<compile_context>
chip_gen: v5e
topology: v5e:2x2
jax: 0.10.0
libtpu: 0.0.40
codegen_flags: <defaults>
</compile_context>

<pallas_src>
import functools

import jax
import jax.numpy as jnp
from jax.experimental import pallas as pl
from jax.experimental.pallas import tpu as pltpu

NP = 128  # lane width: all channel-ish dims are padded to this


# ----------------------------------------------------------------------------
# Tile selection (VMEM-budgeted, generation-robust)
# ----------------------------------------------------------------------------
def _row_tile(m, per_row_bytes, fixed_bytes=0, budget=10 << 20, cap=512):
    """Pick a row tile that divides m, is (8,128)-aligned (multiple of 8 or
    == m), and keeps the double-buffered working set under `budget`.

    Large m (>= 4*cap) is capped at ~cap rows so the grid has >= 4 steps
    (>= 2 per v7x TensorCore for pipeline overlap) while staying well inside
    every generation's scoped-VMEM default; small m takes the largest fitting
    tile to minimise per-step overhead on single-TC chips (v5e/v6e)."""
    limit = m if m < 4 * cap else cap
    cands = []
    if m <= limit:
        cands.append(m)
    t = (min(m, limit) // 8) * 8
    while t >= 8:
        if m % t == 0 and t not in cands:
            cands.append(t)
        t -= 8
    for c in cands:
        if 2 * (c * per_row_bytes + fixed_bytes) <= budget:
            return c
    return cands[-1] if cands else m


# ----------------------------------------------------------------------------
# Pallas kernels
# ----------------------------------------------------------------------------
def _conv_bn_relu_pool_kernel(a_ref, w_ref, scale_ref, shift_ref, o_ref):
    """Fused conv-as-matmul + folded-BN affine + ReLU + 2x2 max-pool.

    a_ref holds the four 2x2-pool parity quarters of the im2col patch matrix
    (leading axis = ph*2+pw), so the pool is a 4-way elementwise max of four
    lane-dense MXU results.  BN affine (scale may be negative) and ReLU are
    applied before the max; ReLU commutes with max so ordering matches the
    PyTorch conv->BN->ReLU->pool semantics."""
    w = w_ref[...]
    scale = scale_ref[...]
    shift = shift_ref[...]

    def quarter(q):
        acc = jnp.dot(a_ref[q], w, preferred_element_type=jnp.float32)
        return jnp.maximum(acc * scale + shift, 0.0)

    pooled = jnp.maximum(jnp.maximum(quarter(0), quarter(1)),
                         jnp.maximum(quarter(2), quarter(3)))
    o_ref[...] = pooled.astype(o_ref.dtype)


def conv_bn_relu_pool(a, w, scale, shift):
    """a: (4, M4, Kp) bf16 pool-parity im2col quarters; w: (Kp, 128) bf16;
    scale/shift: (1, 128) f32.  Returns pooled activations (M4, 128) bf16 with
    rows in (b, h/2, w/2) order, channels lane-padded to 128 (exact zeros)."""
    _, M4, Kp = a.shape
    Np = w.shape[1]
    assert Kp % NP == 0 and Np % NP == 0
    tm = _row_tile(
        M4,
        per_row_bytes=4 * Kp * a.dtype.itemsize + Np * 2,     # 4 A quarters + bf16 out
        fixed_bytes=Kp * Np * w.dtype.itemsize + 2 * Np * 4,  # weight + scale/shift
    )
    return pl.pallas_call(
        _conv_bn_relu_pool_kernel,
        out_shape=jax.ShapeDtypeStruct((M4, Np), jnp.bfloat16),
        grid=(M4 // tm,),
        in_specs=[
            pl.BlockSpec((4, tm, Kp), lambda i: (0, i, 0)),
            pl.BlockSpec((Kp, Np), lambda i: (0, 0)),
            pl.BlockSpec((1, Np), lambda i: (0, 0)),
            pl.BlockSpec((1, Np), lambda i: (0, 0)),
        ],
        out_specs=pl.BlockSpec((tm, Np), lambda i: (i, 0)),
        compiler_params=pltpu.CompilerParams(
            dimension_semantics=("parallel",)),
    )(a, w, scale, shift)


def _mlp_head_kernel(x_ref, w1_ref, b1_ref, w2_ref, b2_ref, o_ref):
    """Fused fc1 + ReLU + fc2; the (tb, 128) intermediate never leaves VMEM."""
    h = jnp.dot(x_ref[...], w1_ref[...], preferred_element_type=jnp.float32)
    h = jnp.maximum(h + b1_ref[...], 0.0)
    out = jnp.dot(h.astype(w2_ref.dtype), w2_ref[...],
                  preferred_element_type=jnp.float32)
    o_ref[...] = (out + b2_ref[...]).astype(o_ref.dtype)


def mlp_head(x, w1, b1, w2, b2):
    """x: (B, Kf) bf16; w1: (Kf, 128) bf16; w2: (128, 128) bf16 -> (B, 128) f32."""
    Bm, Kf = x.shape
    N1 = w1.shape[1]
    N2 = w2.shape[1]
    tb = _row_tile(
        Bm,
        per_row_bytes=Kf * x.dtype.itemsize + N2 * 4,
        fixed_bytes=(Kf * N1 + N1 * N2) * 2 + (N1 + N2) * 4,
    )
    return pl.pallas_call(
        _mlp_head_kernel,
        out_shape=jax.ShapeDtypeStruct((Bm, N2), jnp.float32),
        grid=(Bm // tb,),
        in_specs=[
            pl.BlockSpec((tb, Kf), lambda i: (i, 0)),
            pl.BlockSpec((Kf, N1), lambda i: (0, 0)),
            pl.BlockSpec((1, N1), lambda i: (0, 0)),
            pl.BlockSpec((N1, N2), lambda i: (0, 0)),
            pl.BlockSpec((1, N2), lambda i: (0, 0)),
        ],
        out_specs=pl.BlockSpec((tb, N2), lambda i: (i, 0)),
        compiler_params=pltpu.CompilerParams(
            dimension_semantics=("parallel",)),
    )(x, w1, b1, w2, b2)


# ----------------------------------------------------------------------------
# Plain-JAX glue (layout / padding / parameter packing)
# ----------------------------------------------------------------------------
def _pad_up(n, mult=NP):
    return ((n + mult - 1) // mult) * mult


def _pad2(a, rows, cols):
    r, c = a.shape
    return jnp.pad(a, ((0, rows - r), (0, cols - c)))


def im2col_pooled(x_nhwc, k, pad, k_pad_to):
    """(B, H, W, C) -> (4, B*(Ho//2)*(Wo//2), k_pad_to) im2col patches.

    Leading axis enumerates the 2x2 max-pool parities (ph*2+pw); within each
    quarter, rows are in (b, h//2, w//2) order and features in (kh, kw, c)
    order, zero-padded on the feature dim to k_pad_to (a multiple of 128)."""
    if pad > 0:
        x_nhwc = jnp.pad(x_nhwc, ((0, 0), (pad, pad), (pad, pad), (0, 0)))
    B, H, W, C = x_nhwc.shape
    Ho, Wo = H - k + 1, W - k + 1
    assert Ho % 2 == 0 and Wo % 2 == 0
    cols = []
    for di in range(k):
        for dj in range(k):
            cols.append(x_nhwc[:, di:di + Ho, dj:dj + Wo, :])
    patches = jnp.stack(cols, axis=3).reshape(B, Ho, Wo, k * k * C)
    patches = patches.reshape(B, Ho // 2, 2, Wo // 2, 2, k * k * C)
    patches = jnp.transpose(patches, (2, 4, 0, 1, 3, 5))
    patches = patches.reshape(4, B * (Ho // 2) * (Wo // 2), k * k * C)
    if k_pad_to > k * k * C:
        patches = jnp.pad(patches, ((0, 0), (0, 0), (0, k_pad_to - k * k * C)))
    return patches, (B, Ho // 2, Wo // 2)


def conv_weight_to_mat(w_pt, k_pad_to, n_pad_to):
    """PyTorch conv weight (Cout, Cin, kh, kw) -> zero-padded bf16 (Kp, Np)."""
    cout, cin, kh, kw = w_pt.shape
    wm = jnp.transpose(w_pt, (2, 3, 1, 0)).reshape(kh * kw * cin, cout)
    return _pad2(wm, k_pad_to, n_pad_to).astype(jnp.bfloat16)


def fold_bn(conv_bias, gamma, beta, mean, var, n_pad_to, eps=1e-5):
    """Fold eval-mode BatchNorm (and the conv bias) into padded scale/shift."""
    s = gamma / jnp.sqrt(var + eps)
    t = beta - mean * s
    scale = jnp.pad(s, (0, n_pad_to - s.shape[0]))[None, :].astype(jnp.float32)
    shift = jnp.pad(conv_bias * s + t,
                    (0, n_pad_to - s.shape[0]))[None, :].astype(jnp.float32)
    return scale, shift  # zero pad => padded output channels stay exactly 0


def net_forward(x_nchw, p, num_class):
    B = x_nchw.shape[0]
    x = jnp.transpose(x_nchw, (0, 2, 3, 1)).astype(jnp.bfloat16)  # NHWC, MXU dtype

    # conv1 (5x5, valid) + bn1 + relu + 2x2 maxpool -> one fused Pallas matmul
    a1, (_, h1p, w1p) = im2col_pooled(x, 5, 0, p["conv1_wm"].shape[0])
    y = conv_bn_relu_pool(a1, p["conv1_wm"], p["scale1"], p["shift1"])
    y = y.reshape(B, h1p, w1p, NP)[:, :, :, :20]   # drop lane padding for im2col

    # conv2 (5x5, 'same') + bn2 + relu + 2x2 maxpool -> one fused Pallas matmul
    a2, (_, h2p, w2p) = im2col_pooled(y, 5, 2, p["conv2_wm"].shape[0])
    y = conv_bn_relu_pool(a2, p["conv2_wm"], p["scale2"], p["shift2"])  # (B*64, 128) bf16

    # PyTorch's NCHW flatten is folded into fc1_w at init, so this reshape is a
    # free row-major HBM metadata op straight into the fused fc1+relu+fc2 head.
    y = y.reshape(B, h2p * w2p * NP)
    out = mlp_head(y, p["fc1_w"], p["fc1_b"], p["fc2_w"], p["fc2_b"])
    return out[:, :num_class]


def init_params(key, num_class, num_channel):
    ks = jax.random.split(key, 16)
    f32 = jnp.float32
    # Raw PyTorch-layout parameters.
    conv1_w = 0.1 * jax.random.normal(ks[0], (20, num_channel, 5, 5), f32)
    conv1_b = 0.1 * jax.random.normal(ks[1], (20,), f32)
    bn1_g = 1.0 + 0.1 * jax.random.normal(ks[2], (20,), f32)
    bn1_b = 0.1 * jax.random.normal(ks[3], (20,), f32)
    bn1_m = 0.05 * jax.random.normal(ks[4], (20,), f32)
    bn1_v = 1.0 + 0.1 * jnp.abs(jax.random.normal(ks[5], (20,), f32))
    conv2_w = 0.1 * jax.random.normal(ks[6], (10, 20, 5, 5), f32)
    conv2_b = 0.1 * jax.random.normal(ks[7], (10,), f32)
    bn2_g = 1.0 + 0.1 * jax.random.normal(ks[8], (10,), f32)
    bn2_b = 0.1 * jax.random.normal(ks[9], (10,), f32)
    bn2_m = 0.05 * jax.random.normal(ks[10], (10,), f32)
    bn2_v = 1.0 + 0.1 * jnp.abs(jax.random.normal(ks[11], (10,), f32))
    fc1_w = 0.05 * jax.random.normal(ks[12], (100, 640), f32)  # PyTorch (out, in)
    fc1_b = 0.05 * jax.random.normal(ks[13], (100,), f32)
    fc2_w = 0.05 * jax.random.normal(ks[14], (num_class, 100), f32)
    fc2_b = 0.05 * jax.random.normal(ks[15], (num_class,), f32)

    # Pack into TPU-friendly (K-aligned, lane-dense, bf16) layouts.
    k1 = _pad_up(25 * num_channel)   # 75  -> 128
    k2 = _pad_up(25 * 20)            # 500 -> 512
    p = {}
    p["conv1_wm"] = conv_weight_to_mat(conv1_w, k1, NP)
    p["scale1"], p["shift1"] = fold_bn(conv1_b, bn1_g, bn1_b, bn1_m, bn1_v, NP)
    p["conv2_wm"] = conv_weight_to_mat(conv2_w, k2, NP)
    p["scale2"], p["shift2"] = fold_bn(conv2_b, bn2_g, bn2_b, bn2_m, bn2_v, NP)

    # fc1: fold the PyTorch NCHW flatten (feature order (c, h, w)) into the
    # weight so the pooled conv2 output (rows (b,h,w), lanes c padded to 128)
    # feeds fc1 through a plain free reshape — no transpose / slice launch.
    w1 = fc1_w.reshape(100, 10, 8, 8)            # (out, c, h, w)
    w1 = jnp.transpose(w1, (2, 3, 1, 0))         # (h, w, c, out)
    w1 = jnp.pad(w1, ((0, 0), (0, 0), (0, NP - 10), (0, NP - 100)))
    p["fc1_w"] = w1.reshape(8 * 8 * NP, NP).astype(jnp.bfloat16)      # (8192, 128)
    p["fc1_b"] = jnp.pad(fc1_b, (0, NP - 100))[None, :].astype(f32)   # (1, 128)
    p["fc2_w"] = _pad2(fc2_w.T, NP, NP).astype(jnp.bfloat16)          # (128, 128)
    p["fc2_b"] = jnp.pad(fc2_b, (0, NP - num_class))[None, :].astype(f32)
    return p


if __name__ == "__main__":
    num_class, num_channel = 10, 3
    key = jax.random.PRNGKey(0)
    k_params, k_input = jax.random.split(key)

    params = init_params(k_params, num_class, num_channel)
    # Input spatial size 36x36 so conv1(valid)->pool->conv2(same)->pool lands on
    # the 8x8x10 = 640 features fc1 expects.
    x = jax.random.normal(k_input, (2, num_channel, 36, 36), jnp.float32)

    fwd = jax.jit(functools.partial(net_forward, num_class=num_class))
    out = jax.block_until_ready(fwd(x, params))
    assert out.shape == (2, num_class), out.shape
    print("KERNEL_OK")
</pallas_src>

<mosaic_0001>
module attributes {stable_mosaic.version = 11 : i64} {
  func.func @_conv_bn_relu_pool_kernel(%arg0: i32, %arg1: memref<4x512x128xbf16, #tpu.memory_space<vmem>>, %arg2: memref<128x128xbf16, #tpu.memory_space<vmem>>, %arg3: memref<1x128xf32, #tpu.memory_space<vmem>>, %arg4: memref<1x128xf32, #tpu.memory_space<vmem>>, %arg5: memref<512x128xbf16, #tpu.memory_space<vmem>>) attributes {dimension_semantics = [#tpu.dimension_semantics<parallel>], iteration_bounds = array<i64: 1>, scalar_prefetch = 0 : i64, scratch_operands = 0 : i64, tpu.core_type = #tpu.core_type<tc>, window_params = [{transform_indices = @transform_0, window_bounds = array<i64: 4, 512, 128>}, {pipeline_mode = #tpu.pipeline_mode<synchronous>, transform_indices = @transform_1, window_bounds = array<i64: 128, 128>}, {pipeline_mode = #tpu.pipeline_mode<synchronous>, transform_indices = @transform_2, window_bounds = array<i64: 1, 128>}, {pipeline_mode = #tpu.pipeline_mode<synchronous>, transform_indices = @transform_3, window_bounds = array<i64: 1, 128>}, {transform_indices = @transform_4, window_bounds = array<i64: 512, 128>}]} {
    %c0 = arith.constant 0 : index
    %c0_0 = arith.constant 0 : index
    %0 = vector.load %arg2[%c0, %c0_0] : memref<128x128xbf16, #tpu.memory_space<vmem>>, vector<128x128xbf16>
    %c0_1 = arith.constant 0 : index
    %c0_2 = arith.constant 0 : index
    %1 = vector.load %arg3[%c0_1, %c0_2] : memref<1x128xf32, #tpu.memory_space<vmem>>, vector<1x128xf32>
    %c0_3 = arith.constant 0 : index
    %c0_4 = arith.constant 0 : index
    %2 = vector.load %arg4[%c0_3, %c0_4] : memref<1x128xf32, #tpu.memory_space<vmem>>, vector<1x128xf32>
    %c0_5 = arith.constant 0 : index
    %c0_6 = arith.constant 0 : index
    %c0_7 = arith.constant 0 : index
    %3 = vector.load %arg1[%c0_5, %c0_6, %c0_7] : memref<4x512x128xbf16, #tpu.memory_space<vmem>>, vector<1x512x128xbf16>
    %4 = vector.shape_cast %3 : vector<1x512x128xbf16> to vector<512x128xbf16>
    %cst = arith.constant dense<0.000000e+00> : vector<512x128xf32>
    %5 = tpu.matmul %4, %0, %cst {dimension_numbers = #tpu.dot_dimension_numbers<[1], [0], [0], [1], [0, 0, 1, 1], [], []>} : vector<512x128xbf16>, vector<128x128xbf16>, vector<512x128xf32> -> vector<512x128xf32>
    %6 = vector.broadcast %1 : vector<1x128xf32> to vector<512x128xf32>
    %7 = arith.mulf %5, %6 : vector<512x128xf32>
    %8 = vector.broadcast %2 : vector<1x128xf32> to vector<512x128xf32>
    %9 = arith.addf %7, %8 : vector<512x128xf32>
    %cst_8 = arith.constant 0.000000e+00 : f32
    %10 = vector.broadcast %cst_8 : f32 to vector<512x128xf32>
    %11 = arith.maximumf %9, %10 : vector<512x128xf32>
    %c1 = arith.constant 1 : index
    %c0_9 = arith.constant 0 : index
    %c0_10 = arith.constant 0 : index
    %12 = vector.load %arg1[%c1, %c0_9, %c0_10] : memref<4x512x128xbf16, #tpu.memory_space<vmem>>, vector<1x512x128xbf16>
    %13 = vector.shape_cast %12 : vector<1x512x128xbf16> to vector<512x128xbf16>
    %cst_11 = arith.constant dense<0.000000e+00> : vector<512x128xf32>
    %14 = tpu.matmul %13, %0, %cst_11 {dimension_numbers = #tpu.dot_dimension_numbers<[1], [0], [0], [1], [0, 0, 1, 1], [], []>} : vector<512x128xbf16>, vector<128x128xbf16>, vector<512x128xf32> -> vector<512x128xf32>
    %15 = vector.broadcast %1 : vector<1x128xf32> to vector<512x128xf32>
    %16 = arith.mulf %14, %15 : vector<512x128xf32>
    %17 = vector.broadcast %2 : vector<1x128xf32> to vector<512x128xf32>
    %18 = arith.addf %16, %17 : vector<512x128xf32>
    %cst_12 = arith.constant 0.000000e+00 : f32
    %19 = vector.broadcast %cst_12 : f32 to vector<512x128xf32>
    %20 = arith.maximumf %18, %19 : vector<512x128xf32>
    %21 = arith.maximumf %11, %20 : vector<512x128xf32>
    %c2 = arith.constant 2 : index
    %c0_13 = arith.constant 0 : index
    %c0_14 = arith.constant 0 : index
    %22 = vector.load %arg1[%c2, %c0_13, %c0_14] : memref<4x512x128xbf16, #tpu.memory_space<vmem>>, vector<1x512x128xbf16>
    %23 = vector.shape_cast %22 : vector<1x512x128xbf16> to vector<512x128xbf16>
    %cst_15 = arith.constant dense<0.000000e+00> : vector<512x128xf32>
    %24 = tpu.matmul %23, %0, %cst_15 {dimension_numbers = #tpu.dot_dimension_numbers<[1], [0], [0], [1], [0, 0, 1, 1], [], []>} : vector<512x128xbf16>, vector<128x128xbf16>, vector<512x128xf32> -> vector<512x128xf32>
    %25 = vector.broadcast %1 : vector<1x128xf32> to vector<512x128xf32>
    %26 = arith.mulf %24, %25 : vector<512x128xf32>
    %27 = vector.broadcast %2 : vector<1x128xf32> to vector<512x128xf32>
    %28 = arith.addf %26, %27 : vector<512x128xf32>
    %cst_16 = arith.constant 0.000000e+00 : f32
    %29 = vector.broadcast %cst_16 : f32 to vector<512x128xf32>
    %30 = arith.maximumf %28, %29 : vector<512x128xf32>
    %c3 = arith.constant 3 : index
    %c0_17 = arith.constant 0 : index
    %c0_18 = arith.constant 0 : index
    %31 = vector.load %arg1[%c3, %c0_17, %c0_18] : memref<4x512x128xbf16, #tpu.memory_space<vmem>>, vector<1x512x128xbf16>
    %32 = vector.shape_cast %31 : vector<1x512x128xbf16> to vector<512x128xbf16>
    %cst_19 = arith.constant dense<0.000000e+00> : vector<512x128xf32>
    %33 = tpu.matmul %32, %0, %cst_19 {dimension_numbers = #tpu.dot_dimension_numbers<[1], [0], [0], [1], [0, 0, 1, 1], [], []>} : vector<512x128xbf16>, vector<128x128xbf16>, vector<512x128xf32> -> vector<512x128xf32>
    %34 = vector.broadcast %1 : vector<1x128xf32> to vector<512x128xf32>
    %35 = arith.mulf %33, %34 : vector<512x128xf32>
    %36 = vector.broadcast %2 : vector<1x128xf32> to vector<512x128xf32>
    %37 = arith.addf %35, %36 : vector<512x128xf32>
    %cst_20 = arith.constant 0.000000e+00 : f32
    %38 = vector.broadcast %cst_20 : f32 to vector<512x128xf32>
    %39 = arith.maximumf %37, %38 : vector<512x128xf32>
    %40 = arith.maximumf %30, %39 : vector<512x128xf32>
    %41 = arith.maximumf %21, %40 : vector<512x128xf32>
    %42 = arith.truncf %41 : vector<512x128xf32> to vector<512x128xbf16>
    %c0_21 = arith.constant 0 : index
    %c0_22 = arith.constant 0 : index
    %43 = vector.load %arg5[%c0_21, %c0_22] : memref<512x128xbf16, #tpu.memory_space<vmem>>, vector<512x128xbf16>
    tpu.vector_store %arg5[%c0_21, %c0_22], %42 {strides = array<i32>} : memref<512x128xbf16, #tpu.memory_space<vmem>>, vector<512x128xbf16>,
    return
  }
  func.func @transform_0(%arg0: i32) -> (i32, i32, i32) {
    %c0_i32 = arith.constant 0 : i32
    %c0_i32_0 = arith.constant 0 : i32
    %c0_i32_1 = arith.constant 0 : i32
    return %c0_i32, %arg0, %c0_i32_0 : i32, i32, i32
  }
  func.func @transform_1(%arg0: i32) -> (i32, i32) {
    %c0_i32 = arith.constant 0 : i32
    %c0_i32_0 = arith.constant 0 : i32
    %c0_i32_1 = arith.constant 0 : i32
    return %c0_i32, %c0_i32_0 : i32, i32
  }
  func.func @transform_2(%arg0: i32) -> (i32, i32) {
    %c0_i32 = arith.constant 0 : i32
    %c0_i32_0 = arith.constant 0 : i32
    %c0_i32_1 = arith.constant 0 : i32
    return %c0_i32, %c0_i32_0 : i32, i32
  }
  func.func @transform_3(%arg0: i32) -> (i32, i32) {
    %c0_i32 = arith.constant 0 : i32
    %c0_i32_0 = arith.constant 0 : i32
    %c0_i32_1 = arith.constant 0 : i32
    return %c0_i32, %c0_i32_0 : i32, i32
  }
  func.func @transform_4(%arg0: i32) -> (i32, i32) {
    %c0_i32 = arith.constant 0 : i32
    %c0_i32_0 = arith.constant 0 : i32
    return %arg0, %c0_i32 : i32, i32
  }
}

module attributes {stable_mosaic.version = 11 : i64} {
  func.func @_conv_bn_relu_pool_kernel(%arg0: i32, %arg1: memref<4x128x512xbf16, #tpu.memory_space<vmem>>, %arg2: memref<512x128xbf16, #tpu.memory_space<vmem>>, %arg3: memref<1x128xf32, #tpu.memory_space<vmem>>, %arg4: memref<1x128xf32, #tpu.memory_space<vmem>>, %arg5: memref<128x128xbf16, #tpu.memory_space<vmem>>) attributes {dimension_semantics = [#tpu.dimension_semantics<parallel>], iteration_bounds = array<i64: 1>, scalar_prefetch = 0 : i64, scratch_operands = 0 : i64, tpu.core_type = #tpu.core_type<tc>, window_params = [{transform_indices = @transform_0, window_bounds = array<i64: 4, 128, 512>}, {pipeline_mode = #tpu.pipeline_mode<synchronous>, transform_indices = @transform_1, window_bounds = array<i64: 512, 128>}, {pipeline_mode = #tpu.pipeline_mode<synchronous>, transform_indices = @transform_2, window_bounds = array<i64: 1, 128>}, {pipeline_mode = #tpu.pipeline_mode<synchronous>, transform_indices = @transform_3, window_bounds = array<i64: 1, 128>}, {transform_indices = @transform_4, window_bounds = array<i64: 128, 128>}]} {
    %c0 = arith.constant 0 : index
    %c0_0 = arith.constant 0 : index
    %0 = vector.load %arg2[%c0, %c0_0] : memref<512x128xbf16, #tpu.memory_space<vmem>>, vector<512x128xbf16>
    %c0_1 = arith.constant 0 : index
    %c0_2 = arith.constant 0 : index
    %1 = vector.load %arg3[%c0_1, %c0_2] : memref<1x128xf32, #tpu.memory_space<vmem>>, vector<1x128xf32>
    %c0_3 = arith.constant 0 : index
    %c0_4 = arith.constant 0 : index
    %2 = vector.load %arg4[%c0_3, %c0_4] : memref<1x128xf32, #tpu.memory_space<vmem>>, vector<1x128xf32>
    %c0_5 = arith.constant 0 : index
    %c0_6 = arith.constant 0 : index
    %c0_7 = arith.constant 0 : index
    %3 = vector.load %arg1[%c0_5, %c0_6, %c0_7] : memref<4x128x512xbf16, #tpu.memory_space<vmem>>, vector<1x128x512xbf16>
    %4 = vector.shape_cast %3 : vector<1x128x512xbf16> to vector<128x512xbf16>
    %cst = arith.constant dense<0.000000e+00> : vector<128x128xf32>
    %5 = tpu.matmul %4, %0, %cst {dimension_numbers = #tpu.dot_dimension_numbers<[1], [0], [0], [1], [0, 0, 1, 1], [], []>} : vector<128x512xbf16>, vector<512x128xbf16>, vector<128x128xf32> -> vector<128x128xf32>
    %6 = vector.broadcast %1 : vector<1x128xf32> to vector<128x128xf32>
    %7 = arith.mulf %5, %6 : vector<128x128xf32>
    %8 = vector.broadcast %2 : vector<1x128xf32> to vector<128x128xf32>
    %9 = arith.addf %7, %8 : vector<128x128xf32>
    %cst_8 = arith.constant 0.000000e+00 : f32
    %10 = vector.broadcast %cst_8 : f32 to vector<128x128xf32>
    %11 = arith.maximumf %9, %10 : vector<128x128xf32>
    %c1 = arith.constant 1 : index
    %c0_9 = arith.constant 0 : index
    %c0_10 = arith.constant 0 : index
    %12 = vector.load %arg1[%c1, %c0_9, %c0_10] : memref<4x128x512xbf16, #tpu.memory_space<vmem>>, vector<1x128x512xbf16>
    %13 = vector.shape_cast %12 : vector<1x128x512xbf16> to vector<128x512xbf16>
    %cst_11 = arith.constant dense<0.000000e+00> : vector<128x128xf32>
    %14 = tpu.matmul %13, %0, %cst_11 {dimension_numbers = #tpu.dot_dimension_numbers<[1], [0], [0], [1], [0, 0, 1, 1], [], []>} : vector<128x512xbf16>, vector<512x128xbf16>, vector<128x128xf32> -> vector<128x128xf32>
    %15 = vector.broadcast %1 : vector<1x128xf32> to vector<128x128xf32>
    %16 = arith.mulf %14, %15 : vector<128x128xf32>
    %17 = vector.broadcast %2 : vector<1x128xf32> to vector<128x128xf32>
    %18 = arith.addf %16, %17 : vector<128x128xf32>
    %cst_12 = arith.constant 0.000000e+00 : f32
    %19 = vector.broadcast %cst_12 : f32 to vector<128x128xf32>
    %20 = arith.maximumf %18, %19 : vector<128x128xf32>
    %21 = arith.maximumf %11, %20 : vector<128x128xf32>
    %c2 = arith.constant 2 : index
    %c0_13 = arith.constant 0 : index
    %c0_14 = arith.constant 0 : index
    %22 = vector.load %arg1[%c2, %c0_13, %c0_14] : memref<4x128x512xbf16, #tpu.memory_space<vmem>>, vector<1x128x512xbf16>
    %23 = vector.shape_cast %22 : vector<1x128x512xbf16> to vector<128x512xbf16>
    %cst_15 = arith.constant dense<0.000000e+00> : vector<128x128xf32>
    %24 = tpu.matmul %23, %0, %cst_15 {dimension_numbers = #tpu.dot_dimension_numbers<[1], [0], [0], [1], [0, 0, 1, 1], [], []>} : vector<128x512xbf16>, vector<512x128xbf16>, vector<128x128xf32> -> vector<128x128xf32>
    %25 = vector.broadcast %1 : vector<1x128xf32> to vector<128x128xf32>
    %26 = arith.mulf %24, %25 : vector<128x128xf32>
    %27 = vector.broadcast %2 : vector<1x128xf32> to vector<128x128xf32>
    %28 = arith.addf %26, %27 : vector<128x128xf32>
    %cst_16 = arith.constant 0.000000e+00 : f32
    %29 = vector.broadcast %cst_16 : f32 to vector<128x128xf32>
    %30 = arith.maximumf %28, %29 : vector<128x128xf32>
    %c3 = arith.constant 3 : index
    %c0_17 = arith.constant 0 : index
    %c0_18 = arith.constant 0 : index
    %31 = vector.load %arg1[%c3, %c0_17, %c0_18] : memref<4x128x512xbf16, #tpu.memory_space<vmem>>, vector<1x128x512xbf16>
    %32 = vector.shape_cast %31 : vector<1x128x512xbf16> to vector<128x512xbf16>
    %cst_19 = arith.constant dense<0.000000e+00> : vector<128x128xf32>
    %33 = tpu.matmul %32, %0, %cst_19 {dimension_numbers = #tpu.dot_dimension_numbers<[1], [0], [0], [1], [0, 0, 1, 1], [], []>} : vector<128x512xbf16>, vector<512x128xbf16>, vector<128x128xf32> -> vector<128x128xf32>
    %34 = vector.broadcast %1 : vector<1x128xf32> to vector<128x128xf32>
    %35 = arith.mulf %33, %34 : vector<128x128xf32>
    %36 = vector.broadcast %2 : vector<1x128xf32> to vector<128x128xf32>
    %37 = arith.addf %35, %36 : vector<128x128xf32>
    %cst_20 = arith.constant 0.000000e+00 : f32
    %38 = vector.broadcast %cst_20 : f32 to vector<128x128xf32>
    %39 = arith.maximumf %37, %38 : vector<128x128xf32>
    %40 = arith.maximumf %30, %39 : vector<128x128xf32>
    %41 = arith.maximumf %21, %40 : vector<128x128xf32>
    %42 = arith.truncf %41 : vector<128x128xf32> to vector<128x128xbf16>
    %c0_21 = arith.constant 0 : index
    %c0_22 = arith.constant 0 : index
    %43 = vector.load %arg5[%c0_21, %c0_22] : memref<128x128xbf16, #tpu.memory_space<vmem>>, vector<128x128xbf16>
    tpu.vector_store %arg5[%c0_21, %c0_22], %42 {strides = array<i32>} : memref<128x128xbf16, #tpu.memory_space<vmem>>, vector<128x128xbf16>,
    return
  }
  func.func @transform_0(%arg0: i32) -> (i32, i32, i32) {
    %c0_i32 = arith.constant 0 : i32
    %c0_i32_0 = arith.constant 0 : i32
    %c0_i32_1 = arith.constant 0 : i32
    return %c0_i32, %arg0, %c0_i32_0 : i32, i32, i32
  }
  func.func @transform_1(%arg0: i32) -> (i32, i32) {
    %c0_i32 = arith.constant 0 : i32
    %c0_i32_0 = arith.constant 0 : i32
    %c0_i32_1 = arith.constant 0 : i32
    return %c0_i32, %c0_i32_0 : i32, i32
  }
  func.func @transform_2(%arg0: i32) -> (i32, i32) {
    %c0_i32 = arith.constant 0 : i32
    %c0_i32_0 = arith.constant 0 : i32
    %c0_i32_1 = arith.constant 0 : i32
    return %c0_i32, %c0_i32_0 : i32, i32
  }
  func.func @transform_3(%arg0: i32) -> (i32, i32) {
    %c0_i32 = arith.constant 0 : i32
    %c0_i32_0 = arith.constant 0 : i32
    %c0_i32_1 = arith.constant 0 : i32
    return %c0_i32, %c0_i32_0 : i32, i32
  }
  func.func @transform_4(%arg0: i32) -> (i32, i32) {
    %c0_i32 = arith.constant 0 : i32
    %c0_i32_0 = arith.constant 0 : i32
    return %arg0, %c0_i32 : i32, i32
  }
}

module attributes {stable_mosaic.version = 11 : i64} {
  func.func @_mlp_head_kernel(%arg0: i32, %arg1: memref<2x8192xbf16, #tpu.memory_space<vmem>>, %arg2: memref<8192x128xbf16, #tpu.memory_space<vmem>>, %arg3: memref<1x128xf32, #tpu.memory_space<vmem>>, %arg4: memref<128x128xbf16, #tpu.memory_space<vmem>>, %arg5: memref<1x128xf32, #tpu.memory_space<vmem>>, %arg6: memref<2x128xf32, #tpu.memory_space<vmem>>) attributes {dimension_semantics = [#tpu.dimension_semantics<parallel>], iteration_bounds = array<i64: 1>, scalar_prefetch = 0 : i64, scratch_operands = 0 : i64, tpu.core_type = #tpu.core_type<tc>, window_params = [{transform_indices = @transform_0, window_bounds = array<i64: 2, 8192>}, {pipeline_mode = #tpu.pipeline_mode<synchronous>, transform_indices = @transform_1, window_bounds = array<i64: 8192, 128>}, {pipeline_mode = #tpu.pipeline_mode<synchronous>, transform_indices = @transform_2, window_bounds = array<i64: 1, 128>}, {pipeline_mode = #tpu.pipeline_mode<synchronous>, transform_indices = @transform_3, window_bounds = array<i64: 128, 128>}, {pipeline_mode = #tpu.pipeline_mode<synchronous>, transform_indices = @transform_4, window_bounds = array<i64: 1, 128>}, {transform_indices = @transform_5, window_bounds = array<i64: 2, 128>}]} {
    %c0 = arith.constant 0 : index
    %c0_0 = arith.constant 0 : index
    %0 = vector.load %arg1[%c0, %c0_0] : memref<2x8192xbf16, #tpu.memory_space<vmem>>, vector<2x8192xbf16>
    %c0_1 = arith.constant 0 : index
    %c0_2 = arith.constant 0 : index
    %1 = vector.load %arg2[%c0_1, %c0_2] : memref<8192x128xbf16, #tpu.memory_space<vmem>>, vector<8192x128xbf16>
    %cst = arith.constant dense<0.000000e+00> : vector<2x128xf32>
    %2 = tpu.matmul %0, %1, %cst {dimension_numbers = #tpu.dot_dimension_numbers<[1], [0], [0], [1], [0, 0, 1, 1], [], []>} : vector<2x8192xbf16>, vector<8192x128xbf16>, vector<2x128xf32> -> vector<2x128xf32>
    %c0_3 = arith.constant 0 : index
    %c0_4 = arith.constant 0 : index
    %3 = vector.load %arg3[%c0_3, %c0_4] : memref<1x128xf32, #tpu.memory_space<vmem>>, vector<1x128xf32>
    %4 = vector.broadcast %3 : vector<1x128xf32> to vector<2x128xf32>
    %5 = arith.addf %2, %4 : vector<2x128xf32>
    %cst_5 = arith.constant 0.000000e+00 : f32
    %6 = vector.broadcast %cst_5 : f32 to vector<2x128xf32>
    %7 = arith.maximumf %5, %6 : vector<2x128xf32>
    %8 = arith.truncf %7 : vector<2x128xf32> to vector<2x128xbf16>
    %c0_6 = arith.constant 0 : index
    %c0_7 = arith.constant 0 : index
    %9 = vector.load %arg4[%c0_6, %c0_7] : memref<128x128xbf16, #tpu.memory_space<vmem>>, vector<128x128xbf16>
    %cst_8 = arith.constant dense<0.000000e+00> : vector<2x128xf32>
    %10 = tpu.matmul %8, %9, %cst_8 {dimension_numbers = #tpu.dot_dimension_numbers<[1], [0], [0], [1], [0, 0, 1, 1], [], []>} : vector<2x128xbf16>, vector<128x128xbf16>, vector<2x128xf32> -> vector<2x128xf32>
    %c0_9 = arith.constant 0 : index
    %c0_10 = arith.constant 0 : index
    %11 = vector.load %arg5[%c0_9, %c0_10] : memref<1x128xf32, #tpu.memory_space<vmem>>, vector<1x128xf32>
    %12 = vector.broadcast %11 : vector<1x128xf32> to vector<2x128xf32>
    %13 = arith.addf %10, %12 : vector<2x128xf32>
    %c0_11 = arith.constant 0 : index
    %c0_12 = arith.constant 0 : index
    %14 = vector.load %arg6[%c0_11, %c0_12] : memref<2x128xf32, #tpu.memory_space<vmem>>, vector<2x128xf32>
    tpu.vector_store %arg6[%c0_11, %c0_12], %13 {strides = array<i32>} : memref<2x128xf32, #tpu.memory_space<vmem>>, vector<2x128xf32>,
    return
  }
  func.func @transform_0(%arg0: i32) -> (i32, i32) {
    %c0_i32 = arith.constant 0 : i32
    %c0_i32_0 = arith.constant 0 : i32
    return %arg0, %c0_i32 : i32, i32
  }
  func.func @transform_1(%arg0: i32) -> (i32, i32) {
    %c0_i32 = arith.constant 0 : i32
    %c0_i32_0 = arith.constant 0 : i32
    %c0_i32_1 = arith.constant 0 : i32
    return %c0_i32, %c0_i32_0 : i32, i32
  }
  func.func @transform_2(%arg0: i32) -> (i32, i32) {
    %c0_i32 = arith.constant 0 : i32
    %c0_i32_0 = arith.constant 0 : i32
    %c0_i32_1 = arith.constant 0 : i32
    return %c0_i32, %c0_i32_0 : i32, i32
  }
  func.func @transform_3(%arg0: i32) -> (i32, i32) {
    %c0_i32 = arith.constant 0 : i32
    %c0_i32_0 = arith.constant 0 : i32
    %c0_i32_1 = arith.constant 0 : i32
    return %c0_i32, %c0_i32_0 : i32, i32
  }
  func.func @transform_4(%arg0: i32) -> (i32, i32) {
    %c0_i32 = arith.constant 0 : i32
    %c0_i32_0 = arith.constant 0 : i32
    %c0_i32_1 = arith.constant 0 : i32
    return %c0_i32, %c0_i32_0 : i32, i32
  }
  func.func @transform_5(%arg0: i32) -> (i32, i32) {
    %c0_i32 = arith.constant 0 : i32
    %c0_i32_0 = arith.constant 0 : i32
    return %arg0, %c0_i32 : i32, i32
  }
}

</mosaic_0001>

<bundles_post_ra>
// kernel: net_forward.3
= control target key start
LH: loop header
LB: loop body
LE: loop exit
PB: predicated region body
PF: predicated region fallthrough
CT: control target
= control target key end

     0   :  { %s5024_s1 = inlined_call_operand.vmem [shape: bf16[128,128], index: 1, kind: input, shape index: {}]   ;;  %s5025_s2 = inlined_call_operand.vmem [shape: f32[1,128], index: 2, kind: input, shape index: {}]   ;;  %s5026_s3 = inlined_call_operand.vmem [shape: f32[1,128], index: 3, kind: input, shape index: {}]   ;;  %s5027_s0 = inlined_call_operand.vmem [shape: bf16[4,512,128], index: 0, kind: input, shape index: {}]   ;;  %s5028_s4 = inlined_call_operand.vmem [shape: bf16[512,128], index: 4, kind: output, shape index: {}]  }
   0x1   :  { %v3627_v0 = vld [vmem:[%s5024_s1 + $0x38] sm:$0xff]  ;;  %v3626_v1 = vld [vmem:[%s5024_s1 + $0x30] sm:$0xff]  ;;  %v3625_v2 = vld [vmem:[%s5024_s1 + $0x28] sm:$0xff] }
   0x2   :  { %339 = vmatpush.bf16.msra.mxu0 %v3627_v0  ;;  %963 = vmatpush.bf16.msra.mxu1 %v3627_v0  ;;  %v3624_v3 = vld [vmem:[%s5024_s1 + $0x20] sm:$0xff]  ;;  %v3623_v4 = vld [vmem:[%s5024_s1 + $0x18] sm:$0xff]  ;;  %v3622_v5 = vld [vmem:[%s5024_s1 + $0x10] sm:$0xff] }
   0x3   :  { %1645 = vmatpush.bf16.msra.mxu2 %v3627_v0  ;;  %2263 = vmatpush.bf16.msra.mxu3 %v3627_v0  ;;  %v3621_v6 = vld [vmem:[%s5024_s1 + $0x8] sm:$0xff]  ;;  %v3620_v7 = vld [vmem:[%s5024_s1] sm:$0xff]  ;;  %v3630_v16 = vld [vmem:[%s5027_s0 + $0x10] sm:$0xff] }
   0x4   :  { %v3628_v8 = vld [vmem:[%s5027_s0] sm:$0xff]  ;;  %v3629_v12 = vld [vmem:[%s5027_s0 + $0x8] sm:$0xff]  ;;  %v3662_v17 = vld [vmem:[%s5027_s0 + $0x110] sm:$0xff] }
   0x5   :  { %v3660_v9 = vld [vmem:[%s5027_s0 + $0x100] sm:$0xff]  ;;  %v3661_v13 = vld [vmem:[%s5027_s0 + $0x108] sm:$0xff]  ;;  %v3694_v18 = vld [vmem:[%s5027_s0 + $0x210] sm:$0xff] }
   0x6   :  { %340 = vmatpush.bf16.msra.mxu0 %v3626_v1  ;;  %964 = vmatpush.bf16.msra.mxu1 %v3626_v1  ;;  %v3692_v10 = vld [vmem:[%s5027_s0 + $0x200] sm:$0xff]  ;;  %v3693_v14 = vld [vmem:[%s5027_s0 + $0x208] sm:$0xff]  ;;  %v3726_v19 = vld [vmem:[%s5027_s0 + $0x310] sm:$0xff] }
   0x7   :  { %1646 = vmatpush.bf16.msra.mxu2 %v3626_v1  ;;  %2264 = vmatpush.bf16.msra.mxu3 %v3626_v1  ;;  %v3724_v11 = vld [vmem:[%s5027_s0 + $0x300] sm:$0xff]  ;;  %v3725_v15 = vld [vmem:[%s5027_s0 + $0x308] sm:$0xff]  ;;  %v3631_v20 = vld [vmem:[%s5027_s0 + $0x18] sm:$0xff] }
   0x8   :  { %v3663_v21 = vld [vmem:[%s5027_s0 + $0x118] sm:$0xff]  ;;  %v3632_v24 = vld [vmem:[%s5027_s0 + $0x20] sm:$0xff]  ;;  %v3633_v28 = vld [vmem:[%s5027_s0 + $0x28] sm:$0xff] }
   0x9   :  { %v3695_v22 = vld [vmem:[%s5027_s0 + $0x218] sm:$0xff]  ;;  %v3664_v25 = vld [vmem:[%s5027_s0 + $0x120] sm:$0xff]  ;;  %v3665_v29 = vld [vmem:[%s5027_s0 + $0x128] sm:$0xff] }
   0xa   :  { %341 = vmatpush.bf16.msra.mxu0 %v3625_v2  ;;  %965 = vmatpush.bf16.msra.mxu1 %v3625_v2  ;;  %v3727_v23 = vld [vmem:[%s5027_s0 + $0x318] sm:$0xff]  ;;  %v3696_v26 = vld [vmem:[%s5027_s0 + $0x220] sm:$0xff]  ;;  %v3697_v30 = vld [vmem:[%s5027_s0 + $0x228] sm:$0xff] }
   0xb   :  { %1647 = vmatpush.bf16.msra.mxu2 %v3625_v2  ;;  %2265 = vmatpush.bf16.msra.mxu3 %v3625_v2  ;;  %v3728_v27 = vld [vmem:[%s5027_s0 + $0x320] sm:$0xff]  ;;  %v3729_v31 = vld [vmem:[%s5027_s0 + $0x328] sm:$0xff]  ;;  %v3634_v32 = vld [vmem:[%s5027_s0 + $0x30] sm:$0xff] }
   0xc   :  { %v3666_v33 = vld [vmem:[%s5027_s0 + $0x130] sm:$0xff]  ;;  %v3635_v36 = vld [vmem:[%s5027_s0 + $0x38] sm:$0xff]  ;;  %v3636_v40 = vld [vmem:[%s5027_s0 + $0x40] sm:$0xff] }
   0xd   :  { %v3698_v34 = vld [vmem:[%s5027_s0 + $0x230] sm:$0xff]  ;;  %v3667_v37 = vld [vmem:[%s5027_s0 + $0x138] sm:$0xff]  ;;  %v3668_v41 = vld [vmem:[%s5027_s0 + $0x140] sm:$0xff] }
   0xe   :  { %342 = vmatpush.bf16.msra.mxu0 %v3624_v3  ;;  %966 = vmatpush.bf16.msra.mxu1 %v3624_v3  ;;  %v3730_v35 = vld [vmem:[%s5027_s0 + $0x330] sm:$0xff]  ;;  %v3699_v38 = vld [vmem:[%s5027_s0 + $0x238] sm:$0xff]  ;;  %v3700_v44 = vld [vmem:[%s5027_s0 + $0x240] sm:$0xff] }
   0xf   :  { %1648 = vmatpush.bf16.msra.mxu2 %v3624_v3  ;;  %2266 = vmatpush.bf16.msra.mxu3 %v3624_v3  ;;  %v3731_v39 = vld [vmem:[%s5027_s0 + $0x338] sm:$0xff]  ;;  %v3732_v45 = vld [vmem:[%s5027_s0 + $0x340] sm:$0xff] }
  0x10   :  { %v4113_v46 = vld [vmem:[%s5025_s2] ss:$0 sm:$0xff] }
  0x11   :  { %v4119_v48 = vld [vmem:[%s5026_s3] ss:$0 sm:$0xff] }
  0x12   :  { %343 = vmatpush.bf16.msra.mxu0 %v3623_v4  ;;  %967 = vmatpush.bf16.msra.mxu1 %v3623_v4 }
  0x13   :  { %1649 = vmatpush.bf16.msra.mxu2 %v3623_v4  ;;  %2267 = vmatpush.bf16.msra.mxu3 %v3623_v4  ;;  %v3637_v4 = vld [vmem:[%s5027_s0 + $0x48] sm:$0xff] }
  0x16   :  { %344 = vmatpush.bf16.msra.mxu0 %v3622_v5  ;;  %968 = vmatpush.bf16.msra.mxu1 %v3622_v5 }
  0x17   :  { %1650 = vmatpush.bf16.msra.mxu2 %v3622_v5  ;;  %2268 = vmatpush.bf16.msra.mxu3 %v3622_v5  ;;  %v3669_v5 = vld [vmem:[%s5027_s0 + $0x148] sm:$0xff] }
  0x1a   :  { %345 = vmatpush.bf16.msra.mxu0 %v3621_v6  ;;  %969 = vmatpush.bf16.msra.mxu1 %v3621_v6 }
  0x1b   :  { %1651 = vmatpush.bf16.msra.mxu2 %v3621_v6  ;;  %2269 = vmatpush.bf16.msra.mxu3 %v3621_v6 }
  0x1e   :  { %346 = vmatpush.bf16.msra.mxu0 %v3620_v7  ;;  %970 = vmatpush.bf16.msra.mxu1 %v3620_v7 }
  0x1f   :  { %1652 = vmatpush.bf16.msra.mxu2 %v3620_v7  ;;  %2270 = vmatpush.bf16.msra.mxu3 %v3620_v7 }
  0x21   :  { %347 = vmatmul.bf16.vlgmr.msra.gmra.mxu0 %v3628_v8  ;;  %971 = vmatmul.bf16.vlgmr.msra.gmra.mxu1 %v3660_v9 }
  0x22   :  { %1653 = vmatmul.bf16.vlgmr.msra.gmra.mxu2 %v3692_v10  ;;  %2271 = vmatmul.bf16.vlgmr.msra.gmra.mxu3 %v3724_v11 }
  0x31   :  { %352 = vmatmul.bf16.gmra.mxu0 %v3629_v12  ;;  %976 = vmatmul.bf16.gmra.mxu1 %v3661_v13  ;;  %v3701_v12 = vld [vmem:[%s5027_s0 + $0x248] sm:$0xff] }
  0x32   :  { %1658 = vmatmul.bf16.gmra.mxu2 %v3693_v14  ;;  %2276 = vmatmul.bf16.gmra.mxu3 %v3725_v15  ;;  %v3733_v13 = vld [vmem:[%s5027_s0 + $0x348] sm:$0xff] }
  0x41   :  { %357 = vmatmul.bf16.gmra.mxu0 %v3630_v16  ;;  %981 = vmatmul.bf16.gmra.mxu1 %v3662_v17 }
  0x42   :  { %1663 = vmatmul.bf16.gmra.mxu2 %v3694_v18  ;;  %2281 = vmatmul.bf16.gmra.mxu3 %v3726_v19 }
  0x51   :  { %362 = vmatmul.bf16.gmra.mxu0 %v3631_v20  ;;  %986 = vmatmul.bf16.gmra.mxu1 %v3663_v21 }
  0x52   :  { %1668 = vmatmul.bf16.gmra.mxu2 %v3695_v22  ;;  %2286 = vmatmul.bf16.gmra.mxu3 %v3727_v23 }
  0x61   :  { %367 = vmatmul.bf16.gmra.mxu0 %v3632_v24  ;;  %991 = vmatmul.bf16.gmra.mxu1 %v3664_v25 }
  0x62   :  { %1673 = vmatmul.bf16.gmra.mxu2 %v3696_v26  ;;  %2291 = vmatmul.bf16.gmra.mxu3 %v3728_v27 }
  0x71   :  { %372 = vmatmul.bf16.gmra.mxu0 %v3633_v28  ;;  %996 = vmatmul.bf16.gmra.mxu1 %v3665_v29 }
  0x72   :  { %1678 = vmatmul.bf16.gmra.mxu2 %v3697_v30  ;;  %2296 = vmatmul.bf16.gmra.mxu3 %v3729_v31 }
  0x81   :  { %377 = vmatmul.bf16.gmra.mxu0 %v3634_v32  ;;  %1001 = vmatmul.bf16.gmra.mxu1 %v3666_v33 }
  0x82   :  { %1683 = vmatmul.bf16.gmra.mxu2 %v3698_v34  ;;  %2301 = vmatmul.bf16.gmra.mxu3 %v3730_v35 }
  0x91   :  { %382 = vmatmul.bf16.gmra.mxu0 %v3635_v36  ;;  %1006 = vmatmul.bf16.gmra.mxu1 %v3667_v37 }
  0x92   :  { %1688 = vmatmul.bf16.gmra.mxu2 %v3699_v38  ;;  %2306 = vmatmul.bf16.gmra.mxu3 %v3731_v39 }
  0x9e   :  { %v348_v42 = vpop.f32.mrf.mxu0  ;;  %v972_v43 = vpop.f32.mrf.mxu1 }
  0x9f   :  { %v511_v47 = vmul.f32 %v4113_v46, %v348_v42  ;;  %v1132_v49 = vmul.f32 %v4113_v46, %v972_v43 }
  0xa1   :  { %387 = vmatmul.bf16.gmra.mxu0 %v3636_v40  ;;  %1011 = vmatmul.bf16.gmra.mxu1 %v3668_v41  ;;  %v578_v58 = vadd.f32 %v4119_v48, %v511_v47  ;;  %v1196_v59 = vadd.f32 %v4119_v48, %v1132_v49  ;;  %v3638_v49 = vld [vmem:[%s5027_s0 + $0x50] sm:$0xff] }
  0xa2   :  { %1693 = vmatmul.bf16.gmra.mxu2 %v3700_v44  ;;  %2311 = vmatmul.bf16.gmra.mxu3 %v3732_v45 }
  0xa3   :  { %v642_v0 = vmax.f32 %v578_v58, 0.0  ;;  %v1260_v1 = vmax.f32 %v1196_v59, 0.0  ;;  %v3734_v58 = vld [vmem:[%s5027_s0 + $0x350] sm:$0xff] }
  0xa5   :  { %v1654_v50 = vpop.f32.mrf.mxu2  ;;  %v2272_v51 = vpop.f32.mrf.mxu3  ;;  %v1324_v18 = vmax.f32 %v642_v0, %v1260_v1 }
  0xa6   :  { %v1814_v52 = vmul.f32 %v4113_v46, %v1654_v50  ;;  %v2432_v53 = vmul.f32 %v4113_v46, %v2272_v51  ;;  %v350_v54 = vpop.f32.mrf.mxu0  ;;  %v974_v55 = vpop.f32.mrf.mxu1  ;;  %v3670_v50 = vld [vmem:[%s5027_s0 + $0x150] sm:$0xff] }
  0xa7   :  { %v512_v56 = vmul.f32 %v4113_v46, %v350_v54  ;;  %v1133_v57 = vmul.f32 %v4113_v46, %v974_v55 }
  0xa8   :  { %v1878_v60 = vadd.f32 %v4119_v48, %v1814_v52  ;;  %v2496_v61 = vadd.f32 %v4119_v48, %v2432_v53 }
  0xa9   :  { %v579_v62 = vadd.f32 %v4119_v48, %v512_v56  ;;  %v1197_v63 = vadd.f32 %v4119_v48, %v1133_v57  ;;  %v3702_v57 = vld [vmem:[%s5027_s0 + $0x250] sm:$0xff] }
  0xaa   :  { %v1942_v6 = vmax.f32 %v1878_v60, 0.0  ;;  %v2560_v7 = vmax.f32 %v2496_v61, 0.0 }
  0xab   :  { %v643_v14 = vmax.f32 %v579_v62, 0.0  ;;  %v1261_v15 = vmax.f32 %v1197_v63, 0.0 }
  0xac   :  { %v2624_v19 = vmax.f32 %v1942_v6, %v2560_v7 }
  0xad   :  { %v1656_v2 = vpop.f32.mrf.mxu2  ;;  %v2274_v3 = vpop.f32.mrf.mxu3  ;;  %v1325_v22 = vmax.f32 %v643_v14, %v1261_v15 }
  0xae   :  { %v1815_v8 = vmul.f32 %v4113_v46, %v1656_v2  ;;  %v2433_v9 = vmul.f32 %v4113_v46, %v2274_v3  ;;  %v353_v10 = vpop.f32.mrf.mxu0  ;;  %v977_v11 = vpop.f32.mrf.mxu1  ;;  %v2688_v28 = vmax.f32 %v1324_v18, %v2624_v19 }
  0xaf   :  { %v513_v24 = vmul.f32 %v4113_v46, %v353_v10  ;;  %v1134_v25 = vmul.f32 %v4113_v46, %v977_v11 }
  0xb0   :  { %v1879_v16 = vadd.f32 %v4119_v48, %v1815_v8  ;;  %v2497_v17 = vadd.f32 %v4119_v48, %v2433_v9 }
  0xb1   :  { %392 = vmatmul.bf16.gmra.mxu0 %v3637_v4  ;;  %1016 = vmatmul.bf16.gmra.mxu1 %v3669_v5  ;;  %v580_v37 = vadd.f32 %v4119_v48, %v513_v24  ;;  %v1198_v38 = vadd.f32 %v4119_v48, %v1134_v25 }
  0xb2   :  { %v1943_v20 = vmax.f32 %v1879_v16, 0.0  ;;  %v2561_v21 = vmax.f32 %v2497_v17, 0.0  ;;  %1698 = vmatmul.bf16.gmra.mxu2 %v3701_v12  ;;  %2316 = vmatmul.bf16.gmra.mxu3 %v3733_v13 }
  0xb3   :  { %v644_v43 = vmax.f32 %v580_v37, 0.0  ;;  %v1262_v44 = vmax.f32 %v1198_v38, 0.0  ;;  %v3735_v37 = vld [vmem:[%s5027_s0 + $0x358] sm:$0xff] }
  0xb4   :  { %v2625_v23 = vmax.f32 %v1943_v20, %v2561_v21 }
  0xb5   :  { %v1659_v26 = vpop.f32.mrf.mxu2  ;;  %v2277_v27 = vpop.f32.mrf.mxu3  ;;  %v1326_v63 = vmax.f32 %v644_v43, %v1262_v44 }
  0xb6   :  { %v2689_v29 = vmax.f32 %v1325_v22, %v2625_v23  ;;  %v1816_v30 = vmul.f32 %v4113_v46, %v1659_v26  ;;  %v2434_v31 = vmul.f32 %v4113_v46, %v2277_v27  ;;  %v355_v32 = vpop.f32.mrf.mxu0  ;;  %v979_v33 = vpop.f32.mrf.mxu1 }
  0xb7   :  { %v514_v35 = vmul.f32 %v4113_v46, %v355_v32  ;;  %v1135_v36 = vmul.f32 %v4113_v46, %v979_v33 }
  0xb8   :  { %v3759_v34 = vpack.c.bf16 %v2689_v29, %v2688_v28  ;;  %v1880_v39 = vadd.f32 %v4119_v48, %v1816_v30  ;;  %v2498_v40 = vadd.f32 %v4119_v48, %v2434_v31  ;;  %v3639_v28 = vld [vmem:[%s5027_s0 + $0x58] sm:$0xff] }
  0xb9   :  { %v581_v41 = vadd.f32 %v4119_v48, %v514_v35  ;;  %v1199_v42 = vadd.f32 %v4119_v48, %v1135_v36  ;;  %v3671_v29 = vld [vmem:[%s5027_s0 + $0x158] sm:$0xff] }
  0xba   :  { %3760 = vst [vmem:[%s5028_s4] sm:$0xff] %v3759_v34   ;;  %v1944_v51 = vmax.f32 %v1880_v39, 0.0  ;;  %v2562_v52 = vmax.f32 %v2498_v40, 0.0  ;;  %v3703_v36 = vld [vmem:[%s5027_s0 + $0x258] sm:$0xff] }
  0xbb   :  { %v645_v59 = vmax.f32 %v581_v41, 0.0  ;;  %v1263_v60 = vmax.f32 %v1199_v42, 0.0 }
  0xbc   :  { %v2626_v0 = vmax.f32 %v1944_v51, %v2562_v52 }
  0xbd   :  { %v1661_v45 = vpop.f32.mrf.mxu2  ;;  %v2279_v47 = vpop.f32.mrf.mxu3  ;;  %v1327_v3 = vmax.f32 %v645_v59, %v1263_v60 }
  0xbe   :  { %v1817_v53 = vmul.f32 %v4113_v46, %v1661_v45  ;;  %v2435_v54 = vmul.f32 %v4113_v46, %v2279_v47  ;;  %v358_v55 = vpop.f32.mrf.mxu0  ;;  %v982_v56 = vpop.f32.mrf.mxu1  ;;  %v2690_v9 = vmax.f32 %v1326_v63, %v2626_v0 }
  0xbf   :  { %v515_v5 = vmul.f32 %v4113_v46, %v358_v55  ;;  %v1136_v6 = vmul.f32 %v4113_v46, %v982_v56 }
  0xc0   :  { %v1881_v61 = vadd.f32 %v4119_v48, %v1817_v53  ;;  %v2499_v62 = vadd.f32 %v4119_v48, %v2435_v54 }
  0xc1   :  { %397 = vmatmul.bf16.gmra.mxu0 %v3638_v49  ;;  %1021 = vmatmul.bf16.gmra.mxu1 %v3670_v50  ;;  %v582_v18 = vadd.f32 %v4119_v48, %v515_v5  ;;  %v1200_v19 = vadd.f32 %v4119_v48, %v1136_v6 }
  0xc2   :  { %v1945_v1 = vmax.f32 %v1881_v61, 0.0  ;;  %v2563_v2 = vmax.f32 %v2499_v62, 0.0  ;;  %1703 = vmatmul.bf16.gmra.mxu2 %v3702_v57  ;;  %2321 = vmatmul.bf16.gmra.mxu3 %v3734_v58 }
  0xc3   :  { %v646_v24 = vmax.f32 %v582_v18, 0.0  ;;  %v1264_v25 = vmax.f32 %v1200_v19, 0.0  ;;  %v3736_v18 = vld [vmem:[%s5027_s0 + $0x360] sm:$0xff] }
  0xc4   :  { %v2627_v4 = vmax.f32 %v1945_v1, %v2563_v2 }
  0xc5   :  { %v1664_v7 = vpop.f32.mrf.mxu2  ;;  %v2282_v8 = vpop.f32.mrf.mxu3  ;;  %v1328_v42 = vmax.f32 %v646_v24, %v1264_v25 }
  0xc6   :  { %v2691_v10 = vmax.f32 %v1327_v3, %v2627_v4  ;;  %v1818_v11 = vmul.f32 %v4113_v46, %v1664_v7  ;;  %v2436_v12 = vmul.f32 %v4113_v46, %v2282_v8  ;;  %v360_v13 = vpop.f32.mrf.mxu0  ;;  %v984_v14 = vpop.f32.mrf.mxu1 }
  0xc7   :  { %v516_v16 = vmul.f32 %v4113_v46, %v360_v13  ;;  %v1137_v17 = vmul.f32 %v4113_v46, %v984_v14 }
  0xc8   :  { %v3764_v15 = vpack.c.bf16 %v2691_v10, %v2690_v9  ;;  %v1882_v20 = vadd.f32 %v4119_v48, %v1818_v11  ;;  %v2500_v21 = vadd.f32 %v4119_v48, %v2436_v12  ;;  %v3640_v9 = vld [vmem:[%s5027_s0 + $0x60] sm:$0xff] }
  0xc9   :  { %v583_v22 = vadd.f32 %v4119_v48, %v516_v16  ;;  %v1201_v23 = vadd.f32 %v4119_v48, %v1137_v17  ;;  %v3672_v10 = vld [vmem:[%s5027_s0 + $0x160] sm:$0xff] }
  0xca   :  { %3916 = vst [vmem:[%s5028_s4 + $0x8] sm:$0xff] %v3764_v15   ;;  %v1946_v30 = vmax.f32 %v1882_v20, 0.0  ;;  %v2564_v31 = vmax.f32 %v2500_v21, 0.0  ;;  %v3704_v17 = vld [vmem:[%s5027_s0 + $0x260] sm:$0xff] }
  0xcb   :  { %v647_v38 = vmax.f32 %v583_v22, 0.0  ;;  %v1265_v39 = vmax.f32 %v1201_v23, 0.0 }
  0xcc   :  { %v2628_v43 = vmax.f32 %v1946_v30, %v2564_v31 }
  0xcd   :  { %v1666_v26 = vpop.f32.mrf.mxu2  ;;  %v2284_v27 = vpop.f32.mrf.mxu3  ;;  %v1329_v47 = vmax.f32 %v647_v38, %v1265_v39 }
  0xce   :  { %v1819_v32 = vmul.f32 %v4113_v46, %v1666_v26  ;;  %v2437_v33 = vmul.f32 %v4113_v46, %v2284_v27  ;;  %v363_v34 = vpop.f32.mrf.mxu0  ;;  %v987_v35 = vpop.f32.mrf.mxu1  ;;  %v2692_v54 = vmax.f32 %v1328_v42, %v2628_v43 }
  0xcf   :  { %v517_v50 = vmul.f32 %v4113_v46, %v363_v34  ;;  %v1138_v51 = vmul.f32 %v4113_v46, %v987_v35 }
  0xd0   :  { %v1883_v40 = vadd.f32 %v4119_v48, %v1819_v32  ;;  %v2501_v41 = vadd.f32 %v4119_v48, %v2437_v33 }
  0xd1   :  { %402 = vmatmul.bf16.gmra.mxu0 %v3639_v28  ;;  %1026 = vmatmul.bf16.gmra.mxu1 %v3671_v29  ;;  %v584_v63 = vadd.f32 %v4119_v48, %v517_v50  ;;  %v1202_v0 = vadd.f32 %v4119_v48, %v1138_v51 }
  0xd2   :  { %v1947_v44 = vmax.f32 %v1883_v40, 0.0  ;;  %v2565_v45 = vmax.f32 %v2501_v41, 0.0  ;;  %1708 = vmatmul.bf16.gmra.mxu2 %v3703_v36  ;;  %2326 = vmatmul.bf16.gmra.mxu3 %v3735_v37 }
  0xd3   :  { %v648_v5 = vmax.f32 %v584_v63, 0.0  ;;  %v1266_v6 = vmax.f32 %v1202_v0, 0.0  ;;  %v3737_v63 = vld [vmem:[%s5027_s0 + $0x368] sm:$0xff] }
  0xd4   :  { %v2629_v49 = vmax.f32 %v1947_v44, %v2565_v45 }
  0xd5   :  { %v1669_v52 = vpop.f32.mrf.mxu2  ;;  %v2287_v53 = vpop.f32.mrf.mxu3  ;;  %v1330_v23 = vmax.f32 %v648_v5, %v1266_v6 }
  0xd6   :  { %v2693_v55 = vmax.f32 %v1329_v47, %v2629_v49  ;;  %v1820_v56 = vmul.f32 %v4113_v46, %v1669_v52  ;;  %v2438_v57 = vmul.f32 %v4113_v46, %v2287_v53  ;;  %v365_v58 = vpop.f32.mrf.mxu0  ;;  %v989_v59 = vpop.f32.mrf.mxu1 }
  0xd7   :  { %v518_v61 = vmul.f32 %v4113_v46, %v365_v58  ;;  %v1139_v62 = vmul.f32 %v4113_v46, %v989_v59 }
  0xd8   :  { %v3769_v60 = vpack.c.bf16 %v2693_v55, %v2692_v54  ;;  %v1884_v1 = vadd.f32 %v4119_v48, %v1820_v56  ;;  %v2502_v2 = vadd.f32 %v4119_v48, %v2438_v57  ;;  %v3641_v54 = vld [vmem:[%s5027_s0 + $0x68] sm:$0xff] }
  0xd9   :  { %v585_v3 = vadd.f32 %v4119_v48, %v518_v61  ;;  %v1203_v4 = vadd.f32 %v4119_v48, %v1139_v62  ;;  %v3673_v55 = vld [vmem:[%s5027_s0 + $0x168] sm:$0xff] }
  0xda   :  { %3917 = vst [vmem:[%s5028_s4 + $0x10] sm:$0xff] %v3769_v60   ;;  %v1948_v11 = vmax.f32 %v1884_v1, 0.0  ;;  %v2566_v12 = vmax.f32 %v2502_v2, 0.0  ;;  %v3705_v62 = vld [vmem:[%s5027_s0 + $0x268] sm:$0xff] }
  0xdb   :  { %v649_v19 = vmax.f32 %v585_v3, 0.0  ;;  %v1267_v20 = vmax.f32 %v1203_v4, 0.0 }
  0xdc   :  { %v2630_v24 = vmax.f32 %v1948_v11, %v2566_v12 }
  0xdd   :  { %v1671_v7 = vpop.f32.mrf.mxu2  ;;  %v2289_v8 = vpop.f32.mrf.mxu3  ;;  %v1331_v27 = vmax.f32 %v649_v19, %v1267_v20 }
  0xde   :  { %v1821_v13 = vmul.f32 %v4113_v46, %v1671_v7  ;;  %v2439_v14 = vmul.f32 %v4113_v46, %v2289_v8  ;;  %v368_v15 = vpop.f32.mrf.mxu0  ;;  %v992_v16 = vpop.f32.mrf.mxu1  ;;  %v2694_v33 = vmax.f32 %v1330_v23, %v2630_v24 }
  0xdf   :  { %v519_v29 = vmul.f32 %v4113_v46, %v368_v15  ;;  %v1140_v30 = vmul.f32 %v4113_v46, %v992_v16 }
  0xe0   :  { %v1885_v21 = vadd.f32 %v4119_v48, %v1821_v13  ;;  %v2503_v22 = vadd.f32 %v4119_v48, %v2439_v14 }
  0xe1   :  { %407 = vmatmul.bf16.gmra.mxu0 %v3640_v9  ;;  %1031 = vmatmul.bf16.gmra.mxu1 %v3672_v10  ;;  %v586_v42 = vadd.f32 %v4119_v48, %v519_v29  ;;  %v1204_v43 = vadd.f32 %v4119_v48, %v1140_v30 }
  0xe2   :  { %v1949_v25 = vmax.f32 %v1885_v21, 0.0  ;;  %v2567_v26 = vmax.f32 %v2503_v22, 0.0  ;;  %1713 = vmatmul.bf16.gmra.mxu2 %v3704_v17  ;;  %2331 = vmatmul.bf16.gmra.mxu3 %v3736_v18 }
  0xe3   :  { %v650_v50 = vmax.f32 %v586_v42, 0.0  ;;  %v1268_v51 = vmax.f32 %v1204_v43, 0.0  ;;  %v3738_v42 = vld [vmem:[%s5027_s0 + $0x370] sm:$0xff] }
  0xe4   :  { %v2631_v28 = vmax.f32 %v1949_v25, %v2567_v26 }
  0xe5   :  { %v1674_v31 = vpop.f32.mrf.mxu2  ;;  %v2292_v32 = vpop.f32.mrf.mxu3  ;;  %v1332_v4 = vmax.f32 %v650_v50, %v1268_v51 }
  0xe6   :  { %v2695_v34 = vmax.f32 %v1331_v27, %v2631_v28  ;;  %v1822_v35 = vmul.f32 %v4113_v46, %v1674_v31  ;;  %v2440_v36 = vmul.f32 %v4113_v46, %v2292_v32  ;;  %v370_v37 = vpop.f32.mrf.mxu0  ;;  %v994_v38 = vpop.f32.mrf.mxu1 }
  0xe7   :  { %v520_v40 = vmul.f32 %v4113_v46, %v370_v37  ;;  %v1141_v41 = vmul.f32 %v4113_v46, %v994_v38 }
  0xe8   :  { %v3774_v39 = vpack.c.bf16 %v2695_v34, %v2694_v33  ;;  %v1886_v44 = vadd.f32 %v4119_v48, %v1822_v35  ;;  %v2504_v45 = vadd.f32 %v4119_v48, %v2440_v36  ;;  %v3642_v33 = vld [vmem:[%s5027_s0 + $0x70] sm:$0xff] }
  0xe9   :  { %v587_v47 = vadd.f32 %v4119_v48, %v520_v40  ;;  %v1205_v49 = vadd.f32 %v4119_v48, %v1141_v41  ;;  %v3674_v34 = vld [vmem:[%s5027_s0 + $0x170] sm:$0xff] }
  0xea   :  { %3918 = vst [vmem:[%s5028_s4 + $0x18] sm:$0xff] %v3774_v39   ;;  %v1950_v56 = vmax.f32 %v1886_v44, 0.0  ;;  %v2568_v57 = vmax.f32 %v2504_v45, 0.0  ;;  %v3706_v41 = vld [vmem:[%s5027_s0 + $0x270] sm:$0xff] }
  0xeb   :  { %v651_v0 = vmax.f32 %v587_v47, 0.0  ;;  %v1269_v1 = vmax.f32 %v1205_v49, 0.0 }
  0xec   :  { %v2632_v5 = vmax.f32 %v1950_v56, %v2568_v57 }
  0xed   :  { %v1676_v52 = vpop.f32.mrf.mxu2  ;;  %v2294_v53 = vpop.f32.mrf.mxu3  ;;  %v1333_v8 = vmax.f32 %v651_v0, %v1269_v1 }
  0xee   :  { %v1823_v58 = vmul.f32 %v4113_v46, %v1676_v52  ;;  %v2441_v59 = vmul.f32 %v4113_v46, %v2294_v53  ;;  %v373_v60 = vpop.f32.mrf.mxu0  ;;  %v997_v61 = vpop.f32.mrf.mxu1  ;;  %v2696_v14 = vmax.f32 %v1332_v4, %v2632_v5 }
  0xef   :  { %v521_v10 = vmul.f32 %v4113_v46, %v373_v60  ;;  %v1142_v11 = vmul.f32 %v4113_v46, %v997_v61 }
  0xf0   :  { %v1887_v2 = vadd.f32 %v4119_v48, %v1823_v58  ;;  %v2505_v3 = vadd.f32 %v4119_v48, %v2441_v59 }
  0xf1   :  { %412 = vmatmul.bf16.gmra.mxu0 %v3641_v54  ;;  %1036 = vmatmul.bf16.gmra.mxu1 %v3673_v55  ;;  %v588_v23 = vadd.f32 %v4119_v48, %v521_v10  ;;  %v1206_v24 = vadd.f32 %v4119_v48, %v1142_v11 }
  0xf2   :  { %v1951_v6 = vmax.f32 %v1887_v2, 0.0  ;;  %v2569_v7 = vmax.f32 %v2505_v3, 0.0  ;;  %1718 = vmatmul.bf16.gmra.mxu2 %v3705_v62  ;;  %2336 = vmatmul.bf16.gmra.mxu3 %v3737_v63 }
  0xf3   :  { %v652_v29 = vmax.f32 %v588_v23, 0.0  ;;  %v1270_v30 = vmax.f32 %v1206_v24, 0.0  ;;  %v3739_v23 = vld [vmem:[%s5027_s0 + $0x378] sm:$0xff] }
  0xf4   :  { %v2633_v9 = vmax.f32 %v1951_v6, %v2569_v7 }
  0xf5   :  { %v1679_v12 = vpop.f32.mrf.mxu2  ;;  %v2297_v13 = vpop.f32.mrf.mxu3  ;;  %v1334_v49 = vmax.f32 %v652_v29, %v1270_v30 }
  0xf6   :  { %v2697_v15 = vmax.f32 %v1333_v8, %v2633_v9  ;;  %v1824_v16 = vmul.f32 %v4113_v46, %v1679_v12  ;;  %v2442_v17 = vmul.f32 %v4113_v46, %v2297_v13  ;;  %v375_v18 = vpop.f32.mrf.mxu0  ;;  %v999_v19 = vpop.f32.mrf.mxu1 }
  0xf7   :  { %v522_v21 = vmul.f32 %v4113_v46, %v375_v18  ;;  %v1143_v22 = vmul.f32 %v4113_v46, %v999_v19 }
  0xf8   :  { %v3779_v20 = vpack.c.bf16 %v2697_v15, %v2696_v14  ;;  %v1888_v25 = vadd.f32 %v4119_v48, %v1824_v16  ;;  %v2506_v26 = vadd.f32 %v4119_v48, %v2442_v17  ;;  %v3643_v14 = vld [vmem:[%s5027_s0 + $0x78] sm:$0xff] }
  0xf9   :  { %v589_v27 = vadd.f32 %v4119_v48, %v522_v21  ;;  %v1207_v28 = vadd.f32 %v4119_v48, %v1143_v22  ;;  %v3675_v15 = vld [vmem:[%s5027_s0 + $0x178] sm:$0xff] }
  0xfa   :  { %3919 = vst [vmem:[%s5028_s4 + $0x20] sm:$0xff] %v3779_v20   ;;  %v1952_v35 = vmax.f32 %v1888_v25, 0.0  ;;  %v2570_v36 = vmax.f32 %v2506_v26, 0.0  ;;  %v3707_v22 = vld [vmem:[%s5027_s0 + $0x278] sm:$0xff] }
  0xfb   :  { %v653_v43 = vmax.f32 %v589_v27, 0.0  ;;  %v1271_v44 = vmax.f32 %v1207_v28, 0.0 }
  0xfc   :  { %v2634_v50 = vmax.f32 %v1952_v35, %v2570_v36 }
  0xfd   :  { %v1681_v31 = vpop.f32.mrf.mxu2  ;;  %v2299_v32 = vpop.f32.mrf.mxu3  ;;  %v1335_v53 = vmax.f32 %v653_v43, %v1271_v44 }
  0xfe   :  { %v1825_v37 = vmul.f32 %v4113_v46, %v1681_v31  ;;  %v2443_v38 = vmul.f32 %v4113_v46, %v2299_v32  ;;  %v378_v39 = vpop.f32.mrf.mxu0  ;;  %v1002_v40 = vpop.f32.mrf.mxu1  ;;  %v2698_v59 = vmax.f32 %v1334_v49, %v2634_v50 }
  0xff   :  { %v523_v55 = vmul.f32 %v4113_v46, %v378_v39  ;;  %v1144_v56 = vmul.f32 %v4113_v46, %v1002_v40 }
 0x100   :  { %v1889_v45 = vadd.f32 %v4119_v48, %v1825_v37  ;;  %v2507_v47 = vadd.f32 %v4119_v48, %v2443_v38 }
 0x101   :  { %417 = vmatmul.bf16.gmra.mxu0 %v3642_v33  ;;  %1041 = vmatmul.bf16.gmra.mxu1 %v3674_v34  ;;  %v590_v4 = vadd.f32 %v4119_v48, %v523_v55  ;;  %v1208_v5 = vadd.f32 %v4119_v48, %v1144_v56 }
 0x102   :  { %v1953_v51 = vmax.f32 %v1889_v45, 0.0  ;;  %v2571_v52 = vmax.f32 %v2507_v47, 0.0  ;;  %1723 = vmatmul.bf16.gmra.mxu2 %v3706_v41  ;;  %2341 = vmatmul.bf16.gmra.mxu3 %v3738_v42 }
 0x103   :  { %v654_v10 = vmax.f32 %v590_v4, 0.0  ;;  %v1272_v11 = vmax.f32 %v1208_v5, 0.0  ;;  %v3740_v4 = vld [vmem:[%s5027_s0 + $0x380] sm:$0xff] }
 0x104   :  { %v2635_v54 = vmax.f32 %v1953_v51, %v2571_v52 }
 0x105   :  { %v1684_v57 = vpop.f32.mrf.mxu2  ;;  %v2302_v58 = vpop.f32.mrf.mxu3  ;;  %v1336_v28 = vmax.f32 %v654_v10, %v1272_v11 }
 0x106   :  { %v2699_v60 = vmax.f32 %v1335_v53, %v2635_v54  ;;  %v1826_v61 = vmul.f32 %v4113_v46, %v1684_v57  ;;  %v2444_v62 = vmul.f32 %v4113_v46, %v2302_v58  ;;  %v380_v63 = vpop.f32.mrf.mxu0  ;;  %v1004_v0 = vpop.f32.mrf.mxu1 }
 0x107   :  { %v524_v2 = vmul.f32 %v4113_v46, %v380_v63  ;;  %v1145_v3 = vmul.f32 %v4113_v46, %v1004_v0 }
 0x108   :  { %v3784_v1 = vpack.c.bf16 %v2699_v60, %v2698_v59  ;;  %v1890_v6 = vadd.f32 %v4119_v48, %v1826_v61  ;;  %v2508_v7 = vadd.f32 %v4119_v48, %v2444_v62  ;;  %v3644_v59 = vld [vmem:[%s5027_s0 + $0x80] sm:$0xff] }
 0x109   :  { %v591_v8 = vadd.f32 %v4119_v48, %v524_v2  ;;  %v1209_v9 = vadd.f32 %v4119_v48, %v1145_v3  ;;  %v3676_v60 = vld [vmem:[%s5027_s0 + $0x180] sm:$0xff] }
 0x10a   :  { %3920 = vst [vmem:[%s5028_s4 + $0x28] sm:$0xff] %v3784_v1   ;;  %v1954_v16 = vmax.f32 %v1890_v6, 0.0  ;;  %v2572_v17 = vmax.f32 %v2508_v7, 0.0  ;;  %v3708_v3 = vld [vmem:[%s5027_s0 + $0x280] sm:$0xff] }
 0x10b   :  { %v655_v24 = vmax.f32 %v591_v8, 0.0  ;;  %v1273_v25 = vmax.f32 %v1209_v9, 0.0 }
 0x10c   :  { %v2636_v29 = vmax.f32 %v1954_v16, %v2572_v17 }
 0x10d   :  { %v1686_v12 = vpop.f32.mrf.mxu2  ;;  %v2304_v13 = vpop.f32.mrf.mxu3  ;;  %v1337_v32 = vmax.f32 %v655_v24, %v1273_v25 }
 0x10e   :  { %v1827_v18 = vmul.f32 %v4113_v46, %v1686_v12  ;;  %v2445_v19 = vmul.f32 %v4113_v46, %v2304_v13  ;;  %v383_v20 = vpop.f32.mrf.mxu0  ;;  %v1007_v21 = vpop.f32.mrf.mxu1  ;;  %v2700_v38 = vmax.f32 %v1336_v28, %v2636_v29 }
 0x10f   :  { %v525_v34 = vmul.f32 %v4113_v46, %v383_v20  ;;  %v1146_v35 = vmul.f32 %v4113_v46, %v1007_v21 }
 0x110   :  { %v1891_v26 = vadd.f32 %v4119_v48, %v1827_v18  ;;  %v2509_v27 = vadd.f32 %v4119_v48, %v2445_v19 }
 0x111   :  { %422 = vmatmul.bf16.gmra.mxu0 %v3643_v14  ;;  %1046 = vmatmul.bf16.gmra.mxu1 %v3675_v15  ;;  %v592_v49 = vadd.f32 %v4119_v48, %v525_v34  ;;  %v1210_v50 = vadd.f32 %v4119_v48, %v1146_v35 }
 0x112   :  { %v1955_v30 = vmax.f32 %v1891_v26, 0.0  ;;  %v2573_v31 = vmax.f32 %v2509_v27, 0.0  ;;  %1728 = vmatmul.bf16.gmra.mxu2 %v3707_v22  ;;  %2346 = vmatmul.bf16.gmra.mxu3 %v3739_v23 }
 0x113   :  { %v656_v55 = vmax.f32 %v592_v49, 0.0  ;;  %v1274_v56 = vmax.f32 %v1210_v50, 0.0  ;;  %v3741_v49 = vld [vmem:[%s5027_s0 + $0x388] sm:$0xff] }
 0x114   :  { %v2637_v33 = vmax.f32 %v1955_v30, %v2573_v31 }
 0x115   :  { %v1689_v36 = vpop.f32.mrf.mxu2  ;;  %v2307_v37 = vpop.f32.mrf.mxu3  ;;  %v1338_v9 = vmax.f32 %v656_v55, %v1274_v56 }
 0x116   :  { %v2701_v39 = vmax.f32 %v1337_v32, %v2637_v33  ;;  %v1828_v40 = vmul.f32 %v4113_v46, %v1689_v36  ;;  %v2446_v41 = vmul.f32 %v4113_v46, %v2307_v37  ;;  %v385_v42 = vpop.f32.mrf.mxu0  ;;  %v1009_v43 = vpop.f32.mrf.mxu1 }
 0x117   :  { %v526_v45 = vmul.f32 %v4113_v46, %v385_v42  ;;  %v1147_v47 = vmul.f32 %v4113_v46, %v1009_v43 }
 0x118   :  { %v3789_v44 = vpack.c.bf16 %v2701_v39, %v2700_v38  ;;  %v1892_v51 = vadd.f32 %v4119_v48, %v1828_v40  ;;  %v2510_v52 = vadd.f32 %v4119_v48, %v2446_v41  ;;  %v3645_v38 = vld [vmem:[%s5027_s0 + $0x88] sm:$0xff] }
 0x119   :  { %v593_v53 = vadd.f32 %v4119_v48, %v526_v45  ;;  %v1211_v54 = vadd.f32 %v4119_v48, %v1147_v47  ;;  %v3677_v39 = vld [vmem:[%s5027_s0 + $0x188] sm:$0xff] }
 0x11a   :  { %3921 = vst [vmem:[%s5028_s4 + $0x30] sm:$0xff] %v3789_v44   ;;  %v1956_v61 = vmax.f32 %v1892_v51, 0.0  ;;  %v2574_v62 = vmax.f32 %v2510_v52, 0.0  ;;  %v3709_v47 = vld [vmem:[%s5027_s0 + $0x288] sm:$0xff] }
 0x11b   :  { %v657_v5 = vmax.f32 %v593_v53, 0.0  ;;  %v1275_v6 = vmax.f32 %v1211_v54, 0.0 }
 0x11c   :  { %v2638_v10 = vmax.f32 %v1956_v61, %v2574_v62 }
 0x11d   :  { %v1691_v57 = vpop.f32.mrf.mxu2  ;;  %v2309_v58 = vpop.f32.mrf.mxu3  ;;  %v1339_v13 = vmax.f32 %v657_v5, %v1275_v6 }
 0x11e   :  { %v1829_v63 = vmul.f32 %v4113_v46, %v1691_v57  ;;  %v2447_v0 = vmul.f32 %v4113_v46, %v2309_v58  ;;  %v388_v1 = vpop.f32.mrf.mxu0  ;;  %v1012_v2 = vpop.f32.mrf.mxu1  ;;  %v2702_v19 = vmax.f32 %v1338_v9, %v2638_v10 }
 0x11f   :  { %v527_v15 = vmul.f32 %v4113_v46, %v388_v1  ;;  %v1148_v16 = vmul.f32 %v4113_v46, %v1012_v2 }
 0x120   :  { %v1893_v7 = vadd.f32 %v4119_v48, %v1829_v63  ;;  %v2511_v8 = vadd.f32 %v4119_v48, %v2447_v0 }
 0x121   :  { %427 = vmatmul.bf16.gmra.mxu0 %v3644_v59  ;;  %1051 = vmatmul.bf16.gmra.mxu1 %v3676_v60  ;;  %v594_v28 = vadd.f32 %v4119_v48, %v527_v15  ;;  %v1212_v29 = vadd.f32 %v4119_v48, %v1148_v16 }
 0x122   :  { %v1957_v11 = vmax.f32 %v1893_v7, 0.0  ;;  %v2575_v12 = vmax.f32 %v2511_v8, 0.0  ;;  %1733 = vmatmul.bf16.gmra.mxu2 %v3708_v3  ;;  %2351 = vmatmul.bf16.gmra.mxu3 %v3740_v4 }
 0x123   :  { %v658_v34 = vmax.f32 %v594_v28, 0.0  ;;  %v1276_v35 = vmax.f32 %v1212_v29, 0.0  ;;  %v3742_v28 = vld [vmem:[%s5027_s0 + $0x390] sm:$0xff] }
 0x124   :  { %v2639_v14 = vmax.f32 %v1957_v11, %v2575_v12 }
 0x125   :  { %v1694_v17 = vpop.f32.mrf.mxu2  ;;  %v2312_v18 = vpop.f32.mrf.mxu3  ;;  %v1340_v54 = vmax.f32 %v658_v34, %v1276_v35 }
 0x126   :  { %v2703_v20 = vmax.f32 %v1339_v13, %v2639_v14  ;;  %v1830_v21 = vmul.f32 %v4113_v46, %v1694_v17  ;;  %v2448_v22 = vmul.f32 %v4113_v46, %v2312_v18  ;;  %v390_v23 = vpop.f32.mrf.mxu0  ;;  %v1014_v24 = vpop.f32.mrf.mxu1 }
 0x127   :  { %v528_v26 = vmul.f32 %v4113_v46, %v390_v23  ;;  %v1149_v27 = vmul.f32 %v4113_v46, %v1014_v24 }
 0x128   :  { %v3794_v25 = vpack.c.bf16 %v2703_v20, %v2702_v19  ;;  %v1894_v30 = vadd.f32 %v4119_v48, %v1830_v21  ;;  %v2512_v31 = vadd.f32 %v4119_v48, %v2448_v22  ;;  %v3646_v19 = vld [vmem:[%s5027_s0 + $0x90] sm:$0xff] }
 0x129   :  { %v595_v32 = vadd.f32 %v4119_v48, %v528_v26  ;;  %v1213_v33 = vadd.f32 %v4119_v48, %v1149_v27  ;;  %v3678_v20 = vld [vmem:[%s5027_s0 + $0x190] sm:$0xff] }
 0x12a   :  { %3922 = vst [vmem:[%s5028_s4 + $0x38] sm:$0xff] %v3794_v25   ;;  %v1958_v40 = vmax.f32 %v1894_v30, 0.0  ;;  %v2576_v41 = vmax.f32 %v2512_v31, 0.0  ;;  %v3710_v27 = vld [vmem:[%s5027_s0 + $0x290] sm:$0xff] }
 0x12b   :  { %v659_v50 = vmax.f32 %v595_v32, 0.0  ;;  %v1277_v51 = vmax.f32 %v1213_v33, 0.0 }
 0x12c   :  { %v2640_v55 = vmax.f32 %v1958_v40, %v2576_v41 }
 0x12d   :  { %v1696_v36 = vpop.f32.mrf.mxu2  ;;  %v2314_v37 = vpop.f32.mrf.mxu3  ;;  %v1341_v58 = vmax.f32 %v659_v50, %v1277_v51 }
 0x12e   :  { %v1831_v42 = vmul.f32 %v4113_v46, %v1696_v36  ;;  %v2449_v43 = vmul.f32 %v4113_v46, %v2314_v37  ;;  %v393_v44 = vpop.f32.mrf.mxu0  ;;  %v1017_v45 = vpop.f32.mrf.mxu1  ;;  %v2704_v0 = vmax.f32 %v1340_v54, %v2640_v55 }
 0x12f   :  { %v529_v60 = vmul.f32 %v4113_v46, %v393_v44  ;;  %v1150_v61 = vmul.f32 %v4113_v46, %v1017_v45 }
 0x130   :  { %v1895_v52 = vadd.f32 %v4119_v48, %v1831_v42  ;;  %v2513_v53 = vadd.f32 %v4119_v48, %v2449_v43 }
 0x131   :  { %432 = vmatmul.bf16.gmra.mxu0 %v3645_v38  ;;  %1056 = vmatmul.bf16.gmra.mxu1 %v3677_v39  ;;  %v596_v9 = vadd.f32 %v4119_v48, %v529_v60  ;;  %v1214_v10 = vadd.f32 %v4119_v48, %v1150_v61 }
 0x132   :  { %v1959_v56 = vmax.f32 %v1895_v52, 0.0  ;;  %v2577_v57 = vmax.f32 %v2513_v53, 0.0  ;;  %1738 = vmatmul.bf16.gmra.mxu2 %v3709_v47  ;;  %2356 = vmatmul.bf16.gmra.mxu3 %v3741_v49 }
 0x133   :  { %v660_v15 = vmax.f32 %v596_v9, 0.0  ;;  %v1278_v16 = vmax.f32 %v1214_v10, 0.0  ;;  %v3743_v9 = vld [vmem:[%s5027_s0 + $0x398] sm:$0xff] }
 0x134   :  { %v2641_v59 = vmax.f32 %v1959_v56, %v2577_v57 }
 0x135   :  { %v1699_v62 = vpop.f32.mrf.mxu2  ;;  %v2317_v63 = vpop.f32.mrf.mxu3  ;;  %v1342_v33 = vmax.f32 %v660_v15, %v1278_v16 }
 0x136   :  { %v2705_v1 = vmax.f32 %v1341_v58, %v2641_v59  ;;  %v1832_v2 = vmul.f32 %v4113_v46, %v1699_v62  ;;  %v2450_v3 = vmul.f32 %v4113_v46, %v2317_v63  ;;  %v395_v4 = vpop.f32.mrf.mxu0  ;;  %v1019_v5 = vpop.f32.mrf.mxu1 }
 0x137   :  { %v530_v7 = vmul.f32 %v4113_v46, %v395_v4  ;;  %v1151_v8 = vmul.f32 %v4113_v46, %v1019_v5 }
 0x138   :  { %v3799_v6 = vpack.c.bf16 %v2705_v1, %v2704_v0  ;;  %v1896_v11 = vadd.f32 %v4119_v48, %v1832_v2  ;;  %v2514_v12 = vadd.f32 %v4119_v48, %v2450_v3  ;;  %v3647_v0 = vld [vmem:[%s5027_s0 + $0x98] sm:$0xff] }
 0x139   :  { %v597_v13 = vadd.f32 %v4119_v48, %v530_v7  ;;  %v1215_v14 = vadd.f32 %v4119_v48, %v1151_v8  ;;  %v3679_v1 = vld [vmem:[%s5027_s0 + $0x198] sm:$0xff] }
 0x13a   :  { %3923 = vst [vmem:[%s5028_s4 + $0x40] sm:$0xff] %v3799_v6   ;;  %v1960_v21 = vmax.f32 %v1896_v11, 0.0  ;;  %v2578_v22 = vmax.f32 %v2514_v12, 0.0  ;;  %v3711_v8 = vld [vmem:[%s5027_s0 + $0x298] sm:$0xff] }
 0x13b   :  { %v661_v29 = vmax.f32 %v597_v13, 0.0  ;;  %v1279_v30 = vmax.f32 %v1215_v14, 0.0 }
 0x13c   :  { %v2642_v34 = vmax.f32 %v1960_v21, %v2578_v22 }
 0x13d   :  { %v1701_v17 = vpop.f32.mrf.mxu2  ;;  %v2319_v18 = vpop.f32.mrf.mxu3  ;;  %v1343_v37 = vmax.f32 %v661_v29, %v1279_v30 }
 0x13e   :  { %v1833_v23 = vmul.f32 %v4113_v46, %v1701_v17  ;;  %v2451_v24 = vmul.f32 %v4113_v46, %v2319_v18  ;;  %v398_v25 = vpop.f32.mrf.mxu0  ;;  %v1022_v26 = vpop.f32.mrf.mxu1  ;;  %v2706_v43 = vmax.f32 %v1342_v33, %v2642_v34 }
 0x13f   :  { %v531_v39 = vmul.f32 %v4113_v46, %v398_v25  ;;  %v1152_v40 = vmul.f32 %v4113_v46, %v1022_v26 }
 0x140   :  { %v1897_v31 = vadd.f32 %v4119_v48, %v1833_v23  ;;  %v2515_v32 = vadd.f32 %v4119_v48, %v2451_v24 }
 0x141   :  { %437 = vmatmul.bf16.gmra.mxu0 %v3646_v19  ;;  %1061 = vmatmul.bf16.gmra.mxu1 %v3678_v20  ;;  %v598_v54 = vadd.f32 %v4119_v48, %v531_v39  ;;  %v1216_v55 = vadd.f32 %v4119_v48, %v1152_v40 }
 0x142   :  { %v1961_v35 = vmax.f32 %v1897_v31, 0.0  ;;  %v2579_v36 = vmax.f32 %v2515_v32, 0.0  ;;  %1743 = vmatmul.bf16.gmra.mxu2 %v3710_v27  ;;  %2361 = vmatmul.bf16.gmra.mxu3 %v3742_v28 }
 0x143   :  { %v662_v60 = vmax.f32 %v598_v54, 0.0  ;;  %v1280_v61 = vmax.f32 %v1216_v55, 0.0  ;;  %v3744_v54 = vld [vmem:[%s5027_s0 + $0x3a0] sm:$0xff] }
 0x144   :  { %v2643_v38 = vmax.f32 %v1961_v35, %v2579_v36 }
 0x145   :  { %v1704_v41 = vpop.f32.mrf.mxu2  ;;  %v2322_v42 = vpop.f32.mrf.mxu3  ;;  %v1344_v14 = vmax.f32 %v662_v60, %v1280_v61 }
 0x146   :  { %v2707_v44 = vmax.f32 %v1343_v37, %v2643_v38  ;;  %v1834_v45 = vmul.f32 %v4113_v46, %v1704_v41  ;;  %v2452_v47 = vmul.f32 %v4113_v46, %v2322_v42  ;;  %v400_v49 = vpop.f32.mrf.mxu0  ;;  %v1024_v50 = vpop.f32.mrf.mxu1 }
 0x147   :  { %v532_v52 = vmul.f32 %v4113_v46, %v400_v49  ;;  %v1153_v53 = vmul.f32 %v4113_v46, %v1024_v50 }
 0x148   :  { %v3804_v51 = vpack.c.bf16 %v2707_v44, %v2706_v43  ;;  %v1898_v56 = vadd.f32 %v4119_v48, %v1834_v45  ;;  %v2516_v57 = vadd.f32 %v4119_v48, %v2452_v47  ;;  %v3648_v43 = vld [vmem:[%s5027_s0 + $0xa0] sm:$0xff] }
 0x149   :  { %v599_v58 = vadd.f32 %v4119_v48, %v532_v52  ;;  %v1217_v59 = vadd.f32 %v4119_v48, %v1153_v53  ;;  %v4452_v48 = vld [vmem:[%s5025_s2] ss:$0 sm:$0xff] }
 0x14a   :  { %3924 = vst [vmem:[%s5028_s4 + $0x48] sm:$0xff] %v3804_v51   ;;  %v1962_v2 = vmax.f32 %v1898_v56, 0.0  ;;  %v2580_v3 = vmax.f32 %v2516_v57, 0.0  ;;  %v3680_v44 = vld [vmem:[%s5027_s0 + $0x1a0] sm:$0xff] }
 0x14b   :  { %v663_v10 = vmax.f32 %v599_v58, 0.0  ;;  %v1281_v11 = vmax.f32 %v1217_v59, 0.0  ;;  %v3712_v53 = vld [vmem:[%s5027_s0 + $0x2a0] sm:$0xff] }
 0x14c   :  { %v2644_v15 = vmax.f32 %v1962_v2, %v2580_v3 }
 0x14d   :  { %v1706_v62 = vpop.f32.mrf.mxu2  ;;  %v2324_v63 = vpop.f32.mrf.mxu3  ;;  %v1345_v18 = vmax.f32 %v663_v10, %v1281_v11 }
 0x14e   :  { %v1835_v4 = vmul.f32 %v4113_v46, %v1706_v62  ;;  %v2453_v5 = vmul.f32 %v4452_v48, %v2324_v63  ;;  %v403_v6 = vpop.f32.mrf.mxu0  ;;  %v1027_v7 = vpop.f32.mrf.mxu1  ;;  %v4464_v46 = vld [vmem:[%s5026_s3] ss:$0 sm:$0xff]  ;;  %v2708_v24 = vmax.f32 %v1344_v14, %v2644_v15 }
 0x14f   :  { %v533_v20 = vmul.f32 %v4452_v48, %v403_v6  ;;  %v1154_v21 = vmul.f32 %v4452_v48, %v1027_v7 }
 0x150   :  { %v1899_v12 = vadd.f32 %v4464_v46, %v1835_v4  ;;  %v2517_v13 = vadd.f32 %v4464_v46, %v2453_v5 }
 0x151   :  { %442 = vmatmul.bf16.gmra.mxu0 %v3647_v0  ;;  %1066 = vmatmul.bf16.gmra.mxu1 %v3679_v1  ;;  %v600_v33 = vadd.f32 %v4464_v46, %v533_v20  ;;  %v1218_v34 = vadd.f32 %v4464_v46, %v1154_v21 }
 0x152   :  { %v1963_v16 = vmax.f32 %v1899_v12, 0.0  ;;  %v2581_v17 = vmax.f32 %v2517_v13, 0.0  ;;  %1748 = vmatmul.bf16.gmra.mxu2 %v3711_v8  ;;  %2366 = vmatmul.bf16.gmra.mxu3 %v3743_v9 }
 0x153   :  { %v664_v39 = vmax.f32 %v600_v33, 0.0  ;;  %v1282_v40 = vmax.f32 %v1218_v34, 0.0  ;;  %v3745_v33 = vld [vmem:[%s5027_s0 + $0x3a8] sm:$0xff] }
 0x154   :  { %v2645_v19 = vmax.f32 %v1963_v16, %v2581_v17 }
 0x155   :  { %v1709_v22 = vpop.f32.mrf.mxu2  ;;  %v2327_v23 = vpop.f32.mrf.mxu3  ;;  %v1346_v59 = vmax.f32 %v664_v39, %v1282_v40 }
 0x156   :  { %v2709_v25 = vmax.f32 %v1345_v18, %v2645_v19  ;;  %v1836_v26 = vmul.f32 %v4452_v48, %v1709_v22  ;;  %v2454_v27 = vmul.f32 %v4452_v48, %v2327_v23  ;;  %v405_v28 = vpop.f32.mrf.mxu0  ;;  %v1029_v29 = vpop.f32.mrf.mxu1 }
 0x157   :  { %v534_v31 = vmul.f32 %v4452_v48, %v405_v28  ;;  %v1155_v32 = vmul.f32 %v4452_v48, %v1029_v29 }
 0x158   :  { %v3809_v30 = vpack.c.bf16 %v2709_v25, %v2708_v24  ;;  %v1900_v35 = vadd.f32 %v4464_v46, %v1836_v26  ;;  %v2518_v36 = vadd.f32 %v4464_v46, %v2454_v27  ;;  %v3649_v24 = vld [vmem:[%s5027_s0 + $0xa8] sm:$0xff] }
 0x159   :  { %v601_v37 = vadd.f32 %v4464_v46, %v534_v31  ;;  %v1219_v38 = vadd.f32 %v4464_v46, %v1155_v32  ;;  %v3681_v25 = vld [vmem:[%s5027_s0 + $0x1a8] sm:$0xff] }
 0x15a   :  { %3925 = vst [vmem:[%s5028_s4 + $0x50] sm:$0xff] %v3809_v30   ;;  %v1964_v45 = vmax.f32 %v1900_v35, 0.0  ;;  %v2582_v47 = vmax.f32 %v2518_v36, 0.0  ;;  %v3713_v32 = vld [vmem:[%s5027_s0 + $0x2a8] sm:$0xff] }
 0x15b   :  { %v665_v55 = vmax.f32 %v601_v37, 0.0  ;;  %v1283_v56 = vmax.f32 %v1219_v38, 0.0 }
 0x15c   :  { %v2646_v60 = vmax.f32 %v1964_v45, %v2582_v47 }
 0x15d   :  { %v1711_v41 = vpop.f32.mrf.mxu2  ;;  %v2329_v42 = vpop.f32.mrf.mxu3  ;;  %v1347_v63 = vmax.f32 %v665_v55, %v1283_v56 }
 0x15e   :  { %v1837_v49 = vmul.f32 %v4452_v48, %v1711_v41  ;;  %v2455_v50 = vmul.f32 %v4452_v48, %v2329_v42  ;;  %v408_v51 = vpop.f32.mrf.mxu0  ;;  %v1032_v52 = vpop.f32.mrf.mxu1  ;;  %v2710_v5 = vmax.f32 %v1346_v59, %v2646_v60 }
 0x15f   :  { %v535_v1 = vmul.f32 %v4452_v48, %v408_v51  ;;  %v1156_v2 = vmul.f32 %v4452_v48, %v1032_v52 }
 0x160   :  { %v1901_v57 = vadd.f32 %v4464_v46, %v1837_v49  ;;  %v2519_v58 = vadd.f32 %v4464_v46, %v2455_v50 }
 0x161   :  { %447 = vmatmul.bf16.gmra.mxu0 %v3648_v43  ;;  %1071 = vmatmul.bf16.gmra.mxu1 %v3680_v44  ;;  %v602_v14 = vadd.f32 %v4464_v46, %v535_v1  ;;  %v1220_v15 = vadd.f32 %v4464_v46, %v1156_v2 }
 0x162   :  { %v1965_v61 = vmax.f32 %v1901_v57, 0.0  ;;  %v2583_v62 = vmax.f32 %v2519_v58, 0.0  ;;  %1753 = vmatmul.bf16.gmra.mxu2 %v3712_v53  ;;  %2371 = vmatmul.bf16.gmra.mxu3 %v3744_v54 }
 0x163   :  { %v666_v20 = vmax.f32 %v602_v14, 0.0  ;;  %v1284_v21 = vmax.f32 %v1220_v15, 0.0  ;;  %v3746_v14 = vld [vmem:[%s5027_s0 + $0x3b0] sm:$0xff] }
 0x164   :  { %v2647_v0 = vmax.f32 %v1965_v61, %v2583_v62 }
 0x165   :  { %v1714_v3 = vpop.f32.mrf.mxu2  ;;  %v2332_v4 = vpop.f32.mrf.mxu3  ;;  %v1348_v38 = vmax.f32 %v666_v20, %v1284_v21 }
 0x166   :  { %v2711_v6 = vmax.f32 %v1347_v63, %v2647_v0  ;;  %v1838_v7 = vmul.f32 %v4452_v48, %v1714_v3  ;;  %v2456_v8 = vmul.f32 %v4452_v48, %v2332_v4  ;;  %v410_v9 = vpop.f32.mrf.mxu0  ;;  %v1034_v10 = vpop.f32.mrf.mxu1 }
 0x167   :  { %v536_v12 = vmul.f32 %v4452_v48, %v410_v9  ;;  %v1157_v13 = vmul.f32 %v4452_v48, %v1034_v10 }
 0x168   :  { %v3814_v11 = vpack.c.bf16 %v2711_v6, %v2710_v5  ;;  %v1902_v16 = vadd.f32 %v4464_v46, %v1838_v7  ;;  %v2520_v17 = vadd.f32 %v4464_v46, %v2456_v8  ;;  %v3650_v5 = vld [vmem:[%s5027_s0 + $0xb0] sm:$0xff] }
 0x169   :  { %v603_v18 = vadd.f32 %v4464_v46, %v536_v12  ;;  %v1221_v19 = vadd.f32 %v4464_v46, %v1157_v13  ;;  %v3682_v6 = vld [vmem:[%s5027_s0 + $0x1b0] sm:$0xff] }
 0x16a   :  { %3926 = vst [vmem:[%s5028_s4 + $0x58] sm:$0xff] %v3814_v11   ;;  %v1966_v26 = vmax.f32 %v1902_v16, 0.0  ;;  %v2584_v27 = vmax.f32 %v2520_v17, 0.0  ;;  %v3714_v13 = vld [vmem:[%s5027_s0 + $0x2b0] sm:$0xff] }
 0x16b   :  { %v667_v34 = vmax.f32 %v603_v18, 0.0  ;;  %v1285_v35 = vmax.f32 %v1221_v19, 0.0 }
 0x16c   :  { %v2648_v39 = vmax.f32 %v1966_v26, %v2584_v27 }
 0x16d   :  { %v1716_v22 = vpop.f32.mrf.mxu2  ;;  %v2334_v23 = vpop.f32.mrf.mxu3  ;;  %v1349_v42 = vmax.f32 %v667_v34, %v1285_v35 }
 0x16e   :  { %v1839_v28 = vmul.f32 %v4452_v48, %v1716_v22  ;;  %v2457_v29 = vmul.f32 %v4452_v48, %v2334_v23  ;;  %v413_v30 = vpop.f32.mrf.mxu0  ;;  %v1037_v31 = vpop.f32.mrf.mxu1  ;;  %v2712_v50 = vmax.f32 %v1348_v38, %v2648_v39 }
 0x16f   :  { %v537_v44 = vmul.f32 %v4452_v48, %v413_v30  ;;  %v1158_v45 = vmul.f32 %v4452_v48, %v1037_v31 }
 0x170   :  { %v1903_v36 = vadd.f32 %v4464_v46, %v1839_v28  ;;  %v2521_v37 = vadd.f32 %v4464_v46, %v2457_v29 }
 0x171   :  { %452 = vmatmul.bf16.gmra.mxu0 %v3649_v24  ;;  %1076 = vmatmul.bf16.gmra.mxu1 %v3681_v25  ;;  %v604_v59 = vadd.f32 %v4464_v46, %v537_v44  ;;  %v1222_v60 = vadd.f32 %v4464_v46, %v1158_v45 }
 0x172   :  { %v1967_v40 = vmax.f32 %v1903_v36, 0.0  ;;  %v2585_v41 = vmax.f32 %v2521_v37, 0.0  ;;  %1758 = vmatmul.bf16.gmra.mxu2 %v3713_v32  ;;  %2376 = vmatmul.bf16.gmra.mxu3 %v3745_v33 }
 0x173   :  { %v668_v1 = vmax.f32 %v604_v59, 0.0  ;;  %v1286_v2 = vmax.f32 %v1222_v60, 0.0  ;;  %v3747_v59 = vld [vmem:[%s5027_s0 + $0x3b8] sm:$0xff] }
 0x174   :  { %v2649_v43 = vmax.f32 %v1967_v40, %v2585_v41 }
 0x175   :  { %v1719_v47 = vpop.f32.mrf.mxu2  ;;  %v2337_v49 = vpop.f32.mrf.mxu3  ;;  %v1350_v19 = vmax.f32 %v668_v1, %v1286_v2 }
 0x176   :  { %v2713_v51 = vmax.f32 %v1349_v42, %v2649_v43  ;;  %v1840_v52 = vmul.f32 %v4452_v48, %v1719_v47  ;;  %v2458_v53 = vmul.f32 %v4452_v48, %v2337_v49  ;;  %v415_v54 = vpop.f32.mrf.mxu0  ;;  %v1039_v55 = vpop.f32.mrf.mxu1 }
 0x177   :  { %v538_v57 = vmul.f32 %v4452_v48, %v415_v54  ;;  %v1159_v58 = vmul.f32 %v4452_v48, %v1039_v55 }
 0x178   :  { %v3819_v56 = vpack.c.bf16 %v2713_v51, %v2712_v50  ;;  %v1904_v61 = vadd.f32 %v4464_v46, %v1840_v52  ;;  %v2522_v62 = vadd.f32 %v4464_v46, %v2458_v53  ;;  %v3651_v50 = vld [vmem:[%s5027_s0 + $0xb8] sm:$0xff] }
 0x179   :  { %v605_v63 = vadd.f32 %v4464_v46, %v538_v57  ;;  %v1223_v0 = vadd.f32 %v4464_v46, %v1159_v58  ;;  %v3683_v51 = vld [vmem:[%s5027_s0 + $0x1b8] sm:$0xff] }
 0x17a   :  { %3927 = vst [vmem:[%s5028_s4 + $0x60] sm:$0xff] %v3819_v56   ;;  %v1968_v7 = vmax.f32 %v1904_v61, 0.0  ;;  %v2586_v8 = vmax.f32 %v2522_v62, 0.0  ;;  %v3715_v58 = vld [vmem:[%s5027_s0 + $0x2b8] sm:$0xff] }
 0x17b   :  { %v669_v15 = vmax.f32 %v605_v63, 0.0  ;;  %v1287_v16 = vmax.f32 %v1223_v0, 0.0 }
 0x17c   :  { %v2650_v20 = vmax.f32 %v1968_v7, %v2586_v8 }
 0x17d   :  { %v1721_v3 = vpop.f32.mrf.mxu2  ;;  %v2339_v4 = vpop.f32.mrf.mxu3  ;;  %v1351_v23 = vmax.f32 %v669_v15, %v1287_v16 }
 0x17e   :  { %v1841_v9 = vmul.f32 %v4452_v48, %v1721_v3  ;;  %v2459_v10 = vmul.f32 %v4452_v48, %v2339_v4  ;;  %v418_v11 = vpop.f32.mrf.mxu0  ;;  %v1042_v12 = vpop.f32.mrf.mxu1  ;;  %v2714_v29 = vmax.f32 %v1350_v19, %v2650_v20 }
 0x17f   :  { %v539_v25 = vmul.f32 %v4452_v48, %v418_v11  ;;  %v1160_v26 = vmul.f32 %v4452_v48, %v1042_v12 }
 0x180   :  { %v1905_v17 = vadd.f32 %v4464_v46, %v1841_v9  ;;  %v2523_v18 = vadd.f32 %v4464_v46, %v2459_v10 }
 0x181   :  { %457 = vmatmul.bf16.gmra.mxu0 %v3650_v5  ;;  %1081 = vmatmul.bf16.gmra.mxu1 %v3682_v6  ;;  %v606_v38 = vadd.f32 %v4464_v46, %v539_v25  ;;  %v1224_v39 = vadd.f32 %v4464_v46, %v1160_v26 }
 0x182   :  { %v1969_v21 = vmax.f32 %v1905_v17, 0.0  ;;  %v2587_v22 = vmax.f32 %v2523_v18, 0.0  ;;  %1763 = vmatmul.bf16.gmra.mxu2 %v3714_v13  ;;  %2381 = vmatmul.bf16.gmra.mxu3 %v3746_v14 }
 0x183   :  { %v670_v44 = vmax.f32 %v606_v38, 0.0  ;;  %v1288_v45 = vmax.f32 %v1224_v39, 0.0  ;;  %v3748_v38 = vld [vmem:[%s5027_s0 + $0x3c0] sm:$0xff] }
 0x184   :  { %v2651_v24 = vmax.f32 %v1969_v21, %v2587_v22 }
 0x185   :  { %v1724_v27 = vpop.f32.mrf.mxu2  ;;  %v2342_v28 = vpop.f32.mrf.mxu3  ;;  %v1352_v0 = vmax.f32 %v670_v44, %v1288_v45 }
 0x186   :  { %v2715_v30 = vmax.f32 %v1351_v23, %v2651_v24  ;;  %v1842_v31 = vmul.f32 %v4452_v48, %v1724_v27  ;;  %v2460_v32 = vmul.f32 %v4452_v48, %v2342_v28  ;;  %v420_v33 = vpop.f32.mrf.mxu0  ;;  %v1044_v34 = vpop.f32.mrf.mxu1 }
 0x187   :  { %v540_v36 = vmul.f32 %v4452_v48, %v420_v33  ;;  %v1161_v37 = vmul.f32 %v4452_v48, %v1044_v34 }
 0x188   :  { %v3824_v35 = vpack.c.bf16 %v2715_v30, %v2714_v29  ;;  %v1906_v40 = vadd.f32 %v4464_v46, %v1842_v31  ;;  %v2524_v41 = vadd.f32 %v4464_v46, %v2460_v32  ;;  %v3652_v29 = vld [vmem:[%s5027_s0 + $0xc0] sm:$0xff] }
 0x189   :  { %v607_v42 = vadd.f32 %v4464_v46, %v540_v36  ;;  %v1225_v43 = vadd.f32 %v4464_v46, %v1161_v37  ;;  %v3684_v30 = vld [vmem:[%s5027_s0 + $0x1c0] sm:$0xff] }
 0x18a   :  { %3928 = vst [vmem:[%s5028_s4 + $0x68] sm:$0xff] %v3824_v35   ;;  %v1970_v52 = vmax.f32 %v1906_v40, 0.0  ;;  %v2588_v53 = vmax.f32 %v2524_v41, 0.0  ;;  %v3716_v37 = vld [vmem:[%s5027_s0 + $0x2c0] sm:$0xff] }
 0x18b   :  { %v671_v60 = vmax.f32 %v607_v42, 0.0  ;;  %v1289_v61 = vmax.f32 %v1225_v43, 0.0 }
 0x18c   :  { %v2652_v1 = vmax.f32 %v1970_v52, %v2588_v53 }
 0x18d   :  { %v1726_v47 = vpop.f32.mrf.mxu2  ;;  %v2344_v49 = vpop.f32.mrf.mxu3  ;;  %v1353_v4 = vmax.f32 %v671_v60, %v1289_v61 }
 0x18e   :  { %v1843_v54 = vmul.f32 %v4452_v48, %v1726_v47  ;;  %v2461_v55 = vmul.f32 %v4452_v48, %v2344_v49  ;;  %v423_v56 = vpop.f32.mrf.mxu0  ;;  %v1047_v57 = vpop.f32.mrf.mxu1  ;;  %v2716_v10 = vmax.f32 %v1352_v0, %v2652_v1 }
 0x18f   :  { %v541_v6 = vmul.f32 %v4452_v48, %v423_v56  ;;  %v1162_v7 = vmul.f32 %v4452_v48, %v1047_v57 }
 0x190   :  { %v1907_v62 = vadd.f32 %v4464_v46, %v1843_v54  ;;  %v2525_v63 = vadd.f32 %v4464_v46, %v2461_v55 }
 0x191   :  { %462 = vmatmul.bf16.gmra.mxu0 %v3651_v50  ;;  %1086 = vmatmul.bf16.gmra.mxu1 %v3683_v51  ;;  %v608_v19 = vadd.f32 %v4464_v46, %v541_v6  ;;  %v1226_v20 = vadd.f32 %v4464_v46, %v1162_v7 }
 0x192   :  { %v1971_v2 = vmax.f32 %v1907_v62, 0.0  ;;  %v2589_v3 = vmax.f32 %v2525_v63, 0.0  ;;  %1768 = vmatmul.bf16.gmra.mxu2 %v3715_v58  ;;  %2386 = vmatmul.bf16.gmra.mxu3 %v3747_v59 }
 0x193   :  { %v672_v25 = vmax.f32 %v608_v19, 0.0  ;;  %v1290_v26 = vmax.f32 %v1226_v20, 0.0  ;;  %v3749_v19 = vld [vmem:[%s5027_s0 + $0x3c8] sm:$0xff] }
 0x194   :  { %v2653_v5 = vmax.f32 %v1971_v2, %v2589_v3 }
 0x195   :  { %v1729_v8 = vpop.f32.mrf.mxu2  ;;  %v2347_v9 = vpop.f32.mrf.mxu3  ;;  %v1354_v43 = vmax.f32 %v672_v25, %v1290_v26 }
 0x196   :  { %v2717_v11 = vmax.f32 %v1353_v4, %v2653_v5  ;;  %v1844_v12 = vmul.f32 %v4452_v48, %v1729_v8  ;;  %v2462_v13 = vmul.f32 %v4452_v48, %v2347_v9  ;;  %v425_v14 = vpop.f32.mrf.mxu0  ;;  %v1049_v15 = vpop.f32.mrf.mxu1 }
 0x197   :  { %v542_v17 = vmul.f32 %v4452_v48, %v425_v14  ;;  %v1163_v18 = vmul.f32 %v4452_v48, %v1049_v15 }
 0x198   :  { %v3829_v16 = vpack.c.bf16 %v2717_v11, %v2716_v10  ;;  %v1908_v21 = vadd.f32 %v4464_v46, %v1844_v12  ;;  %v2526_v22 = vadd.f32 %v4464_v46, %v2462_v13  ;;  %v3653_v10 = vld [vmem:[%s5027_s0 + $0xc8] sm:$0xff] }
 0x199   :  { %v609_v23 = vadd.f32 %v4464_v46, %v542_v17  ;;  %v1227_v24 = vadd.f32 %v4464_v46, %v1163_v18  ;;  %v3685_v11 = vld [vmem:[%s5027_s0 + $0x1c8] sm:$0xff] }
 0x19a   :  { %3929 = vst [vmem:[%s5028_s4 + $0x70] sm:$0xff] %v3829_v16   ;;  %v1972_v31 = vmax.f32 %v1908_v21, 0.0  ;;  %v2590_v32 = vmax.f32 %v2526_v22, 0.0  ;;  %v3717_v18 = vld [vmem:[%s5027_s0 + $0x2c8] sm:$0xff] }
 0x19b   :  { %v673_v39 = vmax.f32 %v609_v23, 0.0  ;;  %v1291_v40 = vmax.f32 %v1227_v24, 0.0 }
 0x19c   :  { %v2654_v44 = vmax.f32 %v1972_v31, %v2590_v32 }
 0x19d   :  { %v1731_v27 = vpop.f32.mrf.mxu2  ;;  %v2349_v28 = vpop.f32.mrf.mxu3  ;;  %v1355_v49 = vmax.f32 %v673_v39, %v1291_v40 }
 0x19e   :  { %v1845_v33 = vmul.f32 %v4452_v48, %v1731_v27  ;;  %v2463_v34 = vmul.f32 %v4452_v48, %v2349_v28  ;;  %v428_v35 = vpop.f32.mrf.mxu0  ;;  %v1052_v36 = vpop.f32.mrf.mxu1  ;;  %v2718_v55 = vmax.f32 %v1354_v43, %v2654_v44 }
 0x19f   :  { %v543_v51 = vmul.f32 %v4452_v48, %v428_v35  ;;  %v1164_v52 = vmul.f32 %v4452_v48, %v1052_v36 }
 0x1a0   :  { %v1909_v41 = vadd.f32 %v4464_v46, %v1845_v33  ;;  %v2527_v42 = vadd.f32 %v4464_v46, %v2463_v34 }
 0x1a1   :  { %467 = vmatmul.bf16.gmra.mxu0 %v3652_v29  ;;  %1091 = vmatmul.bf16.gmra.mxu1 %v3684_v30  ;;  %v610_v0 = vadd.f32 %v4464_v46, %v543_v51  ;;  %v1228_v1 = vadd.f32 %v4464_v46, %v1164_v52 }
 0x1a2   :  { %v1973_v45 = vmax.f32 %v1909_v41, 0.0  ;;  %v2591_v47 = vmax.f32 %v2527_v42, 0.0  ;;  %1773 = vmatmul.bf16.gmra.mxu2 %v3716_v37  ;;  %2391 = vmatmul.bf16.gmra.mxu3 %v3748_v38 }
 0x1a3   :  { %v674_v6 = vmax.f32 %v610_v0, 0.0  ;;  %v1292_v7 = vmax.f32 %v1228_v1, 0.0  ;;  %v3750_v0 = vld [vmem:[%s5027_s0 + $0x3d0] sm:$0xff] }
 0x1a4   :  { %v2655_v50 = vmax.f32 %v1973_v45, %v2591_v47 }
 0x1a5   :  { %v1734_v53 = vpop.f32.mrf.mxu2  ;;  %v2352_v54 = vpop.f32.mrf.mxu3  ;;  %v1356_v24 = vmax.f32 %v674_v6, %v1292_v7 }
 0x1a6   :  { %v2719_v56 = vmax.f32 %v1355_v49, %v2655_v50  ;;  %v1846_v57 = vmul.f32 %v4452_v48, %v1734_v53  ;;  %v2464_v58 = vmul.f32 %v4452_v48, %v2352_v54  ;;  %v430_v59 = vpop.f32.mrf.mxu0  ;;  %v1054_v60 = vpop.f32.mrf.mxu1 }
 0x1a7   :  { %v544_v62 = vmul.f32 %v4452_v48, %v430_v59  ;;  %v1165_v63 = vmul.f32 %v4452_v48, %v1054_v60 }
 0x1a8   :  { %v3834_v61 = vpack.c.bf16 %v2719_v56, %v2718_v55  ;;  %v1910_v2 = vadd.f32 %v4464_v46, %v1846_v57  ;;  %v2528_v3 = vadd.f32 %v4464_v46, %v2464_v58  ;;  %v3654_v55 = vld [vmem:[%s5027_s0 + $0xd0] sm:$0xff] }
 0x1a9   :  { %v611_v4 = vadd.f32 %v4464_v46, %v544_v62  ;;  %v1229_v5 = vadd.f32 %v4464_v46, %v1165_v63  ;;  %v3686_v56 = vld [vmem:[%s5027_s0 + $0x1d0] sm:$0xff] }
 0x1aa   :  { %3930 = vst [vmem:[%s5028_s4 + $0x78] sm:$0xff] %v3834_v61   ;;  %v1974_v12 = vmax.f32 %v1910_v2, 0.0  ;;  %v2592_v13 = vmax.f32 %v2528_v3, 0.0  ;;  %v3718_v63 = vld [vmem:[%s5027_s0 + $0x2d0] sm:$0xff] }
 0x1ab   :  { %v675_v20 = vmax.f32 %v611_v4, 0.0  ;;  %v1293_v21 = vmax.f32 %v1229_v5, 0.0 }
 0x1ac   :  { %v2656_v25 = vmax.f32 %v1974_v12, %v2592_v13 }
 0x1ad   :  { %v1736_v8 = vpop.f32.mrf.mxu2  ;;  %v2354_v9 = vpop.f32.mrf.mxu3  ;;  %v1357_v28 = vmax.f32 %v675_v20, %v1293_v21 }
 0x1ae   :  { %v1847_v14 = vmul.f32 %v4452_v48, %v1736_v8  ;;  %v2465_v15 = vmul.f32 %v4452_v48, %v2354_v9  ;;  %v433_v16 = vpop.f32.mrf.mxu0  ;;  %v1057_v17 = vpop.f32.mrf.mxu1  ;;  %v2720_v34 = vmax.f32 %v1356_v24, %v2656_v25 }
 0x1af   :  { %v545_v30 = vmul.f32 %v4452_v48, %v433_v16  ;;  %v1166_v31 = vmul.f32 %v4452_v48, %v1057_v17 }
 0x1b0   :  { %v1911_v22 = vadd.f32 %v4464_v46, %v1847_v14  ;;  %v2529_v23 = vadd.f32 %v4464_v46, %v2465_v15 }
 0x1b1   :  { %472 = vmatmul.bf16.gmra.mxu0 %v3653_v10  ;;  %1096 = vmatmul.bf16.gmra.mxu1 %v3685_v11  ;;  %v612_v43 = vadd.f32 %v4464_v46, %v545_v30  ;;  %v1230_v44 = vadd.f32 %v4464_v46, %v1166_v31 }
 0x1b2   :  { %v1975_v26 = vmax.f32 %v1911_v22, 0.0  ;;  %v2593_v27 = vmax.f32 %v2529_v23, 0.0  ;;  %1778 = vmatmul.bf16.gmra.mxu2 %v3717_v18  ;;  %2396 = vmatmul.bf16.gmra.mxu3 %v3749_v19 }
 0x1b3   :  { %v676_v51 = vmax.f32 %v612_v43, 0.0  ;;  %v1294_v52 = vmax.f32 %v1230_v44, 0.0  ;;  %v3751_v43 = vld [vmem:[%s5027_s0 + $0x3d8] sm:$0xff] }
 0x1b4   :  { %v2657_v29 = vmax.f32 %v1975_v26, %v2593_v27 }
 0x1b5   :  { %v1739_v32 = vpop.f32.mrf.mxu2  ;;  %v2357_v33 = vpop.f32.mrf.mxu3  ;;  %v1358_v5 = vmax.f32 %v676_v51, %v1294_v52 }
 0x1b6   :  { %v2721_v35 = vmax.f32 %v1357_v28, %v2657_v29  ;;  %v1848_v36 = vmul.f32 %v4452_v48, %v1739_v32  ;;  %v2466_v37 = vmul.f32 %v4452_v48, %v2357_v33  ;;  %v435_v38 = vpop.f32.mrf.mxu0  ;;  %v1059_v39 = vpop.f32.mrf.mxu1 }
 0x1b7   :  { %v546_v41 = vmul.f32 %v4452_v48, %v435_v38  ;;  %v1167_v42 = vmul.f32 %v4452_v48, %v1059_v39 }
 0x1b8   :  { %v3839_v40 = vpack.c.bf16 %v2721_v35, %v2720_v34  ;;  %v1912_v45 = vadd.f32 %v4464_v46, %v1848_v36  ;;  %v2530_v47 = vadd.f32 %v4464_v46, %v2466_v37  ;;  %v3655_v34 = vld [vmem:[%s5027_s0 + $0xd8] sm:$0xff] }
 0x1b9   :  { %v613_v49 = vadd.f32 %v4464_v46, %v546_v41  ;;  %v1231_v50 = vadd.f32 %v4464_v46, %v1167_v42  ;;  %v3687_v35 = vld [vmem:[%s5027_s0 + $0x1d8] sm:$0xff] }
 0x1ba   :  { %3931 = vst [vmem:[%s5028_s4 + $0x80] sm:$0xff] %v3839_v40   ;;  %v1976_v57 = vmax.f32 %v1912_v45, 0.0  ;;  %v2594_v58 = vmax.f32 %v2530_v47, 0.0  ;;  %v3719_v42 = vld [vmem:[%s5027_s0 + $0x2d8] sm:$0xff] }
 0x1bb   :  { %v677_v1 = vmax.f32 %v613_v49, 0.0  ;;  %v1295_v2 = vmax.f32 %v1231_v50, 0.0 }
 0x1bc   :  { %v2658_v6 = vmax.f32 %v1976_v57, %v2594_v58 }
 0x1bd   :  { %v1741_v53 = vpop.f32.mrf.mxu2  ;;  %v2359_v54 = vpop.f32.mrf.mxu3  ;;  %v1359_v9 = vmax.f32 %v677_v1, %v1295_v2 }
 0x1be   :  { %v1849_v59 = vmul.f32 %v4452_v48, %v1741_v53  ;;  %v2467_v60 = vmul.f32 %v4452_v48, %v2359_v54  ;;  %v438_v61 = vpop.f32.mrf.mxu0  ;;  %v1062_v62 = vpop.f32.mrf.mxu1  ;;  %v2722_v15 = vmax.f32 %v1358_v5, %v2658_v6 }
 0x1bf   :  { %v547_v11 = vmul.f32 %v4452_v48, %v438_v61  ;;  %v1168_v12 = vmul.f32 %v4452_v48, %v1062_v62 }
 0x1c0   :  { %v1913_v3 = vadd.f32 %v4464_v46, %v1849_v59  ;;  %v2531_v4 = vadd.f32 %v4464_v46, %v2467_v60 }
 0x1c1   :  { %477 = vmatmul.bf16.gmra.mxu0 %v3654_v55  ;;  %1101 = vmatmul.bf16.gmra.mxu1 %v3686_v56  ;;  %v614_v24 = vadd.f32 %v4464_v46, %v547_v11  ;;  %v1232_v25 = vadd.f32 %v4464_v46, %v1168_v12 }
 0x1c2   :  { %v1977_v7 = vmax.f32 %v1913_v3, 0.0  ;;  %v2595_v8 = vmax.f32 %v2531_v4, 0.0  ;;  %1783 = vmatmul.bf16.gmra.mxu2 %v3718_v63  ;;  %2401 = vmatmul.bf16.gmra.mxu3 %v3750_v0 }
 0x1c3   :  { %v678_v30 = vmax.f32 %v614_v24, 0.0  ;;  %v1296_v31 = vmax.f32 %v1232_v25, 0.0  ;;  %v3752_v24 = vld [vmem:[%s5027_s0 + $0x3e0] sm:$0xff] }
 0x1c4   :  { %v2659_v10 = vmax.f32 %v1977_v7, %v2595_v8 }
 0x1c5   :  { %v1744_v13 = vpop.f32.mrf.mxu2  ;;  %v2362_v14 = vpop.f32.mrf.mxu3  ;;  %v1360_v50 = vmax.f32 %v678_v30, %v1296_v31 }
 0x1c6   :  { %v2723_v16 = vmax.f32 %v1359_v9, %v2659_v10  ;;  %v1850_v17 = vmul.f32 %v4452_v48, %v1744_v13  ;;  %v2468_v18 = vmul.f32 %v4452_v48, %v2362_v14  ;;  %v440_v19 = vpop.f32.mrf.mxu0  ;;  %v1064_v20 = vpop.f32.mrf.mxu1 }
 0x1c7   :  { %v548_v22 = vmul.f32 %v4452_v48, %v440_v19  ;;  %v1169_v23 = vmul.f32 %v4452_v48, %v1064_v20 }
 0x1c8   :  { %v3844_v21 = vpack.c.bf16 %v2723_v16, %v2722_v15  ;;  %v1914_v26 = vadd.f32 %v4464_v46, %v1850_v17  ;;  %v2532_v27 = vadd.f32 %v4464_v46, %v2468_v18  ;;  %v3656_v15 = vld [vmem:[%s5027_s0 + $0xe0] sm:$0xff] }
 0x1c9   :  { %v615_v28 = vadd.f32 %v4464_v46, %v548_v22  ;;  %v1233_v29 = vadd.f32 %v4464_v46, %v1169_v23  ;;  %v3688_v16 = vld [vmem:[%s5027_s0 + $0x1e0] sm:$0xff] }
 0x1ca   :  { %3932 = vst [vmem:[%s5028_s4 + $0x88] sm:$0xff] %v3844_v21   ;;  %v1978_v36 = vmax.f32 %v1914_v26, 0.0  ;;  %v2596_v37 = vmax.f32 %v2532_v27, 0.0  ;;  %v3720_v23 = vld [vmem:[%s5027_s0 + $0x2e0] sm:$0xff] }
 0x1cb   :  { %v679_v44 = vmax.f32 %v615_v28, 0.0  ;;  %v1297_v45 = vmax.f32 %v1233_v29, 0.0 }
 0x1cc   :  { %v2660_v51 = vmax.f32 %v1978_v36, %v2596_v37 }
 0x1cd   :  { %v1746_v32 = vpop.f32.mrf.mxu2  ;;  %v2364_v33 = vpop.f32.mrf.mxu3  ;;  %v1361_v54 = vmax.f32 %v679_v44, %v1297_v45 }
 0x1ce   :  { %v1851_v38 = vmul.f32 %v4452_v48, %v1746_v32  ;;  %v2469_v39 = vmul.f32 %v4452_v48, %v2364_v33  ;;  %v443_v40 = vpop.f32.mrf.mxu0  ;;  %v1067_v41 = vpop.f32.mrf.mxu1  ;;  %v2724_v60 = vmax.f32 %v1360_v50, %v2660_v51 }
 0x1cf   :  { %v549_v56 = vmul.f32 %v4452_v48, %v443_v40  ;;  %v1170_v57 = vmul.f32 %v4452_v48, %v1067_v41 }
 0x1d0   :  { %v1915_v47 = vadd.f32 %v4464_v46, %v1851_v38  ;;  %v2533_v49 = vadd.f32 %v4464_v46, %v2469_v39 }
 0x1d1   :  { %482 = vmatmul.bf16.gmra.mxu0 %v3655_v34  ;;  %1106 = vmatmul.bf16.gmra.mxu1 %v3687_v35  ;;  %v616_v5 = vadd.f32 %v4464_v46, %v549_v56  ;;  %v1234_v6 = vadd.f32 %v4464_v46, %v1170_v57 }
 0x1d2   :  { %v1979_v52 = vmax.f32 %v1915_v47, 0.0  ;;  %v2597_v53 = vmax.f32 %v2533_v49, 0.0  ;;  %1788 = vmatmul.bf16.gmra.mxu2 %v3719_v42  ;;  %2406 = vmatmul.bf16.gmra.mxu3 %v3751_v43 }
 0x1d3   :  { %v680_v11 = vmax.f32 %v616_v5, 0.0  ;;  %v1298_v12 = vmax.f32 %v1234_v6, 0.0  ;;  %v3753_v5 = vld [vmem:[%s5027_s0 + $0x3e8] sm:$0xff] }
 0x1d4   :  { %v2661_v55 = vmax.f32 %v1979_v52, %v2597_v53 }
 0x1d5   :  { %v1749_v58 = vpop.f32.mrf.mxu2  ;;  %v2367_v59 = vpop.f32.mrf.mxu3  ;;  %v1362_v29 = vmax.f32 %v680_v11, %v1298_v12 }
 0x1d6   :  { %v2725_v61 = vmax.f32 %v1361_v54, %v2661_v55  ;;  %v1852_v62 = vmul.f32 %v4452_v48, %v1749_v58  ;;  %v2470_v63 = vmul.f32 %v4452_v48, %v2367_v59  ;;  %v445_v0 = vpop.f32.mrf.mxu0  ;;  %v1069_v1 = vpop.f32.mrf.mxu1 }
 0x1d7   :  { %v550_v3 = vmul.f32 %v4452_v48, %v445_v0  ;;  %v1171_v4 = vmul.f32 %v4452_v48, %v1069_v1 }
 0x1d8   :  { %v3849_v2 = vpack.c.bf16 %v2725_v61, %v2724_v60  ;;  %v1916_v7 = vadd.f32 %v4464_v46, %v1852_v62  ;;  %v2534_v8 = vadd.f32 %v4464_v46, %v2470_v63  ;;  %v3657_v60 = vld [vmem:[%s5027_s0 + $0xe8] sm:$0xff] }
 0x1d9   :  { %v617_v9 = vadd.f32 %v4464_v46, %v550_v3  ;;  %v1235_v10 = vadd.f32 %v4464_v46, %v1171_v4  ;;  %v3689_v61 = vld [vmem:[%s5027_s0 + $0x1e8] sm:$0xff] }
 0x1da   :  { %3933 = vst [vmem:[%s5028_s4 + $0x90] sm:$0xff] %v3849_v2   ;;  %v1980_v17 = vmax.f32 %v1916_v7, 0.0  ;;  %v2598_v18 = vmax.f32 %v2534_v8, 0.0  ;;  %v3721_v4 = vld [vmem:[%s5027_s0 + $0x2e8] sm:$0xff] }
 0x1db   :  { %v681_v25 = vmax.f32 %v617_v9, 0.0  ;;  %v1299_v26 = vmax.f32 %v1235_v10, 0.0 }
 0x1dc   :  { %v2662_v30 = vmax.f32 %v1980_v17, %v2598_v18 }
 0x1dd   :  { %v1751_v13 = vpop.f32.mrf.mxu2  ;;  %v2369_v14 = vpop.f32.mrf.mxu3  ;;  %v1363_v33 = vmax.f32 %v681_v25, %v1299_v26 }
 0x1de   :  { %v1853_v19 = vmul.f32 %v4452_v48, %v1751_v13  ;;  %v2471_v20 = vmul.f32 %v4452_v48, %v2369_v14  ;;  %v448_v21 = vpop.f32.mrf.mxu0  ;;  %v1072_v22 = vpop.f32.mrf.mxu1  ;;  %v2726_v39 = vmax.f32 %v1362_v29, %v2662_v30 }
 0x1df   :  { %v551_v35 = vmul.f32 %v4452_v48, %v448_v21  ;;  %v1172_v36 = vmul.f32 %v4452_v48, %v1072_v22 }
 0x1e0   :  { %v1917_v27 = vadd.f32 %v4464_v46, %v1853_v19  ;;  %v2535_v28 = vadd.f32 %v4464_v46, %v2471_v20 }
 0x1e1   :  { %487 = vmatmul.bf16.gmra.mxu0 %v3656_v15  ;;  %1111 = vmatmul.bf16.gmra.mxu1 %v3688_v16  ;;  %v618_v50 = vadd.f32 %v4464_v46, %v551_v35  ;;  %v1236_v51 = vadd.f32 %v4464_v46, %v1172_v36 }
 0x1e2   :  { %v1981_v31 = vmax.f32 %v1917_v27, 0.0  ;;  %v2599_v32 = vmax.f32 %v2535_v28, 0.0  ;;  %1793 = vmatmul.bf16.gmra.mxu2 %v3720_v23  ;;  %2411 = vmatmul.bf16.gmra.mxu3 %v3752_v24 }
 0x1e3   :  { %v682_v56 = vmax.f32 %v618_v50, 0.0  ;;  %v1300_v57 = vmax.f32 %v1236_v51, 0.0 }
 0x1e4   :  { %v2663_v34 = vmax.f32 %v1981_v31, %v2599_v32 }
 0x1e5   :  { %v1754_v37 = vpop.f32.mrf.mxu2  ;;  %v2372_v38 = vpop.f32.mrf.mxu3  ;;  %v1364_v10 = vmax.f32 %v682_v56, %v1300_v57 }
 0x1e6   :  { %v2727_v40 = vmax.f32 %v1363_v33, %v2663_v34  ;;  %v1854_v41 = vmul.f32 %v4452_v48, %v1754_v37  ;;  %v2472_v42 = vmul.f32 %v4452_v48, %v2372_v38  ;;  %v450_v43 = vpop.f32.mrf.mxu0  ;;  %v1074_v44 = vpop.f32.mrf.mxu1  ;;  %v3658_v38 = vld [vmem:[%s5027_s0 + $0xf0] sm:$0xff] }
 0x1e7   :  { %v552_v47 = vmul.f32 %v4452_v48, %v450_v43  ;;  %v1173_v49 = vmul.f32 %v4452_v48, %v1074_v44 }
 0x1e8   :  { %v3854_v45 = vpack.c.bf16 %v2727_v40, %v2726_v39  ;;  %v1918_v52 = vadd.f32 %v4464_v46, %v1854_v41  ;;  %v2536_v53 = vadd.f32 %v4464_v46, %v2472_v42  ;;  %v3690_v39 = vld [vmem:[%s5027_s0 + $0x1f0] sm:$0xff]  ;;  %v4802_v42 = vld [vmem:[%s5025_s2] ss:$0 sm:$0xff] }
 0x1e9   :  { %v619_v54 = vadd.f32 %v4464_v46, %v552_v47  ;;  %v1237_v55 = vadd.f32 %v4464_v46, %v1173_v49  ;;  %v3722_v47 = vld [vmem:[%s5027_s0 + $0x2f0] sm:$0xff] }
 0x1ea   :  { %3934 = vst [vmem:[%s5028_s4 + $0x98] sm:$0xff] %v3854_v45   ;;  %v1982_v62 = vmax.f32 %v1918_v52, 0.0  ;;  %v2600_v63 = vmax.f32 %v2536_v53, 0.0  ;;  %v3754_v49 = vld [vmem:[%s5027_s0 + $0x3f0] sm:$0xff]  ;;  %v4815_v52 = vld [vmem:[%s5026_s3] ss:$0 sm:$0xff] }
 0x1eb   :  { %v683_v6 = vmax.f32 %v619_v54, 0.0  ;;  %v1301_v7 = vmax.f32 %v1237_v55, 0.0 }
 0x1ec   :  { %v2664_v11 = vmax.f32 %v1982_v62, %v2600_v63 }
 0x1ed   :  { %v1756_v58 = vpop.f32.mrf.mxu2  ;;  %v2374_v59 = vpop.f32.mrf.mxu3  ;;  %v1365_v14 = vmax.f32 %v683_v6, %v1301_v7 }
 0x1ee   :  { %v1855_v0 = vmul.f32 %v4452_v48, %v1756_v58  ;;  %v2473_v1 = vmul.f32 %v4452_v48, %v2374_v59  ;;  %v453_v2 = vpop.f32.mrf.mxu0  ;;  %v1077_v3 = vpop.f32.mrf.mxu1  ;;  %v2728_v20 = vmax.f32 %v1364_v10, %v2664_v11 }
 0x1ef   :  { %v553_v16 = vmul.f32 %v4452_v48, %v453_v2  ;;  %v1174_v17 = vmul.f32 %v4452_v48, %v1077_v3 }
 0x1f0   :  { %v1919_v8 = vadd.f32 %v4464_v46, %v1855_v0  ;;  %v2537_v9 = vadd.f32 %v4464_v46, %v2473_v1 }
 0x1f1   :  { %492 = vmatmul.bf16.gmra.mxu0 %v3657_v60  ;;  %1116 = vmatmul.bf16.gmra.mxu1 %v3689_v61  ;;  %v620_v29 = vadd.f32 %v4464_v46, %v553_v16  ;;  %v1238_v30 = vadd.f32 %v4464_v46, %v1174_v17 }
 0x1f2   :  { %v1983_v12 = vmax.f32 %v1919_v8, 0.0  ;;  %v2601_v13 = vmax.f32 %v2537_v9, 0.0  ;;  %1798 = vmatmul.bf16.gmra.mxu2 %v3721_v4  ;;  %2416 = vmatmul.bf16.gmra.mxu3 %v3753_v5 }
 0x1f3   :  { %v684_v35 = vmax.f32 %v620_v29, 0.0  ;;  %v1302_v36 = vmax.f32 %v1238_v30, 0.0  ;;  %v3755_v29 = vld [vmem:[%s5027_s0 + $0x3f8] sm:$0xff] }
 0x1f4   :  { %v2665_v15 = vmax.f32 %v1983_v12, %v2601_v13 }
 0x1f5   :  { %v1759_v18 = vpop.f32.mrf.mxu2  ;;  %v2377_v19 = vpop.f32.mrf.mxu3  ;;  %v1366_v55 = vmax.f32 %v684_v35, %v1302_v36 }
 0x1f6   :  { %v2729_v21 = vmax.f32 %v1365_v14, %v2665_v15  ;;  %v1856_v22 = vmul.f32 %v4452_v48, %v1759_v18  ;;  %v2474_v23 = vmul.f32 %v4452_v48, %v2377_v19  ;;  %v455_v24 = vpop.f32.mrf.mxu0  ;;  %v1079_v25 = vpop.f32.mrf.mxu1 }
 0x1f7   :  { %v554_v27 = vmul.f32 %v4452_v48, %v455_v24  ;;  %v1175_v28 = vmul.f32 %v4452_v48, %v1079_v25 }
 0x1f8   :  { %v3859_v26 = vpack.c.bf16 %v2729_v21, %v2728_v20  ;;  %v1920_v31 = vadd.f32 %v4464_v46, %v1856_v22  ;;  %v2538_v32 = vadd.f32 %v4464_v46, %v2474_v23  ;;  %v3659_v20 = vld [vmem:[%s5027_s0 + $0xf8] sm:$0xff] }
 0x1f9   :  { %v621_v33 = vadd.f32 %v4464_v46, %v554_v27  ;;  %v1239_v34 = vadd.f32 %v4464_v46, %v1175_v28  ;;  %v3691_v21 = vld [vmem:[%s5027_s0 + $0x1f8] sm:$0xff] }
 0x1fa   :  { %3935 = vst [vmem:[%s5028_s4 + $0xa0] sm:$0xff] %v3859_v26   ;;  %v1984_v40 = vmax.f32 %v1920_v31, 0.0  ;;  %v2602_v41 = vmax.f32 %v2538_v32, 0.0  ;;  %v3723_v28 = vld [vmem:[%s5027_s0 + $0x2f8] sm:$0xff] }
 0x1fb   :  { %v685_v50 = vmax.f32 %v621_v33, 0.0  ;;  %v1303_v51 = vmax.f32 %v1239_v34, 0.0 }
 0x1fc   :  { %v2666_v56 = vmax.f32 %v1984_v40, %v2602_v41 }
 0x1fd   :  { %v1761_v37 = vpop.f32.mrf.mxu2  ;;  %v2379_v48 = vpop.f32.mrf.mxu3  ;;  %v1367_v59 = vmax.f32 %v685_v50, %v1303_v51 }
 0x1fe   :  { %v1857_v46 = vmul.f32 %v4802_v42, %v1761_v37  ;;  %v2475_v43 = vmul.f32 %v4802_v42, %v2379_v48  ;;  %v458_v44 = vpop.f32.mrf.mxu0  ;;  %v1082_v45 = vpop.f32.mrf.mxu1  ;;  %v2730_v1 = vmax.f32 %v1366_v55, %v2666_v56 }
 0x1ff   :  { %v555_v61 = vmul.f32 %v4802_v42, %v458_v44  ;;  %v1176_v62 = vmul.f32 %v4802_v42, %v1082_v45 }
 0x200   :  { %v1921_v53 = vadd.f32 %v4815_v52, %v1857_v46  ;;  %v2539_v54 = vadd.f32 %v4815_v52, %v2475_v43 }
 0x201   :  { %497 = vmatmul.bf16.gmra.mxu0 %v3658_v38  ;;  %1121 = vmatmul.bf16.gmra.mxu1 %v3690_v39  ;;  %v622_v10 = vadd.f32 %v4815_v52, %v555_v61  ;;  %v1240_v11 = vadd.f32 %v4815_v52, %v1176_v62 }
 0x202   :  { %v1985_v57 = vmax.f32 %v1921_v53, 0.0  ;;  %v2603_v58 = vmax.f32 %v2539_v54, 0.0  ;;  %1803 = vmatmul.bf16.gmra.mxu2 %v3722_v47  ;;  %2421 = vmatmul.bf16.gmra.mxu3 %v3754_v49 }
 0x203   :  { %v686_v16 = vmax.f32 %v622_v10, 0.0  ;;  %v1304_v17 = vmax.f32 %v1240_v11, 0.0 }
 0x204   :  { %v2667_v60 = vmax.f32 %v1985_v57, %v2603_v58 }
 0x205   :  { %v1764_v63 = vpop.f32.mrf.mxu2  ;;  %v2382_v0 = vpop.f32.mrf.mxu3  ;;  %v1368_v34 = vmax.f32 %v686_v16, %v1304_v17 }
 0x206   :  { %v2731_v2 = vmax.f32 %v1367_v59, %v2667_v60  ;;  %v1858_v3 = vmul.f32 %v4802_v42, %v1764_v63  ;;  %v2476_v4 = vmul.f32 %v4802_v42, %v2382_v0  ;;  %v460_v5 = vpop.f32.mrf.mxu0  ;;  %v1084_v6 = vpop.f32.mrf.mxu1 }
 0x207   :  { %v556_v8 = vmul.f32 %v4802_v42, %v460_v5  ;;  %v1177_v9 = vmul.f32 %v4802_v42, %v1084_v6 }
 0x208   :  { %v3864_v7 = vpack.c.bf16 %v2731_v2, %v2730_v1  ;;  %v1922_v12 = vadd.f32 %v4815_v52, %v1858_v3  ;;  %v2540_v13 = vadd.f32 %v4815_v52, %v2476_v4 }
 0x209   :  { %v623_v14 = vadd.f32 %v4815_v52, %v556_v8  ;;  %v1241_v15 = vadd.f32 %v4815_v52, %v1177_v9 }
 0x20a   :  { %3936 = vst [vmem:[%s5028_s4 + $0xa8] sm:$0xff] %v3864_v7   ;;  %v1986_v22 = vmax.f32 %v1922_v12, 0.0  ;;  %v2604_v23 = vmax.f32 %v2540_v13, 0.0 }
 0x20b   :  { %v687_v30 = vmax.f32 %v623_v14, 0.0  ;;  %v1305_v31 = vmax.f32 %v1241_v15, 0.0 }
 0x20c   :  { %v2668_v35 = vmax.f32 %v1986_v22, %v2604_v23 }
 0x20d   :  { %v1766_v18 = vpop.f32.mrf.mxu2  ;;  %v2384_v19 = vpop.f32.mrf.mxu3  ;;  %v1369_v48 = vmax.f32 %v687_v30, %v1305_v31 }
 0x20e   :  { %v1859_v24 = vmul.f32 %v4802_v42, %v1766_v18  ;;  %v2477_v25 = vmul.f32 %v4802_v42, %v2384_v19  ;;  %v463_v26 = vpop.f32.mrf.mxu0  ;;  %v1087_v27 = vpop.f32.mrf.mxu1  ;;  %v2732_v43 = vmax.f32 %v1368_v34, %v2668_v35 }
 0x20f   :  { %v557_v39 = vmul.f32 %v4802_v42, %v463_v26  ;;  %v1178_v40 = vmul.f32 %v4802_v42, %v1087_v27 }
 0x210   :  { %v1923_v32 = vadd.f32 %v4815_v52, %v1859_v24  ;;  %v2541_v33 = vadd.f32 %v4815_v52, %v2477_v25 }
 0x211   :  { %502 = vmatmul.bf16.gmra.mxu0 %v3659_v20  ;;  %1126 = vmatmul.bf16.gmra.mxu1 %v3691_v21  ;;  %v624_v55 = vadd.f32 %v4815_v52, %v557_v39  ;;  %v1242_v56 = vadd.f32 %v4815_v52, %v1178_v40 }
 0x212   :  { %v1987_v36 = vmax.f32 %v1923_v32, 0.0  ;;  %v2605_v37 = vmax.f32 %v2541_v33, 0.0  ;;  %1808 = vmatmul.bf16.gmra.mxu2 %v3723_v28  ;;  %2426 = vmatmul.bf16.gmra.mxu3 %v3755_v29 }
 0x213   :  { %v688_v61 = vmax.f32 %v624_v55, 0.0  ;;  %v1306_v62 = vmax.f32 %v1242_v56, 0.0 }
 0x214   :  { %v2669_v38 = vmax.f32 %v1987_v36, %v2605_v37 }
 0x215   :  { %v1769_v41 = vpop.f32.mrf.mxu2  ;;  %v2387_v46 = vpop.f32.mrf.mxu3  ;;  %v1370_v11 = vmax.f32 %v688_v61, %v1306_v62 }
 0x216   :  { %v2733_v44 = vmax.f32 %v1369_v48, %v2669_v38  ;;  %v1860_v45 = vmul.f32 %v4802_v42, %v1769_v41  ;;  %v2478_v47 = vmul.f32 %v4802_v42, %v2387_v46  ;;  %v465_v49 = vpop.f32.mrf.mxu0  ;;  %v1089_v50 = vpop.f32.mrf.mxu1 }
 0x217   :  { %v558_v53 = vmul.f32 %v4802_v42, %v465_v49  ;;  %v1179_v54 = vmul.f32 %v4802_v42, %v1089_v50 }
 0x218   :  { %v3869_v51 = vpack.c.bf16 %v2733_v44, %v2732_v43  ;;  %v1924_v57 = vadd.f32 %v4815_v52, %v1860_v45  ;;  %v2542_v58 = vadd.f32 %v4815_v52, %v2478_v47 }
 0x219   :  { %v625_v59 = vadd.f32 %v4815_v52, %v558_v53  ;;  %v1243_v60 = vadd.f32 %v4815_v52, %v1179_v54 }
 0x21a   :  { %3937 = vst [vmem:[%s5028_s4 + $0xb0] sm:$0xff] %v3869_v51   ;;  %v1988_v1 = vmax.f32 %v1924_v57, 0.0  ;;  %v2606_v2 = vmax.f32 %v2542_v58, 0.0 }
 0x21b   :  { %v689_v7 = vmax.f32 %v625_v59, 0.0  ;;  %v1307_v8 = vmax.f32 %v1243_v60, 0.0 }
 0x21c   :  { %v2670_v12 = vmax.f32 %v1988_v1, %v2606_v2 }
 0x21d   :  { %v1771_v63 = vpop.f32.mrf.mxu2  ;;  %v2389_v0 = vpop.f32.mrf.mxu3  ;;  %v1371_v15 = vmax.f32 %v689_v7, %v1307_v8 }
 0x21e   :  { %v1861_v3 = vmul.f32 %v4802_v42, %v1771_v63  ;;  %v2479_v4 = vmul.f32 %v4802_v42, %v2389_v0  ;;  %v468_v5 = vpop.f32.mrf.mxu0  ;;  %v1092_v6 = vpop.f32.mrf.mxu1  ;;  %v2734_v21 = vmax.f32 %v1370_v11, %v2670_v12 }
 0x21f   :  { %v559_v17 = vmul.f32 %v4802_v42, %v468_v5  ;;  %v1180_v18 = vmul.f32 %v4802_v42, %v1092_v6 }
 0x220   :  { %v1925_v9 = vadd.f32 %v4815_v52, %v1861_v3  ;;  %v2543_v10 = vadd.f32 %v4815_v52, %v2479_v4 }
 0x221   :  { %v626_v30 = vadd.f32 %v4815_v52, %v559_v17  ;;  %v1244_v31 = vadd.f32 %v4815_v52, %v1180_v18 }
 0x222   :  { %v1989_v13 = vmax.f32 %v1925_v9, 0.0  ;;  %v2607_v14 = vmax.f32 %v2543_v10, 0.0 }
 0x223   :  { %v690_v36 = vmax.f32 %v626_v30, 0.0  ;;  %v1308_v37 = vmax.f32 %v1244_v31, 0.0 }
 0x224   :  { %v2671_v16 = vmax.f32 %v1989_v13, %v2607_v14 }
 0x225   :  { %v1774_v19 = vpop.f32.mrf.mxu2  ;;  %v2392_v20 = vpop.f32.mrf.mxu3  ;;  %v1372_v51 = vmax.f32 %v690_v36, %v1308_v37 }
 0x226   :  { %v2735_v22 = vmax.f32 %v1371_v15, %v2671_v16  ;;  %v1862_v23 = vmul.f32 %v4802_v42, %v1774_v19  ;;  %v2480_v24 = vmul.f32 %v4802_v42, %v2392_v20  ;;  %v470_v25 = vpop.f32.mrf.mxu0  ;;  %v1094_v26 = vpop.f32.mrf.mxu1 }
 0x227   :  { %v560_v28 = vmul.f32 %v4802_v42, %v470_v25  ;;  %v1181_v29 = vmul.f32 %v4802_v42, %v1094_v26 }
 0x228   :  { %v3874_v27 = vpack.c.bf16 %v2735_v22, %v2734_v21  ;;  %v1926_v32 = vadd.f32 %v4815_v52, %v1862_v23  ;;  %v2544_v33 = vadd.f32 %v4815_v52, %v2480_v24 }
 0x229   :  { %v627_v34 = vadd.f32 %v4815_v52, %v560_v28  ;;  %v1245_v35 = vadd.f32 %v4815_v52, %v1181_v29 }
 0x22a   :  { %3938 = vst [vmem:[%s5028_s4 + $0xb8] sm:$0xff] %v3874_v27   ;;  %v1990_v39 = vmax.f32 %v1926_v32, 0.0  ;;  %v2608_v40 = vmax.f32 %v2544_v33, 0.0 }
 0x22b   :  { %v691_v45 = vmax.f32 %v627_v34, 0.0  ;;  %v1309_v47 = vmax.f32 %v1245_v35, 0.0 }
 0x22c   :  { %v2672_v53 = vmax.f32 %v1990_v39, %v2608_v40 }
 0x22d   :  { %v1776_v48 = vpop.f32.mrf.mxu2  ;;  %v2394_v38 = vpop.f32.mrf.mxu3  ;;  %v1373_v56 = vmax.f32 %v691_v45, %v1309_v47 }
 0x22e   :  { %v1863_v41 = vmul.f32 %v4802_v42, %v1776_v48  ;;  %v2481_v46 = vmul.f32 %v4802_v42, %v2394_v38  ;;  %v473_v43 = vpop.f32.mrf.mxu0  ;;  %v1097_v44 = vpop.f32.mrf.mxu1  ;;  %v2736_v62 = vmax.f32 %v1372_v51, %v2672_v53 }
 0x22f   :  { %v561_v58 = vmul.f32 %v4802_v42, %v473_v43  ;;  %v1182_v59 = vmul.f32 %v4802_v42, %v1097_v44 }
 0x230   :  { %v1927_v49 = vadd.f32 %v4815_v52, %v1863_v41  ;;  %v2545_v50 = vadd.f32 %v4815_v52, %v2481_v46 }
 0x231   :  { %v628_v7 = vadd.f32 %v4815_v52, %v561_v58  ;;  %v1246_v8 = vadd.f32 %v4815_v52, %v1182_v59 }
 0x232   :  { %v1991_v54 = vmax.f32 %v1927_v49, 0.0  ;;  %v2609_v55 = vmax.f32 %v2545_v50, 0.0 }
 0x233   :  { %v692_v13 = vmax.f32 %v628_v7, 0.0  ;;  %v1310_v14 = vmax.f32 %v1246_v8, 0.0 }
 0x234   :  { %v2673_v57 = vmax.f32 %v1991_v54, %v2609_v55 }
 0x235   :  { %v1779_v60 = vpop.f32.mrf.mxu2  ;;  %v2397_v61 = vpop.f32.mrf.mxu3  ;;  %v1374_v27 = vmax.f32 %v692_v13, %v1310_v14 }
 0x236   :  { %v2737_v63 = vmax.f32 %v1373_v56, %v2673_v57  ;;  %v1864_v0 = vmul.f32 %v4802_v42, %v1779_v60  ;;  %v2482_v1 = vmul.f32 %v4802_v42, %v2397_v61  ;;  %v475_v2 = vpop.f32.mrf.mxu0  ;;  %v1099_v3 = vpop.f32.mrf.mxu1 }
 0x237   :  { %v562_v5 = vmul.f32 %v4802_v42, %v475_v2  ;;  %v1183_v6 = vmul.f32 %v4802_v42, %v1099_v3 }
 0x238   :  { %v3879_v4 = vpack.c.bf16 %v2737_v63, %v2736_v62  ;;  %v1928_v9 = vadd.f32 %v4815_v52, %v1864_v0  ;;  %v2546_v10 = vadd.f32 %v4815_v52, %v2482_v1 }
 0x239   :  { %v629_v11 = vadd.f32 %v4815_v52, %v562_v5  ;;  %v1247_v12 = vadd.f32 %v4815_v52, %v1183_v6 }
 0x23a   :  { %3939 = vst [vmem:[%s5028_s4 + $0xc0] sm:$0xff] %v3879_v4   ;;  %v1992_v17 = vmax.f32 %v1928_v9, 0.0  ;;  %v2610_v18 = vmax.f32 %v2546_v10, 0.0 }
 0x23b   :  { %v693_v23 = vmax.f32 %v629_v11, 0.0  ;;  %v1311_v24 = vmax.f32 %v1247_v12, 0.0 }
 0x23c   :  { %v2674_v28 = vmax.f32 %v1992_v17, %v2610_v18 }
 0x23d   :  { %v1781_v15 = vpop.f32.mrf.mxu2  ;;  %v2399_v16 = vpop.f32.mrf.mxu3  ;;  %v1375_v31 = vmax.f32 %v693_v23, %v1311_v24 }
 0x23e   :  { %v1865_v19 = vmul.f32 %v4802_v42, %v1781_v15  ;;  %v2483_v20 = vmul.f32 %v4802_v42, %v2399_v16  ;;  %v478_v21 = vpop.f32.mrf.mxu0  ;;  %v1102_v22 = vpop.f32.mrf.mxu1  ;;  %v2738_v37 = vmax.f32 %v1374_v27, %v2674_v28 }
 0x23f   :  { %v563_v33 = vmul.f32 %v4802_v42, %v478_v21  ;;  %v1184_v34 = vmul.f32 %v4802_v42, %v1102_v22 }
 0x240   :  { %v1929_v25 = vadd.f32 %v4815_v52, %v1865_v19  ;;  %v2547_v26 = vadd.f32 %v4815_v52, %v2483_v20 }
 0x241   :  { %v630_v45 = vadd.f32 %v4815_v52, %v563_v33  ;;  %v1248_v47 = vadd.f32 %v4815_v52, %v1184_v34 }
 0x242   :  { %v1993_v29 = vmax.f32 %v1929_v25, 0.0  ;;  %v2611_v30 = vmax.f32 %v2547_v26, 0.0 }
 0x243   :  { %v694_v54 = vmax.f32 %v630_v45, 0.0  ;;  %v1312_v55 = vmax.f32 %v1248_v47, 0.0 }
 0x244   :  { %v2675_v32 = vmax.f32 %v1993_v29, %v2611_v30 }
 0x245   :  { %v1784_v35 = vpop.f32.mrf.mxu2  ;;  %v2402_v36 = vpop.f32.mrf.mxu3  ;;  %v1376_v4 = vmax.f32 %v694_v54, %v1312_v55 }
 0x246   :  { %v2739_v48 = vmax.f32 %v1375_v31, %v2675_v32  ;;  %v1866_v38 = vmul.f32 %v4802_v42, %v1784_v35  ;;  %v2484_v39 = vmul.f32 %v4802_v42, %v2402_v36  ;;  %v480_v40 = vpop.f32.mrf.mxu0  ;;  %v1104_v41 = vpop.f32.mrf.mxu1 }
 0x247   :  { %v564_v43 = vmul.f32 %v4802_v42, %v480_v40  ;;  %v1185_v44 = vmul.f32 %v4802_v42, %v1104_v41 }
 0x248   :  { %v3884_v46 = vpack.c.bf16 %v2739_v48, %v2738_v37  ;;  %v1930_v49 = vadd.f32 %v4815_v52, %v1866_v38  ;;  %v2548_v50 = vadd.f32 %v4815_v52, %v2484_v39 }
 0x249   :  { %v631_v51 = vadd.f32 %v4815_v52, %v564_v43  ;;  %v1249_v53 = vadd.f32 %v4815_v52, %v1185_v44 }
 0x24a   :  { %3940 = vst [vmem:[%s5028_s4 + $0xc8] sm:$0xff] %v3884_v46   ;;  %v1994_v58 = vmax.f32 %v1930_v49, 0.0  ;;  %v2612_v59 = vmax.f32 %v2548_v50, 0.0 }
 0x24b   :  { %v695_v0 = vmax.f32 %v631_v51, 0.0  ;;  %v1313_v1 = vmax.f32 %v1249_v53, 0.0 }
 0x24c   :  { %v2676_v5 = vmax.f32 %v1994_v58, %v2612_v59 }
 0x24d   :  { %v1786_v56 = vpop.f32.mrf.mxu2  ;;  %v2404_v57 = vpop.f32.mrf.mxu3  ;;  %v1377_v8 = vmax.f32 %v695_v0, %v1313_v1 }
 0x24e   :  { %v1867_v60 = vmul.f32 %v4802_v42, %v1786_v56  ;;  %v2485_v61 = vmul.f32 %v4802_v42, %v2404_v57  ;;  %v483_v62 = vpop.f32.mrf.mxu0  ;;  %v1107_v63 = vpop.f32.mrf.mxu1  ;;  %v2740_v14 = vmax.f32 %v1376_v4, %v2676_v5 }
 0x24f   :  { %v565_v10 = vmul.f32 %v4802_v42, %v483_v62  ;;  %v1186_v11 = vmul.f32 %v4802_v42, %v1107_v63 }
 0x250   :  { %v1931_v2 = vadd.f32 %v4815_v52, %v1867_v60  ;;  %v2549_v3 = vadd.f32 %v4815_v52, %v2485_v61 }
 0x251   :  { %v632_v23 = vadd.f32 %v4815_v52, %v565_v10  ;;  %v1250_v24 = vadd.f32 %v4815_v52, %v1186_v11 }
 0x252   :  { %v1995_v6 = vmax.f32 %v1931_v2, 0.0  ;;  %v2613_v7 = vmax.f32 %v2549_v3, 0.0 }
 0x253   :  { %v696_v29 = vmax.f32 %v632_v23, 0.0  ;;  %v1314_v30 = vmax.f32 %v1250_v24, 0.0 }
 0x254   :  { %v2677_v9 = vmax.f32 %v1995_v6, %v2613_v7 }
 0x255   :  { %v1789_v12 = vpop.f32.mrf.mxu2  ;;  %v2407_v13 = vpop.f32.mrf.mxu3  ;;  %v1378_v46 = vmax.f32 %v696_v29, %v1314_v30 }
 0x256   :  { %v2741_v15 = vmax.f32 %v1377_v8, %v2677_v9  ;;  %v1868_v16 = vmul.f32 %v4802_v42, %v1789_v12  ;;  %v2486_v17 = vmul.f32 %v4802_v42, %v2407_v13  ;;  %v485_v18 = vpop.f32.mrf.mxu0  ;;  %v1109_v19 = vpop.f32.mrf.mxu1 }
 0x257   :  { %v566_v21 = vmul.f32 %v4802_v42, %v485_v18  ;;  %v1187_v22 = vmul.f32 %v4802_v42, %v1109_v19 }
 0x258   :  { %v3889_v20 = vpack.c.bf16 %v2741_v15, %v2740_v14  ;;  %v1932_v25 = vadd.f32 %v4815_v52, %v1868_v16  ;;  %v2550_v26 = vadd.f32 %v4815_v52, %v2486_v17 }
 0x259   :  { %v633_v27 = vadd.f32 %v4815_v52, %v566_v21  ;;  %v1251_v28 = vadd.f32 %v4815_v52, %v1187_v22 }
 0x25a   :  { %3941 = vst [vmem:[%s5028_s4 + $0xd0] sm:$0xff] %v3889_v20   ;;  %v1996_v33 = vmax.f32 %v1932_v25, 0.0  ;;  %v2614_v34 = vmax.f32 %v2550_v26, 0.0 }
 0x25b   :  { %v697_v38 = vmax.f32 %v633_v27, 0.0  ;;  %v1315_v39 = vmax.f32 %v1251_v28, 0.0 }
 0x25c   :  { %v2678_v43 = vmax.f32 %v1996_v33, %v2614_v34 }
 0x25d   :  { %v1791_v31 = vpop.f32.mrf.mxu2  ;;  %v2409_v32 = vpop.f32.mrf.mxu3  ;;  %v1379_v47 = vmax.f32 %v697_v38, %v1315_v39 }
 0x25e   :  { %v1869_v35 = vmul.f32 %v4802_v42, %v1791_v31  ;;  %v2487_v36 = vmul.f32 %v4802_v42, %v2409_v32  ;;  %v488_v37 = vpop.f32.mrf.mxu0  ;;  %v1112_v48 = vpop.f32.mrf.mxu1  ;;  %v2742_v55 = vmax.f32 %v1378_v46, %v2678_v43 }
 0x25f   :  { %v567_v50 = vmul.f32 %v4802_v42, %v488_v37  ;;  %v1188_v51 = vmul.f32 %v4802_v42, %v1112_v48 }
 0x260   :  { %v1933_v40 = vadd.f32 %v4815_v52, %v1869_v35  ;;  %v2551_v41 = vadd.f32 %v4815_v52, %v2487_v36 }
 0x261   :  { %v634_v0 = vadd.f32 %v4815_v52, %v567_v50  ;;  %v1252_v1 = vadd.f32 %v4815_v52, %v1188_v51 }
 0x262   :  { %v1997_v44 = vmax.f32 %v1933_v40, 0.0  ;;  %v2615_v45 = vmax.f32 %v2551_v41, 0.0 }
 0x263   :  { %v698_v6 = vmax.f32 %v634_v0, 0.0  ;;  %v1316_v7 = vmax.f32 %v1252_v1, 0.0 }
 0x264   :  { %v2679_v49 = vmax.f32 %v1997_v44, %v2615_v45 }
 0x265   :  { %v1794_v53 = vpop.f32.mrf.mxu2  ;;  %v2412_v54 = vpop.f32.mrf.mxu3  ;;  %v1380_v20 = vmax.f32 %v698_v6, %v1316_v7 }
 0x266   :  { %v2743_v56 = vmax.f32 %v1379_v47, %v2679_v49  ;;  %v1870_v57 = vmul.f32 %v4802_v42, %v1794_v53  ;;  %v2488_v58 = vmul.f32 %v4802_v42, %v2412_v54  ;;  %v490_v59 = vpop.f32.mrf.mxu0  ;;  %v1114_v60 = vpop.f32.mrf.mxu1 }
 0x267   :  { %v568_v62 = vmul.f32 %v4802_v42, %v490_v59  ;;  %v1189_v63 = vmul.f32 %v4802_v42, %v1114_v60 }
 0x268   :  { %v3894_v61 = vpack.c.bf16 %v2743_v56, %v2742_v55  ;;  %v1934_v2 = vadd.f32 %v4815_v52, %v1870_v57  ;;  %v2552_v3 = vadd.f32 %v4815_v52, %v2488_v58 }
 0x269   :  { %v635_v4 = vadd.f32 %v4815_v52, %v568_v62  ;;  %v1253_v5 = vadd.f32 %v4815_v52, %v1189_v63 }
 0x26a   :  { %3942 = vst [vmem:[%s5028_s4 + $0xd8] sm:$0xff] %v3894_v61   ;;  %v1998_v10 = vmax.f32 %v1934_v2, 0.0  ;;  %v2616_v11 = vmax.f32 %v2552_v3, 0.0 }
 0x26b   :  { %v699_v16 = vmax.f32 %v635_v4, 0.0  ;;  %v1317_v17 = vmax.f32 %v1253_v5, 0.0 }
 0x26c   :  { %v2680_v21 = vmax.f32 %v1998_v10, %v2616_v11 }
 0x26d   :  { %v1796_v8 = vpop.f32.mrf.mxu2  ;;  %v2414_v9 = vpop.f32.mrf.mxu3  ;;  %v1381_v24 = vmax.f32 %v699_v16, %v1317_v17 }
 0x26e   :  { %v1871_v12 = vmul.f32 %v4802_v42, %v1796_v8  ;;  %v2489_v13 = vmul.f32 %v4802_v42, %v2414_v9  ;;  %v493_v14 = vpop.f32.mrf.mxu0  ;;  %v1117_v15 = vpop.f32.mrf.mxu1  ;;  %v2744_v30 = vmax.f32 %v1380_v20, %v2680_v21 }
 0x26f   :  { %v569_v26 = vmul.f32 %v4802_v42, %v493_v14  ;;  %v1190_v27 = vmul.f32 %v4802_v42, %v1117_v15 }
 0x270   :  { %v1935_v18 = vadd.f32 %v4815_v52, %v1871_v12  ;;  %v2553_v19 = vadd.f32 %v4815_v52, %v2489_v13 }
 0x271   :  { %v636_v38 = vadd.f32 %v4815_v52, %v569_v26  ;;  %v1254_v39 = vadd.f32 %v4815_v52, %v1190_v27 }
 0x272   :  { %v1999_v22 = vmax.f32 %v1935_v18, 0.0  ;;  %v2617_v23 = vmax.f32 %v2553_v19, 0.0 }
 0x273   :  { %v700_v44 = vmax.f32 %v636_v38, 0.0  ;;  %v1318_v45 = vmax.f32 %v1254_v39, 0.0 }
 0x274   :  { %v2681_v25 = vmax.f32 %v1999_v22, %v2617_v23 }
 0x275   :  { %v1799_v28 = vpop.f32.mrf.mxu2  ;;  %v2417_v29 = vpop.f32.mrf.mxu3  ;;  %v1382_v61 = vmax.f32 %v700_v44, %v1318_v45 }
 0x276   :  { %v2745_v31 = vmax.f32 %v1381_v24, %v2681_v25  ;;  %v1872_v32 = vmul.f32 %v4802_v42, %v1799_v28  ;;  %v2490_v33 = vmul.f32 %v4802_v42, %v2417_v29  ;;  %v495_v34 = vpop.f32.mrf.mxu0  ;;  %v1119_v35 = vpop.f32.mrf.mxu1 }
 0x277   :  { %v570_v37 = vmul.f32 %v4802_v42, %v495_v34  ;;  %v1191_v48 = vmul.f32 %v4802_v42, %v1119_v35 }
 0x278   :  { %v3899_v36 = vpack.c.bf16 %v2745_v31, %v2744_v30  ;;  %v1936_v40 = vadd.f32 %v4815_v52, %v1872_v32  ;;  %v2554_v41 = vadd.f32 %v4815_v52, %v2490_v33 }
 0x279   :  { %v637_v46 = vadd.f32 %v4815_v52, %v570_v37  ;;  %v1255_v43 = vadd.f32 %v4815_v52, %v1191_v48 }
 0x27a   :  { %3943 = vst [vmem:[%s5028_s4 + $0xe0] sm:$0xff] %v3899_v36   ;;  %v2000_v50 = vmax.f32 %v1936_v40, 0.0  ;;  %v2618_v51 = vmax.f32 %v2554_v41, 0.0 }
 0x27b   :  { %v701_v57 = vmax.f32 %v637_v46, 0.0  ;;  %v1319_v58 = vmax.f32 %v1255_v43, 0.0 }
 0x27c   :  { %v2682_v62 = vmax.f32 %v2000_v50, %v2618_v51 }
 0x27d   :  { %v1801_v47 = vpop.f32.mrf.mxu2  ;;  %v2419_v49 = vpop.f32.mrf.mxu3  ;;  %v1383_v1 = vmax.f32 %v701_v57, %v1319_v58 }
 0x27e   :  { %v1873_v53 = vmul.f32 %v4802_v42, %v1801_v47  ;;  %v2491_v54 = vmul.f32 %v4802_v42, %v2419_v49  ;;  %v498_v55 = vpop.f32.mrf.mxu0  ;;  %v1122_v56 = vpop.f32.mrf.mxu1  ;;  %v2746_v7 = vmax.f32 %v1382_v61, %v2682_v62 }
 0x27f   :  { %v571_v3 = vmul.f32 %v4802_v42, %v498_v55  ;;  %v1192_v4 = vmul.f32 %v4802_v42, %v1122_v56 }
 0x280   :  { %v1937_v59 = vadd.f32 %v4815_v52, %v1873_v53  ;;  %v2555_v60 = vadd.f32 %v4815_v52, %v2491_v54 }
 0x281   :  { %v638_v16 = vadd.f32 %v4815_v52, %v571_v3  ;;  %v1256_v17 = vadd.f32 %v4815_v52, %v1192_v4 }
 0x282   :  { %v2001_v63 = vmax.f32 %v1937_v59, 0.0  ;;  %v2619_v0 = vmax.f32 %v2555_v60, 0.0 }
 0x283   :  { %v702_v22 = vmax.f32 %v638_v16, 0.0  ;;  %v1320_v23 = vmax.f32 %v1256_v17, 0.0 }
 0x284   :  { %v2683_v2 = vmax.f32 %v2001_v63, %v2619_v0 }
 0x285   :  { %v1804_v5 = vpop.f32.mrf.mxu2  ;;  %v2422_v6 = vpop.f32.mrf.mxu3  ;;  %v1384_v36 = vmax.f32 %v702_v22, %v1320_v23 }
 0x286   :  { %v2747_v8 = vmax.f32 %v1383_v1, %v2683_v2  ;;  %v1874_v9 = vmul.f32 %v4802_v42, %v1804_v5  ;;  %v2492_v10 = vmul.f32 %v4802_v42, %v2422_v6  ;;  %v500_v11 = vpop.f32.mrf.mxu0  ;;  %v1124_v12 = vpop.f32.mrf.mxu1 }
 0x287   :  { %v572_v14 = vmul.f32 %v4802_v42, %v500_v11  ;;  %v1193_v15 = vmul.f32 %v4802_v42, %v1124_v12 }
 0x288   :  { %v3904_v13 = vpack.c.bf16 %v2747_v8, %v2746_v7  ;;  %v1938_v18 = vadd.f32 %v4815_v52, %v1874_v9  ;;  %v2556_v19 = vadd.f32 %v4815_v52, %v2492_v10 }
 0x289   :  { %v639_v20 = vadd.f32 %v4815_v52, %v572_v14  ;;  %v1257_v21 = vadd.f32 %v4815_v52, %v1193_v15 }
 0x28a   :  { %3944 = vst [vmem:[%s5028_s4 + $0xe8] sm:$0xff] %v3904_v13   ;;  %v2002_v26 = vmax.f32 %v1938_v18, 0.0  ;;  %v2620_v27 = vmax.f32 %v2556_v19, 0.0 }
 0x28b   :  { %v703_v32 = vmax.f32 %v639_v20, 0.0  ;;  %v1321_v33 = vmax.f32 %v1257_v21, 0.0 }
 0x28c   :  { %v2684_v37 = vmax.f32 %v2002_v26, %v2620_v27 }
 0x28d   :  { %v1806_v24 = vpop.f32.mrf.mxu2  ;;  %v2424_v25 = vpop.f32.mrf.mxu3  ;;  %v1385_v39 = vmax.f32 %v703_v32, %v1321_v33 }
 0x28e   :  { %v1875_v28 = vmul.f32 %v4802_v42, %v1806_v24  ;;  %v2493_v29 = vmul.f32 %v4802_v42, %v2424_v25  ;;  %v503_v30 = vpop.f32.mrf.mxu0  ;;  %v1127_v31 = vpop.f32.mrf.mxu1  ;;  %v2748_v45 = vmax.f32 %v1384_v36, %v2684_v37 }
 0x28f   :  { %v573_v41 = vmul.f32 %v4802_v42, %v503_v30  ;;  %v1194_v46 = vmul.f32 %v4802_v42, %v1127_v31 }
 0x290   :  { %v1939_v34 = vadd.f32 %v4815_v52, %v1875_v28  ;;  %v2557_v35 = vadd.f32 %v4815_v52, %v2493_v29 }
 0x291   :  { %v640_v57 = vadd.f32 %v4815_v52, %v573_v41  ;;  %v1258_v58 = vadd.f32 %v4815_v52, %v1194_v46 }
 0x292   :  { %v2003_v48 = vmax.f32 %v1939_v34, 0.0  ;;  %v2621_v38 = vmax.f32 %v2557_v35, 0.0 }
 0x293   :  { %v704_v63 = vmax.f32 %v640_v57, 0.0  ;;  %v1322_v0 = vmax.f32 %v1258_v58, 0.0 }
 0x294   :  { %v2685_v40 = vmax.f32 %v2003_v48, %v2621_v38 }
 0x295   :  { %v1809_v43 = vpop.f32.mrf.mxu2  ;;  %v2427_v44 = vpop.f32.mrf.mxu3  ;;  %v1386_v11 = vmax.f32 %v704_v63, %v1322_v0 }
 0x296   :  { %v2749_v47 = vmax.f32 %v1385_v39, %v2685_v40  ;;  %v1876_v49 = vmul.f32 %v4802_v42, %v1809_v43  ;;  %v2494_v50 = vmul.f32 %v4802_v42, %v2427_v44  ;;  %v505_v51 = vpop.f32.mrf.mxu0  ;;  %v1129_v53 = vpop.f32.mrf.mxu1 }
 0x297   :  { %v574_v55 = vmul.f32 %v4802_v42, %v505_v51  ;;  %v1195_v56 = vmul.f32 %v4802_v42, %v1129_v53 }
 0x298   :  { %v3909_v54 = vpack.c.bf16 %v2749_v47, %v2748_v45  ;;  %v1940_v59 = vadd.f32 %v4815_v52, %v1876_v49  ;;  %v2558_v60 = vadd.f32 %v4815_v52, %v2494_v50 }
 0x299   :  { %v641_v61 = vadd.f32 %v4815_v52, %v574_v55  ;;  %v1259_v62 = vadd.f32 %v4815_v52, %v1195_v56 }
 0x29a   :  { %3945 = vst [vmem:[%s5028_s4 + $0xf0] sm:$0xff] %v3909_v54   ;;  %v2004_v3 = vmax.f32 %v1940_v59, 0.0  ;;  %v2622_v4 = vmax.f32 %v2558_v60, 0.0 }
 0x29b   :  { %v705_v7 = vmax.f32 %v641_v61, 0.0  ;;  %v1323_v8 = vmax.f32 %v1259_v62, 0.0 }
 0x29c   :  { %v2686_v12 = vmax.f32 %v2004_v3, %v2622_v4 }
 0x29d   :  { %v1811_v1 = vpop.f32.mrf.mxu2  ;;  %v2429_v2 = vpop.f32.mrf.mxu3  ;;  %v1387_v15 = vmax.f32 %v705_v7, %v1323_v8 }
 0x29e   :  { %v1877_v5 = vmul.f32 %v4802_v42, %v1811_v1  ;;  %v2495_v6 = vmul.f32 %v4802_v42, %v2429_v2  ;;  %v2750_v17 = vmax.f32 %v1386_v11, %v2686_v12 }
 0x2a0   :  { %v1941_v9 = vadd.f32 %v4815_v52, %v1877_v5  ;;  %v2559_v10 = vadd.f32 %v4815_v52, %v2495_v6 }
 0x2a2   :  { %v2005_v13 = vmax.f32 %v1941_v9, 0.0  ;;  %v2623_v14 = vmax.f32 %v2559_v10, 0.0 }
 0x2a4   :  { %v2687_v16 = vmax.f32 %v2005_v13, %v2623_v14 }
 0x2a6   :  { %v2751_v18 = vmax.f32 %v1387_v15, %v2687_v16 }
 0x2a8   :  { %v3914_v19 = vpack.c.bf16 %v2751_v18, %v2750_v17 }
 0x2aa   :  { %3946 = vst [vmem:[%s5028_s4 + $0xf8] sm:$0xff] %v3914_v19  }

// kernel: net_forward.4
= control target key start
LH: loop header
LB: loop body
LE: loop exit
PB: predicated region body
PF: predicated region fallthrough
CT: control target
= control target key end

     0   :  { %s4456_s1 = inlined_call_operand.vmem [shape: bf16[512,128], index: 1, kind: input, shape index: {}]   ;;  %s4457_s0 = inlined_call_operand.vmem [shape: bf16[4,128,512], index: 0, kind: input, shape index: {}]   ;;  %s4458_s2 = inlined_call_operand.vmem [shape: f32[1,128], index: 2, kind: input, shape index: {}]   ;;  %s4459_s3 = inlined_call_operand.vmem [shape: f32[1,128], index: 3, kind: input, shape index: {}]   ;;  %s4460_s4 = inlined_call_operand.vmem [shape: bf16[128,128], index: 4, kind: output, shape index: {}]  }
   0x1   :  { %v3087_v0 = vld [vmem:[%s4456_s1 + $0x38] sm:$0xff]  ;;  %v3109_v4 = vld [vmem:[%s4456_s1 + $0x30] sm:$0xff]  ;;  %v3133_v8 = vld [vmem:[%s4456_s1 + $0x28] sm:$0xff] }
   0x2   :  { %v3092_v1 = vld [vmem:[%s4456_s1 + $0x78] sm:$0xff]  ;;  %467 = vmatpush.bf16.msra.mxu0 %v3087_v0  ;;  %v3114_v5 = vld [vmem:[%s4456_s1 + $0x70] sm:$0xff]  ;;  %v3138_v9 = vld [vmem:[%s4456_s1 + $0x68] sm:$0xff] }
   0x3   :  { %v3097_v2 = vld [vmem:[%s4456_s1 + $0xb8] sm:$0xff]  ;;  %516 = vmatpush.bf16.msra.mxu1 %v3092_v1  ;;  %v3121_v6 = vld [vmem:[%s4456_s1 + $0xb0] sm:$0xff]  ;;  %v3145_v10 = vld [vmem:[%s4456_s1 + $0xa8] sm:$0xff] }
   0x4   :  { %v3102_v3 = vld [vmem:[%s4456_s1 + $0xf8] sm:$0xff]  ;;  %565 = vmatpush.bf16.msra.mxu2 %v3097_v2  ;;  %v3126_v7 = vld [vmem:[%s4456_s1 + $0xf0] sm:$0xff]  ;;  %v3150_v11 = vld [vmem:[%s4456_s1 + $0xe8] sm:$0xff] }
   0x5   :  { %614 = vmatpush.bf16.msra.mxu3 %v3102_v3  ;;  %v3157_v12 = vld [vmem:[%s4456_s1 + $0x20] sm:$0xff]  ;;  %v3181_v16 = vld [vmem:[%s4456_s1 + $0x18] sm:$0xff]  ;;  %v3205_v20 = vld [vmem:[%s4456_s1 + $0x10] sm:$0xff] }
   0x6   :  { %468 = vmatpush.bf16.msra.mxu0 %v3109_v4  ;;  %v3162_v13 = vld [vmem:[%s4456_s1 + $0x60] sm:$0xff]  ;;  %v3186_v17 = vld [vmem:[%s4456_s1 + $0x58] sm:$0xff]  ;;  %v3210_v21 = vld [vmem:[%s4456_s1 + $0x50] sm:$0xff] }
   0x7   :  { %517 = vmatpush.bf16.msra.mxu1 %v3114_v5  ;;  %v3169_v14 = vld [vmem:[%s4456_s1 + $0xa0] sm:$0xff]  ;;  %v3193_v18 = vld [vmem:[%s4456_s1 + $0x98] sm:$0xff]  ;;  %v3217_v22 = vld [vmem:[%s4456_s1 + $0x90] sm:$0xff] }
   0x8   :  { %566 = vmatpush.bf16.msra.mxu2 %v3121_v6  ;;  %v3174_v15 = vld [vmem:[%s4456_s1 + $0xe0] sm:$0xff]  ;;  %v3198_v19 = vld [vmem:[%s4456_s1 + $0xd8] sm:$0xff]  ;;  %v3222_v23 = vld [vmem:[%s4456_s1 + $0xd0] sm:$0xff] }
   0x9   :  { %615 = vmatpush.bf16.msra.mxu3 %v3126_v7  ;;  %v3229_v24 = vld [vmem:[%s4456_s1 + $0x8] sm:$0xff]  ;;  %v3251_v28 = vld [vmem:[%s4456_s1] sm:$0xff]  ;;  %v2882_v33 = vld [vmem:[%s4457_s0 + $0xc] sm:$0xf0] }
   0xa   :  { %469 = vmatpush.bf16.msra.mxu0 %v3133_v8  ;;  %v3234_v25 = vld [vmem:[%s4456_s1 + $0x48] sm:$0xff]  ;;  %v3256_v29 = vld [vmem:[%s4456_s1 + $0x40] sm:$0xff]  ;;  %v2116_v35 = vld [vmem:[%s4457_s0 + $0x10] sm:$0xf0] }
   0xb   :  { %518 = vmatpush.bf16.msra.mxu1 %v3138_v9  ;;  %v3241_v26 = vld [vmem:[%s4456_s1 + $0x88] sm:$0xff]  ;;  %v3261_v30 = vld [vmem:[%s4456_s1 + $0x80] sm:$0xff]  ;;  %v2883_v37 = vld [vmem:[%s4457_s0 + $0x14] sm:$0xf0] }
   0xc   :  { %567 = vmatpush.bf16.msra.mxu2 %v3145_v10  ;;  %v3246_v27 = vld [vmem:[%s4456_s1 + $0xc8] sm:$0xff]  ;;  %v3266_v31 = vld [vmem:[%s4456_s1 + $0xc0] sm:$0xff]  ;;  %v2124_v39 = vld [vmem:[%s4457_s0 + $0x18] sm:$0xf0] }
   0xd   :  { %616 = vmatpush.bf16.msra.mxu3 %v3150_v11  ;;  %v2114_v32 = vld [vmem:[%s4457_s0] sm:$0xf]  ;;  %v2880_v34 = vld [vmem:[%s4457_s0 + $0x4] sm:$0xf]  ;;  %v2122_v36 = vld [vmem:[%s4457_s0 + $0x8] sm:$0xf] }
   0xe   :  { %470 = vmatpush.bf16.msra.mxu0 %v3157_v12  ;;  %v2881_v38 = vld [vmem:[%s4457_s0 + $0xc] sm:$0xf]  ;;  %v2115_v40 = vor.u32 %v2882_v33, %v2114_v32  ;;  %v2119_v41 = vor.u32 %v2880_v34, %v2116_v35  ;;  %v2123_v42 = vor.u32 %v2883_v37, %v2122_v36  ;;  %v2130_v44 = vld [vmem:[%s4457_s0 + $0x20] sm:$0xf]  ;;  %v2886_v45 = vld [vmem:[%s4457_s0 + $0x2c] sm:$0xf0] }
   0xf   :  { %519 = vmatpush.bf16.msra.mxu1 %v3162_v13  ;;  %v2127_v43 = vor.u32 %v2881_v38, %v2124_v39  ;;  %v2884_v46 = vld [vmem:[%s4457_s0 + $0x24] sm:$0xf]  ;;  %v2132_v47 = vld [vmem:[%s4457_s0 + $0x30] sm:$0xf0]  ;;  %v2138_v48 = vld [vmem:[%s4457_s0 + $0x28] sm:$0xf]  ;;  %v2131_v52 = vor.u32 %v2886_v45, %v2130_v44 }
  0x10   :  { %568 = vmatpush.bf16.msra.mxu2 %v3169_v14  ;;  %v2887_v49 = vld [vmem:[%s4457_s0 + $0x34] sm:$0xf0]  ;;  %v2885_v50 = vld [vmem:[%s4457_s0 + $0x2c] sm:$0xf]  ;;  %v2140_v51 = vld [vmem:[%s4457_s0 + $0x38] sm:$0xf0]  ;;  %v2135_v53 = vor.u32 %v2884_v46, %v2132_v47 }
  0x11   :  { %617 = vmatpush.bf16.msra.mxu3 %v3174_v15  ;;  %v2139_v54 = vor.u32 %v2887_v49, %v2138_v48  ;;  %v2143_v55 = vor.u32 %v2885_v50, %v2140_v51  ;;  %v2146_v56 = vld [vmem:[%s4457_s0 + $0x40] sm:$0xf]  ;;  %v2890_v57 = vld [vmem:[%s4457_s0 + $0x4c] sm:$0xf0]  ;;  %v2888_v58 = vld [vmem:[%s4457_s0 + $0x44] sm:$0xf] }
  0x12   :  { %471 = vmatpush.bf16.msra.mxu0 %v3181_v16  ;;  %v2148_v59 = vld [vmem:[%s4457_s0 + $0x50] sm:$0xf0]  ;;  %v2154_v60 = vld [vmem:[%s4457_s0 + $0x48] sm:$0xf]  ;;  %v2891_v61 = vld [vmem:[%s4457_s0 + $0x54] sm:$0xf0]  ;;  %v2147_v32 = vor.u32 %v2890_v57, %v2146_v56 }
  0x13   :  { %520 = vmatpush.bf16.msra.mxu1 %v3186_v17  ;;  %v2889_v62 = vld [vmem:[%s4457_s0 + $0x4c] sm:$0xf]  ;;  %v2156_v63 = vld [vmem:[%s4457_s0 + $0x58] sm:$0xf0]  ;;  %v2151_v33 = vor.u32 %v2888_v58, %v2148_v59  ;;  %v2155_v34 = vor.u32 %v2891_v61, %v2154_v60  ;;  %v2162_v36 = vld [vmem:[%s4457_s0 + $0x60] sm:$0xf] }
  0x14   :  { %569 = vmatpush.bf16.msra.mxu2 %v3193_v18  ;;  %v2159_v35 = vor.u32 %v2889_v62, %v2156_v63  ;;  %v2894_v37 = vld [vmem:[%s4457_s0 + $0x6c] sm:$0xf0]  ;;  %v2892_v38 = vld [vmem:[%s4457_s0 + $0x64] sm:$0xf]  ;;  %v2164_v39 = vld [vmem:[%s4457_s0 + $0x70] sm:$0xf0] }
  0x15   :  { %618 = vmatpush.bf16.msra.mxu3 %v3198_v19  ;;  %v2163_v44 = vor.u32 %v2894_v37, %v2162_v36  ;;  %v2167_v45 = vor.u32 %v2892_v38, %v2164_v39  ;;  %v2178_v48 = vld [vmem:[%s4457_s0 + $0x80] sm:$0xf]  ;;  %v2898_v49 = vld [vmem:[%s4457_s0 + $0x8c] sm:$0xf0]  ;;  %v2896_v50 = vld [vmem:[%s4457_s0 + $0x84] sm:$0xf] }
  0x16   :  { %472 = vmatpush.bf16.msra.mxu0 %v3205_v20  ;;  %v2180_v51 = vld [vmem:[%s4457_s0 + $0x90] sm:$0xf0]  ;;  %v2179_v56 = vor.u32 %v2898_v49, %v2178_v48  ;;  %v2194_v60 = vld [vmem:[%s4457_s0 + $0xa0] sm:$0xf]  ;;  %v2902_v61 = vld [vmem:[%s4457_s0 + $0xac] sm:$0xf0] }
  0x17   :  { %521 = vmatpush.bf16.msra.mxu1 %v3210_v21  ;;  %v2183_v57 = vor.u32 %v2896_v50, %v2180_v51  ;;  %v2900_v62 = vld [vmem:[%s4457_s0 + $0xa4] sm:$0xf]  ;;  %v2196_v63 = vld [vmem:[%s4457_s0 + $0xb0] sm:$0xf0]  ;;  %v2195_v36 = vor.u32 %v2902_v61, %v2194_v60 }
  0x18   :  { %570 = vmatpush.bf16.msra.mxu2 %v3217_v22  ;;  %v2199_v37 = vor.u32 %v2900_v62, %v2196_v63 }
  0x19   :  { %619 = vmatpush.bf16.msra.mxu3 %v3222_v23 }
  0x1a   :  { %473 = vmatpush.bf16.msra.mxu0 %v3229_v24 }
  0x1b   :  { %522 = vmatpush.bf16.msra.mxu1 %v3234_v25 }
  0x1c   :  { %571 = vmatpush.bf16.msra.mxu2 %v3241_v26 }
  0x1d   :  { %620 = vmatpush.bf16.msra.mxu3 %v3246_v27 }
  0x1e   :  { %474 = vmatpush.bf16.msra.mxu0 %v3251_v28 }
  0x1f   :  { %523 = vmatpush.bf16.msra.mxu1 %v3256_v29 }
  0x20   :  { %572 = vmatpush.bf16.msra.mxu2 %v3261_v30 }
  0x21   :  { %621 = vmatpush.bf16.msra.mxu3 %v3266_v31  ;;  %475 = vmatmul.bf16.vlgmr.msra.gmra.mxu0 %v2115_v40  ;;  %v2170_v40 = vld [vmem:[%s4457_s0 + $0x68] sm:$0xf] }
  0x22   :  { %524 = vmatmul.bf16.vlgmr.msra.gmra.mxu1 %v2119_v41  ;;  %910 = vmatpush.bf16.msrb.mxu0 %v3087_v0  ;;  %v2895_v41 = vld [vmem:[%s4457_s0 + $0x74] sm:$0xf0] }
  0x23   :  { %573 = vmatmul.bf16.vlgmr.msra.gmra.mxu2 %v2123_v42  ;;  %959 = vmatpush.bf16.msrb.mxu1 %v3092_v1  ;;  %v2893_v42 = vld [vmem:[%s4457_s0 + $0x6c] sm:$0xf]  ;;  %v2171_v46 = vor.u32 %v2895_v41, %v2170_v40  ;;  %v2210_v40 = vld [vmem:[%s4457_s0 + $0xc0] sm:$0xf]  ;;  %v2906_v41 = vld [vmem:[%s4457_s0 + $0xcc] sm:$0xf0] }
  0x24   :  { %1008 = vmatpush.bf16.msrb.mxu2 %v3097_v2  ;;  %622 = vmatmul.bf16.vlgmr.msra.gmra.mxu3 %v2127_v43  ;;  %v2172_v43 = vld [vmem:[%s4457_s0 + $0x78] sm:$0xf0]  ;;  %v2211_v48 = vor.u32 %v2906_v41, %v2210_v40 }
  0x25   :  { %1057 = vmatpush.bf16.msrb.mxu3 %v3102_v3  ;;  %v2175_v47 = vor.u32 %v2893_v42, %v2172_v43  ;;  %v2904_v42 = vld [vmem:[%s4457_s0 + $0xc4] sm:$0xf]  ;;  %v2212_v43 = vld [vmem:[%s4457_s0 + $0xd0] sm:$0xf0] }
  0x26   :  { %911 = vmatpush.bf16.msrb.mxu0 %v3109_v4  ;;  %v2215_v49 = vor.u32 %v2904_v42, %v2212_v43 }
  0x27   :  { %960 = vmatpush.bf16.msrb.mxu1 %v3114_v5 }
  0x28   :  { %1009 = vmatpush.bf16.msrb.mxu2 %v3121_v6 }
  0x29   :  { %1058 = vmatpush.bf16.msrb.mxu3 %v3126_v7 }
  0x2a   :  { %912 = vmatpush.bf16.msrb.mxu0 %v3133_v8 }
  0x2b   :  { %961 = vmatpush.bf16.msrb.mxu1 %v3138_v9 }
  0x2c   :  { %1010 = vmatpush.bf16.msrb.mxu2 %v3145_v10 }
  0x2d   :  { %1059 = vmatpush.bf16.msrb.mxu3 %v3150_v11 }
  0x2e   :  { %913 = vmatpush.bf16.msrb.mxu0 %v3157_v12 }
  0x2f   :  { %962 = vmatpush.bf16.msrb.mxu1 %v3162_v13 }
  0x30   :  { %1011 = vmatpush.bf16.msrb.mxu2 %v3169_v14 }
  0x31   :  { %1060 = vmatpush.bf16.msrb.mxu3 %v3174_v15  ;;  %480 = vmatmul.bf16.gmra.mxu0 %v2131_v52  ;;  %v2186_v52 = vld [vmem:[%s4457_s0 + $0x88] sm:$0xf] }
  0x32   :  { %529 = vmatmul.bf16.gmra.mxu1 %v2135_v53  ;;  %914 = vmatpush.bf16.msrb.mxu0 %v3181_v16  ;;  %v2899_v53 = vld [vmem:[%s4457_s0 + $0x94] sm:$0xf0] }
  0x33   :  { %578 = vmatmul.bf16.gmra.mxu2 %v2139_v54  ;;  %963 = vmatpush.bf16.msrb.mxu1 %v3186_v17  ;;  %v2897_v54 = vld [vmem:[%s4457_s0 + $0x8c] sm:$0xf]  ;;  %v2187_v58 = vor.u32 %v2899_v53, %v2186_v52  ;;  %v2226_v52 = vld [vmem:[%s4457_s0 + $0xe0] sm:$0xf]  ;;  %v2910_v53 = vld [vmem:[%s4457_s0 + $0xec] sm:$0xf0] }
  0x34   :  { %1012 = vmatpush.bf16.msrb.mxu2 %v3193_v18  ;;  %627 = vmatmul.bf16.gmra.mxu3 %v2143_v55  ;;  %v2188_v55 = vld [vmem:[%s4457_s0 + $0x98] sm:$0xf0]  ;;  %v2227_v60 = vor.u32 %v2910_v53, %v2226_v52 }
  0x35   :  { %1061 = vmatpush.bf16.msrb.mxu3 %v3198_v19  ;;  %v2191_v59 = vor.u32 %v2897_v54, %v2188_v55  ;;  %v2908_v54 = vld [vmem:[%s4457_s0 + $0xe4] sm:$0xf]  ;;  %v2228_v55 = vld [vmem:[%s4457_s0 + $0xf0] sm:$0xf0] }
  0x36   :  { %915 = vmatpush.bf16.msrb.mxu0 %v3205_v20  ;;  %v2231_v61 = vor.u32 %v2908_v54, %v2228_v55 }
  0x37   :  { %964 = vmatpush.bf16.msrb.mxu1 %v3210_v21 }
  0x38   :  { %1013 = vmatpush.bf16.msrb.mxu2 %v3217_v22 }
  0x39   :  { %1062 = vmatpush.bf16.msrb.mxu3 %v3222_v23 }
  0x3a   :  { %916 = vmatpush.bf16.msrb.mxu0 %v3229_v24 }
  0x3b   :  { %965 = vmatpush.bf16.msrb.mxu1 %v3234_v25 }
  0x3c   :  { %1014 = vmatpush.bf16.msrb.mxu2 %v3241_v26 }
  0x3d   :  { %1063 = vmatpush.bf16.msrb.mxu3 %v3246_v27 }
  0x3e   :  { %917 = vmatpush.bf16.msrb.mxu0 %v3251_v28 }
  0x3f   :  { %966 = vmatpush.bf16.msrb.mxu1 %v3256_v29 }
  0x40   :  { %1015 = vmatpush.bf16.msrb.mxu2 %v3261_v30 }
  0x41   :  { %1064 = vmatpush.bf16.msrb.mxu3 %v3266_v31  ;;  %485 = vmatmul.bf16.gmra.mxu0 %v2147_v32  ;;  %v2202_v32 = vld [vmem:[%s4457_s0 + $0xa8] sm:$0xf] }
  0x42   :  { %1363 = vmatpush.bf16.msra.mxu0 %v3087_v0  ;;  %534 = vmatmul.bf16.gmra.mxu1 %v2151_v33  ;;  %v2903_v33 = vld [vmem:[%s4457_s0 + $0xb4] sm:$0xf0] }
  0x43   :  { %1412 = vmatpush.bf16.msra.mxu1 %v3092_v1  ;;  %583 = vmatmul.bf16.gmra.mxu2 %v2155_v34  ;;  %v2901_v34 = vld [vmem:[%s4457_s0 + $0xac] sm:$0xf]  ;;  %v2203_v38 = vor.u32 %v2903_v33, %v2202_v32  ;;  %v2402_v32 = vld [vmem:[%s4457_s0 + $0x100] sm:$0xf]  ;;  %v2914_v33 = vld [vmem:[%s4457_s0 + $0x10c] sm:$0xf0] }
  0x44   :  { %1461 = vmatpush.bf16.msra.mxu2 %v3097_v2  ;;  %632 = vmatmul.bf16.gmra.mxu3 %v2159_v35  ;;  %v2204_v35 = vld [vmem:[%s4457_s0 + $0xb8] sm:$0xf0]  ;;  %v2403_v40 = vor.u32 %v2914_v33, %v2402_v32 }
  0x45   :  { %1510 = vmatpush.bf16.msra.mxu3 %v3102_v3  ;;  %v2207_v39 = vor.u32 %v2901_v34, %v2204_v35  ;;  %v2912_v34 = vld [vmem:[%s4457_s0 + $0x104] sm:$0xf]  ;;  %v2404_v35 = vld [vmem:[%s4457_s0 + $0x110] sm:$0xf0] }
  0x46   :  { %1364 = vmatpush.bf16.msra.mxu0 %v3109_v4  ;;  %v2407_v41 = vor.u32 %v2912_v34, %v2404_v35 }
  0x47   :  { %1413 = vmatpush.bf16.msra.mxu1 %v3114_v5 }
  0x48   :  { %1462 = vmatpush.bf16.msra.mxu2 %v3121_v6 }
  0x49   :  { %1511 = vmatpush.bf16.msra.mxu3 %v3126_v7 }
  0x4a   :  { %1365 = vmatpush.bf16.msra.mxu0 %v3133_v8 }
  0x4b   :  { %1414 = vmatpush.bf16.msra.mxu1 %v3138_v9 }
  0x4c   :  { %1463 = vmatpush.bf16.msra.mxu2 %v3145_v10 }
  0x4d   :  { %1512 = vmatpush.bf16.msra.mxu3 %v3150_v11 }
  0x4e   :  { %1366 = vmatpush.bf16.msra.mxu0 %v3157_v12 }
  0x4f   :  { %1415 = vmatpush.bf16.msra.mxu1 %v3162_v13 }
  0x50   :  { %1464 = vmatpush.bf16.msra.mxu2 %v3169_v14 }
  0x51   :  { %1513 = vmatpush.bf16.msra.mxu3 %v3174_v15  ;;  %490 = vmatmul.bf16.gmra.mxu0 %v2163_v44  ;;  %v2218_v44 = vld [vmem:[%s4457_s0 + $0xc8] sm:$0xf] }
  0x52   :  { %1367 = vmatpush.bf16.msra.mxu0 %v3181_v16  ;;  %539 = vmatmul.bf16.gmra.mxu1 %v2167_v45  ;;  %v2907_v45 = vld [vmem:[%s4457_s0 + $0xd4] sm:$0xf0] }
  0x53   :  { %1416 = vmatpush.bf16.msra.mxu1 %v3186_v17  ;;  %588 = vmatmul.bf16.gmra.mxu2 %v2171_v46  ;;  %v2905_v46 = vld [vmem:[%s4457_s0 + $0xcc] sm:$0xf]  ;;  %v2219_v50 = vor.u32 %v2907_v45, %v2218_v44 }
  0x54   :  { %1465 = vmatpush.bf16.msra.mxu2 %v3193_v18  ;;  %637 = vmatmul.bf16.gmra.mxu3 %v2175_v47  ;;  %v2220_v47 = vld [vmem:[%s4457_s0 + $0xd8] sm:$0xf0] }
  0x55   :  { %1514 = vmatpush.bf16.msra.mxu3 %v3198_v19  ;;  %v2223_v51 = vor.u32 %v2905_v46, %v2220_v47 }
  0x56   :  { %1368 = vmatpush.bf16.msra.mxu0 %v3205_v20 }
  0x57   :  { %1417 = vmatpush.bf16.msra.mxu1 %v3210_v21 }
  0x58   :  { %1466 = vmatpush.bf16.msra.mxu2 %v3217_v22 }
  0x59   :  { %1515 = vmatpush.bf16.msra.mxu3 %v3222_v23 }
  0x5a   :  { %1369 = vmatpush.bf16.msra.mxu0 %v3229_v24 }
  0x5b   :  { %1418 = vmatpush.bf16.msra.mxu1 %v3234_v25 }
  0x5c   :  { %1467 = vmatpush.bf16.msra.mxu2 %v3241_v26 }
  0x5d   :  { %1516 = vmatpush.bf16.msra.mxu3 %v3246_v27 }
  0x5e   :  { %1370 = vmatpush.bf16.msra.mxu0 %v3251_v28 }
  0x5f   :  { %1419 = vmatpush.bf16.msra.mxu1 %v3256_v29 }
  0x60   :  { %1468 = vmatpush.bf16.msra.mxu2 %v3261_v30 }
  0x61   :  { %1517 = vmatpush.bf16.msra.mxu3 %v3266_v31  ;;  %495 = vmatmul.bf16.gmra.mxu0 %v2179_v56  ;;  %v2234_v56 = vld [vmem:[%s4457_s0 + $0xe8] sm:$0xf] }
  0x62   :  { %544 = vmatmul.bf16.gmra.mxu1 %v2183_v57  ;;  %v2911_v57 = vld [vmem:[%s4457_s0 + $0xf4] sm:$0xf0] }
  0x63   :  { %593 = vmatmul.bf16.gmra.mxu2 %v2187_v58  ;;  %v2909_v58 = vld [vmem:[%s4457_s0 + $0xec] sm:$0xf]  ;;  %v2235_v62 = vor.u32 %v2911_v57, %v2234_v56 }
  0x64   :  { %642 = vmatmul.bf16.gmra.mxu3 %v2191_v59  ;;  %v2236_v59 = vld [vmem:[%s4457_s0 + $0xf8] sm:$0xf0] }
  0x65   :  { %v2239_v63 = vor.u32 %v2909_v58, %v2236_v59 }
  0x71   :  { %500 = vmatmul.bf16.gmra.mxu0 %v2195_v36  ;;  %v2410_v36 = vld [vmem:[%s4457_s0 + $0x108] sm:$0xf] }
  0x72   :  { %549 = vmatmul.bf16.gmra.mxu1 %v2199_v37  ;;  %v2915_v37 = vld [vmem:[%s4457_s0 + $0x114] sm:$0xf0] }
  0x73   :  { %598 = vmatmul.bf16.gmra.mxu2 %v2203_v38  ;;  %v2913_v38 = vld [vmem:[%s4457_s0 + $0x10c] sm:$0xf]  ;;  %v2411_v44 = vor.u32 %v2915_v37, %v2410_v36 }
  0x74   :  { %647 = vmatmul.bf16.gmra.mxu3 %v2207_v39  ;;  %v2412_v39 = vld [vmem:[%s4457_s0 + $0x118] sm:$0xf0] }
  0x75   :  { %v2415_v45 = vor.u32 %v2913_v38, %v2412_v39 }
  0x81   :  { %505 = vmatmul.bf16.gmra.mxu0 %v2211_v48 }
  0x82   :  { %554 = vmatmul.bf16.gmra.mxu1 %v2215_v49 }
  0x83   :  { %603 = vmatmul.bf16.gmra.mxu2 %v2219_v50 }
  0x84   :  { %652 = vmatmul.bf16.gmra.mxu3 %v2223_v51 }
  0x91   :  { %510 = vmatmul.bf16.gmra.mxu0 %v2227_v60 }
  0x92   :  { %559 = vmatmul.bf16.gmra.mxu1 %v2231_v61 }
  0x93   :  { %608 = vmatmul.bf16.gmra.mxu2 %v2235_v62 }
  0x94   :  { %657 = vmatmul.bf16.gmra.mxu3 %v2239_v63 }
  0x9e   :  { %v476_v42 = vpop.f32.mrf.mxu0 }
  0x9f   :  { %v525_v43 = vpop.f32.mrf.mxu1 }
  0xa0   :  { %v526_v46 = vadd.f32 %v525_v43, %v476_v42 }
  0xa1   :  { %918 = vmatmul.bf16.vlgmr.msrb.gmra.mxu0 %v2403_v40 }
  0xa2   :  { %967 = vmatmul.bf16.vlgmr.msrb.gmra.mxu1 %v2407_v41  ;;  %1800 = vmatpush.bf16.msrb.mxu0 %v3087_v0  ;;  %v2418_v0 = vld [vmem:[%s4457_s0 + $0x120] sm:$0xf] }
  0xa3   :  { %1016 = vmatmul.bf16.vlgmr.msrb.gmra.mxu2 %v2411_v44  ;;  %1849 = vmatpush.bf16.msrb.mxu1 %v3092_v1  ;;  %v2918_v1 = vld [vmem:[%s4457_s0 + $0x12c] sm:$0xf0] }
  0xa4   :  { %1065 = vmatmul.bf16.vlgmr.msrb.gmra.mxu3 %v2415_v45  ;;  %1898 = vmatpush.bf16.msrb.mxu2 %v3097_v2  ;;  %v2916_v2 = vld [vmem:[%s4457_s0 + $0x124] sm:$0xf]  ;;  %v2419_v56 = vor.u32 %v2918_v1, %v2418_v0 }
  0xa5   :  { %1947 = vmatpush.bf16.msrb.mxu3 %v3102_v3  ;;  %v2420_v3 = vld [vmem:[%s4457_s0 + $0x130] sm:$0xf0] }
  0xa6   :  { %v574_v47 = vpop.f32.mrf.mxu2  ;;  %v478_v50 = vpop.f32.mrf.mxu0  ;;  %1801 = vmatpush.bf16.msrb.mxu0 %v3109_v4  ;;  %v2426_v4 = vld [vmem:[%s4457_s0 + $0x128] sm:$0xf]  ;;  %v2423_v57 = vor.u32 %v2916_v2, %v2420_v3 }
  0xa7   :  { %v623_v48 = vpop.f32.mrf.mxu3  ;;  %v575_v49 = vadd.f32 %v574_v47, %v526_v46  ;;  %v527_v51 = vpop.f32.mrf.mxu1  ;;  %1850 = vmatpush.bf16.msrb.mxu1 %v3114_v5  ;;  %v2919_v5 = vld [vmem:[%s4457_s0 + $0x134] sm:$0xf0]  ;;  %v2458_v46 = vld [vmem:[%s4457_s0 + $0x168] sm:$0xf] }
  0xa8   :  { %v528_v52 = vadd.f32 %v527_v51, %v478_v50  ;;  %1899 = vmatpush.bf16.msrb.mxu2 %v3121_v6  ;;  %v2917_v6 = vld [vmem:[%s4457_s0 + $0x12c] sm:$0xf]  ;;  %v2427_v61 = vor.u32 %v2919_v5, %v2426_v4  ;;  %v2927_v47 = vld [vmem:[%s4457_s0 + $0x174] sm:$0xf0] }
  0xa9   :  { %1948 = vmatpush.bf16.msrb.mxu3 %v3126_v7  ;;  %v3562_v53 = vadd.f32 %v623_v48, %v575_v49  ;;  %v2428_v7 = vld [vmem:[%s4457_s0 + $0x138] sm:$0xf0]  ;;  %v2925_v48 = vld [vmem:[%s4457_s0 + $0x16c] sm:$0xf]  ;;  %v2459_v4 = vor.u32 %v2927_v47, %v2458_v46 }
  0xaa   :  { %1802 = vmatpush.bf16.msrb.mxu0 %v3133_v8  ;;  %v2431_v62 = vor.u32 %v2917_v6, %v2428_v7  ;;  %v2460_v49 = vld [vmem:[%s4457_s0 + $0x178] sm:$0xf0] }
  0xab   :  { %1851 = vmatpush.bf16.msrb.mxu1 %v3138_v9  ;;  %v2463_v5 = vor.u32 %v2925_v48, %v2460_v49 }
  0xac   :  { %1900 = vmatpush.bf16.msrb.mxu2 %v3145_v10 }
  0xad   :  { %1949 = vmatpush.bf16.msrb.mxu3 %v3150_v11 }
  0xae   :  { %v576_v54 = vpop.f32.mrf.mxu2  ;;  %v481_v59 = vpop.f32.mrf.mxu0  ;;  %1803 = vmatpush.bf16.msrb.mxu0 %v3157_v12 }
  0xaf   :  { %v625_v55 = vpop.f32.mrf.mxu3  ;;  %v577_v58 = vadd.f32 %v576_v54, %v528_v52  ;;  %v530_v60 = vpop.f32.mrf.mxu1  ;;  %1852 = vmatpush.bf16.msrb.mxu1 %v3162_v13 }
  0xb0   :  { %v531_v63 = vadd.f32 %v530_v60, %v481_v59  ;;  %1901 = vmatpush.bf16.msrb.mxu2 %v3169_v14 }
  0xb1   :  { %1950 = vmatpush.bf16.msrb.mxu3 %v3174_v15  ;;  %v3596_v10 = vadd.f32 %v625_v55, %v577_v58  ;;  %923 = vmatmul.bf16.gmra.mxu0 %v2419_v56 }
  0xb2   :  { %972 = vmatmul.bf16.gmra.mxu1 %v2423_v57  ;;  %1804 = vmatpush.bf16.msrb.mxu0 %v3181_v16  ;;  %v2434_v16 = vld [vmem:[%s4457_s0 + $0x140] sm:$0xf] }
  0xb3   :  { %1021 = vmatmul.bf16.gmra.mxu2 %v2427_v61  ;;  %1853 = vmatpush.bf16.msrb.mxu1 %v3186_v17  ;;  %v2922_v17 = vld [vmem:[%s4457_s0 + $0x14c] sm:$0xf0]  ;;  %v2466_v61 = vld [vmem:[%s4457_s0 + $0x180] sm:$0xf] }
  0xb4   :  { %1070 = vmatmul.bf16.gmra.mxu3 %v2431_v62  ;;  %1902 = vmatpush.bf16.msrb.mxu2 %v3193_v18  ;;  %v2920_v18 = vld [vmem:[%s4457_s0 + $0x144] sm:$0xf]  ;;  %v2435_v34 = vor.u32 %v2922_v17, %v2434_v16  ;;  %v2930_v62 = vld [vmem:[%s4457_s0 + $0x18c] sm:$0xf0] }
  0xb5   :  { %1951 = vmatpush.bf16.msrb.mxu3 %v3198_v19  ;;  %v2436_v19 = vld [vmem:[%s4457_s0 + $0x150] sm:$0xf0]  ;;  %v2467_v17 = vor.u32 %v2930_v62, %v2466_v61  ;;  %v2939_v61 = vld [vmem:[%s4457_s0 + $0x1d4] sm:$0xf0]  ;;  %v2937_v62 = vld [vmem:[%s4457_s0 + $0x1cc] sm:$0xf] }
  0xb6   :  { %v579_v8 = vpop.f32.mrf.mxu2  ;;  %v483_v14 = vpop.f32.mrf.mxu0  ;;  %1805 = vmatpush.bf16.msrb.mxu0 %v3205_v20  ;;  %v2442_v20 = vld [vmem:[%s4457_s0 + $0x148] sm:$0xf]  ;;  %v2439_v35 = vor.u32 %v2920_v18, %v2436_v19 }
  0xb7   :  { %v628_v9 = vpop.f32.mrf.mxu3  ;;  %v580_v11 = vadd.f32 %v579_v8, %v531_v63  ;;  %v532_v15 = vpop.f32.mrf.mxu1  ;;  %1854 = vmatpush.bf16.msrb.mxu1 %v3210_v21  ;;  %v2923_v21 = vld [vmem:[%s4457_s0 + $0x154] sm:$0xf0]  ;;  %v2928_v63 = vld [vmem:[%s4457_s0 + $0x184] sm:$0xf]  ;;  %v2468_v8 = vld [vmem:[%s4457_s0 + $0x190] sm:$0xf0] }
  0xb8   :  { %v533_v12 = vadd.f32 %v532_v15, %v483_v14  ;;  %1903 = vmatpush.bf16.msrb.mxu2 %v3217_v22  ;;  %v2921_v22 = vld [vmem:[%s4457_s0 + $0x14c] sm:$0xf]  ;;  %v2443_v39 = vor.u32 %v2923_v21, %v2442_v20  ;;  %v2476_v15 = vld [vmem:[%s4457_s0 + $0x198] sm:$0xf0]  ;;  %v2471_v18 = vor.u32 %v2928_v63, %v2468_v8 }
  0xb9   :  { %1952 = vmatpush.bf16.msrb.mxu3 %v3222_v23  ;;  %v3606_v13 = vadd.f32 %v628_v9, %v580_v11  ;;  %v2444_v23 = vld [vmem:[%s4457_s0 + $0x158] sm:$0xf0]  ;;  %v2474_v9 = vld [vmem:[%s4457_s0 + $0x188] sm:$0xf]  ;;  %v2931_v11 = vld [vmem:[%s4457_s0 + $0x194] sm:$0xf0] }
  0xba   :  { %1806 = vmatpush.bf16.msrb.mxu0 %v3229_v24  ;;  %v2447_v40 = vor.u32 %v2921_v22, %v2444_v23  ;;  %v2929_v14 = vld [vmem:[%s4457_s0 + $0x18c] sm:$0xf]  ;;  %v2475_v22 = vor.u32 %v2931_v11, %v2474_v9  ;;  %v2508_v63 = vld [vmem:[%s4457_s0 + $0x1d8] sm:$0xf0] }
  0xbb   :  { %1855 = vmatpush.bf16.msrb.mxu1 %v3234_v25  ;;  %v2479_v23 = vor.u32 %v2929_v14, %v2476_v15 }
  0xbc   :  { %1904 = vmatpush.bf16.msrb.mxu2 %v3241_v26 }
  0xbd   :  { %1953 = vmatpush.bf16.msrb.mxu3 %v3246_v27 }
  0xbe   :  { %v581_v32 = vpop.f32.mrf.mxu2  ;;  %v486_v37 = vpop.f32.mrf.mxu0  ;;  %1807 = vmatpush.bf16.msrb.mxu0 %v3251_v28  ;;  %v2926_v28 = vld [vmem:[%s4457_s0 + $0x16c] sm:$0xf0] }
  0xbf   :  { %v630_v33 = vpop.f32.mrf.mxu3  ;;  %v582_v36 = vadd.f32 %v581_v32, %v533_v12  ;;  %v535_v38 = vpop.f32.mrf.mxu1  ;;  %1856 = vmatpush.bf16.msrb.mxu1 %v3256_v29  ;;  %v2924_v29 = vld [vmem:[%s4457_s0 + $0x164] sm:$0xf] }
  0xc0   :  { %v536_v41 = vadd.f32 %v535_v38, %v486_v37  ;;  %1905 = vmatpush.bf16.msrb.mxu2 %v3261_v30  ;;  %v2450_v30 = vld [vmem:[%s4457_s0 + $0x160] sm:$0xf] }
  0xc1   :  { %1954 = vmatpush.bf16.msrb.mxu3 %v3266_v31  ;;  %v3640_v26 = vadd.f32 %v630_v33, %v582_v36  ;;  %928 = vmatmul.bf16.gmra.mxu0 %v2435_v34  ;;  %v2452_v31 = vld [vmem:[%s4457_s0 + $0x170] sm:$0xf0]  ;;  %v2451_v52 = vor.u32 %v2926_v28, %v2450_v30  ;;  %v2492_v30 = vld [vmem:[%s4457_s0 + $0x1b8] sm:$0xf0] }
  0xc2   :  { %977 = vmatmul.bf16.gmra.mxu1 %v2439_v35  ;;  %v2455_v0 = vor.u32 %v2924_v29, %v2452_v31 }
  0xc3   :  { %1026 = vmatmul.bf16.gmra.mxu2 %v2443_v39 }
  0xc4   :  { %1075 = vmatmul.bf16.gmra.mxu3 %v2447_v40 }
  0xc6   :  { %v584_v24 = vpop.f32.mrf.mxu2  ;;  %v488_v42 = vpop.f32.mrf.mxu0 }
  0xc7   :  { %v633_v25 = vpop.f32.mrf.mxu3  ;;  %v585_v27 = vadd.f32 %v584_v24, %v536_v41  ;;  %v537_v43 = vpop.f32.mrf.mxu1  ;;  %v2482_v41 = vld [vmem:[%s4457_s0 + $0x1a0] sm:$0xf]  ;;  %v2934_v24 = vld [vmem:[%s4457_s0 + $0x1ac] sm:$0xf0] }
  0xc8   :  { %v538_v44 = vadd.f32 %v537_v43, %v488_v42  ;;  %v2490_v42 = vld [vmem:[%s4457_s0 + $0x1a8] sm:$0xf]  ;;  %v2935_v43 = vld [vmem:[%s4457_s0 + $0x1b4] sm:$0xf0]  ;;  %v2483_v31 = vor.u32 %v2934_v24, %v2482_v41  ;;  %v2516_v41 = vld [vmem:[%s4457_s0 + $0x1f0] sm:$0xf0] }
  0xc9   :  { %v3644_v45 = vadd.f32 %v633_v25, %v585_v27  ;;  %v2932_v25 = vld [vmem:[%s4457_s0 + $0x1a4] sm:$0xf]  ;;  %v2484_v27 = vld [vmem:[%s4457_s0 + $0x1b0] sm:$0xf0]  ;;  %v2522_v24 = vld [vmem:[%s4457_s0 + $0x1e8] sm:$0xf] }
  0xca   :  { %v2487_v46 = vor.u32 %v2932_v25, %v2484_v27  ;;  %v2943_v25 = vld [vmem:[%s4457_s0 + $0x1f4] sm:$0xf0]  ;;  %v2941_v27 = vld [vmem:[%s4457_s0 + $0x1ec] sm:$0xf] }
  0xce   :  { %v586_v50 = vpop.f32.mrf.mxu2  ;;  %v491_v2 = vpop.f32.mrf.mxu0 }
  0xcf   :  { %v635_v51 = vpop.f32.mrf.mxu3  ;;  %v587_v1 = vadd.f32 %v586_v50, %v538_v44  ;;  %v540_v3 = vpop.f32.mrf.mxu1  ;;  %v2933_v44 = vld [vmem:[%s4457_s0 + $0x1ac] sm:$0xf]  ;;  %v2491_v50 = vor.u32 %v2935_v43, %v2490_v42  ;;  %v2524_v42 = vld [vmem:[%s4457_s0 + $0x1f8] sm:$0xf0] }
  0xd0   :  { %v541_v6 = vadd.f32 %v540_v3, %v491_v2 }
  0xd1   :  { %v3670_v7 = vadd.f32 %v635_v51, %v587_v1  ;;  %933 = vmatmul.bf16.gmra.mxu0 %v2451_v52  ;;  %v2495_v51 = vor.u32 %v2933_v44, %v2492_v30 }
  0xd2   :  { %982 = vmatmul.bf16.gmra.mxu1 %v2455_v0 }
  0xd3   :  { %1031 = vmatmul.bf16.gmra.mxu2 %v2459_v4 }
  0xd4   :  { %1080 = vmatmul.bf16.gmra.mxu3 %v2463_v5 }
  0xd6   :  { %v589_v54 = vpop.f32.mrf.mxu2  ;;  %v493_v57 = vpop.f32.mrf.mxu0 }
  0xd7   :  { %v638_v55 = vpop.f32.mrf.mxu3  ;;  %v590_v56 = vadd.f32 %v589_v54, %v541_v6  ;;  %v542_v58 = vpop.f32.mrf.mxu1 }
  0xd8   :  { %v543_v59 = vadd.f32 %v542_v58, %v493_v57  ;;  %v2936_v57 = vld [vmem:[%s4457_s0 + $0x1c4] sm:$0xf]  ;;  %v2500_v58 = vld [vmem:[%s4457_s0 + $0x1d0] sm:$0xf0] }
  0xd9   :  { %v3672_v60 = vadd.f32 %v638_v55, %v590_v56  ;;  %v2498_v55 = vld [vmem:[%s4457_s0 + $0x1c0] sm:$0xf]  ;;  %v2938_v56 = vld [vmem:[%s4457_s0 + $0x1cc] sm:$0xf0]  ;;  %v2503_v14 = vor.u32 %v2936_v57, %v2500_v58  ;;  %v2564_v57 = vld [vmem:[%s4457_s0 + $0x210] sm:$0xf0] }
  0xda   :  { %v2499_v11 = vor.u32 %v2938_v56, %v2498_v55  ;;  %v2946_v55 = vld [vmem:[%s4457_s0 + $0x20c] sm:$0xf0]  ;;  %v2944_v56 = vld [vmem:[%s4457_s0 + $0x204] sm:$0xf]  ;;  %v2570_v58 = vld [vmem:[%s4457_s0 + $0x208] sm:$0xf] }
  0xde   :  { %v591_v12 = vpop.f32.mrf.mxu2  ;;  %v496_v20 = vpop.f32.mrf.mxu0 }
  0xdf   :  { %v640_v16 = vpop.f32.mrf.mxu3  ;;  %v592_v19 = vadd.f32 %v591_v12, %v543_v59  ;;  %v545_v21 = vpop.f32.mrf.mxu1  ;;  %v2506_v59 = vld [vmem:[%s4457_s0 + $0x1c8] sm:$0xf] }
  0xe0   :  { %v546_v32 = vadd.f32 %v545_v21, %v496_v20 }
  0xe1   :  { %v3698_v33 = vadd.f32 %v640_v16, %v592_v19  ;;  %938 = vmatmul.bf16.gmra.mxu0 %v2467_v17  ;;  %v2507_v17 = vor.u32 %v2939_v61, %v2506_v59  ;;  %v2947_v59 = vld [vmem:[%s4457_s0 + $0x214] sm:$0xf0]  ;;  %v2945_v61 = vld [vmem:[%s4457_s0 + $0x20c] sm:$0xf] }
  0xe2   :  { %987 = vmatmul.bf16.gmra.mxu1 %v2471_v18  ;;  %v2511_v18 = vor.u32 %v2937_v62, %v2508_v63  ;;  %v2572_v62 = vld [vmem:[%s4457_s0 + $0x218] sm:$0xf0] }
  0xe3   :  { %1036 = vmatmul.bf16.gmra.mxu2 %v2475_v22 }
  0xe4   :  { %1085 = vmatmul.bf16.gmra.mxu3 %v2479_v23 }
  0xe6   :  { %v594_v34 = vpop.f32.mrf.mxu2  ;;  %v498_v37 = vpop.f32.mrf.mxu0 }
  0xe7   :  { %v643_v35 = vpop.f32.mrf.mxu3  ;;  %v595_v36 = vadd.f32 %v594_v34, %v546_v32  ;;  %v547_v38 = vpop.f32.mrf.mxu1 }
  0xe8   :  { %v548_v39 = vadd.f32 %v547_v38, %v498_v37  ;;  %v2514_v37 = vld [vmem:[%s4457_s0 + $0x1e0] sm:$0xf]  ;;  %v2942_v38 = vld [vmem:[%s4457_s0 + $0x1ec] sm:$0xf0] }
  0xe9   :  { %v3700_v40 = vadd.f32 %v643_v35, %v595_v36  ;;  %v2515_v30 = vor.u32 %v2942_v38, %v2514_v37 }
  0xee   :  { %v596_v28 = vpop.f32.mrf.mxu2  ;;  %v501_v48 = vpop.f32.mrf.mxu0 }
  0xef   :  { %v645_v29 = vpop.f32.mrf.mxu3  ;;  %v597_v47 = vadd.f32 %v596_v28, %v548_v39  ;;  %v550_v49 = vpop.f32.mrf.mxu1  ;;  %v2940_v39 = vld [vmem:[%s4457_s0 + $0x1e4] sm:$0xf] }
  0xf0   :  { %v551_v52 = vadd.f32 %v550_v49, %v501_v48  ;;  %v2519_v28 = vor.u32 %v2940_v39, %v2516_v41  ;;  %v2527_v48 = vor.u32 %v2941_v27, %v2524_v42  ;;  %v2948_v42 = vld [vmem:[%s4457_s0 + $0x224] sm:$0xf] }
  0xf1   :  { %v3726_v0 = vadd.f32 %v645_v29, %v597_v47  ;;  %943 = vmatmul.bf16.gmra.mxu0 %v2483_v31  ;;  %v2523_v47 = vor.u32 %v2943_v25, %v2522_v24  ;;  %v2578_v25 = vld [vmem:[%s4457_s0 + $0x220] sm:$0xf] }
  0xf2   :  { %992 = vmatmul.bf16.gmra.mxu1 %v2487_v46 }
  0xf3   :  { %1041 = vmatmul.bf16.gmra.mxu2 %v2491_v50 }
  0xf4   :  { %1090 = vmatmul.bf16.gmra.mxu3 %v2495_v51 }
  0xf6   :  { %v599_v1 = vpop.f32.mrf.mxu2  ;;  %v503_v4 = vpop.f32.mrf.mxu0 }
  0xf7   :  { %v648_v2 = vpop.f32.mrf.mxu3  ;;  %v600_v3 = vadd.f32 %v599_v1, %v551_v52  ;;  %v552_v5 = vpop.f32.mrf.mxu1 }
  0xf8   :  { %v553_v6 = vadd.f32 %v552_v5, %v503_v4 }
  0xf9   :  { %v3728_v54 = vadd.f32 %v648_v2, %v600_v3 }
  0xfe   :  { %v601_v8 = vpop.f32.mrf.mxu2  ;;  %v506_v12 = vpop.f32.mrf.mxu0 }
  0xff   :  { %v650_v9 = vpop.f32.mrf.mxu3  ;;  %v602_v15 = vadd.f32 %v601_v8, %v553_v6  ;;  %v555_v16 = vpop.f32.mrf.mxu1  ;;  %v2562_v6 = vld [vmem:[%s4457_s0 + $0x200] sm:$0xf] }
 0x100   :  { %v556_v19 = vadd.f32 %v555_v16, %v506_v12  ;;  %v2571_v16 = vor.u32 %v2947_v59, %v2570_v58 }
 0x101   :  { %v3754_v20 = vadd.f32 %v650_v9, %v602_v15  ;;  %948 = vmatmul.bf16.gmra.mxu0 %v2499_v11  ;;  %v2563_v9 = vor.u32 %v2946_v55, %v2562_v6  ;;  %v2567_v11 = vor.u32 %v2944_v56, %v2564_v57 }
 0x102   :  { %997 = vmatmul.bf16.gmra.mxu1 %v2503_v14 }
 0x103   :  { %1046 = vmatmul.bf16.gmra.mxu2 %v2507_v17  ;;  %v2575_v17 = vor.u32 %v2945_v61, %v2572_v62 }
 0x104   :  { %1095 = vmatmul.bf16.gmra.mxu3 %v2511_v18 }
 0x106   :  { %v604_v21 = vpop.f32.mrf.mxu2  ;;  %v508_v32 = vpop.f32.mrf.mxu0 }
 0x107   :  { %v653_v22 = vpop.f32.mrf.mxu3  ;;  %v605_v23 = vadd.f32 %v604_v21, %v556_v19  ;;  %v557_v34 = vpop.f32.mrf.mxu1  ;;  %v3815_v21 = vld [vmem:[%s4458_s2] ss:$0 sm:$0xff] }
 0x108   :  { %v558_v35 = vadd.f32 %v557_v34, %v508_v32  ;;  %v668_v62 = vmul.f32 %v3815_v21, %v3606_v13  ;;  %v2954_v13 = vld [vmem:[%s4457_s0 + $0x24c] sm:$0xf0] }
 0x109   :  { %v3756_v36 = vadd.f32 %v653_v22, %v605_v23  ;;  %v666_v22 = vmul.f32 %v3815_v21, %v3562_v53  ;;  %v3822_v23 = vld [vmem:[%s4459_s3] ss:$0 sm:$0xff]  ;;  %v2950_v53 = vld [vmem:[%s4457_s0 + $0x22c] sm:$0xf0] }
 0x10b   :  { %v685_v24 = vadd.f32 %v3822_v23, %v666_v22  ;;  %v687_v22 = vadd.f32 %v3822_v23, %v668_v62 }
 0x10e   :  { %v606_v43 = vpop.f32.mrf.mxu2  ;;  %v511_v31 = vpop.f32.mrf.mxu0 }
 0x10f   :  { %v655_v44 = vpop.f32.mrf.mxu3  ;;  %v607_v29 = vadd.f32 %v606_v43, %v558_v35  ;;  %v560_v46 = vpop.f32.mrf.mxu1  ;;  %v2580_v43 = vld [vmem:[%s4457_s0 + $0x230] sm:$0xf0] }
 0x110   :  { %v561_v49 = vadd.f32 %v560_v46, %v511_v31  ;;  %v701_v46 = vmax.f32 %v685_v24, 0.0  ;;  %v2604_v24 = vld [vmem:[%s4457_s0 + $0x258] sm:$0xf0] }
 0x111   :  { %v3782_v50 = vadd.f32 %v655_v44, %v607_v29  ;;  %953 = vmatmul.bf16.gmra.mxu0 %v2515_v30  ;;  %v2586_v44 = vld [vmem:[%s4457_s0 + $0x228] sm:$0xf]  ;;  %v2951_v30 = vld [vmem:[%s4457_s0 + $0x234] sm:$0xf0]  ;;  %v2588_v29 = vld [vmem:[%s4457_s0 + $0x238] sm:$0xf0] }
 0x112   :  { %1002 = vmatmul.bf16.gmra.mxu1 %v2519_v28  ;;  %v2949_v28 = vld [vmem:[%s4457_s0 + $0x22c] sm:$0xf]  ;;  %v2587_v6 = vor.u32 %v2951_v30, %v2586_v44 }
 0x113   :  { %1051 = vmatmul.bf16.gmra.mxu2 %v2523_v47  ;;  %v667_v47 = vmul.f32 %v3815_v21, %v3596_v10  ;;  %v2591_v55 = vor.u32 %v2949_v28, %v2588_v29 }
 0x114   :  { %1100 = vmatmul.bf16.gmra.mxu3 %v2527_v48 }
 0x115   :  { %v686_v59 = vadd.f32 %v3822_v23, %v667_v47 }
 0x116   :  { %v609_v51 = vpop.f32.mrf.mxu2  ;;  %v513_v2 = vpop.f32.mrf.mxu0 }
 0x117   :  { %v658_v52 = vpop.f32.mrf.mxu3  ;;  %v610_v1 = vadd.f32 %v609_v51, %v561_v49  ;;  %v562_v3 = vpop.f32.mrf.mxu1  ;;  %v2579_v51 = vor.u32 %v2950_v53, %v2578_v25  ;;  %v703_v53 = vmax.f32 %v687_v22, 0.0  ;;  %v2620_v22 = vld [vmem:[%s4457_s0 + $0x278] sm:$0xf0] }
 0x118   :  { %v563_v4 = vadd.f32 %v562_v3, %v513_v2 }
 0x119   :  { %v3784_v5 = vadd.f32 %v658_v52, %v610_v1  ;;  %v2583_v52 = vor.u32 %v2948_v42, %v2580_v43 }
 0x11e   :  { %v611_v63 = vpop.f32.mrf.mxu2  ;;  %v919_v15 = vpop.f32.mrf.mxu0 }
 0x11f   :  { %v660_v8 = vpop.f32.mrf.mxu3  ;;  %v612_v14 = vadd.f32 %v611_v63, %v563_v4  ;;  %v968_v12 = vpop.f32.mrf.mxu1 }
 0x120   :  { %v969_v18 = vadd.f32 %v968_v12, %v919_v15 }
 0x121   :  { %v3810_v19 = vadd.f32 %v660_v8, %v612_v14  ;;  %1371 = vmatmul.bf16.vlgmr.msra.gmra.mxu0 %v2563_v9  ;;  %v702_v9 = vmax.f32 %v686_v59, 0.0 }
 0x122   :  { %1420 = vmatmul.bf16.vlgmr.msra.gmra.mxu1 %v2567_v11 }
 0x123   :  { %1469 = vmatmul.bf16.vlgmr.msra.gmra.mxu2 %v2571_v16 }
 0x124   :  { %1518 = vmatmul.bf16.vlgmr.msra.gmra.mxu3 %v2575_v17 }
 0x126   :  { %v1017_v32 = vpop.f32.mrf.mxu2  ;;  %v921_v37 = vpop.f32.mrf.mxu0 }
 0x127   :  { %v1066_v34 = vpop.f32.mrf.mxu3  ;;  %v1018_v35 = vadd.f32 %v1017_v32, %v969_v18  ;;  %v970_v38 = vpop.f32.mrf.mxu1  ;;  %v2594_v32 = vld [vmem:[%s4457_s0 + $0x240] sm:$0xf] }
 0x128   :  { %v971_v39 = vadd.f32 %v970_v38, %v921_v37  ;;  %v2596_v37 = vld [vmem:[%s4457_s0 + $0x250] sm:$0xf0]  ;;  %v2602_v38 = vld [vmem:[%s4457_s0 + $0x248] sm:$0xf]  ;;  %v2595_v44 = vor.u32 %v2954_v13, %v2594_v32 }
 0x129   :  { %v1067_v41 = vadd.f32 %v1066_v34, %v1018_v35  ;;  %v2952_v35 = vld [vmem:[%s4457_s0 + $0x244] sm:$0xf] }
 0x12a   :  { %v2599_v30 = vor.u32 %v2952_v35, %v2596_v37 }
 0x12b   :  { %v1106_v27 = vmul.f32 %v3815_v21, %v1067_v41  ;;  %v2953_v41 = vld [vmem:[%s4457_s0 + $0x24c] sm:$0xf] }
 0x12d   :  { %v1122_v31 = vadd.f32 %v3822_v23, %v1106_v27  ;;  %v669_v27 = vmul.f32 %v3815_v21, %v3640_v26 }
 0x12e   :  { %v1019_v48 = vpop.f32.mrf.mxu2  ;;  %v924_v3 = vpop.f32.mrf.mxu0 }
 0x12f   :  { %v1068_v49 = vpop.f32.mrf.mxu3  ;;  %v1138_v1 = vmax.f32 %v1122_v31, 0.0  ;;  %v1020_v2 = vadd.f32 %v1019_v48, %v971_v39  ;;  %v973_v4 = vpop.f32.mrf.mxu1  ;;  %v2955_v39 = vld [vmem:[%s4457_s0 + $0x254] sm:$0xf0]  ;;  %v2607_v48 = vor.u32 %v2953_v41, %v2604_v24 }
 0x130   :  { %v974_v56 = vadd.f32 %v973_v4, %v924_v3  ;;  %v2603_v47 = vor.u32 %v2955_v39, %v2602_v38  ;;  %v670_v3 = vmul.f32 %v3815_v21, %v3644_v45  ;;  %v2958_v45 = vld [vmem:[%s4457_s0 + $0x26c] sm:$0xf0] }
 0x131   :  { %v3853_v57 = vmax.f32 %v701_v46, %v1138_v1  ;;  %v1069_v58 = vadd.f32 %v1068_v49, %v1020_v2  ;;  %1376 = vmatmul.bf16.gmra.mxu0 %v2579_v51  ;;  %v688_v1 = vadd.f32 %v3822_v23, %v669_v27 }
 0x132   :  { %1425 = vmatmul.bf16.gmra.mxu1 %v2583_v52 }
 0x133   :  { %v1107_v10 = vmul.f32 %v3815_v21, %v1069_v58  ;;  %1474 = vmatmul.bf16.gmra.mxu2 %v2587_v6 }
 0x134   :  { %1523 = vmatmul.bf16.gmra.mxu3 %v2591_v55  ;;  %v704_v55 = vmax.f32 %v688_v1, 0.0 }
 0x135   :  { %v1123_v61 = vadd.f32 %v3822_v23, %v1107_v10 }
 0x136   :  { %v1022_v63 = vpop.f32.mrf.mxu2  ;;  %v926_v15 = vpop.f32.mrf.mxu0 }
 0x137   :  { %v1071_v8 = vpop.f32.mrf.mxu3  ;;  %v1139_v11 = vmax.f32 %v1123_v61, 0.0  ;;  %v1023_v14 = vadd.f32 %v1022_v63, %v974_v56  ;;  %v975_v12 = vpop.f32.mrf.mxu1 }
 0x138   :  { %v976_v16 = vadd.f32 %v975_v12, %v926_v15  ;;  %v2612_v15 = vld [vmem:[%s4457_s0 + $0x270] sm:$0xf0]  ;;  %v2618_v12 = vld [vmem:[%s4457_s0 + $0x268] sm:$0xf] }
 0x139   :  { %v3860_v17 = vmax.f32 %v702_v9, %v1139_v11  ;;  %v1072_v18 = vadd.f32 %v1071_v8, %v1023_v14  ;;  %v689_v8 = vadd.f32 %v3822_v23, %v670_v3  ;;  %v2610_v9 = vld [vmem:[%s4457_s0 + $0x260] sm:$0xf]  ;;  %v2956_v14 = vld [vmem:[%s4457_s0 + $0x264] sm:$0xf] }
 0x13a   :  { %v2611_v38 = vor.u32 %v2958_v45, %v2610_v9  ;;  %v2615_v39 = vor.u32 %v2956_v14, %v2612_v15 }
 0x13b   :  { %v1108_v34 = vmul.f32 %v3815_v21, %v1072_v18  ;;  %v2957_v18 = vld [vmem:[%s4457_s0 + $0x26c] sm:$0xf]  ;;  %v705_v13 = vmax.f32 %v689_v8, 0.0  ;;  %v2636_v8 = vld [vmem:[%s4457_s0 + $0x298] sm:$0xf0] }
 0x13d   :  { %v1124_v25 = vadd.f32 %v3822_v23, %v1108_v34  ;;  %v671_v34 = vmul.f32 %v3815_v21, %v3670_v7 }
 0x13e   :  { %v1024_v42 = vpop.f32.mrf.mxu2  ;;  %v929_v31 = vpop.f32.mrf.mxu0 }
 0x13f   :  { %v1073_v43 = vpop.f32.mrf.mxu3  ;;  %v1140_v28 = vmax.f32 %v1124_v25, 0.0  ;;  %v1025_v29 = vadd.f32 %v1024_v42, %v976_v16  ;;  %v978_v46 = vpop.f32.mrf.mxu1  ;;  %v2959_v16 = vld [vmem:[%s4457_s0 + $0x274] sm:$0xf0]  ;;  %v2623_v42 = vor.u32 %v2957_v18, %v2620_v22 }
 0x140   :  { %v979_v49 = vadd.f32 %v978_v46, %v929_v31  ;;  %v2619_v27 = vor.u32 %v2959_v16, %v2618_v12  ;;  %v672_v31 = vmul.f32 %v3815_v21, %v3672_v60  ;;  %v2962_v60 = vld [vmem:[%s4457_s0 + $0x28c] sm:$0xf0] }
 0x141   :  { %v3891_v51 = vmax.f32 %v703_v53, %v1140_v28  ;;  %v1074_v52 = vadd.f32 %v1073_v43, %v1025_v29  ;;  %1381 = vmatmul.bf16.gmra.mxu0 %v2595_v44  ;;  %v690_v28 = vadd.f32 %v3822_v23, %v671_v34 }
 0x142   :  { %1430 = vmatmul.bf16.gmra.mxu1 %v2599_v30 }
 0x143   :  { %v1109_v26 = vmul.f32 %v3815_v21, %v1074_v52  ;;  %1479 = vmatmul.bf16.gmra.mxu2 %v2603_v47 }
 0x144   :  { %1528 = vmatmul.bf16.gmra.mxu3 %v2607_v48  ;;  %v706_v48 = vmax.f32 %v690_v28, 0.0 }
 0x145   :  { %v1125_v2 = vadd.f32 %v3822_v23, %v1109_v26 }
 0x146   :  { %v1027_v4 = vpop.f32.mrf.mxu2  ;;  %v931_v59 = vpop.f32.mrf.mxu0 }
 0x147   :  { %v1076_v6 = vpop.f32.mrf.mxu3  ;;  %v1141_v56 = vmax.f32 %v1125_v2, 0.0  ;;  %v1028_v58 = vadd.f32 %v1027_v4, %v979_v49  ;;  %v980_v10 = vpop.f32.mrf.mxu1 }
 0x148   :  { %v981_v61 = vadd.f32 %v980_v10, %v931_v59  ;;  %v2628_v59 = vld [vmem:[%s4457_s0 + $0x290] sm:$0xf0]  ;;  %v2634_v10 = vld [vmem:[%s4457_s0 + $0x288] sm:$0xf] }
 0x149   :  { %v3898_v62 = vmax.f32 %v704_v55, %v1141_v56  ;;  %v1077_v63 = vadd.f32 %v1076_v6, %v1028_v58  ;;  %v691_v6 = vadd.f32 %v3822_v23, %v672_v31  ;;  %v2626_v55 = vld [vmem:[%s4457_s0 + $0x280] sm:$0xf]  ;;  %v2960_v58 = vld [vmem:[%s4457_s0 + $0x284] sm:$0xf] }
 0x14a   :  { %v2627_v12 = vor.u32 %v2962_v60, %v2626_v55  ;;  %v2631_v16 = vor.u32 %v2960_v58, %v2628_v59 }
 0x14b   :  { %v1110_v11 = vmul.f32 %v3815_v21, %v1077_v63  ;;  %v2961_v63 = vld [vmem:[%s4457_s0 + $0x28c] sm:$0xf]  ;;  %v707_v45 = vmax.f32 %v691_v6, 0.0  ;;  %v2652_v6 = vld [vmem:[%s4457_s0 + $0x2b8] sm:$0xf0] }
 0x14d   :  { %v1126_v32 = vadd.f32 %v3822_v23, %v1110_v11  ;;  %v673_v11 = vmul.f32 %v3815_v21, %v3698_v33 }
 0x14e   :  { %v1029_v35 = vpop.f32.mrf.mxu2  ;;  %v934_v25 = vpop.f32.mrf.mxu0 }
 0x14f   :  { %v1078_v37 = vpop.f32.mrf.mxu3  ;;  %v1142_v41 = vmax.f32 %v1126_v32, 0.0  ;;  %v1030_v24 = vadd.f32 %v1029_v35, %v981_v61  ;;  %v983_v53 = vpop.f32.mrf.mxu1  ;;  %v2963_v61 = vld [vmem:[%s4457_s0 + $0x294] sm:$0xf0]  ;;  %v2639_v35 = vor.u32 %v2961_v63, %v2636_v8 }
 0x150   :  { %v984_v43 = vadd.f32 %v983_v53, %v934_v25  ;;  %v2635_v34 = vor.u32 %v2963_v61, %v2634_v10  ;;  %v674_v25 = vmul.f32 %v3815_v21, %v3700_v40  ;;  %v2966_v40 = vld [vmem:[%s4457_s0 + $0x2ac] sm:$0xf0] }
 0x151   :  { %v3929_v44 = vmax.f32 %v705_v13, %v1142_v41  ;;  %v1079_v30 = vadd.f32 %v1078_v37, %v1030_v24  ;;  %1386 = vmatmul.bf16.gmra.mxu0 %v2611_v38  ;;  %v692_v41 = vadd.f32 %v3822_v23, %v673_v11 }
 0x152   :  { %1435 = vmatmul.bf16.gmra.mxu1 %v2615_v39 }
 0x153   :  { %v1111_v7 = vmul.f32 %v3815_v21, %v1079_v30  ;;  %1484 = vmatmul.bf16.gmra.mxu2 %v2619_v27 }
 0x154   :  { %1533 = vmatmul.bf16.gmra.mxu3 %v2623_v42  ;;  %v708_v42 = vmax.f32 %v692_v41, 0.0 }
 0x155   :  { %v1127_v29 = vadd.f32 %v3822_v23, %v1111_v7 }
 0x156   :  { %v1032_v46 = vpop.f32.mrf.mxu2  ;;  %v936_v1 = vpop.f32.mrf.mxu0 }
 0x157   :  { %v1081_v47 = vpop.f32.mrf.mxu3  ;;  %v1143_v49 = vmax.f32 %v1127_v29, 0.0  ;;  %v1033_v52 = vadd.f32 %v1032_v46, %v984_v43  ;;  %v985_v26 = vpop.f32.mrf.mxu1 }
 0x158   :  { %v986_v2 = vadd.f32 %v985_v26, %v936_v1  ;;  %v2644_v1 = vld [vmem:[%s4457_s0 + $0x2b0] sm:$0xf0]  ;;  %v2650_v26 = vld [vmem:[%s4457_s0 + $0x2a8] sm:$0xf] }
 0x159   :  { %v3936_v3 = vmax.f32 %v706_v48, %v1143_v49  ;;  %v1082_v4 = vadd.f32 %v1081_v47, %v1033_v52  ;;  %v693_v47 = vadd.f32 %v3822_v23, %v674_v25  ;;  %v2642_v48 = vld [vmem:[%s4457_s0 + $0x2a0] sm:$0xf]  ;;  %v2964_v52 = vld [vmem:[%s4457_s0 + $0x2a4] sm:$0xf] }
 0x15a   :  { %v2643_v10 = vor.u32 %v2966_v40, %v2642_v48  ;;  %v2647_v61 = vor.u32 %v2964_v52, %v2644_v1 }
 0x15b   :  { %v1112_v56 = vmul.f32 %v3815_v21, %v1082_v4  ;;  %v2965_v4 = vld [vmem:[%s4457_s0 + $0x2ac] sm:$0xf]  ;;  %v709_v60 = vmax.f32 %v693_v47, 0.0  ;;  %v2668_v47 = vld [vmem:[%s4457_s0 + $0x2d8] sm:$0xf0] }
 0x15d   :  { %v1128_v9 = vadd.f32 %v3822_v23, %v1112_v56  ;;  %v675_v56 = vmul.f32 %v3815_v21, %v3726_v0 }
 0x15e   :  { %v1034_v14 = vpop.f32.mrf.mxu2  ;;  %v939_v32 = vpop.f32.mrf.mxu0 }
 0x15f   :  { %v1083_v15 = vpop.f32.mrf.mxu3  ;;  %v1144_v18 = vmax.f32 %v1128_v9, 0.0  ;;  %v1035_v22 = vadd.f32 %v1034_v14, %v986_v2  ;;  %v988_v13 = vpop.f32.mrf.mxu1  ;;  %v2967_v2 = vld [vmem:[%s4457_s0 + $0x2b4] sm:$0xf0]  ;;  %v2655_v14 = vor.u32 %v2965_v4, %v2652_v6 }
 0x160   :  { %v989_v37 = vadd.f32 %v988_v13, %v939_v32  ;;  %v2651_v11 = vor.u32 %v2967_v2, %v2650_v26  ;;  %v676_v32 = vmul.f32 %v3815_v21, %v3728_v54  ;;  %v2970_v54 = vld [vmem:[%s4457_s0 + $0x2cc] sm:$0xf0] }
 0x161   :  { %v3967_v38 = vmax.f32 %v707_v45, %v1144_v18  ;;  %v1084_v39 = vadd.f32 %v1083_v15, %v1035_v22  ;;  %1391 = vmatmul.bf16.gmra.mxu0 %v2627_v12  ;;  %v694_v18 = vadd.f32 %v3822_v23, %v675_v56 }
 0x162   :  { %1440 = vmatmul.bf16.gmra.mxu1 %v2631_v16 }
 0x163   :  { %v1113_v33 = vmul.f32 %v3815_v21, %v1084_v39  ;;  %1489 = vmatmul.bf16.gmra.mxu2 %v2635_v34 }
 0x164   :  { %1538 = vmatmul.bf16.gmra.mxu3 %v2639_v35  ;;  %v710_v35 = vmax.f32 %v694_v18, 0.0 }
 0x165   :  { %v1129_v24 = vadd.f32 %v3822_v23, %v1113_v33 }
 0x166   :  { %v1037_v53 = vpop.f32.mrf.mxu2  ;;  %v941_v28 = vpop.f32.mrf.mxu0 }
 0x167   :  { %v1086_v27 = vpop.f32.mrf.mxu3  ;;  %v1145_v43 = vmax.f32 %v1129_v24, 0.0  ;;  %v1038_v30 = vadd.f32 %v1037_v53, %v989_v37  ;;  %v990_v7 = vpop.f32.mrf.mxu1 }
 0x168   :  { %v991_v29 = vadd.f32 %v990_v7, %v941_v28  ;;  %v2660_v28 = vld [vmem:[%s4457_s0 + $0x2d0] sm:$0xf0]  ;;  %v2666_v7 = vld [vmem:[%s4457_s0 + $0x2c8] sm:$0xf] }
 0x169   :  { %v3974_v31 = vmax.f32 %v708_v42, %v1145_v43  ;;  %v1087_v46 = vadd.f32 %v1086_v27, %v1038_v30  ;;  %v695_v27 = vadd.f32 %v3822_v23, %v676_v32  ;;  %v2658_v42 = vld [vmem:[%s4457_s0 + $0x2c0] sm:$0xf]  ;;  %v2968_v30 = vld [vmem:[%s4457_s0 + $0x2c4] sm:$0xf] }
 0x16a   :  { %v2659_v26 = vor.u32 %v2970_v54, %v2658_v42  ;;  %v2663_v2 = vor.u32 %v2968_v30, %v2660_v28 }
 0x16b   :  { %v1114_v49 = vmul.f32 %v3815_v21, %v1087_v46  ;;  %v2969_v46 = vld [vmem:[%s4457_s0 + $0x2cc] sm:$0xf]  ;;  %v711_v40 = vmax.f32 %v695_v27, 0.0  ;;  %v2684_v27 = vld [vmem:[%s4457_s0 + $0x2f8] sm:$0xf0] }
 0x16d   :  { %v1130_v55 = vadd.f32 %v3822_v23, %v1114_v49  ;;  %v677_v49 = vmul.f32 %v3815_v21, %v3754_v20 }
 0x16e   :  { %v1039_v58 = vpop.f32.mrf.mxu2  ;;  %v944_v9 = vpop.f32.mrf.mxu0 }
 0x16f   :  { %v1088_v59 = vpop.f32.mrf.mxu3  ;;  %v1146_v63 = vmax.f32 %v1130_v55, 0.0  ;;  %v1040_v8 = vadd.f32 %v1039_v58, %v991_v29  ;;  %v993_v45 = vpop.f32.mrf.mxu1  ;;  %v2971_v29 = vld [vmem:[%s4457_s0 + $0x2d4] sm:$0xf0]  ;;  %v2671_v58 = vor.u32 %v2969_v46, %v2668_v47 }
 0x170   :  { %v994_v15 = vadd.f32 %v993_v45, %v944_v9  ;;  %v2667_v56 = vor.u32 %v2971_v29, %v2666_v7  ;;  %v678_v9 = vmul.f32 %v3815_v21, %v3756_v36  ;;  %v2974_v36 = vld [vmem:[%s4457_s0 + $0x2ec] sm:$0xf0] }
 0x171   :  { %v4005_v12 = vmax.f32 %v709_v60, %v1146_v63  ;;  %v1089_v16 = vadd.f32 %v1088_v59, %v1040_v8  ;;  %1396 = vmatmul.bf16.gmra.mxu0 %v2643_v10  ;;  %v696_v63 = vadd.f32 %v3822_v23, %v677_v49 }
 0x172   :  { %1445 = vmatmul.bf16.gmra.mxu1 %v2647_v61 }
 0x173   :  { %v1115_v0 = vmul.f32 %v3815_v21, %v1089_v16  ;;  %1494 = vmatmul.bf16.gmra.mxu2 %v2651_v11 }
 0x174   :  { %1543 = vmatmul.bf16.gmra.mxu3 %v2655_v14  ;;  %v712_v14 = vmax.f32 %v696_v63, 0.0 }
 0x175   :  { %v1131_v22 = vadd.f32 %v3822_v23, %v1115_v0 }
 0x176   :  { %v1042_v13 = vpop.f32.mrf.mxu2  ;;  %v946_v41 = vpop.f32.mrf.mxu0 }
 0x177   :  { %v1091_v34 = vpop.f32.mrf.mxu3  ;;  %v1147_v37 = vmax.f32 %v1131_v22, 0.0  ;;  %v1043_v39 = vadd.f32 %v1042_v13, %v994_v15  ;;  %v995_v33 = vpop.f32.mrf.mxu1 }
 0x178   :  { %v996_v24 = vadd.f32 %v995_v33, %v946_v41  ;;  %v2676_v41 = vld [vmem:[%s4457_s0 + $0x2f0] sm:$0xf0]  ;;  %v2682_v33 = vld [vmem:[%s4457_s0 + $0x2e8] sm:$0xf] }
 0x179   :  { %v4012_v25 = vmax.f32 %v710_v35, %v1147_v37  ;;  %v1092_v53 = vadd.f32 %v1091_v34, %v1043_v39  ;;  %v697_v34 = vadd.f32 %v3822_v23, %v678_v9  ;;  %v2674_v35 = vld [vmem:[%s4457_s0 + $0x2e0] sm:$0xf]  ;;  %v2972_v39 = vld [vmem:[%s4457_s0 + $0x2e4] sm:$0xf] }
 0x17a   :  { %v2675_v7 = vor.u32 %v2974_v36, %v2674_v35  ;;  %v2679_v29 = vor.u32 %v2972_v39, %v2676_v41 }
 0x17b   :  { %v1116_v43 = vmul.f32 %v3815_v21, %v1092_v53  ;;  %v2973_v53 = vld [vmem:[%s4457_s0 + $0x2ec] sm:$0xf]  ;;  %v713_v54 = vmax.f32 %v697_v34, 0.0  ;;  %v2732_v34 = vld [vmem:[%s4457_s0 + $0x318] sm:$0xf0] }
 0x17d   :  { %v1132_v48 = vadd.f32 %v3822_v23, %v1116_v43  ;;  %v679_v43 = vmul.f32 %v3815_v21, %v3782_v50 }
 0x17e   :  { %v1044_v52 = vpop.f32.mrf.mxu2  ;;  %v949_v55 = vpop.f32.mrf.mxu0 }
 0x17f   :  { %v1093_v1 = vpop.f32.mrf.mxu3  ;;  %v1148_v4 = vmax.f32 %v1132_v48, 0.0  ;;  %v1045_v6 = vadd.f32 %v1044_v52, %v996_v24  ;;  %v998_v60 = vpop.f32.mrf.mxu1  ;;  %v2975_v24 = vld [vmem:[%s4457_s0 + $0x2f4] sm:$0xf0]  ;;  %v2687_v52 = vor.u32 %v2973_v53, %v2684_v27 }
 0x180   :  { %v999_v59 = vadd.f32 %v998_v60, %v949_v55  ;;  %v2683_v49 = vor.u32 %v2975_v24, %v2682_v33  ;;  %v680_v55 = vmul.f32 %v3815_v21, %v3784_v5  ;;  %v2978_v5 = vld [vmem:[%s4457_s0 + $0x30c] sm:$0xf0] }
 0x181   :  { %v4043_v10 = vmax.f32 %v711_v40, %v1148_v4  ;;  %v1094_v61 = vadd.f32 %v1093_v1, %v1045_v6  ;;  %1401 = vmatmul.bf16.gmra.mxu0 %v2659_v26  ;;  %v698_v4 = vadd.f32 %v3822_v23, %v679_v43 }
 0x182   :  { %1450 = vmatmul.bf16.gmra.mxu1 %v2663_v2 }
 0x183   :  { %v1117_v20 = vmul.f32 %v3815_v21, %v1094_v61  ;;  %1499 = vmatmul.bf16.gmra.mxu2 %v2667_v56 }
 0x184   :  { %1548 = vmatmul.bf16.gmra.mxu3 %v2671_v58  ;;  %v714_v58 = vmax.f32 %v698_v4, 0.0 }
 0x185   :  { %v1133_v8 = vadd.f32 %v3822_v23, %v1117_v20 }
 0x186   :  { %v1047_v45 = vpop.f32.mrf.mxu2  ;;  %v951_v18 = vpop.f32.mrf.mxu0 }
 0x187   :  { %v1096_v11 = vpop.f32.mrf.mxu3  ;;  %v1149_v15 = vmax.f32 %v1133_v8, 0.0  ;;  %v1048_v16 = vadd.f32 %v1047_v45, %v999_v59  ;;  %v1000_v0 = vpop.f32.mrf.mxu1 }
 0x188   :  { %v1001_v22 = vadd.f32 %v1000_v0, %v951_v18  ;;  %v2724_v18 = vld [vmem:[%s4457_s0 + $0x310] sm:$0xf0]  ;;  %v2730_v0 = vld [vmem:[%s4457_s0 + $0x308] sm:$0xf] }
 0x189   :  { %v4050_v32 = vmax.f32 %v712_v14, %v1149_v15  ;;  %v1097_v13 = vadd.f32 %v1096_v11, %v1048_v16  ;;  %v699_v11 = vadd.f32 %v3822_v23, %v680_v55  ;;  %v2722_v14 = vld [vmem:[%s4457_s0 + $0x300] sm:$0xf]  ;;  %v2976_v16 = vld [vmem:[%s4457_s0 + $0x304] sm:$0xf] }
 0x18a   :  { %v2723_v33 = vor.u32 %v2978_v5, %v2722_v14  ;;  %v2727_v24 = vor.u32 %v2976_v16, %v2724_v18 }
 0x18b   :  { %v1118_v37 = vmul.f32 %v3815_v21, %v1097_v13  ;;  %v2977_v13 = vld [vmem:[%s4457_s0 + $0x30c] sm:$0xf]  ;;  %v715_v36 = vmax.f32 %v699_v11, 0.0 }
 0x18d   :  { %v1134_v42 = vadd.f32 %v3822_v23, %v1118_v37  ;;  %v681_v37 = vmul.f32 %v3815_v21, %v3810_v19 }
 0x18e   :  { %v1049_v30 = vpop.f32.mrf.mxu2  ;;  %v954_v48 = vpop.f32.mrf.mxu0 }
 0x18f   :  { %v1098_v28 = vpop.f32.mrf.mxu3  ;;  %v1150_v46 = vmax.f32 %v1134_v42, 0.0  ;;  %v1050_v47 = vadd.f32 %v1049_v30, %v1001_v22  ;;  %v1003_v40 = vpop.f32.mrf.mxu1  ;;  %v2979_v22 = vld [vmem:[%s4457_s0 + $0x314] sm:$0xf0]  ;;  %v2735_v30 = vor.u32 %v2977_v13, %v2732_v34 }
 0x190   :  { %v1004_v1 = vadd.f32 %v1003_v40, %v954_v48  ;;  %v2731_v43 = vor.u32 %v2979_v22, %v2730_v0 }
 0x191   :  { %v4081_v26 = vmax.f32 %v713_v54, %v1150_v46  ;;  %v1099_v2 = vadd.f32 %v1098_v28, %v1050_v47  ;;  %1406 = vmatmul.bf16.gmra.mxu0 %v2675_v7  ;;  %v700_v46 = vadd.f32 %v3822_v23, %v681_v37 }
 0x192   :  { %1455 = vmatmul.bf16.gmra.mxu1 %v2679_v29 }
 0x193   :  { %v1119_v50 = vmul.f32 %v3815_v21, %v1099_v2  ;;  %1504 = vmatmul.bf16.gmra.mxu2 %v2683_v49  ;;  %v716_v49 = vmax.f32 %v700_v46, 0.0 }
 0x194   :  { %1553 = vmatmul.bf16.gmra.mxu3 %v2687_v52 }
 0x195   :  { %v1135_v6 = vadd.f32 %v3822_v23, %v1119_v50 }
 0x196   :  { %v1052_v60 = vpop.f32.mrf.mxu2  ;;  %v956_v63 = vpop.f32.mrf.mxu0 }
 0x197   :  { %v1101_v56 = vpop.f32.mrf.mxu3  ;;  %v1151_v59 = vmax.f32 %v1135_v6, 0.0  ;;  %v1053_v61 = vadd.f32 %v1052_v60, %v1004_v1  ;;  %v1005_v20 = vpop.f32.mrf.mxu1  ;;  %v2980_v60 = vld [vmem:[%s4457_s0 + $0x324] sm:$0xf] }
 0x198   :  { %v1006_v8 = vadd.f32 %v1005_v20, %v956_v63  ;;  %v2748_v63 = vld [vmem:[%s4457_s0 + $0x338] sm:$0xf0] }
 0x199   :  { %v4088_v9 = vmax.f32 %v714_v58, %v1151_v59  ;;  %v1102_v45 = vadd.f32 %v1101_v56, %v1053_v61  ;;  %v2740_v56 = vld [vmem:[%s4457_s0 + $0x330] sm:$0xf0]  ;;  %v2746_v58 = vld [vmem:[%s4457_s0 + $0x328] sm:$0xf]  ;;  %v2983_v59 = vld [vmem:[%s4457_s0 + $0x334] sm:$0xf0] }
 0x19a   :  { %v2981_v61 = vld [vmem:[%s4457_s0 + $0x32c] sm:$0xf]  ;;  %v2743_v11 = vor.u32 %v2980_v60, %v2740_v56  ;;  %v2747_v16 = vor.u32 %v2983_v59, %v2746_v58  ;;  %v2770_v59 = vld [vmem:[%s4457_s0 + $0x360] sm:$0xf] }
 0x19b   :  { %v1120_v15 = vmul.f32 %v3815_v21, %v1102_v45  ;;  %v2751_v18 = vor.u32 %v2981_v61, %v2748_v63  ;;  %v2990_v61 = vld [vmem:[%s4457_s0 + $0x36c] sm:$0xf0]  ;;  %v2988_v63 = vld [vmem:[%s4457_s0 + $0x364] sm:$0xf] }
 0x19d   :  { %v1136_v35 = vadd.f32 %v3822_v23, %v1120_v15 }
 0x19e   :  { %v1054_v39 = vpop.f32.mrf.mxu2  ;;  %v1372_v42 = vpop.f32.mrf.mxu0 }
 0x19f   :  { %v1103_v41 = vpop.f32.mrf.mxu3  ;;  %v1152_v53 = vmax.f32 %v1136_v35, 0.0  ;;  %v1055_v27 = vadd.f32 %v1054_v39, %v1006_v8  ;;  %v1421_v54 = vpop.f32.mrf.mxu1 }
 0x1a0   :  { %v1422_v28 = vadd.f32 %v1421_v54, %v1372_v42  ;;  %v2762_v42 = vld [vmem:[%s4457_s0 + $0x348] sm:$0xf]  ;;  %v2987_v54 = vld [vmem:[%s4457_s0 + $0x354] sm:$0xf0] }
 0x1a1   :  { %v4119_v7 = vmax.f32 %v715_v36, %v1152_v53  ;;  %v1104_v29 = vadd.f32 %v1103_v41, %v1055_v27  ;;  %1808 = vmatmul.bf16.vlgmr.msrb.gmra.mxu0 %v2723_v33  ;;  %v2754_v33 = vld [vmem:[%s4457_s0 + $0x340] sm:$0xf]  ;;  %v2984_v53 = vld [vmem:[%s4457_s0 + $0x344] sm:$0xf]  ;;  %v2756_v27 = vld [vmem:[%s4457_s0 + $0x350] sm:$0xf0] }
 0x1a2   :  { %1857 = vmatmul.bf16.vlgmr.msrb.gmra.mxu1 %v2727_v24  ;;  %v2986_v24 = vld [vmem:[%s4457_s0 + $0x34c] sm:$0xf0] }
 0x1a3   :  { %v1121_v19 = vmul.f32 %v3815_v21, %v1104_v29  ;;  %1906 = vmatmul.bf16.vlgmr.msrb.gmra.mxu2 %v2731_v43  ;;  %v2738_v21 = vld [vmem:[%s4457_s0 + $0x320] sm:$0xf]  ;;  %v2985_v43 = vld [vmem:[%s4457_s0 + $0x34c] sm:$0xf]  ;;  %v2755_v46 = vor.u32 %v2986_v24, %v2754_v33 }
 0x1a4   :  { %1955 = vmatmul.bf16.vlgmr.msrb.gmra.mxu3 %v2735_v30  ;;  %v2764_v30 = vld [vmem:[%s4457_s0 + $0x358] sm:$0xf0] }
 0x1a5   :  { %v1137_v47 = vadd.f32 %v3822_v23, %v1121_v19  ;;  %v2982_v23 = vld [vmem:[%s4457_s0 + $0x32c] sm:$0xf0]  ;;  %v2759_v19 = vor.u32 %v2984_v53, %v2756_v27 }
 0x1a6   :  { %v1470_v48 = vpop.f32.mrf.mxu2  ;;  %v1374_v2 = vpop.f32.mrf.mxu0  ;;  %v2739_v45 = vor.u32 %v2982_v23, %v2738_v21 }
 0x1a7   :  { %v1519_v40 = vpop.f32.mrf.mxu3  ;;  %v1153_v52 = vmax.f32 %v1137_v47, 0.0  ;;  %v1471_v1 = vadd.f32 %v1470_v48, %v1422_v28  ;;  %v1423_v4 = vpop.f32.mrf.mxu1 }
 0x1a8   :  { %v1424_v50 = vadd.f32 %v1423_v4, %v1374_v2 }
 0x1a9   :  { %v4124_v6 = vmax.f32 %v716_v49, %v1153_v52  ;;  %v4126_v55 = vadd.f32 %v1519_v40, %v1471_v1  ;;  %v2763_v49 = vor.u32 %v2987_v54, %v2762_v42  ;;  %v2767_v52 = vor.u32 %v2985_v43, %v2764_v30  ;;  %v2786_v30 = vld [vmem:[%s4457_s0 + $0x380] sm:$0xf] }
 0x1ae   :  { %v1472_v20 = vpop.f32.mrf.mxu2  ;;  %v1377_v5 = vpop.f32.mrf.mxu0 }
 0x1af   :  { %v1521_v8 = vpop.f32.mrf.mxu3  ;;  %v1473_v14 = vadd.f32 %v1472_v20, %v1424_v50  ;;  %v1426_v15 = vpop.f32.mrf.mxu1  ;;  %v2772_v20 = vld [vmem:[%s4457_s0 + $0x370] sm:$0xf0] }
 0x1b0   :  { %v1427_v0 = vadd.f32 %v1426_v15, %v1377_v5 }
 0x1b1   :  { %v4152_v22 = vadd.f32 %v1521_v8, %v1473_v14  ;;  %1813 = vmatmul.bf16.gmra.mxu0 %v2739_v45  ;;  %v2778_v8 = vld [vmem:[%s4457_s0 + $0x368] sm:$0xf]  ;;  %v2991_v45 = vld [vmem:[%s4457_s0 + $0x374] sm:$0xf0]  ;;  %v2780_v14 = vld [vmem:[%s4457_s0 + $0x378] sm:$0xf0] }
 0x1b2   :  { %1862 = vmatmul.bf16.gmra.mxu1 %v2743_v11  ;;  %v2989_v11 = vld [vmem:[%s4457_s0 + $0x36c] sm:$0xf] }
 0x1b3   :  { %1911 = vmatmul.bf16.gmra.mxu2 %v2747_v16  ;;  %v2771_v16 = vor.u32 %v2990_v61, %v2770_v59 }
 0x1b4   :  { %1960 = vmatmul.bf16.gmra.mxu3 %v2751_v18  ;;  %v2775_v18 = vor.u32 %v2988_v63, %v2772_v20 }
 0x1b6   :  { %v1475_v13 = vpop.f32.mrf.mxu2  ;;  %v1379_v36 = vpop.f32.mrf.mxu0 }
 0x1b7   :  { %v1524_v34 = vpop.f32.mrf.mxu3  ;;  %v1476_v35 = vadd.f32 %v1475_v13, %v1427_v0  ;;  %v1428_v37 = vpop.f32.mrf.mxu1 }
 0x1b8   :  { %v1429_v39 = vadd.f32 %v1428_v37, %v1379_v36  ;;  %v2783_v36 = vor.u32 %v2989_v11, %v2780_v14 }
 0x1b9   :  { %v4154_v41 = vadd.f32 %v1524_v34, %v1476_v35  ;;  %v2779_v35 = vor.u32 %v2991_v45, %v2778_v8 }
 0x1be   :  { %v1477_v28 = vpop.f32.mrf.mxu2  ;;  %v1382_v48 = vpop.f32.mrf.mxu0 }
 0x1bf   :  { %v1526_v29 = vpop.f32.mrf.mxu3  ;;  %v1478_v47 = vadd.f32 %v1477_v28, %v1429_v39  ;;  %v1431_v40 = vpop.f32.mrf.mxu1  ;;  %v2994_v28 = vld [vmem:[%s4457_s0 + $0x38c] sm:$0xf0] }
 0x1c0   :  { %v1432_v1 = vadd.f32 %v1431_v40, %v1382_v48  ;;  %v2993_v48 = vld [vmem:[%s4457_s0 + $0x38c] sm:$0xf]  ;;  %v2796_v40 = vld [vmem:[%s4457_s0 + $0x398] sm:$0xf0] }
 0x1c1   :  { %v4180_v2 = vadd.f32 %v1526_v29, %v1478_v47  ;;  %1818 = vmatmul.bf16.gmra.mxu0 %v2755_v46  ;;  %v2992_v29 = vld [vmem:[%s4457_s0 + $0x384] sm:$0xf]  ;;  %v2788_v46 = vld [vmem:[%s4457_s0 + $0x390] sm:$0xf0]  ;;  %v2995_v47 = vld [vmem:[%s4457_s0 + $0x394] sm:$0xf0] }
 0x1c2   :  { %1867 = vmatmul.bf16.gmra.mxu1 %v2759_v19  ;;  %v2794_v19 = vld [vmem:[%s4457_s0 + $0x388] sm:$0xf] }
 0x1c3   :  { %1916 = vmatmul.bf16.gmra.mxu2 %v2763_v49 }
 0x1c4   :  { %1965 = vmatmul.bf16.gmra.mxu3 %v2767_v52 }
 0x1c6   :  { %v1480_v4 = vpop.f32.mrf.mxu2  ;;  %v1384_v23 = vpop.f32.mrf.mxu0 }
 0x1c7   :  { %v1529_v50 = vpop.f32.mrf.mxu3  ;;  %v1481_v21 = vadd.f32 %v1480_v4, %v1432_v1  ;;  %v1433_v60 = vpop.f32.mrf.mxu1  ;;  %v2787_v1 = vor.u32 %v2994_v28, %v2786_v30  ;;  %v2791_v4 = vor.u32 %v2992_v29, %v2788_v46 }
 0x1c8   :  { %v1434_v56 = vadd.f32 %v1433_v60, %v1384_v23  ;;  %v2795_v60 = vor.u32 %v2995_v47, %v2794_v19 }
 0x1c9   :  { %v4182_v58 = vadd.f32 %v1529_v50, %v1481_v21 }
 0x1ce   :  { %v1482_v5 = vpop.f32.mrf.mxu2  ;;  %v1387_v13 = vpop.f32.mrf.mxu0 }
 0x1cf   :  { %v1531_v15 = vpop.f32.mrf.mxu3  ;;  %v1483_v0 = vadd.f32 %v1482_v5, %v1434_v56  ;;  %v1436_v34 = vpop.f32.mrf.mxu1  ;;  %v2799_v56 = vor.u32 %v2993_v48, %v2796_v40 }
 0x1d0   :  { %v1437_v37 = vadd.f32 %v1436_v34, %v1387_v13  ;;  %v2810_v13 = vld [vmem:[%s4457_s0 + $0x3a8] sm:$0xf]  ;;  %v2999_v34 = vld [vmem:[%s4457_s0 + $0x3b4] sm:$0xf0] }
 0x1d1   :  { %v4208_v39 = vadd.f32 %v1531_v15, %v1483_v0  ;;  %1823 = vmatmul.bf16.gmra.mxu0 %v2771_v16  ;;  %v2802_v15 = vld [vmem:[%s4457_s0 + $0x3a0] sm:$0xf]  ;;  %v2998_v16 = vld [vmem:[%s4457_s0 + $0x3ac] sm:$0xf0]  ;;  %v2804_v0 = vld [vmem:[%s4457_s0 + $0x3b0] sm:$0xf0]  ;;  %v2811_v30 = vor.u32 %v2999_v34, %v2810_v13 }
 0x1d2   :  { %1872 = vmatmul.bf16.gmra.mxu1 %v2775_v18  ;;  %v2996_v18 = vld [vmem:[%s4457_s0 + $0x3a4] sm:$0xf] }
 0x1d3   :  { %1921 = vmatmul.bf16.gmra.mxu2 %v2779_v35  ;;  %v2997_v35 = vld [vmem:[%s4457_s0 + $0x3ac] sm:$0xf] }
 0x1d4   :  { %1970 = vmatmul.bf16.gmra.mxu3 %v2783_v36  ;;  %v2812_v36 = vld [vmem:[%s4457_s0 + $0x3b8] sm:$0xf0] }
 0x1d5   :  { %v2815_v28 = vor.u32 %v2997_v35, %v2812_v36 }
 0x1d6   :  { %v1485_v33 = vpop.f32.mrf.mxu2  ;;  %v1389_v27 = vpop.f32.mrf.mxu0 }
 0x1d7   :  { %v1534_v24 = vpop.f32.mrf.mxu3  ;;  %v1486_v53 = vadd.f32 %v1485_v33, %v1437_v37  ;;  %v1438_v42 = vpop.f32.mrf.mxu1 }
 0x1d8   :  { %v1439_v54 = vadd.f32 %v1438_v42, %v1389_v27 }
 0x1d9   :  { %v4210_v43 = vadd.f32 %v1534_v24, %v1486_v53  ;;  %v2803_v24 = vor.u32 %v2998_v16, %v2802_v15  ;;  %v2807_v53 = vor.u32 %v2996_v18, %v2804_v0 }
 0x1de   :  { %v1487_v49 = vpop.f32.mrf.mxu2  ;;  %v1392_v21 = vpop.f32.mrf.mxu0 }
 0x1df   :  { %v1536_v52 = vpop.f32.mrf.mxu3  ;;  %v1488_v50 = vadd.f32 %v1487_v49, %v1439_v54  ;;  %v1441_v23 = vpop.f32.mrf.mxu1 }
 0x1e0   :  { %v1442_v59 = vadd.f32 %v1441_v23, %v1392_v21  ;;  %v3000_v21 = vld [vmem:[%s4457_s0 + $0x3c4] sm:$0xf]  ;;  %v2820_v23 = vld [vmem:[%s4457_s0 + $0x3d0] sm:$0xf0] }
 0x1e1   :  { %v4236_v61 = vadd.f32 %v1536_v52, %v1488_v50  ;;  %1828 = vmatmul.bf16.gmra.mxu0 %v2787_v1  ;;  %v3002_v50 = vld [vmem:[%s4457_s0 + $0x3cc] sm:$0xf0] }
 0x1e2   :  { %1877 = vmatmul.bf16.gmra.mxu1 %v2791_v4  ;;  %v2818_v4 = vld [vmem:[%s4457_s0 + $0x3c0] sm:$0xf] }
 0x1e3   :  { %1926 = vmatmul.bf16.gmra.mxu2 %v2795_v60  ;;  %v2826_v60 = vld [vmem:[%s4457_s0 + $0x3c8] sm:$0xf] }
 0x1e4   :  { %1975 = vmatmul.bf16.gmra.mxu3 %v2799_v56  ;;  %v3003_v56 = vld [vmem:[%s4457_s0 + $0x3d4] sm:$0xf0] }
 0x1e5   :  { %v2827_v18 = vor.u32 %v3003_v56, %v2826_v60 }
 0x1e6   :  { %v1490_v63 = vpop.f32.mrf.mxu2  ;;  %v1394_v45 = vpop.f32.mrf.mxu0 }
 0x1e7   :  { %v1539_v20 = vpop.f32.mrf.mxu3  ;;  %v1491_v8 = vadd.f32 %v1490_v63, %v1442_v59  ;;  %v1443_v11 = vpop.f32.mrf.mxu1  ;;  %v3001_v59 = vld [vmem:[%s4457_s0 + $0x3cc] sm:$0xf]  ;;  %v2828_v63 = vld [vmem:[%s4457_s0 + $0x3d8] sm:$0xf0] }
 0x1e8   :  { %v1444_v14 = vadd.f32 %v1443_v11, %v1394_v45  ;;  %v2819_v45 = vor.u32 %v3002_v50, %v2818_v4  ;;  %v2823_v11 = vor.u32 %v3000_v21, %v2820_v23  ;;  %v2831_v0 = vor.u32 %v3001_v59, %v2828_v63 }
 0x1e9   :  { %v4238_v5 = vadd.f32 %v1539_v20, %v1491_v8 }
 0x1ee   :  { %v1492_v37 = vpop.f32.mrf.mxu2  ;;  %v1397_v42 = vpop.f32.mrf.mxu0 }
 0x1ef   :  { %v1541_v33 = vpop.f32.mrf.mxu3  ;;  %v1493_v27 = vadd.f32 %v1492_v37, %v1444_v14  ;;  %v1446_v54 = vpop.f32.mrf.mxu1 }
 0x1f0   :  { %v1447_v29 = vadd.f32 %v1446_v54, %v1397_v42  ;;  %v2834_v42 = vld [vmem:[%s4457_s0 + $0x3e0] sm:$0xf]  ;;  %v3006_v54 = vld [vmem:[%s4457_s0 + $0x3ec] sm:$0xf0] }
 0x1f1   :  { %v4264_v46 = vadd.f32 %v1541_v33, %v1493_v27  ;;  %1833 = vmatmul.bf16.gmra.mxu0 %v2803_v24 }
 0x1f2   :  { %1882 = vmatmul.bf16.gmra.mxu1 %v2807_v53 }
 0x1f3   :  { %1931 = vmatmul.bf16.gmra.mxu2 %v2811_v30  ;;  %v3004_v30 = vld [vmem:[%s4457_s0 + $0x3e4] sm:$0xf] }
 0x1f4   :  { %1980 = vmatmul.bf16.gmra.mxu3 %v2815_v28  ;;  %v2836_v28 = vld [vmem:[%s4457_s0 + $0x3f0] sm:$0xf0] }
 0x1f5   :  { %v2839_v4 = vor.u32 %v3004_v30, %v2836_v28 }
 0x1f6   :  { %v1495_v19 = vpop.f32.mrf.mxu2  ;;  %v1399_v40 = vpop.f32.mrf.mxu0 }
 0x1f7   :  { %v1544_v47 = vpop.f32.mrf.mxu3  ;;  %v1496_v48 = vadd.f32 %v1495_v19, %v1447_v29  ;;  %v1448_v49 = vpop.f32.mrf.mxu1  ;;  %v2842_v29 = vld [vmem:[%s4457_s0 + $0x3e8] sm:$0xf]  ;;  %v3007_v19 = vld [vmem:[%s4457_s0 + $0x3f4] sm:$0xf0] }
 0x1f8   :  { %v1449_v52 = vadd.f32 %v1448_v49, %v1399_v40  ;;  %v2843_v60 = vor.u32 %v3007_v19, %v2842_v29 }
 0x1f9   :  { %v4266_v1 = vadd.f32 %v1544_v47, %v1496_v48  ;;  %v3005_v47 = vld [vmem:[%s4457_s0 + $0x3ec] sm:$0xf]  ;;  %v2844_v48 = vld [vmem:[%s4457_s0 + $0x3f8] sm:$0xf0] }
 0x1fa   :  { %v2847_v56 = vor.u32 %v3005_v47, %v2844_v48  ;;  %v4336_v47 = vld [vmem:[%s4459_s3] ss:$0 sm:$0xff] }
 0x1fe   :  { %v1497_v20 = vpop.f32.mrf.mxu2  ;;  %v1402_v15 = vpop.f32.mrf.mxu0 }
 0x1ff   :  { %v1546_v8 = vpop.f32.mrf.mxu3  ;;  %v1498_v14 = vadd.f32 %v1497_v20, %v1449_v52  ;;  %v1451_v16 = vpop.f32.mrf.mxu1  ;;  %v2835_v52 = vor.u32 %v3006_v54, %v2834_v42  ;;  %v4329_v42 = vld [vmem:[%s4458_s2] ss:$0 sm:$0xff] }
 0x200   :  { %v1452_v13 = vadd.f32 %v1451_v16, %v1402_v15  ;;  %v1559_v54 = vmul.f32 %v4329_v42, %v4126_v55  ;;  %v1560_v55 = vmul.f32 %v4329_v42, %v4152_v22  ;;  %v1561_v22 = vmul.f32 %v4329_v42, %v4154_v41 }
 0x201   :  { %v4292_v34 = vadd.f32 %v1546_v8, %v1498_v14  ;;  %1838 = vmatmul.bf16.gmra.mxu0 %v2819_v45  ;;  %v1562_v41 = vmul.f32 %v4329_v42, %v4180_v2 }
 0x202   :  { %1887 = vmatmul.bf16.gmra.mxu1 %v2823_v11  ;;  %v1575_v48 = vadd.f32 %v4336_v47, %v1559_v54 }
 0x203   :  { %1936 = vmatmul.bf16.gmra.mxu2 %v2827_v18 }
 0x204   :  { %1985 = vmatmul.bf16.gmra.mxu3 %v2831_v0 }
 0x206   :  { %v1500_v35 = vpop.f32.mrf.mxu2  ;;  %v1404_v33 = vpop.f32.mrf.mxu0 }
 0x207   :  { %v1549_v36 = vpop.f32.mrf.mxu3  ;;  %v1501_v37 = vadd.f32 %v1500_v35, %v1452_v13  ;;  %v1453_v24 = vpop.f32.mrf.mxu1 }
 0x208   :  { %v1454_v53 = vadd.f32 %v1453_v24, %v1404_v33 }
 0x209   :  { %v4294_v27 = vadd.f32 %v1549_v36, %v1501_v37 }
 0x20e   :  { %v1502_v40 = vpop.f32.mrf.mxu2  ;;  %v1407_v21 = vpop.f32.mrf.mxu0 }
 0x20f   :  { %v1551_v49 = vpop.f32.mrf.mxu3  ;;  %v1503_v50 = vadd.f32 %v1502_v40, %v1454_v53  ;;  %v1456_v23 = vpop.f32.mrf.mxu1 }
 0x210   :  { %v1457_v59 = vadd.f32 %v1456_v23, %v1407_v21  ;;  %v1591_v21 = vmax.f32 %v1575_v48, 0.0 }
 0x211   :  { %v4320_v63 = vadd.f32 %v1551_v49, %v1503_v50  ;;  %1843 = vmatmul.bf16.gmra.mxu0 %v2835_v52 }
 0x212   :  { %1892 = vmatmul.bf16.gmra.mxu1 %v2839_v4 }
 0x213   :  { %1941 = vmatmul.bf16.gmra.mxu2 %v2843_v60 }
 0x214   :  { %1990 = vmatmul.bf16.gmra.mxu3 %v2847_v56 }
 0x216   :  { %v1505_v20 = vpop.f32.mrf.mxu2  ;;  %v1409_v11 = vpop.f32.mrf.mxu0 }
 0x217   :  { %v1554_v8 = vpop.f32.mrf.mxu3  ;;  %v1506_v45 = vadd.f32 %v1505_v20, %v1457_v59  ;;  %v1458_v14 = vpop.f32.mrf.mxu1 }
 0x218   :  { %v1459_v15 = vadd.f32 %v1458_v14, %v1409_v11 }
 0x219   :  { %v4322_v16 = vadd.f32 %v1554_v8, %v1506_v45  ;;  %v1576_v45 = vadd.f32 %v4336_v47, %v1560_v55 }
 0x21e   :  { %v1507_v18 = vpop.f32.mrf.mxu2  ;;  %v1809_v35 = vpop.f32.mrf.mxu0 }
 0x21f   :  { %v1556_v0 = vpop.f32.mrf.mxu3  ;;  %v1508_v13 = vadd.f32 %v1507_v18, %v1459_v15  ;;  %v1858_v36 = vpop.f32.mrf.mxu1 }
 0x220   :  { %v1859_v33 = vadd.f32 %v1858_v36, %v1809_v35  ;;  %v1592_v35 = vmax.f32 %v1576_v45, 0.0 }
 0x221   :  { %v4324_v37 = vadd.f32 %v1556_v0, %v1508_v13 }
 0x226   :  { %v1907_v24 = vpop.f32.mrf.mxu2  ;;  %v1811_v28 = vpop.f32.mrf.mxu0 }
 0x227   :  { %v1956_v53 = vpop.f32.mrf.mxu3  ;;  %v1908_v30 = vadd.f32 %v1907_v24, %v1859_v33  ;;  %v1860_v29 = vpop.f32.mrf.mxu1 }
 0x228   :  { %v1861_v52 = vadd.f32 %v1860_v29, %v1811_v28  ;;  %v1577_v28 = vadd.f32 %v4336_v47, %v1561_v22 }
 0x229   :  { %v1957_v19 = vadd.f32 %v1956_v53, %v1908_v30 }
 0x22b   :  { %v1996_v40 = vmul.f32 %v4329_v42, %v1957_v19 }
 0x22d   :  { %v2012_v49 = vadd.f32 %v4336_v47, %v1996_v40 }
 0x22e   :  { %v1909_v4 = vpop.f32.mrf.mxu2  ;;  %v1814_v56 = vpop.f32.mrf.mxu0 }
 0x22f   :  { %v1958_v50 = vpop.f32.mrf.mxu3  ;;  %v2028_v23 = vmax.f32 %v2012_v49, 0.0  ;;  %v1910_v60 = vadd.f32 %v1909_v4, %v1861_v52  ;;  %v1863_v59 = vpop.f32.mrf.mxu1  ;;  %v1593_v4 = vmax.f32 %v1577_v28, 0.0 }
 0x230   :  { %v1864_v15 = vadd.f32 %v1863_v59, %v1814_v56  ;;  %v1578_v56 = vadd.f32 %v4336_v47, %v1562_v41 }
 0x231   :  { %v2044_v20 = vmax.f32 %v1591_v21, %v2028_v23  ;;  %v1959_v8 = vadd.f32 %v1958_v50, %v1910_v60 }
 0x233   :  { %v2060_v11 = vmax.f32 %v3853_v57, %v2044_v20  ;;  %v1997_v14 = vmul.f32 %v4329_v42, %v1959_v8 }
 0x235   :  { %v2013_v18 = vadd.f32 %v4336_v47, %v1997_v14  ;;  %v1594_v14 = vmax.f32 %v1578_v56, 0.0 }
 0x236   :  { %v1912_v0 = vpop.f32.mrf.mxu2  ;;  %v1816_v24 = vpop.f32.mrf.mxu0 }
 0x237   :  { %v1961_v13 = vpop.f32.mrf.mxu3  ;;  %v2029_v36 = vmax.f32 %v2013_v18, 0.0  ;;  %v1913_v33 = vadd.f32 %v1912_v0, %v1864_v15  ;;  %v1865_v53 = vpop.f32.mrf.mxu1  ;;  %v1563_v15 = vmul.f32 %v4329_v42, %v4182_v58  ;;  %v1564_v58 = vmul.f32 %v4329_v42, %v4208_v39 }
 0x238   :  { %v1866_v40 = vadd.f32 %v1865_v53, %v1816_v24 }
 0x239   :  { %v2045_v54 = vmax.f32 %v1592_v35, %v2029_v36  ;;  %v1962_v30 = vadd.f32 %v1961_v13, %v1913_v33  ;;  %v1579_v33 = vadd.f32 %v4336_v47, %v1563_v15 }
 0x23b   :  { %v2061_v57 = vmax.f32 %v3860_v17, %v2045_v54  ;;  %v1998_v29 = vmul.f32 %v4329_v42, %v1962_v30 }
 0x23d   :  { %v3011_v19 = vpack.c.bf16 %v2061_v57, %v2060_v11  ;;  %v2014_v48 = vadd.f32 %v4336_v47, %v1998_v29  ;;  %v1595_v29 = vmax.f32 %v1579_v33, 0.0 }
 0x23e   :  { %v1914_v49 = vpop.f32.mrf.mxu2  ;;  %v1819_v55 = vpop.f32.mrf.mxu0 }
 0x23f   :  { %v1963_v52 = vpop.f32.mrf.mxu3  ;;  %3012 = vst [vmem:[%s4460_s4] sm:$0xff] %v3011_v19   ;;  %v2030_v50 = vmax.f32 %v2014_v48, 0.0  ;;  %v1915_v21 = vadd.f32 %v1914_v49, %v1866_v40  ;;  %v1868_v17 = vpop.f32.mrf.mxu1 }
 0x240   :  { %v1869_v8 = vadd.f32 %v1868_v17, %v1819_v55 }
 0x241   :  { %v2046_v23 = vmax.f32 %v1593_v4, %v2030_v50  ;;  %v1964_v60 = vadd.f32 %v1963_v52, %v1915_v21  ;;  %v1580_v4 = vadd.f32 %v4336_v47, %v1564_v58 }
 0x243   :  { %v2062_v59 = vmax.f32 %v3891_v51, %v2046_v23  ;;  %v1999_v20 = vmul.f32 %v4329_v42, %v1964_v60  ;;  %v1596_v23 = vmax.f32 %v1580_v4, 0.0  ;;  %v1565_v60 = vmul.f32 %v4329_v42, %v4210_v43 }
 0x244   :  { %v1566_v43 = vmul.f32 %v4329_v42, %v4236_v61 }
 0x245   :  { %v2015_v45 = vadd.f32 %v4336_v47, %v1999_v20 }
 0x246   :  { %v1917_v2 = vpop.f32.mrf.mxu2  ;;  %v1821_v13 = vpop.f32.mrf.mxu0 }
 0x247   :  { %v1966_v11 = vpop.f32.mrf.mxu3  ;;  %v2031_v18 = vmax.f32 %v2015_v45, 0.0  ;;  %v1918_v0 = vadd.f32 %v1917_v2, %v1869_v8  ;;  %v1870_v35 = vpop.f32.mrf.mxu1 }
 0x248   :  { %v1871_v30 = vadd.f32 %v1870_v35, %v1821_v13 }
 0x249   :  { %v2047_v22 = vmax.f32 %v1594_v14, %v2031_v18  ;;  %v1967_v36 = vadd.f32 %v1966_v11, %v1918_v0  ;;  %v1581_v11 = vadd.f32 %v4336_v47, %v1565_v60 }
 0x24b   :  { %v2063_v51 = vmax.f32 %v3898_v62, %v2047_v22  ;;  %v2000_v24 = vmul.f32 %v4329_v42, %v1967_v36  ;;  %v1597_v22 = vmax.f32 %v1581_v11, 0.0 }
 0x24d   :  { %v3016_v53 = vpack.c.bf16 %v2063_v51, %v2062_v59  ;;  %v2016_v54 = vadd.f32 %v4336_v47, %v2000_v24 }
 0x24e   :  { %v1919_v28 = vpop.f32.mrf.mxu2  ;;  %v1824_v40 = vpop.f32.mrf.mxu0 }
 0x24f   :  { %v1968_v57 = vpop.f32.mrf.mxu3  ;;  %3048 = vst [vmem:[%s4460_s4 + $0x8] sm:$0xff] %v3016_v53   ;;  %v2032_v19 = vmax.f32 %v2016_v54, 0.0  ;;  %v1920_v48 = vadd.f32 %v1919_v28, %v1871_v30  ;;  %v1873_v62 = vpop.f32.mrf.mxu1  ;;  %v1582_v54 = vadd.f32 %v4336_v47, %v1566_v43 }
 0x250   :  { %v1874_v21 = vadd.f32 %v1873_v62, %v1824_v40 }
 0x251   :  { %v2048_v49 = vmax.f32 %v1595_v29, %v2032_v19  ;;  %v1969_v52 = vadd.f32 %v1968_v57, %v1920_v48  ;;  %v1598_v19 = vmax.f32 %v1582_v54, 0.0  ;;  %v1567_v48 = vmul.f32 %v4329_v42, %v4238_v5 }
 0x252   :  { %v1568_v5 = vmul.f32 %v4329_v42, %v4264_v46 }
 0x253   :  { %v2064_v41 = vmax.f32 %v3929_v44, %v2048_v49  ;;  %v2001_v50 = vmul.f32 %v4329_v42, %v1969_v52 }
 0x254   :  { %v1584_v11 = vadd.f32 %v4336_v47, %v1568_v5 }
 0x255   :  { %v2017_v55 = vadd.f32 %v4336_v47, %v2001_v50  ;;  %v1583_v50 = vadd.f32 %v4336_v47, %v1567_v48 }
 0x256   :  { %v1922_v39 = vpop.f32.mrf.mxu2  ;;  %v1826_v20 = vpop.f32.mrf.mxu0 }
 0x257   :  { %v1971_v17 = vpop.f32.mrf.mxu3  ;;  %v2033_v56 = vmax.f32 %v2017_v55, 0.0  ;;  %v1923_v59 = vadd.f32 %v1922_v39, %v1874_v21  ;;  %v1875_v8 = vpop.f32.mrf.mxu1 }
 0x258   :  { %v1876_v0 = vadd.f32 %v1875_v8, %v1826_v20 }
 0x259   :  { %v2049_v45 = vmax.f32 %v1596_v23, %v2033_v56  ;;  %v1972_v2 = vadd.f32 %v1971_v17, %v1923_v59  ;;  %v1599_v56 = vmax.f32 %v1583_v50, 0.0 }
 0x25b   :  { %v2065_v44 = vmax.f32 %v3936_v3, %v2049_v45  ;;  %v2002_v14 = vmul.f32 %v4329_v42, %v1972_v2 }
 0x25d   :  { %v3021_v15 = vpack.c.bf16 %v2065_v44, %v2064_v41  ;;  %v2018_v18 = vadd.f32 %v4336_v47, %v2002_v14 }
 0x25e   :  { %v1924_v13 = vpop.f32.mrf.mxu2  ;;  %v1829_v51 = vpop.f32.mrf.mxu0 }
 0x25f   :  { %v1973_v35 = vpop.f32.mrf.mxu3  ;;  %3049 = vst [vmem:[%s4460_s4 + $0x10] sm:$0xff] %v3021_v15   ;;  %v2034_v36 = vmax.f32 %v2018_v18, 0.0  ;;  %v1925_v33 = vadd.f32 %v1924_v13, %v1876_v0  ;;  %v1878_v3 = vpop.f32.mrf.mxu1  ;;  %v1600_v13 = vmax.f32 %v1584_v11, 0.0 }
 0x260   :  { %v1879_v57 = vadd.f32 %v1878_v3, %v1829_v51 }
 0x261   :  { %v2050_v24 = vmax.f32 %v1597_v22, %v2034_v36  ;;  %v1974_v53 = vadd.f32 %v1973_v35, %v1925_v33  ;;  %v1569_v35 = vmul.f32 %v4329_v42, %v4266_v1  ;;  %v1570_v1 = vmul.f32 %v4329_v42, %v4292_v34 }
 0x263   :  { %v2066_v30 = vmax.f32 %v3967_v38, %v2050_v24  ;;  %v2003_v28 = vmul.f32 %v4329_v42, %v1974_v53  ;;  %v1585_v24 = vadd.f32 %v4336_v47, %v1569_v35 }
 0x265   :  { %v2019_v29 = vadd.f32 %v4336_v47, %v2003_v28 }
 0x266   :  { %v1927_v61 = vpop.f32.mrf.mxu2  ;;  %v1831_v49 = vpop.f32.mrf.mxu0 }
 0x267   :  { %v1976_v58 = vpop.f32.mrf.mxu3  ;;  %v2035_v40 = vmax.f32 %v2019_v29, 0.0  ;;  %v1928_v62 = vadd.f32 %v1927_v61, %v1879_v57  ;;  %v1880_v52 = vpop.f32.mrf.mxu1  ;;  %v1601_v61 = vmax.f32 %v1585_v24, 0.0 }
 0x268   :  { %v1881_v17 = vadd.f32 %v1880_v52, %v1831_v49  ;;  %v1586_v49 = vadd.f32 %v4336_v47, %v1570_v1 }
 0x269   :  { %v2051_v4 = vmax.f32 %v1598_v19, %v2035_v40  ;;  %v1977_v41 = vadd.f32 %v1976_v58, %v1928_v62 }
 0x26b   :  { %v2067_v38 = vmax.f32 %v3974_v31, %v2051_v4  ;;  %v2004_v21 = vmul.f32 %v4329_v42, %v1977_v41 }
 0x26d   :  { %v3026_v55 = vpack.c.bf16 %v2067_v38, %v2066_v30  ;;  %v2020_v39 = vadd.f32 %v4336_v47, %v2004_v21  ;;  %v1602_v21 = vmax.f32 %v1586_v49, 0.0 }
 0x26e   :  { %v1929_v23 = vpop.f32.mrf.mxu2  ;;  %v1834_v8 = vpop.f32.mrf.mxu0 }
 0x26f   :  { %v1978_v60 = vpop.f32.mrf.mxu3  ;;  %3050 = vst [vmem:[%s4460_s4 + $0x18] sm:$0xff] %v3026_v55   ;;  %v2036_v59 = vmax.f32 %v2020_v39, 0.0  ;;  %v1930_v20 = vadd.f32 %v1929_v23, %v1881_v17  ;;  %v1883_v31 = vpop.f32.mrf.mxu1  ;;  %v1571_v55 = vmul.f32 %v4329_v42, %v4294_v27  ;;  %v1572_v27 = vmul.f32 %v4329_v42, %v4320_v63 }
 0x270   :  { %v1884_v15 = vadd.f32 %v1883_v31, %v1834_v8 }
 0x271   :  { %v2052_v45 = vmax.f32 %v1599_v56, %v2036_v59  ;;  %v1979_v2 = vadd.f32 %v1978_v60, %v1930_v20  ;;  %v1587_v59 = vadd.f32 %v4336_v47, %v1571_v55 }
 0x273   :  { %v2068_v44 = vmax.f32 %v4005_v12, %v2052_v45  ;;  %v2005_v14 = vmul.f32 %v4329_v42, %v1979_v2 }
 0x275   :  { %v2021_v18 = vadd.f32 %v4336_v47, %v2005_v14 }
 0x276   :  { %v1932_v46 = vpop.f32.mrf.mxu2  ;;  %v1836_v36 = vpop.f32.mrf.mxu0 }
 0x277   :  { %v1981_v0 = vpop.f32.mrf.mxu3  ;;  %v2037_v22 = vmax.f32 %v2021_v18, 0.0  ;;  %v1933_v43 = vadd.f32 %v1932_v46, %v1884_v15  ;;  %v1885_v33 = vpop.f32.mrf.mxu1 }
 0x278   :  { %v1886_v28 = vadd.f32 %v1885_v33, %v1836_v36 }
 0x279   :  { %v2053_v51 = vmax.f32 %v1600_v13, %v2037_v22  ;;  %v1982_v3 = vadd.f32 %v1981_v0, %v1933_v43  ;;  %v1588_v13 = vadd.f32 %v4336_v47, %v1572_v27 }
 0x27b   :  { %v2069_v12 = vmax.f32 %v4012_v25, %v2053_v51  ;;  %v2006_v53 = vmul.f32 %v4329_v42, %v1982_v3  ;;  %v1604_v51 = vmax.f32 %v1588_v13, 0.0  ;;  %v1573_v3 = vmul.f32 %v4329_v42, %v4322_v16 }
 0x27c   :  { %v1574_v16 = vmul.f32 %v4329_v42, %v4324_v37 }
 0x27d   :  { %v3031_v54 = vpack.c.bf16 %v2069_v12, %v2068_v44  ;;  %v2022_v30 = vadd.f32 %v4336_v47, %v2006_v53  ;;  %v1603_v44 = vmax.f32 %v1587_v59, 0.0 }
 0x27e   :  { %v1934_v57 = vpop.f32.mrf.mxu2  ;;  %v1839_v48 = vpop.f32.mrf.mxu0 }
 0x27f   :  { %v1983_v29 = vpop.f32.mrf.mxu3  ;;  %3051 = vst [vmem:[%s4460_s4 + $0x20] sm:$0xff] %v3031_v54   ;;  %v2038_v58 = vmax.f32 %v2022_v30, 0.0  ;;  %v1935_v19 = vadd.f32 %v1934_v57, %v1886_v28  ;;  %v1888_v25 = vpop.f32.mrf.mxu1  ;;  %v1589_v57 = vadd.f32 %v4336_v47, %v1573_v3 }
 0x280   :  { %v1889_v41 = vadd.f32 %v1888_v25, %v1839_v48 }
 0x281   :  { %v2054_v40 = vmax.f32 %v1601_v61, %v2038_v58  ;;  %v1984_v62 = vadd.f32 %v1983_v29, %v1935_v19  ;;  %v1605_v48 = vmax.f32 %v1589_v57, 0.0 }
 0x283   :  { %v2070_v52 = vmax.f32 %v4043_v10, %v2054_v40  ;;  %v2007_v4 = vmul.f32 %v4329_v42, %v1984_v62 }
 0x285   :  { %v2023_v50 = vadd.f32 %v4336_v47, %v2007_v4 }
 0x286   :  { %v1937_v34 = vpop.f32.mrf.mxu2  ;;  %v1841_v23 = vpop.f32.mrf.mxu0 }
 0x287   :  { %v1986_v38 = vpop.f32.mrf.mxu3  ;;  %v2039_v39 = vmax.f32 %v2023_v50, 0.0  ;;  %v1938_v17 = vadd.f32 %v1937_v34, %v1889_v41  ;;  %v1890_v60 = vpop.f32.mrf.mxu1 }
 0x288   :  { %v1891_v45 = vadd.f32 %v1890_v60, %v1841_v23 }
 0x289   :  { %v2055_v56 = vmax.f32 %v1602_v21, %v2039_v39  ;;  %v1987_v5 = vadd.f32 %v1986_v38, %v1938_v17 }
 0x28b   :  { %v2071_v10 = vmax.f32 %v4050_v32, %v2055_v56  ;;  %v2008_v20 = vmul.f32 %v4329_v42, %v1987_v5 }
 0x28d   :  { %v3036_v8 = vpack.c.bf16 %v2071_v10, %v2070_v52  ;;  %v2024_v31 = vadd.f32 %v4336_v47, %v2008_v20  ;;  %v1590_v52 = vadd.f32 %v4336_v47, %v1574_v16 }
 0x28e   :  { %v1939_v2 = vpop.f32.mrf.mxu2  ;;  %v1844_v18 = vpop.f32.mrf.mxu0 }
 0x28f   :  { %v1988_v11 = vpop.f32.mrf.mxu3  ;;  %3052 = vst [vmem:[%s4460_s4 + $0x28] sm:$0xff] %v3036_v8   ;;  %v2040_v14 = vmax.f32 %v2024_v31, 0.0  ;;  %v1940_v15 = vadd.f32 %v1939_v2, %v1891_v45  ;;  %v1893_v32 = vpop.f32.mrf.mxu1  ;;  %v1606_v34 = vmax.f32 %v1590_v52, 0.0 }
 0x290   :  { %v1894_v43 = vadd.f32 %v1893_v32, %v1844_v18 }
 0x291   :  { %v2056_v46 = vmax.f32 %v1603_v44, %v2040_v14  ;;  %v1989_v0 = vadd.f32 %v1988_v11, %v1940_v15 }
 0x293   :  { %v2072_v35 = vmax.f32 %v4081_v26, %v2056_v46  ;;  %v2009_v22 = vmul.f32 %v4329_v42, %v1989_v0 }
 0x295   :  { %v2025_v36 = vadd.f32 %v4336_v47, %v2009_v22 }
 0x296   :  { %v1942_v63 = vpop.f32.mrf.mxu2  ;;  %v1846_v30 = vpop.f32.mrf.mxu0 }
 0x297   :  { %v1991_v33 = vpop.f32.mrf.mxu3  ;;  %v2041_v24 = vmax.f32 %v2025_v36, 0.0  ;;  %v1943_v12 = vadd.f32 %v1942_v63, %v1894_v43  ;;  %v1895_v28 = vpop.f32.mrf.mxu1 }
 0x298   :  { %v1896_v58 = vadd.f32 %v1895_v28, %v1846_v30 }
 0x299   :  { %v2057_v53 = vmax.f32 %v1604_v51, %v2041_v24  ;;  %v1992_v54 = vadd.f32 %v1991_v33, %v1943_v12 }
 0x29b   :  { %v2073_v26 = vmax.f32 %v4088_v9, %v2057_v53  ;;  %v2010_v29 = vmul.f32 %v4329_v42, %v1992_v54 }
 0x29d   :  { %v3041_v61 = vpack.c.bf16 %v2073_v26, %v2072_v35  ;;  %v2026_v1 = vadd.f32 %v4336_v47, %v2010_v29 }
 0x29e   :  { %v1944_v19 = vpop.f32.mrf.mxu2 }
 0x29f   :  { %3053 = vst [vmem:[%s4460_s4 + $0x30] sm:$0xff] %v3041_v61   ;;  %v2042_v25 = vmax.f32 %v2026_v1, 0.0  ;;  %v1945_v40 = vadd.f32 %v1944_v19, %v1896_v58  ;;  %v1993_v62 = vpop.f32.mrf.mxu3 }
 0x2a1   :  { %v2058_v49 = vmax.f32 %v1605_v48, %v2042_v25  ;;  %v1994_v9 = vadd.f32 %v1993_v62, %v1945_v40 }
 0x2a3   :  { %v2074_v4 = vmax.f32 %v4119_v7, %v2058_v49  ;;  %v2011_v41 = vmul.f32 %v4329_v42, %v1994_v9 }
 0x2a5   :  { %v2027_v50 = vadd.f32 %v4336_v47, %v2011_v41 }
 0x2a7   :  { %v2043_v38 = vmax.f32 %v2027_v50, 0.0 }
 0x2a9   :  { %v2059_v37 = vmax.f32 %v1606_v34, %v2043_v38 }
 0x2ab   :  { %v2075_v21 = vmax.f32 %v4124_v6, %v2059_v37 }
 0x2ad   :  { %v3046_v55 = vpack.c.bf16 %v2075_v21, %v2074_v4 }
 0x2af   :  { %3054 = vst [vmem:[%s4460_s4 + $0x38] sm:$0xff] %v3046_v55  }

// kernel: net_forward.5
= control target key start
LH: loop header
LB: loop body
LE: loop exit
PB: predicated region body
PF: predicated region fallthrough
CT: control target
= control target key end

     0   :  { %s9473_s0 = inlined_call_operand.vmem [shape: bf16[2,8192], index: 0, kind: input, shape index: {}]   ;;  %s9474_s1 = inlined_call_operand.vmem [shape: bf16[8192,128], index: 1, kind: input, shape index: {}]   ;;  %s9475_s2 = inlined_call_operand.vmem [shape: f32[1,128], index: 2, kind: input, shape index: {}]   ;;  %s9476_s3 = inlined_call_operand.vmem [shape: bf16[128,128], index: 3, kind: input, shape index: {}]   ;;  %s9477_s4 = inlined_call_operand.vmem [shape: f32[1,128], index: 4, kind: input, shape index: {}]   ;;  %s9478_s5 = inlined_call_operand.hbm [shape: f32[2,128], index: 5, kind: output, shape index: {}]  }
   0x1   :  { %v7292_v0 = vld [vmem:[%s9474_s1 + $0x38] sm:$0xff]  ;;  %v7291_v4 = vld [vmem:[%s9474_s1 + $0x30] sm:$0xff]  ;;  %v7290_v8 = vld [vmem:[%s9474_s1 + $0x28] sm:$0xff] }
   0x2   :  { %v7300_v1 = vld [vmem:[%s9474_s1 + $0x78] sm:$0xff]  ;;  %4273 = vmatpush.bf16.msra.mxu0 %v7292_v0  ;;  %v7299_v5 = vld [vmem:[%s9474_s1 + $0x70] sm:$0xff]  ;;  %v7298_v9 = vld [vmem:[%s9474_s1 + $0x68] sm:$0xff] }
   0x3   :  { %v7308_v2 = vld [vmem:[%s9474_s1 + $0xb8] sm:$0xff]  ;;  %4286 = vmatpush.bf16.msra.mxu1 %v7300_v1  ;;  %v7307_v6 = vld [vmem:[%s9474_s1 + $0xb0] sm:$0xff]  ;;  %v7306_v10 = vld [vmem:[%s9474_s1 + $0xa8] sm:$0xff] }
   0x4   :  { %v7316_v3 = vld [vmem:[%s9474_s1 + $0xf8] sm:$0xff]  ;;  %4299 = vmatpush.bf16.msra.mxu2 %v7308_v2  ;;  %v7315_v7 = vld [vmem:[%s9474_s1 + $0xf0] sm:$0xff]  ;;  %v7314_v11 = vld [vmem:[%s9474_s1 + $0xe8] sm:$0xff] }
   0x5   :  { %4312 = vmatpush.bf16.msra.mxu3 %v7316_v3  ;;  %v7289_v12 = vld [vmem:[%s9474_s1 + $0x20] sm:$0xff]  ;;  %v7288_v16 = vld [vmem:[%s9474_s1 + $0x18] sm:$0xff]  ;;  %v7287_v20 = vld [vmem:[%s9474_s1 + $0x10] sm:$0xff] }
   0x6   :  { %4274 = vmatpush.bf16.msra.mxu0 %v7291_v4  ;;  %v7297_v13 = vld [vmem:[%s9474_s1 + $0x60] sm:$0xff]  ;;  %v7296_v17 = vld [vmem:[%s9474_s1 + $0x58] sm:$0xff]  ;;  %v7295_v21 = vld [vmem:[%s9474_s1 + $0x50] sm:$0xff] }
   0x7   :  { %4287 = vmatpush.bf16.msra.mxu1 %v7299_v5  ;;  %v7305_v14 = vld [vmem:[%s9474_s1 + $0xa0] sm:$0xff]  ;;  %v7304_v18 = vld [vmem:[%s9474_s1 + $0x98] sm:$0xff]  ;;  %v7303_v23 = vld [vmem:[%s9474_s1 + $0x90] sm:$0xff] }
   0x8   :  { %4300 = vmatpush.bf16.msra.mxu2 %v7307_v6  ;;  %v7313_v15 = vld [vmem:[%s9474_s1 + $0xe0] sm:$0xff]  ;;  %v7312_v19 = vld [vmem:[%s9474_s1 + $0xd8] sm:$0xff]  ;;  %v7311_v24 = vld [vmem:[%s9474_s1 + $0xd0] sm:$0xff] }
   0x9   :  { %4313 = vmatpush.bf16.msra.mxu3 %v7315_v7  ;;  %v21_v22 = vld [vmem:[%s9473_s0] sm:$0xff] }
   0xa   :  { %4275 = vmatpush.bf16.msra.mxu0 %v7290_v8  ;;  %1058 = vst [vmem:[#allocation1] ss:$9 sm:$0xff] %v21_v22 }
   0xb   :  { %4288 = vmatpush.bf16.msra.mxu1 %v7298_v9 }
   0xc   :  { %4301 = vmatpush.bf16.msra.mxu2 %v7306_v10 }
   0xd   :  { %4314 = vmatpush.bf16.msra.mxu3 %v7314_v11 }
   0xe   :  { %4276 = vmatpush.bf16.msra.mxu0 %v7289_v12 }
   0xf   :  { %4289 = vmatpush.bf16.msra.mxu1 %v7297_v13 }
  0x10   :  { %4302 = vmatpush.bf16.msra.mxu2 %v7305_v14 }
  0x11   :  { %4315 = vmatpush.bf16.msra.mxu3 %v7313_v15 }
  0x12   :  { %4277 = vmatpush.bf16.msra.mxu0 %v7288_v16 }
  0x13   :  { %4290 = vmatpush.bf16.msra.mxu1 %v7296_v17 }
  0x14   :  { %4303 = vmatpush.bf16.msra.mxu2 %v7304_v18 }
  0x15   :  { %4316 = vmatpush.bf16.msra.mxu3 %v7312_v19 }
  0x16   :  { %10 = vsyncpa [#allocation3], 0  ;;  %4278 = vmatpush.bf16.msra.mxu0 %v7287_v20  ;;  %v7286_v25 = vld [vmem:[%s9474_s1 + $0x8] sm:$0xff]  ;;  %v7285_v29 = vld [vmem:[%s9474_s1] sm:$0xff]  ;;  %s7834_s18 = smov [#allocation2]   ;;  %s5196_s22 = sshll.u32 %s9478_s5, 4  ;;  %s5197_s22 = int_to_ptr.hbm [resolvable:$true] %s5196_s22 }
  0x17   :  { %4291 = vmatpush.bf16.msra.mxu1 %v7295_v21  ;;  %v7294_v26 = vld [vmem:[%s9474_s1 + $0x48] sm:$0xff]  ;;  %v7293_v30 = vld [vmem:[%s9474_s1 + $0x40] sm:$0xff]  ;;  %v7324_v33 = vld [vmem:[%s9474_s1 + $0x138] sm:$0xff]  ;;  %s5194_s19 = sshll.u32 %s7834_s18, 4  ;;  %s5195_s19 = int_to_ptr.vmem [resolvable:$true] %s5194_s19 }
  0x18   :  { %4304 = vmatpush.bf16.msra.mxu2 %v7303_v23  ;;  %v7302_v27 = vld [vmem:[%s9474_s1 + $0x88] sm:$0xff]  ;;  %v7301_v31 = vld [vmem:[%s9474_s1 + $0x80] sm:$0xff]  ;;  %v7332_v34 = vld [vmem:[%s9474_s1 + $0x178] sm:$0xff] }
  0x19   :  { %4317 = vmatpush.bf16.msra.mxu3 %v7311_v24  ;;  %v7310_v28 = vld [vmem:[%s9474_s1 + $0xc8] sm:$0xff]  ;;  %v7309_v32 = vld [vmem:[%s9474_s1 + $0xc0] sm:$0xff]  ;;  %v7340_v35 = vld [vmem:[%s9474_s1 + $0x1b8] sm:$0xff] }
  0x1a   :  { %4279 = vmatpush.bf16.msra.mxu0 %v7286_v25  ;;  %v7348_v36 = vld [vmem:[%s9474_s1 + $0x1f8] sm:$0xff]  ;;  %v7323_v37 = vld [vmem:[%s9474_s1 + $0x130] sm:$0xff]  ;;  %v1059_v39 = vld [vmem:[#allocation1] sm:$0xff] }
  0x1b   :  { %4292 = vmatpush.bf16.msra.mxu1 %v7294_v26  ;;  %v1061_v38 = vld [vmem:[#allocation1 + $0x12] sm:$0xff]  ;;  %v1062_v41 = vld [vmem:[#allocation1 + $0x1b] sm:$0xff]  ;;  %v1060_v42 = vld [vmem:[#allocation1 + $0x9] sm:$0xff] }
  0x1c   :  { %4305 = vmatpush.bf16.msra.mxu2 %v7302_v27  ;;  %v7331_v40 = vld [vmem:[%s9474_s1 + $0x170] sm:$0xff]  ;;  %v7322_v45 = vld [vmem:[%s9474_s1 + $0x128] sm:$0xff]  ;;  %v7321_v49 = vld [vmem:[%s9474_s1 + $0x120] sm:$0xff] }
  0x1d   :  { %4318 = vmatpush.bf16.msra.mxu3 %v7310_v28  ;;  %v7339_v43 = vld [vmem:[%s9474_s1 + $0x1b0] sm:$0xff]  ;;  %v7330_v46 = vld [vmem:[%s9474_s1 + $0x168] sm:$0xff]  ;;  %v7329_v50 = vld [vmem:[%s9474_s1 + $0x160] sm:$0xff] }
  0x1e   :  { %4280 = vmatpush.bf16.msra.mxu0 %v7285_v29  ;;  %v7347_v44 = vld [vmem:[%s9474_s1 + $0x1f0] sm:$0xff]  ;;  %v7338_v47 = vld [vmem:[%s9474_s1 + $0x1a8] sm:$0xff]  ;;  %v1066_v54 = vld [vmem:[#allocation1 + $0x3f] sm:$0xff] }
  0x1f   :  { %4293 = vmatpush.bf16.msra.mxu1 %v7293_v30  ;;  %v7346_v48 = vld [vmem:[%s9474_s1 + $0x1e8] sm:$0xff]  ;;  %v1065_v51 = vld [vmem:[#allocation1 + $0x36] sm:$0xff]  ;;  %v7337_v56 = vld [vmem:[%s9474_s1 + $0x1a0] sm:$0xff] }
  0x20   :  { %4306 = vmatpush.bf16.msra.mxu2 %v7301_v31  ;;  %v22_v52 = vld [vmem:[%s9473_s0 + $0x8] sm:$0xff]  ;;  %v7345_v57 = vld [vmem:[%s9474_s1 + $0x1e0] sm:$0xff]  ;;  %v7320_v58 = vld [vmem:[%s9474_s1 + $0x118] sm:$0xff] }
  0x21   :  { %4319 = vmatpush.bf16.msra.mxu3 %v7309_v32  ;;  %4281 = vmatmul.bf16.vlgmr.msra.gmra.mxu0 %v1059_v39  ;;  %v1063_v53 = vld [vmem:[#allocation1 + $0x24] sm:$0xff]  ;;  %v1064_v55 = vld [vmem:[#allocation1 + $0x2d] sm:$0xff]  ;;  %v7328_v59 = vld [vmem:[%s9474_s1 + $0x158] sm:$0xff] }
  0x22   :  { %4325 = vmatpush.bf16.msrb.mxu0 %v7324_v33  ;;  %4294 = vmatmul.bf16.vlgmr.msra.gmra.mxu1 %v1060_v42  ;;  %1068 = vst [vmem:[#allocation1] ss:$9 sm:$0xff] %v22_v52  ;;  %v7336_v60 = vld [vmem:[%s9474_s1 + $0x198] sm:$0xff]  ;;  %v7319_v62 = vld [vmem:[%s9474_s1 + $0x110] sm:$0xff]  ;;  %v7318_v2 = vld [vmem:[%s9474_s1 + $0x108] sm:$0xff] }
  0x23   :  { %4338 = vmatpush.bf16.msrb.mxu1 %v7332_v34  ;;  %4307 = vmatmul.bf16.vlgmr.msra.gmra.mxu2 %v1061_v38  ;;  %v7344_v61 = vld [vmem:[%s9474_s1 + $0x1d8] sm:$0xff]  ;;  %v7327_v63 = vld [vmem:[%s9474_s1 + $0x150] sm:$0xff]  ;;  %v7326_v3 = vld [vmem:[%s9474_s1 + $0x148] sm:$0xff] }
  0x24   :  { %4351 = vmatpush.bf16.msrb.mxu2 %v7340_v35  ;;  %4320 = vmatmul.bf16.vlgmr.msra.gmra.mxu3 %v1062_v41  ;;  %v7335_v0 = vld [vmem:[%s9474_s1 + $0x190] sm:$0xff]  ;;  %v7334_v4 = vld [vmem:[%s9474_s1 + $0x188] sm:$0xff]  ;;  %v7317_v6 = vld [vmem:[%s9474_s1 + $0x100] sm:$0xff] }
  0x25   :  { %4364 = vmatpush.bf16.msrb.mxu3 %v7348_v36  ;;  %v7343_v1 = vld [vmem:[%s9474_s1 + $0x1d0] sm:$0xff]  ;;  %v7342_v5 = vld [vmem:[%s9474_s1 + $0x1c8] sm:$0xff]  ;;  %v7325_v7 = vld [vmem:[%s9474_s1 + $0x140] sm:$0xff] }
  0x26   :  { %4326 = vmatpush.bf16.msrb.mxu0 %v7323_v37  ;;  %v7333_v8 = vld [vmem:[%s9474_s1 + $0x180] sm:$0xff]  ;;  %v7356_v10 = vld [vmem:[%s9474_s1 + $0x238] sm:$0xff]  ;;  %v7355_v14 = vld [vmem:[%s9474_s1 + $0x230] sm:$0xff] }
  0x27   :  { %4339 = vmatpush.bf16.msrb.mxu1 %v7331_v40  ;;  %v7341_v9 = vld [vmem:[%s9474_s1 + $0x1c0] sm:$0xff]  ;;  %v7364_v11 = vld [vmem:[%s9474_s1 + $0x278] sm:$0xff]  ;;  %v7363_v15 = vld [vmem:[%s9474_s1 + $0x270] sm:$0xff] }
  0x28   :  { %4352 = vmatpush.bf16.msrb.mxu2 %v7339_v43  ;;  %v7372_v12 = vld [vmem:[%s9474_s1 + $0x2b8] sm:$0xff]  ;;  %v7371_v16 = vld [vmem:[%s9474_s1 + $0x2b0] sm:$0xff]  ;;  %v7354_v18 = vld [vmem:[%s9474_s1 + $0x228] sm:$0xff] }
  0x29   :  { %4365 = vmatpush.bf16.msrb.mxu3 %v7347_v44  ;;  %v7380_v13 = vld [vmem:[%s9474_s1 + $0x2f8] sm:$0xff]  ;;  %v7379_v17 = vld [vmem:[%s9474_s1 + $0x2f0] sm:$0xff]  ;;  %v7362_v19 = vld [vmem:[%s9474_s1 + $0x268] sm:$0xff] }
  0x2a   :  { %4327 = vmatpush.bf16.msrb.mxu0 %v7322_v45  ;;  %v7370_v20 = vld [vmem:[%s9474_s1 + $0x2a8] sm:$0xff]  ;;  %v7353_v22 = vld [vmem:[%s9474_s1 + $0x220] sm:$0xff]  ;;  %v7352_v26 = vld [vmem:[%s9474_s1 + $0x218] sm:$0xff] }
  0x2b   :  { %4340 = vmatpush.bf16.msrb.mxu1 %v7330_v46  ;;  %v7378_v21 = vld [vmem:[%s9474_s1 + $0x2e8] sm:$0xff]  ;;  %v7361_v23 = vld [vmem:[%s9474_s1 + $0x260] sm:$0xff]  ;;  %v7360_v27 = vld [vmem:[%s9474_s1 + $0x258] sm:$0xff] }
  0x2c   :  { %4353 = vmatpush.bf16.msrb.mxu2 %v7338_v47  ;;  %v7369_v24 = vld [vmem:[%s9474_s1 + $0x2a0] sm:$0xff]  ;;  %v7368_v28 = vld [vmem:[%s9474_s1 + $0x298] sm:$0xff]  ;;  %v7351_v30 = vld [vmem:[%s9474_s1 + $0x210] sm:$0xff] }
  0x2d   :  { %4366 = vmatpush.bf16.msrb.mxu3 %v7346_v48  ;;  %v7377_v25 = vld [vmem:[%s9474_s1 + $0x2e0] sm:$0xff]  ;;  %v7376_v29 = vld [vmem:[%s9474_s1 + $0x2d8] sm:$0xff]  ;;  %v7359_v31 = vld [vmem:[%s9474_s1 + $0x250] sm:$0xff] }
  0x2e   :  { %4328 = vmatpush.bf16.msrb.mxu0 %v7321_v49  ;;  %v7367_v32 = vld [vmem:[%s9474_s1 + $0x290] sm:$0xff]  ;;  %v7350_v34 = vld [vmem:[%s9474_s1 + $0x208] sm:$0xff]  ;;  %v7349_v38 = vld [vmem:[%s9474_s1 + $0x200] sm:$0xff] }
  0x2f   :  { %4341 = vmatpush.bf16.msrb.mxu1 %v7329_v50  ;;  %v7375_v33 = vld [vmem:[%s9474_s1 + $0x2d0] sm:$0xff]  ;;  %v7358_v35 = vld [vmem:[%s9474_s1 + $0x248] sm:$0xff]  ;;  %v7357_v39 = vld [vmem:[%s9474_s1 + $0x240] sm:$0xff] }
  0x30   :  { %4354 = vmatpush.bf16.msrb.mxu2 %v7337_v56  ;;  %v7366_v36 = vld [vmem:[%s9474_s1 + $0x288] sm:$0xff]  ;;  %v7365_v40 = vld [vmem:[%s9474_s1 + $0x280] sm:$0xff]  ;;  %v7388_v42 = vld [vmem:[%s9474_s1 + $0x338] sm:$0xff] }
  0x31   :  { %4367 = vmatpush.bf16.msrb.mxu3 %v7345_v57  ;;  %v7374_v37 = vld [vmem:[%s9474_s1 + $0x2c8] sm:$0xff]  ;;  %v7373_v41 = vld [vmem:[%s9474_s1 + $0x2c0] sm:$0xff]  ;;  %v7396_v43 = vld [vmem:[%s9474_s1 + $0x378] sm:$0xff] }
  0x32   :  { %4329 = vmatpush.bf16.msrb.mxu0 %v7320_v58  ;;  %v7404_v44 = vld [vmem:[%s9474_s1 + $0x3b8] sm:$0xff]  ;;  %v1069_v46 = vld [vmem:[#allocation1] sm:$0xff]  ;;  %v1070_v48 = vld [vmem:[#allocation1 + $0x9] sm:$0xff] }
  0x33   :  { %4342 = vmatpush.bf16.msrb.mxu1 %v7328_v59  ;;  %v7412_v45 = vld [vmem:[%s9474_s1 + $0x3f8] sm:$0xff]  ;;  %v7387_v50 = vld [vmem:[%s9474_s1 + $0x330] sm:$0xff]  ;;  %v7402_v56 = vld [vmem:[%s9474_s1 + $0x3a8] sm:$0xff] }
  0x34   :  { %4355 = vmatpush.bf16.msrb.mxu2 %v7336_v60  ;;  %v1071_v47 = vld [vmem:[#allocation1 + $0x12] sm:$0xff]  ;;  %v1072_v49 = vld [vmem:[#allocation1 + $0x1b] sm:$0xff]  ;;  %v7410_v57 = vld [vmem:[%s9474_s1 + $0x3e8] sm:$0xff] }
  0x35   :  { %4368 = vmatpush.bf16.msrb.mxu3 %v7344_v61  ;;  %v7403_v52 = vld [vmem:[%s9474_s1 + $0x3b0] sm:$0xff]  ;;  %v7385_v58 = vld [vmem:[%s9474_s1 + $0x320] sm:$0xff] }
  0x36   :  { %4330 = vmatpush.bf16.msrb.mxu0 %v7319_v62  ;;  %v7393_v59 = vld [vmem:[%s9474_s1 + $0x360] sm:$0xff]  ;;  %v7384_v62 = vld [vmem:[%s9474_s1 + $0x318] sm:$0xff] }
  0x37   :  { %4343 = vmatpush.bf16.msrb.mxu1 %v7327_v63  ;;  %v7401_v60 = vld [vmem:[%s9474_s1 + $0x3a0] sm:$0xff]  ;;  %v7392_v63 = vld [vmem:[%s9474_s1 + $0x358] sm:$0xff] }
  0x38   :  { %4356 = vmatpush.bf16.msrb.mxu2 %v7335_v0  ;;  %v7409_v61 = vld [vmem:[%s9474_s1 + $0x3e0] sm:$0xff]  ;;  %v7400_v0 = vld [vmem:[%s9474_s1 + $0x398] sm:$0xff] }
  0x39   :  { %4369 = vmatpush.bf16.msrb.mxu3 %v7343_v1  ;;  %v7408_v1 = vld [vmem:[%s9474_s1 + $0x3d8] sm:$0xff] }
  0x3a   :  { %4331 = vmatpush.bf16.msrb.mxu0 %v7318_v2  ;;  %v7383_v2 = vld [vmem:[%s9474_s1 + $0x310] sm:$0xff] }
  0x3b   :  { %4344 = vmatpush.bf16.msrb.mxu1 %v7326_v3  ;;  %v7391_v3 = vld [vmem:[%s9474_s1 + $0x350] sm:$0xff] }
  0x3c   :  { %4357 = vmatpush.bf16.msrb.mxu2 %v7334_v4  ;;  %v7399_v4 = vld [vmem:[%s9474_s1 + $0x390] sm:$0xff] }
  0x3d   :  { %4370 = vmatpush.bf16.msrb.mxu3 %v7342_v5  ;;  %v7407_v5 = vld [vmem:[%s9474_s1 + $0x3d0] sm:$0xff] }
  0x3e   :  { %4332 = vmatpush.bf16.msrb.mxu0 %v7317_v6  ;;  %v7382_v6 = vld [vmem:[%s9474_s1 + $0x308] sm:$0xff] }
  0x3f   :  { %4345 = vmatpush.bf16.msrb.mxu1 %v7325_v7  ;;  %v7390_v7 = vld [vmem:[%s9474_s1 + $0x348] sm:$0xff] }
  0x40   :  { %4358 = vmatpush.bf16.msrb.mxu2 %v7333_v8  ;;  %v7398_v8 = vld [vmem:[%s9474_s1 + $0x388] sm:$0xff] }
  0x41   :  { %4371 = vmatpush.bf16.msrb.mxu3 %v7341_v9  ;;  %4333 = vmatmul.bf16.vlgmr.msrb.gmra.mxu0 %v1063_v53  ;;  %v7411_v53 = vld [vmem:[%s9474_s1 + $0x3f0] sm:$0xff]  ;;  %v7406_v9 = vld [vmem:[%s9474_s1 + $0x3c8] sm:$0xff] }
  0x42   :  { %4377 = vmatpush.bf16.msra.mxu0 %v7356_v10  ;;  %4346 = vmatmul.bf16.vlgmr.msrb.gmra.mxu1 %v1064_v55  ;;  %v7394_v55 = vld [vmem:[%s9474_s1 + $0x368] sm:$0xff] }
  0x43   :  { %4390 = vmatpush.bf16.msra.mxu1 %v7364_v11  ;;  %4359 = vmatmul.bf16.vlgmr.msrb.gmra.mxu2 %v1065_v51  ;;  %v7395_v51 = vld [vmem:[%s9474_s1 + $0x370] sm:$0xff]  ;;  %v1073_v10 = vld [vmem:[#allocation1 + $0x24] sm:$0xff] }
  0x44   :  { %4403 = vmatpush.bf16.msra.mxu2 %v7372_v12  ;;  %4372 = vmatmul.bf16.vlgmr.msrb.gmra.mxu3 %v1066_v54  ;;  %v7386_v54 = vld [vmem:[%s9474_s1 + $0x328] sm:$0xff]  ;;  %v1075_v11 = vld [vmem:[#allocation1 + $0x36] sm:$0xff] }
  0x45   :  { %4416 = vmatpush.bf16.msra.mxu3 %v7380_v13  ;;  %v1074_v12 = vld [vmem:[#allocation1 + $0x2d] sm:$0xff]  ;;  %v1076_v13 = vld [vmem:[#allocation1 + $0x3f] sm:$0xff] }
  0x46   :  { %4378 = vmatpush.bf16.msra.mxu0 %v7355_v14  ;;  %v23_v14 = vld [vmem:[%s9473_s0 + $0x10] sm:$0xff] }
  0x47   :  { %4391 = vmatpush.bf16.msra.mxu1 %v7363_v15  ;;  %1078 = vst [vmem:[#allocation1] ss:$9 sm:$0xff] %v23_v14  ;;  %v7381_v15 = vld [vmem:[%s9474_s1 + $0x300] sm:$0xff]  ;;  %v7464_v14 = vld [vmem:[%s9474_s1 + $0x598] sm:$0xff] }
  0x48   :  { %4404 = vmatpush.bf16.msra.mxu2 %v7371_v16  ;;  %v7389_v16 = vld [vmem:[%s9474_s1 + $0x340] sm:$0xff] }
  0x49   :  { %4417 = vmatpush.bf16.msra.mxu3 %v7379_v17  ;;  %v7397_v17 = vld [vmem:[%s9474_s1 + $0x380] sm:$0xff] }
  0x4a   :  { %4379 = vmatpush.bf16.msra.mxu0 %v7354_v18  ;;  %v7405_v18 = vld [vmem:[%s9474_s1 + $0x3c0] sm:$0xff] }
  0x4b   :  { %4392 = vmatpush.bf16.msra.mxu1 %v7362_v19  ;;  %v7420_v19 = vld [vmem:[%s9474_s1 + $0x438] sm:$0xff] }
  0x4c   :  { %4405 = vmatpush.bf16.msra.mxu2 %v7370_v20  ;;  %v7428_v20 = vld [vmem:[%s9474_s1 + $0x478] sm:$0xff] }
  0x4d   :  { %4418 = vmatpush.bf16.msra.mxu3 %v7378_v21  ;;  %v7436_v21 = vld [vmem:[%s9474_s1 + $0x4b8] sm:$0xff] }
  0x4e   :  { %4380 = vmatpush.bf16.msra.mxu0 %v7353_v22  ;;  %v7444_v22 = vld [vmem:[%s9474_s1 + $0x4f8] sm:$0xff] }
  0x4f   :  { %4393 = vmatpush.bf16.msra.mxu1 %v7361_v23  ;;  %v7419_v23 = vld [vmem:[%s9474_s1 + $0x430] sm:$0xff] }
  0x50   :  { %4406 = vmatpush.bf16.msra.mxu2 %v7369_v24  ;;  %v7427_v24 = vld [vmem:[%s9474_s1 + $0x470] sm:$0xff] }
  0x51   :  { %4419 = vmatpush.bf16.msra.mxu3 %v7377_v25  ;;  %v7435_v25 = vld [vmem:[%s9474_s1 + $0x4b0] sm:$0xff] }
  0x52   :  { %4381 = vmatpush.bf16.msra.mxu0 %v7352_v26  ;;  %v7443_v26 = vld [vmem:[%s9474_s1 + $0x4f0] sm:$0xff] }
  0x53   :  { %4394 = vmatpush.bf16.msra.mxu1 %v7360_v27  ;;  %v7418_v27 = vld [vmem:[%s9474_s1 + $0x428] sm:$0xff] }
  0x54   :  { %4407 = vmatpush.bf16.msra.mxu2 %v7368_v28  ;;  %v7426_v28 = vld [vmem:[%s9474_s1 + $0x468] sm:$0xff] }
  0x55   :  { %4420 = vmatpush.bf16.msra.mxu3 %v7376_v29  ;;  %v7434_v29 = vld [vmem:[%s9474_s1 + $0x4a8] sm:$0xff] }
  0x56   :  { %4382 = vmatpush.bf16.msra.mxu0 %v7351_v30  ;;  %v7442_v30 = vld [vmem:[%s9474_s1 + $0x4e8] sm:$0xff] }
  0x57   :  { %4395 = vmatpush.bf16.msra.mxu1 %v7359_v31  ;;  %v7417_v31 = vld [vmem:[%s9474_s1 + $0x420] sm:$0xff] }
  0x58   :  { %4408 = vmatpush.bf16.msra.mxu2 %v7367_v32  ;;  %v7425_v32 = vld [vmem:[%s9474_s1 + $0x460] sm:$0xff] }
  0x59   :  { %4421 = vmatpush.bf16.msra.mxu3 %v7375_v33  ;;  %v7433_v33 = vld [vmem:[%s9474_s1 + $0x4a0] sm:$0xff] }
  0x5a   :  { %4383 = vmatpush.bf16.msra.mxu0 %v7350_v34  ;;  %v7441_v34 = vld [vmem:[%s9474_s1 + $0x4e0] sm:$0xff] }
  0x5b   :  { %4396 = vmatpush.bf16.msra.mxu1 %v7358_v35  ;;  %v7416_v35 = vld [vmem:[%s9474_s1 + $0x418] sm:$0xff] }
  0x5c   :  { %4409 = vmatpush.bf16.msra.mxu2 %v7366_v36  ;;  %v7424_v36 = vld [vmem:[%s9474_s1 + $0x458] sm:$0xff] }
  0x5d   :  { %4422 = vmatpush.bf16.msra.mxu3 %v7374_v37  ;;  %v7432_v37 = vld [vmem:[%s9474_s1 + $0x498] sm:$0xff] }
  0x5e   :  { %4384 = vmatpush.bf16.msra.mxu0 %v7349_v38  ;;  %v7440_v38 = vld [vmem:[%s9474_s1 + $0x4d8] sm:$0xff] }
  0x5f   :  { %4397 = vmatpush.bf16.msra.mxu1 %v7357_v39  ;;  %v7415_v39 = vld [vmem:[%s9474_s1 + $0x410] sm:$0xff] }
  0x60   :  { %4410 = vmatpush.bf16.msra.mxu2 %v7365_v40  ;;  %v7423_v40 = vld [vmem:[%s9474_s1 + $0x450] sm:$0xff] }
  0x61   :  { %4423 = vmatpush.bf16.msra.mxu3 %v7373_v41  ;;  %4385 = vmatmul.bf16.vlgmr.msra.gmra.mxu0 %v1069_v46  ;;  %v7431_v41 = vld [vmem:[%s9474_s1 + $0x490] sm:$0xff]  ;;  %v7438_v46 = vld [vmem:[%s9474_s1 + $0x4c8] sm:$0xff] }
  0x62   :  { %4429 = vmatpush.bf16.msrb.mxu0 %v7388_v42  ;;  %4398 = vmatmul.bf16.vlgmr.msra.gmra.mxu1 %v1070_v48  ;;  %v7439_v42 = vld [vmem:[%s9474_s1 + $0x4d0] sm:$0xff]  ;;  %v7421_v48 = vld [vmem:[%s9474_s1 + $0x440] sm:$0xff] }
  0x63   :  { %4442 = vmatpush.bf16.msrb.mxu1 %v7396_v43  ;;  %4411 = vmatmul.bf16.vlgmr.msra.gmra.mxu2 %v1071_v47  ;;  %v7414_v43 = vld [vmem:[%s9474_s1 + $0x408] sm:$0xff]  ;;  %v7413_v47 = vld [vmem:[%s9474_s1 + $0x400] sm:$0xff] }
  0x64   :  { %4455 = vmatpush.bf16.msrb.mxu2 %v7404_v44  ;;  %4424 = vmatmul.bf16.vlgmr.msra.gmra.mxu3 %v1072_v49  ;;  %v7422_v44 = vld [vmem:[%s9474_s1 + $0x448] sm:$0xff]  ;;  %v7429_v49 = vld [vmem:[%s9474_s1 + $0x480] sm:$0xff] }
  0x65   :  { %4468 = vmatpush.bf16.msrb.mxu3 %v7412_v45  ;;  %v7430_v45 = vld [vmem:[%s9474_s1 + $0x488] sm:$0xff] }
  0x66   :  { %4430 = vmatpush.bf16.msrb.mxu0 %v7387_v50  ;;  %v7437_v50 = vld [vmem:[%s9474_s1 + $0x4c0] sm:$0xff] }
  0x67   :  { %4443 = vmatpush.bf16.msrb.mxu1 %v7395_v51  ;;  %v7452_v51 = vld [vmem:[%s9474_s1 + $0x538] sm:$0xff] }
  0x68   :  { %4456 = vmatpush.bf16.msrb.mxu2 %v7403_v52  ;;  %v7460_v52 = vld [vmem:[%s9474_s1 + $0x578] sm:$0xff] }
  0x69   :  { %4469 = vmatpush.bf16.msrb.mxu3 %v7411_v53  ;;  %v7468_v53 = vld [vmem:[%s9474_s1 + $0x5b8] sm:$0xff] }
  0x6a   :  { %4431 = vmatpush.bf16.msrb.mxu0 %v7386_v54  ;;  %v7476_v54 = vld [vmem:[%s9474_s1 + $0x5f8] sm:$0xff] }
  0x6b   :  { %4444 = vmatpush.bf16.msrb.mxu1 %v7394_v55  ;;  %v1079_v55 = vld [vmem:[#allocation1] sm:$0xff] }
  0x6c   :  { %4457 = vmatpush.bf16.msrb.mxu2 %v7402_v56  ;;  %v1081_v56 = vld [vmem:[#allocation1 + $0x12] sm:$0xff] }
  0x6d   :  { %4470 = vmatpush.bf16.msrb.mxu3 %v7410_v57  ;;  %v1080_v57 = vld [vmem:[#allocation1 + $0x9] sm:$0xff] }
  0x6e   :  { %4432 = vmatpush.bf16.msrb.mxu0 %v7385_v58  ;;  %v1082_v58 = vld [vmem:[#allocation1 + $0x1b] sm:$0xff] }
  0x6f   :  { %4445 = vmatpush.bf16.msrb.mxu1 %v7393_v59  ;;  %v7451_v59 = vld [vmem:[%s9474_s1 + $0x530] sm:$0xff] }
  0x70   :  { %4458 = vmatpush.bf16.msrb.mxu2 %v7401_v60  ;;  %v7459_v60 = vld [vmem:[%s9474_s1 + $0x570] sm:$0xff] }
  0x71   :  { %4471 = vmatpush.bf16.msrb.mxu3 %v7409_v61  ;;  %v7467_v61 = vld [vmem:[%s9474_s1 + $0x5b0] sm:$0xff] }
  0x72   :  { %4433 = vmatpush.bf16.msrb.mxu0 %v7384_v62  ;;  %v7475_v62 = vld [vmem:[%s9474_s1 + $0x5f0] sm:$0xff] }
  0x73   :  { %4446 = vmatpush.bf16.msrb.mxu1 %v7392_v63  ;;  %v7450_v63 = vld [vmem:[%s9474_s1 + $0x528] sm:$0xff] }
  0x74   :  { %4459 = vmatpush.bf16.msrb.mxu2 %v7400_v0  ;;  %v7458_v0 = vld [vmem:[%s9474_s1 + $0x568] sm:$0xff] }
  0x75   :  { %4472 = vmatpush.bf16.msrb.mxu3 %v7408_v1  ;;  %v7806_v1 = vld [vmem:[%s9475_s2] ss:$0 sm:$0xff] }
  0x76   :  { %4434 = vmatpush.bf16.msrb.mxu0 %v7383_v2  ;;  %v7466_v2 = vld [vmem:[%s9474_s1 + $0x5a8] sm:$0xff] }
  0x77   :  { %4447 = vmatpush.bf16.msrb.mxu1 %v7391_v3  ;;  %v7474_v3 = vld [vmem:[%s9474_s1 + $0x5e8] sm:$0xff] }
  0x78   :  { %4460 = vmatpush.bf16.msrb.mxu2 %v7399_v4 }
  0x79   :  { %4473 = vmatpush.bf16.msrb.mxu3 %v7407_v5  ;;  %v7449_v5 = vld [vmem:[%s9474_s1 + $0x520] sm:$0xff] }
  0x7a   :  { %4435 = vmatpush.bf16.msrb.mxu0 %v7382_v6  ;;  %v7457_v6 = vld [vmem:[%s9474_s1 + $0x560] sm:$0xff] }
  0x7b   :  { %4448 = vmatpush.bf16.msrb.mxu1 %v7390_v7 }
  0x7c   :  { %4461 = vmatpush.bf16.msrb.mxu2 %v7398_v8 }
  0x7d   :  { %4474 = vmatpush.bf16.msrb.mxu3 %v7406_v9  ;;  %v7465_v9 = vld [vmem:[%s9474_s1 + $0x5a0] sm:$0xff] }
  0x7e   :  { %4436 = vmatpush.bf16.msrb.mxu0 %v7381_v15  ;;  %v7472_v15 = vld [vmem:[%s9474_s1 + $0x5d8] sm:$0xff] }
  0x7f   :  { %4449 = vmatpush.bf16.msrb.mxu1 %v7389_v16 }
  0x80   :  { %4462 = vmatpush.bf16.msrb.mxu2 %v7397_v17 }
  0x81   :  { %4475 = vmatpush.bf16.msrb.mxu3 %v7405_v18  ;;  %4437 = vmatmul.bf16.vlgmr.msrb.gmra.mxu0 %v1073_v10  ;;  %v7473_v10 = vld [vmem:[%s9474_s1 + $0x5e0] sm:$0xff] }
  0x82   :  { %4481 = vmatpush.bf16.msra.mxu0 %v7420_v19  ;;  %4450 = vmatmul.bf16.vlgmr.msrb.gmra.mxu1 %v1074_v12  ;;  %v7448_v12 = vld [vmem:[%s9474_s1 + $0x518] sm:$0xff] }
  0x83   :  { %4494 = vmatpush.bf16.msra.mxu1 %v7428_v20  ;;  %4463 = vmatmul.bf16.vlgmr.msrb.gmra.mxu2 %v1075_v11  ;;  %v7447_v20 = vld [vmem:[%s9474_s1 + $0x510] sm:$0xff] }
  0x84   :  { %4507 = vmatpush.bf16.msra.mxu2 %v7436_v21  ;;  %4476 = vmatmul.bf16.vlgmr.msrb.gmra.mxu3 %v1076_v13  ;;  %v7456_v13 = vld [vmem:[%s9474_s1 + $0x558] sm:$0xff]  ;;  %v7455_v21 = vld [vmem:[%s9474_s1 + $0x550] sm:$0xff] }
  0x85   :  { %4520 = vmatpush.bf16.msra.mxu3 %v7444_v22 }
  0x86   :  { %4482 = vmatpush.bf16.msra.mxu0 %v7419_v23 }
  0x87   :  { %4495 = vmatpush.bf16.msra.mxu1 %v7427_v24  ;;  %v7463_v24 = vld [vmem:[%s9474_s1 + $0x590] sm:$0xff] }
  0x88   :  { %4508 = vmatpush.bf16.msra.mxu2 %v7435_v25  ;;  %v7471_v25 = vld [vmem:[%s9474_s1 + $0x5d0] sm:$0xff] }
  0x89   :  { %4521 = vmatpush.bf16.msra.mxu3 %v7443_v26  ;;  %v7446_v26 = vld [vmem:[%s9474_s1 + $0x508] sm:$0xff] }
  0x8a   :  { %4483 = vmatpush.bf16.msra.mxu0 %v7418_v27  ;;  %v7454_v27 = vld [vmem:[%s9474_s1 + $0x548] sm:$0xff] }
  0x8b   :  { %4496 = vmatpush.bf16.msra.mxu1 %v7426_v28  ;;  %v7462_v28 = vld [vmem:[%s9474_s1 + $0x588] sm:$0xff] }
  0x8c   :  { %4509 = vmatpush.bf16.msra.mxu2 %v7434_v29  ;;  %v7470_v29 = vld [vmem:[%s9474_s1 + $0x5c8] sm:$0xff] }
  0x8d   :  { %4522 = vmatpush.bf16.msra.mxu3 %v7442_v30  ;;  %v1083_v30 = vld [vmem:[#allocation1 + $0x24] sm:$0xff] }
  0x8e   :  { %4484 = vmatpush.bf16.msra.mxu0 %v7417_v31  ;;  %v1085_v31 = vld [vmem:[#allocation1 + $0x36] sm:$0xff] }
  0x8f   :  { %4497 = vmatpush.bf16.msra.mxu1 %v7425_v32 }
  0x90   :  { %4510 = vmatpush.bf16.msra.mxu2 %v7433_v33  ;;  %v1084_v33 = vld [vmem:[#allocation1 + $0x2d] sm:$0xff] }
  0x91   :  { %4523 = vmatpush.bf16.msra.mxu3 %v7441_v34  ;;  %v1086_v34 = vld [vmem:[#allocation1 + $0x3f] sm:$0xff] }
  0x92   :  { %4485 = vmatpush.bf16.msra.mxu0 %v7416_v35 }
  0x93   :  { %4498 = vmatpush.bf16.msra.mxu1 %v7424_v36  ;;  %v24_v36 = vld [vmem:[%s9473_s0 + $0x18] sm:$0xff] }
  0x94   :  { %4511 = vmatpush.bf16.msra.mxu2 %v7432_v37  ;;  %1088 = vst [vmem:[#allocation1] ss:$9 sm:$0xff] %v24_v36  ;;  %v7445_v37 = vld [vmem:[%s9474_s1 + $0x500] sm:$0xff]  ;;  %v7538_v36 = vld [vmem:[%s9474_s1 + $0x7e8] sm:$0xff] }
  0x95   :  { %4524 = vmatpush.bf16.msra.mxu3 %v7440_v38  ;;  %v7453_v38 = vld [vmem:[%s9474_s1 + $0x540] sm:$0xff] }
  0x96   :  { %4486 = vmatpush.bf16.msra.mxu0 %v7415_v39  ;;  %v7461_v39 = vld [vmem:[%s9474_s1 + $0x580] sm:$0xff] }
  0x97   :  { %4499 = vmatpush.bf16.msra.mxu1 %v7423_v40  ;;  %v7469_v40 = vld [vmem:[%s9474_s1 + $0x5c0] sm:$0xff] }
  0x98   :  { %4512 = vmatpush.bf16.msra.mxu2 %v7431_v41  ;;  %v7484_v41 = vld [vmem:[%s9474_s1 + $0x638] sm:$0xff] }
  0x99   :  { %4525 = vmatpush.bf16.msra.mxu3 %v7439_v42  ;;  %v7492_v42 = vld [vmem:[%s9474_s1 + $0x678] sm:$0xff] }
  0x9a   :  { %4487 = vmatpush.bf16.msra.mxu0 %v7414_v43  ;;  %v7500_v43 = vld [vmem:[%s9474_s1 + $0x6b8] sm:$0xff] }
  0x9b   :  { %4500 = vmatpush.bf16.msra.mxu1 %v7422_v44  ;;  %v7508_v44 = vld [vmem:[%s9474_s1 + $0x6f8] sm:$0xff] }
  0x9c   :  { %4513 = vmatpush.bf16.msra.mxu2 %v7430_v45  ;;  %v7483_v45 = vld [vmem:[%s9474_s1 + $0x630] sm:$0xff] }
  0x9d   :  { %4526 = vmatpush.bf16.msra.mxu3 %v7438_v46  ;;  %v7491_v46 = vld [vmem:[%s9474_s1 + $0x670] sm:$0xff] }
  0x9e   :  { %4488 = vmatpush.bf16.msra.mxu0 %v7413_v47  ;;  %v4282_v4 = vpop.f32.mrf.mxu0  ;;  %v7499_v47 = vld [vmem:[%s9474_s1 + $0x6b0] sm:$0xff] }
  0x9f   :  { %4501 = vmatpush.bf16.msra.mxu1 %v7421_v48  ;;  %v4283_v7 = vadd.f32 %v7806_v1, %v4282_v4  ;;  %v4295_v8 = vpop.f32.mrf.mxu1  ;;  %v7507_v48 = vld [vmem:[%s9474_s1 + $0x6f0] sm:$0xff] }
  0xa0   :  { %4514 = vmatpush.bf16.msra.mxu2 %v7429_v49  ;;  %v7482_v49 = vld [vmem:[%s9474_s1 + $0x628] sm:$0xff] }
  0xa1   :  { %4527 = vmatpush.bf16.msra.mxu3 %v7437_v50  ;;  %4489 = vmatmul.bf16.vlgmr.msra.gmra.mxu0 %v1079_v55  ;;  %v4296_v11 = vadd.f32 %v4295_v8, %v4283_v7  ;;  %v7490_v50 = vld [vmem:[%s9474_s1 + $0x668] sm:$0xff]  ;;  %v7489_v55 = vld [vmem:[%s9474_s1 + $0x660] sm:$0xff] }
  0xa2   :  { %4533 = vmatpush.bf16.msrb.mxu0 %v7452_v51  ;;  %4502 = vmatmul.bf16.vlgmr.msra.gmra.mxu1 %v1080_v57  ;;  %v7498_v51 = vld [vmem:[%s9474_s1 + $0x6a8] sm:$0xff] }
  0xa3   :  { %4546 = vmatpush.bf16.msrb.mxu1 %v7460_v52  ;;  %4515 = vmatmul.bf16.vlgmr.msra.gmra.mxu2 %v1081_v56  ;;  %v7506_v52 = vld [vmem:[%s9474_s1 + $0x6e8] sm:$0xff] }
  0xa4   :  { %4559 = vmatpush.bf16.msrb.mxu2 %v7468_v53  ;;  %4528 = vmatmul.bf16.vlgmr.msra.gmra.mxu3 %v1082_v58  ;;  %v7497_v58 = vld [vmem:[%s9474_s1 + $0x6a0] sm:$0xff] }
  0xa5   :  { %4572 = vmatpush.bf16.msrb.mxu3 %v7476_v54  ;;  %v7481_v54 = vld [vmem:[%s9474_s1 + $0x620] sm:$0xff] }
  0xa6   :  { %4534 = vmatpush.bf16.msrb.mxu0 %v7451_v59  ;;  %v4308_v16 = vpop.f32.mrf.mxu2  ;;  %v4284_v19 = vpop.f32.mrf.mxu0  ;;  %v7505_v59 = vld [vmem:[%s9474_s1 + $0x6e0] sm:$0xff] }
  0xa7   :  { %4547 = vmatpush.bf16.msrb.mxu1 %v7459_v60  ;;  %v4309_v17 = vadd.f32 %v4308_v16, %v4296_v11  ;;  %v4321_v18 = vpop.f32.mrf.mxu3  ;;  %v4297_v23 = vpop.f32.mrf.mxu1  ;;  %v7478_v11 = vld [vmem:[%s9474_s1 + $0x608] sm:$0xff]  ;;  %v7493_v19 = vld [vmem:[%s9474_s1 + $0x680] sm:$0xff] }
  0xa8   :  { %4560 = vmatpush.bf16.msrb.mxu2 %v7467_v61  ;;  %v7480_v61 = vld [vmem:[%s9474_s1 + $0x618] sm:$0xff] }
  0xa9   :  { %4573 = vmatpush.bf16.msrb.mxu3 %v7475_v62  ;;  %v8423_v22 = vadd.f32 %v4321_v18, %v4309_v17  ;;  %v7488_v62 = vld [vmem:[%s9474_s1 + $0x658] sm:$0xff]  ;;  %v7477_v17 = vld [vmem:[%s9474_s1 + $0x600] sm:$0xff] }
  0xaa   :  { %4535 = vmatpush.bf16.msrb.mxu0 %v7450_v63  ;;  %v7496_v63 = vld [vmem:[%s9474_s1 + $0x698] sm:$0xff]  ;;  %v7485_v18 = vld [vmem:[%s9474_s1 + $0x640] sm:$0xff] }
  0xab   :  { %4548 = vmatpush.bf16.msrb.mxu1 %v7458_v0  ;;  %v7504_v0 = vld [vmem:[%s9474_s1 + $0x6d8] sm:$0xff] }
  0xac   :  { %4561 = vmatpush.bf16.msrb.mxu2 %v7466_v2  ;;  %v7532_v23 = vld [vmem:[%s9474_s1 + $0x7b8] sm:$0xff] }
  0xad   :  { %4574 = vmatpush.bf16.msrb.mxu3 %v7474_v3 }
  0xae   :  { %4536 = vmatpush.bf16.msrb.mxu0 %v7449_v5  ;;  %v4310_v32 = vpop.f32.mrf.mxu2  ;;  %v7479_v5 = vld [vmem:[%s9474_s1 + $0x610] sm:$0xff] }
  0xaf   :  { %4549 = vmatpush.bf16.msrb.mxu1 %v7457_v6  ;;  %v4323_v35 = vpop.f32.mrf.mxu3  ;;  %v7487_v6 = vld [vmem:[%s9474_s1 + $0x650] sm:$0xff] }
  0xb0   :  { %4562 = vmatpush.bf16.msrb.mxu2 %v7465_v9  ;;  %v7495_v9 = vld [vmem:[%s9474_s1 + $0x690] sm:$0xff]  ;;  %v7530_v35 = vld [vmem:[%s9474_s1 + $0x7a8] sm:$0xff] }
  0xb1   :  { %4575 = vmatpush.bf16.msrb.mxu3 %v7473_v10  ;;  %v7503_v10 = vld [vmem:[%s9474_s1 + $0x6d0] sm:$0xff] }
  0xb2   :  { %4537 = vmatpush.bf16.msrb.mxu0 %v7448_v12  ;;  %v7486_v12 = vld [vmem:[%s9474_s1 + $0x648] sm:$0xff]  ;;  %v7539_v32 = vld [vmem:[%s9474_s1 + $0x7f0] sm:$0xff] }
  0xb3   :  { %4550 = vmatpush.bf16.msrb.mxu1 %v7456_v13  ;;  %v7494_v13 = vld [vmem:[%s9474_s1 + $0x688] sm:$0xff] }
  0xb4   :  { %4563 = vmatpush.bf16.msrb.mxu2 %v7464_v14  ;;  %v7502_v14 = vld [vmem:[%s9474_s1 + $0x6c8] sm:$0xff] }
  0xb5   :  { %4576 = vmatpush.bf16.msrb.mxu3 %v7472_v15 }
  0xb6   :  { %4538 = vmatpush.bf16.msrb.mxu0 %v7447_v20  ;;  %v7501_v20 = vld [vmem:[%s9474_s1 + $0x6c0] sm:$0xff] }
  0xb7   :  { %4551 = vmatpush.bf16.msrb.mxu1 %v7455_v21  ;;  %v7516_v21 = vld [vmem:[%s9474_s1 + $0x738] sm:$0xff] }
  0xb8   :  { %4564 = vmatpush.bf16.msrb.mxu2 %v7463_v24  ;;  %v7540_v24 = vld [vmem:[%s9474_s1 + $0x7f8] sm:$0xff] }
  0xb9   :  { %4577 = vmatpush.bf16.msrb.mxu3 %v7471_v25  ;;  %v1089_v25 = vld [vmem:[#allocation1] sm:$0xff] }
  0xba   :  { %4539 = vmatpush.bf16.msrb.mxu0 %v7446_v26  ;;  %v1091_v26 = vld [vmem:[#allocation1 + $0x12] sm:$0xff] }
  0xbb   :  { %4552 = vmatpush.bf16.msrb.mxu1 %v7454_v27  ;;  %v1090_v27 = vld [vmem:[#allocation1 + $0x9] sm:$0xff] }
  0xbc   :  { %4565 = vmatpush.bf16.msrb.mxu2 %v7462_v28  ;;  %v1092_v28 = vld [vmem:[#allocation1 + $0x1b] sm:$0xff] }
  0xbd   :  { %4578 = vmatpush.bf16.msrb.mxu3 %v7470_v29  ;;  %v7515_v29 = vld [vmem:[%s9474_s1 + $0x730] sm:$0xff] }
  0xbe   :  { %4540 = vmatpush.bf16.msrb.mxu0 %v7445_v37  ;;  %v4334_v53 = vpop.f32.mrf.mxu0 }
  0xbf   :  { %4553 = vmatpush.bf16.msrb.mxu1 %v7453_v38  ;;  %v4335_v56 = vadd.f32 %v4334_v53, %v8423_v22  ;;  %v4347_v57 = vpop.f32.mrf.mxu1  ;;  %v7524_v22 = vld [vmem:[%s9474_s1 + $0x778] sm:$0xff] }
  0xc0   :  { %4566 = vmatpush.bf16.msrb.mxu2 %v7461_v39  ;;  %v7513_v39 = vld [vmem:[%s9474_s1 + $0x720] sm:$0xff] }
  0xc1   :  { %4579 = vmatpush.bf16.msrb.mxu3 %v7469_v40  ;;  %4541 = vmatmul.bf16.vlgmr.msrb.gmra.mxu0 %v1083_v30  ;;  %v4348_v60 = vadd.f32 %v4347_v57, %v4335_v56  ;;  %v7523_v30 = vld [vmem:[%s9474_s1 + $0x770] sm:$0xff]  ;;  %v7521_v40 = vld [vmem:[%s9474_s1 + $0x760] sm:$0xff] }
  0xc2   :  { %4585 = vmatpush.bf16.msra.mxu0 %v7484_v41  ;;  %4554 = vmatmul.bf16.vlgmr.msrb.gmra.mxu1 %v1084_v33  ;;  %v7514_v33 = vld [vmem:[%s9474_s1 + $0x728] sm:$0xff]  ;;  %v7527_v57 = vld [vmem:[%s9474_s1 + $0x790] sm:$0xff] }
  0xc3   :  { %4598 = vmatpush.bf16.msra.mxu1 %v7492_v42  ;;  %4567 = vmatmul.bf16.vlgmr.msrb.gmra.mxu2 %v1085_v31  ;;  %v7531_v31 = vld [vmem:[%s9474_s1 + $0x7b0] sm:$0xff]  ;;  %v7529_v42 = vld [vmem:[%s9474_s1 + $0x7a0] sm:$0xff] }
  0xc4   :  { %4611 = vmatpush.bf16.msra.mxu2 %v7500_v43  ;;  %4580 = vmatmul.bf16.vlgmr.msrb.gmra.mxu3 %v1086_v34  ;;  %v7522_v34 = vld [vmem:[%s9474_s1 + $0x768] sm:$0xff]  ;;  %v7537_v43 = vld [vmem:[%s9474_s1 + $0x7e0] sm:$0xff] }
  0xc5   :  { %4624 = vmatpush.bf16.msra.mxu3 %v7508_v44 }
  0xc6   :  { %4586 = vmatpush.bf16.msra.mxu0 %v7483_v45  ;;  %v4360_v1 = vpop.f32.mrf.mxu2  ;;  %v4336_v4 = vpop.f32.mrf.mxu0  ;;  %v7512_v45 = vld [vmem:[%s9474_s1 + $0x718] sm:$0xff] }
  0xc7   :  { %4599 = vmatpush.bf16.msra.mxu1 %v7491_v46  ;;  %v4361_v2 = vadd.f32 %v4360_v1, %v4348_v60  ;;  %v4373_v3 = vpop.f32.mrf.mxu3  ;;  %v4349_v8 = vpop.f32.mrf.mxu1  ;;  %v7520_v46 = vld [vmem:[%s9474_s1 + $0x758] sm:$0xff]  ;;  %v7518_v60 = vld [vmem:[%s9474_s1 + $0x748] sm:$0xff] }
  0xc8   :  { %4612 = vmatpush.bf16.msra.mxu2 %v7499_v47  ;;  %v7528_v47 = vld [vmem:[%s9474_s1 + $0x798] sm:$0xff]  ;;  %v7525_v8 = vld [vmem:[%s9474_s1 + $0x780] sm:$0xff] }
  0xc9   :  { %4625 = vmatpush.bf16.msra.mxu3 %v7507_v48  ;;  %v4374_v7 = vadd.f32 %v4373_v3, %v4361_v2  ;;  %v7536_v48 = vld [vmem:[%s9474_s1 + $0x7d8] sm:$0xff]  ;;  %v1094_v2 = vld [vmem:[#allocation1 + $0x2d] sm:$0xff] }
  0xca   :  { %4587 = vmatpush.bf16.msra.mxu0 %v7482_v49  ;;  %v1096_v3 = vld [vmem:[#allocation1 + $0x3f] sm:$0xff] }
  0xcb   :  { %4600 = vmatpush.bf16.msra.mxu1 %v7490_v50 }
  0xcc   :  { %4613 = vmatpush.bf16.msra.mxu2 %v7498_v51 }
  0xcd   :  { %4626 = vmatpush.bf16.msra.mxu3 %v7506_v52 }
  0xce   :  { %4588 = vmatpush.bf16.msra.mxu0 %v7481_v54  ;;  %v4362_v15 = vpop.f32.mrf.mxu2  ;;  %v7511_v54 = vld [vmem:[%s9474_s1 + $0x710] sm:$0xff] }
  0xcf   :  { %4601 = vmatpush.bf16.msra.mxu1 %v7489_v55  ;;  %v4375_v16 = vpop.f32.mrf.mxu3  ;;  %v7519_v55 = vld [vmem:[%s9474_s1 + $0x750] sm:$0xff] }
  0xd0   :  { %4614 = vmatpush.bf16.msra.mxu2 %v7497_v58  ;;  %v7535_v58 = vld [vmem:[%s9474_s1 + $0x7d0] sm:$0xff] }
  0xd1   :  { %4627 = vmatpush.bf16.msra.mxu3 %v7505_v59  ;;  %v7510_v59 = vld [vmem:[%s9474_s1 + $0x708] sm:$0xff]  ;;  %v7555_v15 = vld [vmem:[%s9474_s1 + $0x870] sm:$0xff] }
  0xd2   :  { %4589 = vmatpush.bf16.msra.mxu0 %v7480_v61  ;;  %v7526_v61 = vld [vmem:[%s9474_s1 + $0x788] sm:$0xff]  ;;  %v7563_v16 = vld [vmem:[%s9474_s1 + $0x8b0] sm:$0xff] }
  0xd3   :  { %4602 = vmatpush.bf16.msra.mxu1 %v7488_v62  ;;  %v7534_v62 = vld [vmem:[%s9474_s1 + $0x7c8] sm:$0xff] }
  0xd4   :  { %4615 = vmatpush.bf16.msra.mxu2 %v7496_v63  ;;  %v1093_v63 = vld [vmem:[#allocation1 + $0x24] sm:$0xff] }
  0xd5   :  { %4628 = vmatpush.bf16.msra.mxu3 %v7504_v0  ;;  %v1095_v0 = vld [vmem:[#allocation1 + $0x36] sm:$0xff] }
  0xd6   :  { %4590 = vmatpush.bf16.msra.mxu0 %v7479_v5  ;;  %v25_v5 = vld [vmem:[%s9473_s0 + $0x20] sm:$0xff] }
  0xd7   :  { %4603 = vmatpush.bf16.msra.mxu1 %v7487_v6  ;;  %1098 = vst [vmem:[#allocation1] ss:$9 sm:$0xff] %v25_v5  ;;  %v7509_v6 = vld [vmem:[%s9474_s1 + $0x700] sm:$0xff]  ;;  %v7602_v5 = vld [vmem:[%s9474_s1 + $0x9e8] sm:$0xff] }
  0xd8   :  { %4616 = vmatpush.bf16.msra.mxu2 %v7495_v9  ;;  %v7533_v9 = vld [vmem:[%s9474_s1 + $0x7c0] sm:$0xff] }
  0xd9   :  { %4629 = vmatpush.bf16.msra.mxu3 %v7503_v10  ;;  %v7548_v10 = vld [vmem:[%s9474_s1 + $0x838] sm:$0xff] }
  0xda   :  { %4591 = vmatpush.bf16.msra.mxu0 %v7478_v11  ;;  %v7556_v11 = vld [vmem:[%s9474_s1 + $0x878] sm:$0xff] }
  0xdb   :  { %4604 = vmatpush.bf16.msra.mxu1 %v7486_v12  ;;  %v7564_v12 = vld [vmem:[%s9474_s1 + $0x8b8] sm:$0xff] }
  0xdc   :  { %4617 = vmatpush.bf16.msra.mxu2 %v7494_v13  ;;  %v7572_v13 = vld [vmem:[%s9474_s1 + $0x8f8] sm:$0xff] }
  0xdd   :  { %4630 = vmatpush.bf16.msra.mxu3 %v7502_v14  ;;  %v7547_v14 = vld [vmem:[%s9474_s1 + $0x830] sm:$0xff] }
  0xde   :  { %4592 = vmatpush.bf16.msra.mxu0 %v7477_v17  ;;  %v4386_v37 = vpop.f32.mrf.mxu0  ;;  %v7571_v17 = vld [vmem:[%s9474_s1 + $0x8f0] sm:$0xff] }
  0xdf   :  { %4605 = vmatpush.bf16.msra.mxu1 %v7485_v18  ;;  %v4387_v38 = vadd.f32 %v4386_v37, %v4374_v7  ;;  %v4399_v41 = vpop.f32.mrf.mxu1  ;;  %v7517_v7 = vld [vmem:[%s9474_s1 + $0x740] sm:$0xff]  ;;  %v7546_v18 = vld [vmem:[%s9474_s1 + $0x828] sm:$0xff] }
  0xe0   :  { %4618 = vmatpush.bf16.msra.mxu2 %v7493_v19  ;;  %v7554_v19 = vld [vmem:[%s9474_s1 + $0x868] sm:$0xff] }
  0xe1   :  { %4631 = vmatpush.bf16.msra.mxu3 %v7501_v20  ;;  %4593 = vmatmul.bf16.vlgmr.msra.gmra.mxu0 %v1089_v25  ;;  %v4400_v44 = vadd.f32 %v4399_v41, %v4387_v38  ;;  %v7562_v20 = vld [vmem:[%s9474_s1 + $0x8a8] sm:$0xff]  ;;  %v7553_v25 = vld [vmem:[%s9474_s1 + $0x860] sm:$0xff] }
  0xe2   :  { %4637 = vmatpush.bf16.msrb.mxu0 %v7516_v21  ;;  %4606 = vmatmul.bf16.vlgmr.msra.gmra.mxu1 %v1090_v27  ;;  %v7570_v21 = vld [vmem:[%s9474_s1 + $0x8e8] sm:$0xff]  ;;  %v7561_v27 = vld [vmem:[%s9474_s1 + $0x8a0] sm:$0xff] }
  0xe3   :  { %4650 = vmatpush.bf16.msrb.mxu1 %v7524_v22  ;;  %4619 = vmatmul.bf16.vlgmr.msra.gmra.mxu2 %v1091_v26 }
  0xe4   :  { %4663 = vmatpush.bf16.msrb.mxu2 %v7532_v23  ;;  %4632 = vmatmul.bf16.vlgmr.msra.gmra.mxu3 %v1092_v28  ;;  %v7569_v28 = vld [vmem:[%s9474_s1 + $0x8e0] sm:$0xff] }
  0xe5   :  { %4676 = vmatpush.bf16.msrb.mxu3 %v7540_v24  ;;  %v7545_v24 = vld [vmem:[%s9474_s1 + $0x820] sm:$0xff] }
  0xe6   :  { %4638 = vmatpush.bf16.msrb.mxu0 %v7515_v29  ;;  %v4412_v49 = vpop.f32.mrf.mxu2  ;;  %v4388_v52 = vpop.f32.mrf.mxu0 }
  0xe7   :  { %4651 = vmatpush.bf16.msrb.mxu1 %v7523_v30  ;;  %v4413_v50 = vadd.f32 %v4412_v49, %v4400_v44  ;;  %v4425_v51 = vpop.f32.mrf.mxu3  ;;  %v4401_v56 = vpop.f32.mrf.mxu1  ;;  %v7544_v30 = vld [vmem:[%s9474_s1 + $0x818] sm:$0xff]  ;;  %v7542_v44 = vld [vmem:[%s9474_s1 + $0x808] sm:$0xff]  ;;  %v7557_v52 = vld [vmem:[%s9474_s1 + $0x880] sm:$0xff] }
  0xe8   :  { %4664 = vmatpush.bf16.msrb.mxu2 %v7531_v31  ;;  %v7552_v31 = vld [vmem:[%s9474_s1 + $0x858] sm:$0xff] }
  0xe9   :  { %4677 = vmatpush.bf16.msrb.mxu3 %v7539_v32  ;;  %v8615_v53 = vadd.f32 %v4425_v51, %v4413_v50  ;;  %v7560_v32 = vld [vmem:[%s9474_s1 + $0x898] sm:$0xff]  ;;  %v7541_v50 = vld [vmem:[%s9474_s1 + $0x800] sm:$0xff] }
  0xea   :  { %4639 = vmatpush.bf16.msrb.mxu0 %v7514_v33  ;;  %v7568_v33 = vld [vmem:[%s9474_s1 + $0x8d8] sm:$0xff]  ;;  %v7549_v51 = vld [vmem:[%s9474_s1 + $0x840] sm:$0xff] }
  0xeb   :  { %4652 = vmatpush.bf16.msrb.mxu1 %v7522_v34  ;;  %v7596_v56 = vld [vmem:[%s9474_s1 + $0x9b8] sm:$0xff] }
  0xec   :  { %4665 = vmatpush.bf16.msrb.mxu2 %v7530_v35 }
  0xed   :  { %4678 = vmatpush.bf16.msrb.mxu3 %v7538_v36 }
  0xee   :  { %4640 = vmatpush.bf16.msrb.mxu0 %v7513_v39  ;;  %v4414_v1 = vpop.f32.mrf.mxu2  ;;  %v7543_v39 = vld [vmem:[%s9474_s1 + $0x810] sm:$0xff] }
  0xef   :  { %4653 = vmatpush.bf16.msrb.mxu1 %v7521_v40  ;;  %v4427_v4 = vpop.f32.mrf.mxu3  ;;  %v7551_v40 = vld [vmem:[%s9474_s1 + $0x850] sm:$0xff] }
  0xf0   :  { %4666 = vmatpush.bf16.msrb.mxu2 %v7529_v42  ;;  %v7559_v42 = vld [vmem:[%s9474_s1 + $0x890] sm:$0xff]  ;;  %v7594_v4 = vld [vmem:[%s9474_s1 + $0x9a8] sm:$0xff] }
  0xf1   :  { %4679 = vmatpush.bf16.msrb.mxu3 %v7537_v43  ;;  %v7567_v43 = vld [vmem:[%s9474_s1 + $0x8d0] sm:$0xff] }
  0xf2   :  { %4641 = vmatpush.bf16.msrb.mxu0 %v7512_v45  ;;  %v7550_v45 = vld [vmem:[%s9474_s1 + $0x848] sm:$0xff]  ;;  %v7603_v1 = vld [vmem:[%s9474_s1 + $0x9f0] sm:$0xff] }
  0xf3   :  { %4654 = vmatpush.bf16.msrb.mxu1 %v7520_v46  ;;  %v7558_v46 = vld [vmem:[%s9474_s1 + $0x888] sm:$0xff] }
  0xf4   :  { %4667 = vmatpush.bf16.msrb.mxu2 %v7528_v47  ;;  %v7566_v47 = vld [vmem:[%s9474_s1 + $0x8c8] sm:$0xff] }
  0xf5   :  { %4680 = vmatpush.bf16.msrb.mxu3 %v7536_v48 }
  0xf6   :  { %4642 = vmatpush.bf16.msrb.mxu0 %v7511_v54  ;;  %v7580_v54 = vld [vmem:[%s9474_s1 + $0x938] sm:$0xff] }
  0xf7   :  { %4655 = vmatpush.bf16.msrb.mxu1 %v7519_v55  ;;  %v7588_v55 = vld [vmem:[%s9474_s1 + $0x978] sm:$0xff] }
  0xf8   :  { %4668 = vmatpush.bf16.msrb.mxu2 %v7527_v57  ;;  %v7604_v57 = vld [vmem:[%s9474_s1 + $0x9f8] sm:$0xff] }
  0xf9   :  { %4681 = vmatpush.bf16.msrb.mxu3 %v7535_v58  ;;  %v1099_v58 = vld [vmem:[#allocation1] sm:$0xff] }
  0xfa   :  { %4643 = vmatpush.bf16.msrb.mxu0 %v7510_v59  ;;  %v1101_v59 = vld [vmem:[#allocation1 + $0x12] sm:$0xff] }
  0xfb   :  { %4656 = vmatpush.bf16.msrb.mxu1 %v7518_v60  ;;  %v1100_v60 = vld [vmem:[#allocation1 + $0x9] sm:$0xff] }
  0xfc   :  { %4669 = vmatpush.bf16.msrb.mxu2 %v7526_v61  ;;  %v1102_v61 = vld [vmem:[#allocation1 + $0x1b] sm:$0xff] }
  0xfd   :  { %4682 = vmatpush.bf16.msrb.mxu3 %v7534_v62  ;;  %v7579_v62 = vld [vmem:[%s9474_s1 + $0x930] sm:$0xff] }
  0xfe   :  { %4644 = vmatpush.bf16.msrb.mxu0 %v7509_v6  ;;  %v4438_v22 = vpop.f32.mrf.mxu0 }
  0xff   :  { %4657 = vmatpush.bf16.msrb.mxu1 %v7517_v7  ;;  %v4439_v23 = vadd.f32 %v4438_v22, %v8615_v53  ;;  %v4451_v26 = vpop.f32.mrf.mxu1  ;;  %v7565_v53 = vld [vmem:[%s9474_s1 + $0x8c0] sm:$0xff] }
 0x100   :  { %4670 = vmatpush.bf16.msrb.mxu2 %v7525_v8  ;;  %v7577_v8 = vld [vmem:[%s9474_s1 + $0x920] sm:$0xff] }
 0x101   :  { %4683 = vmatpush.bf16.msrb.mxu3 %v7533_v9  ;;  %4645 = vmatmul.bf16.vlgmr.msrb.gmra.mxu0 %v1093_v63  ;;  %v4452_v29 = vadd.f32 %v4451_v26, %v4439_v23  ;;  %v7587_v63 = vld [vmem:[%s9474_s1 + $0x970] sm:$0xff]  ;;  %v7585_v9 = vld [vmem:[%s9474_s1 + $0x960] sm:$0xff] }
 0x102   :  { %4689 = vmatpush.bf16.msra.mxu0 %v7548_v10  ;;  %4658 = vmatmul.bf16.vlgmr.msrb.gmra.mxu1 %v1094_v2  ;;  %v7578_v2 = vld [vmem:[%s9474_s1 + $0x928] sm:$0xff]  ;;  %v7575_v23 = vld [vmem:[%s9474_s1 + $0x910] sm:$0xff] }
 0x103   :  { %4702 = vmatpush.bf16.msra.mxu1 %v7556_v11  ;;  %4671 = vmatmul.bf16.vlgmr.msrb.gmra.mxu2 %v1095_v0  ;;  %v7595_v0 = vld [vmem:[%s9474_s1 + $0x9b0] sm:$0xff]  ;;  %v7593_v11 = vld [vmem:[%s9474_s1 + $0x9a0] sm:$0xff] }
 0x104   :  { %4715 = vmatpush.bf16.msra.mxu2 %v7564_v12  ;;  %4684 = vmatmul.bf16.vlgmr.msrb.gmra.mxu3 %v1096_v3  ;;  %v7586_v3 = vld [vmem:[%s9474_s1 + $0x968] sm:$0xff]  ;;  %v7601_v12 = vld [vmem:[%s9474_s1 + $0x9e0] sm:$0xff]  ;;  %v7591_v26 = vld [vmem:[%s9474_s1 + $0x990] sm:$0xff] }
 0x105   :  { %4728 = vmatpush.bf16.msra.mxu3 %v7572_v13 }
 0x106   :  { %4690 = vmatpush.bf16.msra.mxu0 %v7547_v14  ;;  %v4464_v34 = vpop.f32.mrf.mxu2  ;;  %v4440_v37 = vpop.f32.mrf.mxu0  ;;  %v7576_v14 = vld [vmem:[%s9474_s1 + $0x918] sm:$0xff] }
 0x107   :  { %4703 = vmatpush.bf16.msra.mxu1 %v7555_v15  ;;  %v4465_v35 = vadd.f32 %v4464_v34, %v4452_v29  ;;  %v4477_v36 = vpop.f32.mrf.mxu3  ;;  %v4453_v41 = vpop.f32.mrf.mxu1  ;;  %v7584_v15 = vld [vmem:[%s9474_s1 + $0x958] sm:$0xff]  ;;  %v7582_v29 = vld [vmem:[%s9474_s1 + $0x948] sm:$0xff] }
 0x108   :  { %4716 = vmatpush.bf16.msra.mxu2 %v7563_v16  ;;  %v7592_v16 = vld [vmem:[%s9474_s1 + $0x998] sm:$0xff]  ;;  %v7589_v41 = vld [vmem:[%s9474_s1 + $0x980] sm:$0xff] }
 0x109   :  { %4729 = vmatpush.bf16.msra.mxu3 %v7571_v17  ;;  %v4478_v38 = vadd.f32 %v4477_v36, %v4465_v35  ;;  %v7600_v17 = vld [vmem:[%s9474_s1 + $0x9d8] sm:$0xff]  ;;  %v1104_v35 = vld [vmem:[#allocation1 + $0x2d] sm:$0xff] }
 0x10a   :  { %4691 = vmatpush.bf16.msra.mxu0 %v7546_v18  ;;  %v1106_v36 = vld [vmem:[#allocation1 + $0x3f] sm:$0xff] }
 0x10b   :  { %4704 = vmatpush.bf16.msra.mxu1 %v7554_v19 }
 0x10c   :  { %4717 = vmatpush.bf16.msra.mxu2 %v7562_v20 }
 0x10d   :  { %4730 = vmatpush.bf16.msra.mxu3 %v7570_v21 }
 0x10e   :  { %4692 = vmatpush.bf16.msra.mxu0 %v7545_v24  ;;  %v4466_v48 = vpop.f32.mrf.mxu2  ;;  %v7583_v24 = vld [vmem:[%s9474_s1 + $0x950] sm:$0xff] }
 0x10f   :  { %4705 = vmatpush.bf16.msra.mxu1 %v7553_v25  ;;  %v4479_v49 = vpop.f32.mrf.mxu3  ;;  %v7619_v48 = vld [vmem:[%s9474_s1 + $0xa70] sm:$0xff] }
 0x110   :  { %4718 = vmatpush.bf16.msra.mxu2 %v7561_v27  ;;  %v7599_v27 = vld [vmem:[%s9474_s1 + $0x9d0] sm:$0xff] }
 0x111   :  { %4731 = vmatpush.bf16.msra.mxu3 %v7569_v28  ;;  %v7574_v28 = vld [vmem:[%s9474_s1 + $0x908] sm:$0xff]  ;;  %v7627_v49 = vld [vmem:[%s9474_s1 + $0xab0] sm:$0xff] }
 0x112   :  { %4693 = vmatpush.bf16.msra.mxu0 %v7544_v30  ;;  %v7590_v30 = vld [vmem:[%s9474_s1 + $0x988] sm:$0xff] }
 0x113   :  { %4706 = vmatpush.bf16.msra.mxu1 %v7552_v31  ;;  %v7598_v31 = vld [vmem:[%s9474_s1 + $0x9c8] sm:$0xff] }
 0x114   :  { %4719 = vmatpush.bf16.msra.mxu2 %v7560_v32  ;;  %v1103_v32 = vld [vmem:[#allocation1 + $0x24] sm:$0xff] }
 0x115   :  { %4732 = vmatpush.bf16.msra.mxu3 %v7568_v33  ;;  %v1105_v33 = vld [vmem:[#allocation1 + $0x36] sm:$0xff] }
 0x116   :  { %4694 = vmatpush.bf16.msra.mxu0 %v7543_v39  ;;  %v7573_v39 = vld [vmem:[%s9474_s1 + $0x900] sm:$0xff] }
 0x117   :  { %4707 = vmatpush.bf16.msra.mxu1 %v7551_v40  ;;  %v7581_v40 = vld [vmem:[%s9474_s1 + $0x940] sm:$0xff] }
 0x118   :  { %4720 = vmatpush.bf16.msra.mxu2 %v7559_v42  ;;  %v7597_v42 = vld [vmem:[%s9474_s1 + $0x9c0] sm:$0xff] }
 0x119   :  { %4733 = vmatpush.bf16.msra.mxu3 %v7567_v43  ;;  %v7612_v43 = vld [vmem:[%s9474_s1 + $0xa38] sm:$0xff] }
 0x11a   :  { %4695 = vmatpush.bf16.msra.mxu0 %v7542_v44  ;;  %v7620_v44 = vld [vmem:[%s9474_s1 + $0xa78] sm:$0xff] }
 0x11b   :  { %4708 = vmatpush.bf16.msra.mxu1 %v7550_v45  ;;  %v7628_v45 = vld [vmem:[%s9474_s1 + $0xab8] sm:$0xff] }
 0x11c   :  { %4721 = vmatpush.bf16.msra.mxu2 %v7558_v46  ;;  %v7636_v46 = vld [vmem:[%s9474_s1 + $0xaf8] sm:$0xff] }
 0x11d   :  { %4734 = vmatpush.bf16.msra.mxu3 %v7566_v47  ;;  %v7611_v47 = vld [vmem:[%s9474_s1 + $0xa30] sm:$0xff] }
 0x11e   :  { %4696 = vmatpush.bf16.msra.mxu0 %v7541_v50  ;;  %v4490_v6 = vpop.f32.mrf.mxu0  ;;  %v7635_v50 = vld [vmem:[%s9474_s1 + $0xaf0] sm:$0xff] }
 0x11f   :  { %4709 = vmatpush.bf16.msra.mxu1 %v7549_v51  ;;  %v4491_v7 = vadd.f32 %v4490_v6, %v4478_v38  ;;  %v4503_v10 = vpop.f32.mrf.mxu1  ;;  %v26_v38 = vld [vmem:[%s9473_s0 + $0x28] sm:$0xff] }
 0x120   :  { %4722 = vmatpush.bf16.msra.mxu2 %v7557_v52  ;;  %1108 = vst [vmem:[#allocation1] ss:$9 sm:$0xff] %v26_v38  ;;  %v7610_v51 = vld [vmem:[%s9474_s1 + $0xa28] sm:$0xff] }
 0x121   :  { %4735 = vmatpush.bf16.msra.mxu3 %v7565_v53  ;;  %4697 = vmatmul.bf16.vlgmr.msra.gmra.mxu0 %v1099_v58  ;;  %v4504_v13 = vadd.f32 %v4503_v10, %v4491_v7  ;;  %v7618_v52 = vld [vmem:[%s9474_s1 + $0xa68] sm:$0xff]  ;;  %v7617_v58 = vld [vmem:[%s9474_s1 + $0xa60] sm:$0xff] }
 0x122   :  { %4741 = vmatpush.bf16.msrb.mxu0 %v7580_v54  ;;  %4710 = vmatmul.bf16.vlgmr.msra.gmra.mxu1 %v1100_v60  ;;  %v7626_v53 = vld [vmem:[%s9474_s1 + $0xaa8] sm:$0xff]  ;;  %v7625_v60 = vld [vmem:[%s9474_s1 + $0xaa0] sm:$0xff] }
 0x123   :  { %4754 = vmatpush.bf16.msrb.mxu1 %v7588_v55  ;;  %4723 = vmatmul.bf16.vlgmr.msra.gmra.mxu2 %v1101_v59  ;;  %v7634_v54 = vld [vmem:[%s9474_s1 + $0xae8] sm:$0xff] }
 0x124   :  { %4767 = vmatpush.bf16.msrb.mxu2 %v7596_v56  ;;  %4736 = vmatmul.bf16.vlgmr.msra.gmra.mxu3 %v1102_v61  ;;  %v7633_v61 = vld [vmem:[%s9474_s1 + $0xae0] sm:$0xff]  ;;  %v7666_v38 = vld [vmem:[%s9474_s1 + $0xbe8] sm:$0xff] }
 0x125   :  { %4780 = vmatpush.bf16.msrb.mxu3 %v7604_v57  ;;  %v7609_v57 = vld [vmem:[%s9474_s1 + $0xa20] sm:$0xff] }
 0x126   :  { %4742 = vmatpush.bf16.msrb.mxu0 %v7579_v62  ;;  %v4516_v18 = vpop.f32.mrf.mxu2  ;;  %v4492_v21 = vpop.f32.mrf.mxu0 }
 0x127   :  { %4755 = vmatpush.bf16.msrb.mxu1 %v7587_v63  ;;  %v4517_v19 = vadd.f32 %v4516_v18, %v4504_v13  ;;  %v4529_v20 = vpop.f32.mrf.mxu3  ;;  %v4505_v25 = vpop.f32.mrf.mxu1  ;;  %v7608_v63 = vld [vmem:[%s9474_s1 + $0xa18] sm:$0xff]  ;;  %v7606_v13 = vld [vmem:[%s9474_s1 + $0xa08] sm:$0xff]  ;;  %v7621_v21 = vld [vmem:[%s9474_s1 + $0xa80] sm:$0xff] }
 0x128   :  { %4768 = vmatpush.bf16.msrb.mxu2 %v7595_v0  ;;  %v7616_v0 = vld [vmem:[%s9474_s1 + $0xa58] sm:$0xff] }
 0x129   :  { %4781 = vmatpush.bf16.msrb.mxu3 %v7603_v1  ;;  %v8813_v22 = vadd.f32 %v4529_v20, %v4517_v19  ;;  %v7624_v1 = vld [vmem:[%s9474_s1 + $0xa98] sm:$0xff]  ;;  %v7605_v19 = vld [vmem:[%s9474_s1 + $0xa00] sm:$0xff] }
 0x12a   :  { %4743 = vmatpush.bf16.msrb.mxu0 %v7578_v2  ;;  %v7632_v2 = vld [vmem:[%s9474_s1 + $0xad8] sm:$0xff]  ;;  %v7613_v20 = vld [vmem:[%s9474_s1 + $0xa40] sm:$0xff] }
 0x12b   :  { %4756 = vmatpush.bf16.msrb.mxu1 %v7586_v3  ;;  %v7660_v25 = vld [vmem:[%s9474_s1 + $0xbb8] sm:$0xff] }
 0x12c   :  { %4769 = vmatpush.bf16.msrb.mxu2 %v7594_v4 }
 0x12d   :  { %4782 = vmatpush.bf16.msrb.mxu3 %v7602_v5 }
 0x12e   :  { %4744 = vmatpush.bf16.msrb.mxu0 %v7577_v8  ;;  %v4518_v34 = vpop.f32.mrf.mxu2  ;;  %v7607_v8 = vld [vmem:[%s9474_s1 + $0xa10] sm:$0xff] }
 0x12f   :  { %4757 = vmatpush.bf16.msrb.mxu1 %v7585_v9  ;;  %v4531_v37 = vpop.f32.mrf.mxu3  ;;  %v7615_v9 = vld [vmem:[%s9474_s1 + $0xa50] sm:$0xff] }
 0x130   :  { %4770 = vmatpush.bf16.msrb.mxu2 %v7593_v11  ;;  %v7623_v11 = vld [vmem:[%s9474_s1 + $0xa90] sm:$0xff]  ;;  %v7658_v37 = vld [vmem:[%s9474_s1 + $0xba8] sm:$0xff] }
 0x131   :  { %4783 = vmatpush.bf16.msrb.mxu3 %v7601_v12  ;;  %v7631_v12 = vld [vmem:[%s9474_s1 + $0xad0] sm:$0xff] }
 0x132   :  { %4745 = vmatpush.bf16.msrb.mxu0 %v7576_v14  ;;  %v7614_v14 = vld [vmem:[%s9474_s1 + $0xa48] sm:$0xff]  ;;  %v7667_v34 = vld [vmem:[%s9474_s1 + $0xbf0] sm:$0xff] }
 0x133   :  { %4758 = vmatpush.bf16.msrb.mxu1 %v7584_v15  ;;  %v7622_v15 = vld [vmem:[%s9474_s1 + $0xa88] sm:$0xff] }
 0x134   :  { %4771 = vmatpush.bf16.msrb.mxu2 %v7592_v16  ;;  %v7630_v16 = vld [vmem:[%s9474_s1 + $0xac8] sm:$0xff] }
 0x135   :  { %4784 = vmatpush.bf16.msrb.mxu3 %v7600_v17 }
 0x136   :  { %4746 = vmatpush.bf16.msrb.mxu0 %v7575_v23  ;;  %v7644_v23 = vld [vmem:[%s9474_s1 + $0xb38] sm:$0xff] }
 0x137   :  { %4759 = vmatpush.bf16.msrb.mxu1 %v7583_v24  ;;  %v7652_v24 = vld [vmem:[%s9474_s1 + $0xb78] sm:$0xff] }
 0x138   :  { %4772 = vmatpush.bf16.msrb.mxu2 %v7591_v26  ;;  %v7668_v26 = vld [vmem:[%s9474_s1 + $0xbf8] sm:$0xff] }
 0x139   :  { %4785 = vmatpush.bf16.msrb.mxu3 %v7599_v27  ;;  %v1109_v27 = vld [vmem:[#allocation1] sm:$0xff] }
 0x13a   :  { %4747 = vmatpush.bf16.msrb.mxu0 %v7574_v28  ;;  %v1111_v28 = vld [vmem:[#allocation1 + $0x12] sm:$0xff] }
 0x13b   :  { %4760 = vmatpush.bf16.msrb.mxu1 %v7582_v29  ;;  %v1110_v29 = vld [vmem:[#allocation1 + $0x9] sm:$0xff] }
 0x13c   :  { %4773 = vmatpush.bf16.msrb.mxu2 %v7590_v30  ;;  %v1112_v30 = vld [vmem:[#allocation1 + $0x1b] sm:$0xff] }
 0x13d   :  { %4786 = vmatpush.bf16.msrb.mxu3 %v7598_v31  ;;  %v7643_v31 = vld [vmem:[%s9474_s1 + $0xb30] sm:$0xff] }
 0x13e   :  { %4748 = vmatpush.bf16.msrb.mxu0 %v7573_v39  ;;  %v4542_v55 = vpop.f32.mrf.mxu0 }
 0x13f   :  { %4761 = vmatpush.bf16.msrb.mxu1 %v7581_v40  ;;  %v4543_v56 = vadd.f32 %v4542_v55, %v8813_v22  ;;  %v4555_v59 = vpop.f32.mrf.mxu1  ;;  %v7629_v22 = vld [vmem:[%s9474_s1 + $0xac0] sm:$0xff] }
 0x140   :  { %4774 = vmatpush.bf16.msrb.mxu2 %v7589_v41  ;;  %v7641_v41 = vld [vmem:[%s9474_s1 + $0xb20] sm:$0xff] }
 0x141   :  { %4787 = vmatpush.bf16.msrb.mxu3 %v7597_v42  ;;  %4749 = vmatmul.bf16.vlgmr.msrb.gmra.mxu0 %v1103_v32  ;;  %v4556_v62 = vadd.f32 %v4555_v59, %v4543_v56  ;;  %v7651_v32 = vld [vmem:[%s9474_s1 + $0xb70] sm:$0xff]  ;;  %v7649_v42 = vld [vmem:[%s9474_s1 + $0xb60] sm:$0xff] }
 0x142   :  { %4793 = vmatpush.bf16.msra.mxu0 %v7612_v43  ;;  %4762 = vmatmul.bf16.vlgmr.msrb.gmra.mxu1 %v1104_v35  ;;  %v7642_v35 = vld [vmem:[%s9474_s1 + $0xb28] sm:$0xff]  ;;  %v7639_v56 = vld [vmem:[%s9474_s1 + $0xb10] sm:$0xff] }
 0x143   :  { %4806 = vmatpush.bf16.msra.mxu1 %v7620_v44  ;;  %4775 = vmatmul.bf16.vlgmr.msrb.gmra.mxu2 %v1105_v33  ;;  %v7659_v33 = vld [vmem:[%s9474_s1 + $0xbb0] sm:$0xff]  ;;  %v7657_v44 = vld [vmem:[%s9474_s1 + $0xba0] sm:$0xff] }
 0x144   :  { %4819 = vmatpush.bf16.msra.mxu2 %v7628_v45  ;;  %4788 = vmatmul.bf16.vlgmr.msrb.gmra.mxu3 %v1106_v36  ;;  %v7650_v36 = vld [vmem:[%s9474_s1 + $0xb68] sm:$0xff]  ;;  %v7665_v45 = vld [vmem:[%s9474_s1 + $0xbe0] sm:$0xff]  ;;  %v7655_v59 = vld [vmem:[%s9474_s1 + $0xb90] sm:$0xff] }
 0x145   :  { %4832 = vmatpush.bf16.msra.mxu3 %v7636_v46 }
 0x146   :  { %4794 = vmatpush.bf16.msra.mxu0 %v7611_v47  ;;  %v4568_v3 = vpop.f32.mrf.mxu2  ;;  %v4544_v6 = vpop.f32.mrf.mxu0  ;;  %v7640_v47 = vld [vmem:[%s9474_s1 + $0xb18] sm:$0xff] }
 0x147   :  { %4807 = vmatpush.bf16.msra.mxu1 %v7619_v48  ;;  %v4569_v4 = vadd.f32 %v4568_v3, %v4556_v62  ;;  %v4581_v5 = vpop.f32.mrf.mxu3  ;;  %v4557_v10 = vpop.f32.mrf.mxu1  ;;  %v7648_v48 = vld [vmem:[%s9474_s1 + $0xb58] sm:$0xff]  ;;  %v7646_v62 = vld [vmem:[%s9474_s1 + $0xb48] sm:$0xff] }
 0x148   :  { %4820 = vmatpush.bf16.msra.mxu2 %v7627_v49  ;;  %v7656_v49 = vld [vmem:[%s9474_s1 + $0xb98] sm:$0xff]  ;;  %v7653_v10 = vld [vmem:[%s9474_s1 + $0xb80] sm:$0xff] }
 0x149   :  { %4833 = vmatpush.bf16.msra.mxu3 %v7635_v50  ;;  %v4582_v7 = vadd.f32 %v4581_v5, %v4569_v4  ;;  %v7664_v50 = vld [vmem:[%s9474_s1 + $0xbd8] sm:$0xff]  ;;  %v1114_v4 = vld [vmem:[#allocation1 + $0x2d] sm:$0xff] }
 0x14a   :  { %4795 = vmatpush.bf16.msra.mxu0 %v7610_v51  ;;  %v1116_v5 = vld [vmem:[#allocation1 + $0x3f] sm:$0xff] }
 0x14b   :  { %4808 = vmatpush.bf16.msra.mxu1 %v7618_v52 }
 0x14c   :  { %4821 = vmatpush.bf16.msra.mxu2 %v7626_v53 }
 0x14d   :  { %4834 = vmatpush.bf16.msra.mxu3 %v7634_v54 }
 0x14e   :  { %4796 = vmatpush.bf16.msra.mxu0 %v7609_v57  ;;  %v4570_v17 = vpop.f32.mrf.mxu2  ;;  %v7647_v57 = vld [vmem:[%s9474_s1 + $0xb50] sm:$0xff] }
 0x14f   :  { %4809 = vmatpush.bf16.msra.mxu1 %v7617_v58  ;;  %v4583_v18 = vpop.f32.mrf.mxu3  ;;  %v7683_v17 = vld [vmem:[%s9474_s1 + $0xc70] sm:$0xff] }
 0x150   :  { %4822 = vmatpush.bf16.msra.mxu2 %v7625_v60  ;;  %v7663_v60 = vld [vmem:[%s9474_s1 + $0xbd0] sm:$0xff] }
 0x151   :  { %4835 = vmatpush.bf16.msra.mxu3 %v7633_v61  ;;  %v7638_v61 = vld [vmem:[%s9474_s1 + $0xb08] sm:$0xff]  ;;  %v7691_v18 = vld [vmem:[%s9474_s1 + $0xcb0] sm:$0xff] }
 0x152   :  { %4797 = vmatpush.bf16.msra.mxu0 %v7608_v63  ;;  %v7654_v63 = vld [vmem:[%s9474_s1 + $0xb88] sm:$0xff] }
 0x153   :  { %4810 = vmatpush.bf16.msra.mxu1 %v7616_v0  ;;  %v7662_v0 = vld [vmem:[%s9474_s1 + $0xbc8] sm:$0xff] }
 0x154   :  { %4823 = vmatpush.bf16.msra.mxu2 %v7624_v1  ;;  %v1113_v1 = vld [vmem:[#allocation1 + $0x24] sm:$0xff] }
 0x155   :  { %4836 = vmatpush.bf16.msra.mxu3 %v7632_v2  ;;  %v1115_v2 = vld [vmem:[#allocation1 + $0x36] sm:$0xff] }
 0x156   :  { %4798 = vmatpush.bf16.msra.mxu0 %v7607_v8  ;;  %v7637_v8 = vld [vmem:[%s9474_s1 + $0xb00] sm:$0xff] }
 0x157   :  { %4811 = vmatpush.bf16.msra.mxu1 %v7615_v9  ;;  %v7645_v9 = vld [vmem:[%s9474_s1 + $0xb40] sm:$0xff] }
 0x158   :  { %4824 = vmatpush.bf16.msra.mxu2 %v7623_v11  ;;  %v7661_v11 = vld [vmem:[%s9474_s1 + $0xbc0] sm:$0xff] }
 0x159   :  { %4837 = vmatpush.bf16.msra.mxu3 %v7631_v12  ;;  %v7676_v12 = vld [vmem:[%s9474_s1 + $0xc38] sm:$0xff] }
 0x15a   :  { %4799 = vmatpush.bf16.msra.mxu0 %v7606_v13  ;;  %v7684_v13 = vld [vmem:[%s9474_s1 + $0xc78] sm:$0xff] }
 0x15b   :  { %4812 = vmatpush.bf16.msra.mxu1 %v7614_v14  ;;  %v7692_v14 = vld [vmem:[%s9474_s1 + $0xcb8] sm:$0xff] }
 0x15c   :  { %4825 = vmatpush.bf16.msra.mxu2 %v7622_v15  ;;  %v7700_v15 = vld [vmem:[%s9474_s1 + $0xcf8] sm:$0xff] }
 0x15d   :  { %4838 = vmatpush.bf16.msra.mxu3 %v7630_v16  ;;  %v7675_v16 = vld [vmem:[%s9474_s1 + $0xc30] sm:$0xff] }
 0x15e   :  { %4800 = vmatpush.bf16.msra.mxu0 %v7605_v19  ;;  %v4594_v39 = vpop.f32.mrf.mxu0  ;;  %v7699_v19 = vld [vmem:[%s9474_s1 + $0xcf0] sm:$0xff] }
 0x15f   :  { %4813 = vmatpush.bf16.msra.mxu1 %v7613_v20  ;;  %v4595_v40 = vadd.f32 %v4594_v39, %v4582_v7  ;;  %v4607_v43 = vpop.f32.mrf.mxu1  ;;  %v27_v7 = vld [vmem:[%s9473_s0 + $0x30] sm:$0xff]  ;;  %v7674_v20 = vld [vmem:[%s9474_s1 + $0xc28] sm:$0xff] }
 0x160   :  { %4826 = vmatpush.bf16.msra.mxu2 %v7621_v21  ;;  %1118 = vst [vmem:[#allocation1] ss:$9 sm:$0xff] %v27_v7  ;;  %v7682_v21 = vld [vmem:[%s9474_s1 + $0xc68] sm:$0xff] }
 0x161   :  { %4839 = vmatpush.bf16.msra.mxu3 %v7629_v22  ;;  %4801 = vmatmul.bf16.vlgmr.msra.gmra.mxu0 %v1109_v27  ;;  %v4608_v46 = vadd.f32 %v4607_v43, %v4595_v40  ;;  %v7690_v22 = vld [vmem:[%s9474_s1 + $0xca8] sm:$0xff]  ;;  %v7681_v27 = vld [vmem:[%s9474_s1 + $0xc60] sm:$0xff] }
 0x162   :  { %4845 = vmatpush.bf16.msrb.mxu0 %v7644_v23  ;;  %4814 = vmatmul.bf16.vlgmr.msra.gmra.mxu1 %v1110_v29  ;;  %v7698_v23 = vld [vmem:[%s9474_s1 + $0xce8] sm:$0xff]  ;;  %v7689_v29 = vld [vmem:[%s9474_s1 + $0xca0] sm:$0xff] }
 0x163   :  { %4858 = vmatpush.bf16.msrb.mxu1 %v7652_v24  ;;  %4827 = vmatmul.bf16.vlgmr.msra.gmra.mxu2 %v1111_v28  ;;  %v7730_v7 = vld [vmem:[%s9474_s1 + $0xde8] sm:$0xff] }
 0x164   :  { %4871 = vmatpush.bf16.msrb.mxu2 %v7660_v25  ;;  %4840 = vmatmul.bf16.vlgmr.msra.gmra.mxu3 %v1112_v30  ;;  %v7697_v30 = vld [vmem:[%s9474_s1 + $0xce0] sm:$0xff] }
 0x165   :  { %4884 = vmatpush.bf16.msrb.mxu3 %v7668_v26  ;;  %v7673_v26 = vld [vmem:[%s9474_s1 + $0xc20] sm:$0xff] }
 0x166   :  { %4846 = vmatpush.bf16.msrb.mxu0 %v7643_v31  ;;  %v4620_v51 = vpop.f32.mrf.mxu2  ;;  %v4596_v54 = vpop.f32.mrf.mxu0 }
 0x167   :  { %4859 = vmatpush.bf16.msrb.mxu1 %v7651_v32  ;;  %v4621_v52 = vadd.f32 %v4620_v51, %v4608_v46  ;;  %v4633_v53 = vpop.f32.mrf.mxu3  ;;  %v4609_v58 = vpop.f32.mrf.mxu1  ;;  %v7672_v32 = vld [vmem:[%s9474_s1 + $0xc18] sm:$0xff]  ;;  %v7670_v46 = vld [vmem:[%s9474_s1 + $0xc08] sm:$0xff]  ;;  %v7685_v54 = vld [vmem:[%s9474_s1 + $0xc80] sm:$0xff] }
 0x168   :  { %4872 = vmatpush.bf16.msrb.mxu2 %v7659_v33  ;;  %v7680_v33 = vld [vmem:[%s9474_s1 + $0xc58] sm:$0xff] }
 0x169   :  { %4885 = vmatpush.bf16.msrb.mxu3 %v7667_v34  ;;  %v9011_v55 = vadd.f32 %v4633_v53, %v4621_v52  ;;  %v7688_v34 = vld [vmem:[%s9474_s1 + $0xc98] sm:$0xff]  ;;  %v7669_v52 = vld [vmem:[%s9474_s1 + $0xc00] sm:$0xff] }
 0x16a   :  { %4847 = vmatpush.bf16.msrb.mxu0 %v7642_v35  ;;  %v7696_v35 = vld [vmem:[%s9474_s1 + $0xcd8] sm:$0xff]  ;;  %v7677_v53 = vld [vmem:[%s9474_s1 + $0xc40] sm:$0xff] }
 0x16b   :  { %4860 = vmatpush.bf16.msrb.mxu1 %v7650_v36  ;;  %v7724_v58 = vld [vmem:[%s9474_s1 + $0xdb8] sm:$0xff] }
 0x16c   :  { %4873 = vmatpush.bf16.msrb.mxu2 %v7658_v37 }
 0x16d   :  { %4886 = vmatpush.bf16.msrb.mxu3 %v7666_v38 }
 0x16e   :  { %4848 = vmatpush.bf16.msrb.mxu0 %v7641_v41  ;;  %v4622_v3 = vpop.f32.mrf.mxu2  ;;  %v7671_v41 = vld [vmem:[%s9474_s1 + $0xc10] sm:$0xff] }
 0x16f   :  { %4861 = vmatpush.bf16.msrb.mxu1 %v7649_v42  ;;  %v4635_v6 = vpop.f32.mrf.mxu3  ;;  %v7679_v42 = vld [vmem:[%s9474_s1 + $0xc50] sm:$0xff] }
 0x170   :  { %4874 = vmatpush.bf16.msrb.mxu2 %v7657_v44  ;;  %v7687_v44 = vld [vmem:[%s9474_s1 + $0xc90] sm:$0xff]  ;;  %v7722_v6 = vld [vmem:[%s9474_s1 + $0xda8] sm:$0xff] }
 0x171   :  { %4887 = vmatpush.bf16.msrb.mxu3 %v7665_v45  ;;  %v7695_v45 = vld [vmem:[%s9474_s1 + $0xcd0] sm:$0xff] }
 0x172   :  { %4849 = vmatpush.bf16.msrb.mxu0 %v7640_v47  ;;  %v7678_v47 = vld [vmem:[%s9474_s1 + $0xc48] sm:$0xff]  ;;  %v7731_v3 = vld [vmem:[%s9474_s1 + $0xdf0] sm:$0xff] }
 0x173   :  { %4862 = vmatpush.bf16.msrb.mxu1 %v7648_v48  ;;  %v7686_v48 = vld [vmem:[%s9474_s1 + $0xc88] sm:$0xff] }
 0x174   :  { %4875 = vmatpush.bf16.msrb.mxu2 %v7656_v49  ;;  %v7694_v49 = vld [vmem:[%s9474_s1 + $0xcc8] sm:$0xff] }
 0x175   :  { %4888 = vmatpush.bf16.msrb.mxu3 %v7664_v50 }
 0x176   :  { %4850 = vmatpush.bf16.msrb.mxu0 %v7639_v56  ;;  %v7708_v56 = vld [vmem:[%s9474_s1 + $0xd38] sm:$0xff] }
 0x177   :  { %4863 = vmatpush.bf16.msrb.mxu1 %v7647_v57  ;;  %v7716_v57 = vld [vmem:[%s9474_s1 + $0xd78] sm:$0xff] }
 0x178   :  { %4876 = vmatpush.bf16.msrb.mxu2 %v7655_v59  ;;  %v7732_v59 = vld [vmem:[%s9474_s1 + $0xdf8] sm:$0xff] }
 0x179   :  { %4889 = vmatpush.bf16.msrb.mxu3 %v7663_v60  ;;  %v1119_v60 = vld [vmem:[#allocation1] sm:$0xff] }
 0x17a   :  { %4851 = vmatpush.bf16.msrb.mxu0 %v7638_v61  ;;  %v1121_v61 = vld [vmem:[#allocation1 + $0x12] sm:$0xff] }
 0x17b   :  { %4864 = vmatpush.bf16.msrb.mxu1 %v7646_v62  ;;  %v1120_v62 = vld [vmem:[#allocation1 + $0x9] sm:$0xff] }
 0x17c   :  { %4877 = vmatpush.bf16.msrb.mxu2 %v7654_v63  ;;  %v1122_v63 = vld [vmem:[#allocation1 + $0x1b] sm:$0xff] }
 0x17d   :  { %4890 = vmatpush.bf16.msrb.mxu3 %v7662_v0  ;;  %v7707_v0 = vld [vmem:[%s9474_s1 + $0xd30] sm:$0xff] }
 0x17e   :  { %4852 = vmatpush.bf16.msrb.mxu0 %v7637_v8  ;;  %v4646_v24 = vpop.f32.mrf.mxu0 }
 0x17f   :  { %4865 = vmatpush.bf16.msrb.mxu1 %v7645_v9  ;;  %v4647_v25 = vadd.f32 %v4646_v24, %v9011_v55  ;;  %v4659_v28 = vpop.f32.mrf.mxu1  ;;  %v7693_v55 = vld [vmem:[%s9474_s1 + $0xcc0] sm:$0xff] }
 0x180   :  { %4878 = vmatpush.bf16.msrb.mxu2 %v7653_v10  ;;  %v7705_v10 = vld [vmem:[%s9474_s1 + $0xd20] sm:$0xff] }
 0x181   :  { %4891 = vmatpush.bf16.msrb.mxu3 %v7661_v11  ;;  %4853 = vmatmul.bf16.vlgmr.msrb.gmra.mxu0 %v1113_v1  ;;  %v4660_v31 = vadd.f32 %v4659_v28, %v4647_v25  ;;  %v7715_v1 = vld [vmem:[%s9474_s1 + $0xd70] sm:$0xff]  ;;  %v7713_v11 = vld [vmem:[%s9474_s1 + $0xd60] sm:$0xff] }
 0x182   :  { %4897 = vmatpush.bf16.msra.mxu0 %v7676_v12  ;;  %4866 = vmatmul.bf16.vlgmr.msrb.gmra.mxu1 %v1114_v4  ;;  %v7706_v4 = vld [vmem:[%s9474_s1 + $0xd28] sm:$0xff]  ;;  %v7703_v25 = vld [vmem:[%s9474_s1 + $0xd10] sm:$0xff] }
 0x183   :  { %4910 = vmatpush.bf16.msra.mxu1 %v7684_v13  ;;  %4879 = vmatmul.bf16.vlgmr.msrb.gmra.mxu2 %v1115_v2  ;;  %v7723_v2 = vld [vmem:[%s9474_s1 + $0xdb0] sm:$0xff]  ;;  %v7721_v13 = vld [vmem:[%s9474_s1 + $0xda0] sm:$0xff] }
 0x184   :  { %4923 = vmatpush.bf16.msra.mxu2 %v7692_v14  ;;  %4892 = vmatmul.bf16.vlgmr.msrb.gmra.mxu3 %v1116_v5  ;;  %v7714_v5 = vld [vmem:[%s9474_s1 + $0xd68] sm:$0xff]  ;;  %v7729_v14 = vld [vmem:[%s9474_s1 + $0xde0] sm:$0xff]  ;;  %v7719_v28 = vld [vmem:[%s9474_s1 + $0xd90] sm:$0xff] }
 0x185   :  { %4936 = vmatpush.bf16.msra.mxu3 %v7700_v15 }
 0x186   :  { %4898 = vmatpush.bf16.msra.mxu0 %v7675_v16  ;;  %v4672_v36 = vpop.f32.mrf.mxu2  ;;  %v4648_v39 = vpop.f32.mrf.mxu0  ;;  %v7704_v16 = vld [vmem:[%s9474_s1 + $0xd18] sm:$0xff] }
 0x187   :  { %4911 = vmatpush.bf16.msra.mxu1 %v7683_v17  ;;  %v4673_v37 = vadd.f32 %v4672_v36, %v4660_v31  ;;  %v4685_v38 = vpop.f32.mrf.mxu3  ;;  %v4661_v43 = vpop.f32.mrf.mxu1  ;;  %v7712_v17 = vld [vmem:[%s9474_s1 + $0xd58] sm:$0xff]  ;;  %v7710_v31 = vld [vmem:[%s9474_s1 + $0xd48] sm:$0xff] }
 0x188   :  { %4924 = vmatpush.bf16.msra.mxu2 %v7691_v18  ;;  %v7720_v18 = vld [vmem:[%s9474_s1 + $0xd98] sm:$0xff]  ;;  %v7717_v43 = vld [vmem:[%s9474_s1 + $0xd80] sm:$0xff] }
 0x189   :  { %4937 = vmatpush.bf16.msra.mxu3 %v7699_v19  ;;  %v4686_v40 = vadd.f32 %v4685_v38, %v4673_v37  ;;  %v7728_v19 = vld [vmem:[%s9474_s1 + $0xdd8] sm:$0xff]  ;;  %v1124_v37 = vld [vmem:[#allocation1 + $0x2d] sm:$0xff] }
 0x18a   :  { %4899 = vmatpush.bf16.msra.mxu0 %v7674_v20  ;;  %v1126_v38 = vld [vmem:[#allocation1 + $0x3f] sm:$0xff] }
 0x18b   :  { %4912 = vmatpush.bf16.msra.mxu1 %v7682_v21 }
 0x18c   :  { %4925 = vmatpush.bf16.msra.mxu2 %v7690_v22 }
 0x18d   :  { %4938 = vmatpush.bf16.msra.mxu3 %v7698_v23 }
 0x18e   :  { %4900 = vmatpush.bf16.msra.mxu0 %v7673_v26  ;;  %v4674_v50 = vpop.f32.mrf.mxu2  ;;  %v7711_v26 = vld [vmem:[%s9474_s1 + $0xd50] sm:$0xff] }
 0x18f   :  { %4913 = vmatpush.bf16.msra.mxu1 %v7681_v27  ;;  %v4687_v51 = vpop.f32.mrf.mxu3  ;;  %v7747_v50 = vld [vmem:[%s9474_s1 + $0xe70] sm:$0xff] }
 0x190   :  { %4926 = vmatpush.bf16.msra.mxu2 %v7689_v29  ;;  %v7727_v29 = vld [vmem:[%s9474_s1 + $0xdd0] sm:$0xff] }
 0x191   :  { %4939 = vmatpush.bf16.msra.mxu3 %v7697_v30  ;;  %v7702_v30 = vld [vmem:[%s9474_s1 + $0xd08] sm:$0xff]  ;;  %v7755_v51 = vld [vmem:[%s9474_s1 + $0xeb0] sm:$0xff] }
 0x192   :  { %4901 = vmatpush.bf16.msra.mxu0 %v7672_v32  ;;  %v7718_v32 = vld [vmem:[%s9474_s1 + $0xd88] sm:$0xff] }
 0x193   :  { %4914 = vmatpush.bf16.msra.mxu1 %v7680_v33  ;;  %v7726_v33 = vld [vmem:[%s9474_s1 + $0xdc8] sm:$0xff] }
 0x194   :  { %4927 = vmatpush.bf16.msra.mxu2 %v7688_v34  ;;  %v1123_v34 = vld [vmem:[#allocation1 + $0x24] sm:$0xff] }
 0x195   :  { %4940 = vmatpush.bf16.msra.mxu3 %v7696_v35  ;;  %v1125_v35 = vld [vmem:[#allocation1 + $0x36] sm:$0xff] }
 0x196   :  { %4902 = vmatpush.bf16.msra.mxu0 %v7671_v41  ;;  %v7701_v41 = vld [vmem:[%s9474_s1 + $0xd00] sm:$0xff] }
 0x197   :  { %4915 = vmatpush.bf16.msra.mxu1 %v7679_v42  ;;  %v7709_v42 = vld [vmem:[%s9474_s1 + $0xd40] sm:$0xff] }
 0x198   :  { %4928 = vmatpush.bf16.msra.mxu2 %v7687_v44  ;;  %v7725_v44 = vld [vmem:[%s9474_s1 + $0xdc0] sm:$0xff] }
 0x199   :  { %4941 = vmatpush.bf16.msra.mxu3 %v7695_v45  ;;  %v7740_v45 = vld [vmem:[%s9474_s1 + $0xe38] sm:$0xff] }
 0x19a   :  { %4903 = vmatpush.bf16.msra.mxu0 %v7670_v46  ;;  %v7748_v46 = vld [vmem:[%s9474_s1 + $0xe78] sm:$0xff] }
 0x19b   :  { %4916 = vmatpush.bf16.msra.mxu1 %v7678_v47  ;;  %v7756_v47 = vld [vmem:[%s9474_s1 + $0xeb8] sm:$0xff] }
 0x19c   :  { %4929 = vmatpush.bf16.msra.mxu2 %v7686_v48  ;;  %v7764_v48 = vld [vmem:[%s9474_s1 + $0xef8] sm:$0xff] }
 0x19d   :  { %4942 = vmatpush.bf16.msra.mxu3 %v7694_v49  ;;  %v7739_v49 = vld [vmem:[%s9474_s1 + $0xe30] sm:$0xff] }
 0x19e   :  { %4904 = vmatpush.bf16.msra.mxu0 %v7669_v52  ;;  %v4698_v8 = vpop.f32.mrf.mxu0  ;;  %v7763_v52 = vld [vmem:[%s9474_s1 + $0xef0] sm:$0xff] }
 0x19f   :  { %4917 = vmatpush.bf16.msra.mxu1 %v7677_v53  ;;  %v4699_v9 = vadd.f32 %v4698_v8, %v4686_v40  ;;  %v4711_v12 = vpop.f32.mrf.mxu1  ;;  %v28_v40 = vld [vmem:[%s9473_s0 + $0x38] sm:$0xff]  ;;  %v7738_v53 = vld [vmem:[%s9474_s1 + $0xe28] sm:$0xff] }
 0x1a0   :  { %4930 = vmatpush.bf16.msra.mxu2 %v7685_v54  ;;  %1128 = vst [vmem:[#allocation1] ss:$9 sm:$0xff] %v28_v40  ;;  %v7746_v54 = vld [vmem:[%s9474_s1 + $0xe68] sm:$0xff] }
 0x1a1   :  { %4943 = vmatpush.bf16.msra.mxu3 %v7693_v55  ;;  %4905 = vmatmul.bf16.vlgmr.msra.gmra.mxu0 %v1119_v60  ;;  %v4712_v15 = vadd.f32 %v4711_v12, %v4699_v9  ;;  %v7754_v55 = vld [vmem:[%s9474_s1 + $0xea8] sm:$0xff]  ;;  %v7745_v60 = vld [vmem:[%s9474_s1 + $0xe60] sm:$0xff] }
 0x1a2   :  { %4949 = vmatpush.bf16.msrb.mxu0 %v7708_v56  ;;  %4918 = vmatmul.bf16.vlgmr.msra.gmra.mxu1 %v1120_v62  ;;  %v7762_v56 = vld [vmem:[%s9474_s1 + $0xee8] sm:$0xff]  ;;  %v7753_v62 = vld [vmem:[%s9474_s1 + $0xea0] sm:$0xff] }
 0x1a3   :  { %4962 = vmatpush.bf16.msrb.mxu1 %v7716_v57  ;;  %4931 = vmatmul.bf16.vlgmr.msra.gmra.mxu2 %v1121_v61  ;;  %v7794_v40 = vld [vmem:[%s9474_s1 + $0xfe8] sm:$0xff] }
 0x1a4   :  { %4975 = vmatpush.bf16.msrb.mxu2 %v7724_v58  ;;  %4944 = vmatmul.bf16.vlgmr.msra.gmra.mxu3 %v1122_v63  ;;  %v7761_v63 = vld [vmem:[%s9474_s1 + $0xee0] sm:$0xff] }
 0x1a5   :  { %4988 = vmatpush.bf16.msrb.mxu3 %v7732_v59  ;;  %v7737_v59 = vld [vmem:[%s9474_s1 + $0xe20] sm:$0xff] }
 0x1a6   :  { %4950 = vmatpush.bf16.msrb.mxu0 %v7707_v0  ;;  %v4724_v20 = vpop.f32.mrf.mxu2  ;;  %v4700_v23 = vpop.f32.mrf.mxu0 }
 0x1a7   :  { %4963 = vmatpush.bf16.msrb.mxu1 %v7715_v1  ;;  %v4725_v21 = vadd.f32 %v4724_v20, %v4712_v15  ;;  %v4737_v22 = vpop.f32.mrf.mxu3  ;;  %v4713_v27 = vpop.f32.mrf.mxu1  ;;  %v7736_v1 = vld [vmem:[%s9474_s1 + $0xe18] sm:$0xff]  ;;  %v7734_v15 = vld [vmem:[%s9474_s1 + $0xe08] sm:$0xff]  ;;  %v7749_v23 = vld [vmem:[%s9474_s1 + $0xe80] sm:$0xff] }
 0x1a8   :  { %4976 = vmatpush.bf16.msrb.mxu2 %v7723_v2  ;;  %v7744_v2 = vld [vmem:[%s9474_s1 + $0xe58] sm:$0xff] }
 0x1a9   :  { %4989 = vmatpush.bf16.msrb.mxu3 %v7731_v3  ;;  %v9209_v24 = vadd.f32 %v4737_v22, %v4725_v21  ;;  %v7752_v3 = vld [vmem:[%s9474_s1 + $0xe98] sm:$0xff]  ;;  %v7733_v21 = vld [vmem:[%s9474_s1 + $0xe00] sm:$0xff] }
 0x1aa   :  { %4951 = vmatpush.bf16.msrb.mxu0 %v7706_v4  ;;  %v7760_v4 = vld [vmem:[%s9474_s1 + $0xed8] sm:$0xff]  ;;  %v7741_v22 = vld [vmem:[%s9474_s1 + $0xe40] sm:$0xff] }
 0x1ab   :  { %4964 = vmatpush.bf16.msrb.mxu1 %v7714_v5  ;;  %v7788_v27 = vld [vmem:[%s9474_s1 + $0xfb8] sm:$0xff] }
 0x1ac   :  { %4977 = vmatpush.bf16.msrb.mxu2 %v7722_v6 }
 0x1ad   :  { %4990 = vmatpush.bf16.msrb.mxu3 %v7730_v7 }
 0x1ae   :  { %4952 = vmatpush.bf16.msrb.mxu0 %v7705_v10  ;;  %v4726_v36 = vpop.f32.mrf.mxu2  ;;  %v7735_v10 = vld [vmem:[%s9474_s1 + $0xe10] sm:$0xff] }
 0x1af   :  { %4965 = vmatpush.bf16.msrb.mxu1 %v7713_v11  ;;  %v4739_v39 = vpop.f32.mrf.mxu3  ;;  %v7743_v11 = vld [vmem:[%s9474_s1 + $0xe50] sm:$0xff] }
 0x1b0   :  { %4978 = vmatpush.bf16.msrb.mxu2 %v7721_v13  ;;  %v7751_v13 = vld [vmem:[%s9474_s1 + $0xe90] sm:$0xff]  ;;  %v7786_v39 = vld [vmem:[%s9474_s1 + $0xfa8] sm:$0xff] }
 0x1b1   :  { %4991 = vmatpush.bf16.msrb.mxu3 %v7729_v14  ;;  %v7759_v14 = vld [vmem:[%s9474_s1 + $0xed0] sm:$0xff] }
 0x1b2   :  { %4953 = vmatpush.bf16.msrb.mxu0 %v7704_v16  ;;  %v7742_v16 = vld [vmem:[%s9474_s1 + $0xe48] sm:$0xff]  ;;  %v7795_v36 = vld [vmem:[%s9474_s1 + $0xff0] sm:$0xff] }
 0x1b3   :  { %4966 = vmatpush.bf16.msrb.mxu1 %v7712_v17  ;;  %v7750_v17 = vld [vmem:[%s9474_s1 + $0xe88] sm:$0xff] }
 0x1b4   :  { %4979 = vmatpush.bf16.msrb.mxu2 %v7720_v18  ;;  %v7758_v18 = vld [vmem:[%s9474_s1 + $0xec8] sm:$0xff] }
 0x1b5   :  { %4992 = vmatpush.bf16.msrb.mxu3 %v7728_v19 }
 0x1b6   :  { %4954 = vmatpush.bf16.msrb.mxu0 %v7703_v25  ;;  %v7772_v25 = vld [vmem:[%s9474_s1 + $0xf38] sm:$0xff] }
 0x1b7   :  { %4967 = vmatpush.bf16.msrb.mxu1 %v7711_v26  ;;  %v7780_v26 = vld [vmem:[%s9474_s1 + $0xf78] sm:$0xff] }
 0x1b8   :  { %4980 = vmatpush.bf16.msrb.mxu2 %v7719_v28  ;;  %v7796_v28 = vld [vmem:[%s9474_s1 + $0xff8] sm:$0xff] }
 0x1b9   :  { %4993 = vmatpush.bf16.msrb.mxu3 %v7727_v29  ;;  %v1129_v29 = vld [vmem:[#allocation1] sm:$0xff] }
 0x1ba   :  { %4955 = vmatpush.bf16.msrb.mxu0 %v7702_v30  ;;  %v1131_v30 = vld [vmem:[#allocation1 + $0x12] sm:$0xff] }
 0x1bb   :  { %4968 = vmatpush.bf16.msrb.mxu1 %v7710_v31  ;;  %v1130_v31 = vld [vmem:[#allocation1 + $0x9] sm:$0xff] }
 0x1bc   :  { %4981 = vmatpush.bf16.msrb.mxu2 %v7718_v32  ;;  %v1132_v32 = vld [vmem:[#allocation1 + $0x1b] sm:$0xff] }
 0x1bd   :  { %4994 = vmatpush.bf16.msrb.mxu3 %v7726_v33  ;;  %v7771_v33 = vld [vmem:[%s9474_s1 + $0xf30] sm:$0xff] }
 0x1be   :  { %4956 = vmatpush.bf16.msrb.mxu0 %v7701_v41  ;;  %v4750_v57 = vpop.f32.mrf.mxu0 }
 0x1bf   :  { %4969 = vmatpush.bf16.msrb.mxu1 %v7709_v42  ;;  %v4751_v58 = vadd.f32 %v4750_v57, %v9209_v24  ;;  %v4763_v61 = vpop.f32.mrf.mxu1  ;;  %v7757_v24 = vld [vmem:[%s9474_s1 + $0xec0] sm:$0xff] }
 0x1c0   :  { %4982 = vmatpush.bf16.msrb.mxu2 %v7717_v43  ;;  %v7769_v43 = vld [vmem:[%s9474_s1 + $0xf20] sm:$0xff] }
 0x1c1   :  { %4995 = vmatpush.bf16.msrb.mxu3 %v7725_v44  ;;  %4957 = vmatmul.bf16.vlgmr.msrb.gmra.mxu0 %v1123_v34  ;;  %v4764_v0 = vadd.f32 %v4763_v61, %v4751_v58  ;;  %v7779_v34 = vld [vmem:[%s9474_s1 + $0xf70] sm:$0xff]  ;;  %v7777_v44 = vld [vmem:[%s9474_s1 + $0xf60] sm:$0xff] }
 0x1c2   :  { %5001 = vmatpush.bf16.msra.mxu0 %v7740_v45  ;;  %4970 = vmatmul.bf16.vlgmr.msrb.gmra.mxu1 %v1124_v37  ;;  %v7770_v37 = vld [vmem:[%s9474_s1 + $0xf28] sm:$0xff]  ;;  %v7767_v58 = vld [vmem:[%s9474_s1 + $0xf10] sm:$0xff] }
 0x1c3   :  { %5014 = vmatpush.bf16.msra.mxu1 %v7748_v46  ;;  %4983 = vmatmul.bf16.vlgmr.msrb.gmra.mxu2 %v1125_v35  ;;  %v7787_v35 = vld [vmem:[%s9474_s1 + $0xfb0] sm:$0xff]  ;;  %v7785_v46 = vld [vmem:[%s9474_s1 + $0xfa0] sm:$0xff] }
 0x1c4   :  { %5027 = vmatpush.bf16.msra.mxu2 %v7756_v47  ;;  %4996 = vmatmul.bf16.vlgmr.msrb.gmra.mxu3 %v1126_v38  ;;  %v7778_v38 = vld [vmem:[%s9474_s1 + $0xf68] sm:$0xff]  ;;  %v7793_v47 = vld [vmem:[%s9474_s1 + $0xfe0] sm:$0xff]  ;;  %v7783_v61 = vld [vmem:[%s9474_s1 + $0xf90] sm:$0xff] }
 0x1c5   :  { %5040 = vmatpush.bf16.msra.mxu3 %v7764_v48 }
 0x1c6   :  { %5002 = vmatpush.bf16.msra.mxu0 %v7739_v49  ;;  %v4776_v5 = vpop.f32.mrf.mxu2  ;;  %v4752_v8 = vpop.f32.mrf.mxu0  ;;  %v7768_v49 = vld [vmem:[%s9474_s1 + $0xf18] sm:$0xff] }
 0x1c7   :  { %5015 = vmatpush.bf16.msra.mxu1 %v7747_v50  ;;  %v4777_v6 = vadd.f32 %v4776_v5, %v4764_v0  ;;  %v4789_v7 = vpop.f32.mrf.mxu3  ;;  %v4765_v12 = vpop.f32.mrf.mxu1  ;;  %v7776_v50 = vld [vmem:[%s9474_s1 + $0xf58] sm:$0xff]  ;;  %v7774_v0 = vld [vmem:[%s9474_s1 + $0xf48] sm:$0xff]  ;;  %v7765_v5 = vld [vmem:[%s9474_s1 + $0xf00] sm:$0xff] }
 0x1c8   :  { %5028 = vmatpush.bf16.msra.mxu2 %v7755_v51  ;;  %v7784_v51 = vld [vmem:[%s9474_s1 + $0xf98] sm:$0xff]  ;;  %v7789_v8 = vld [vmem:[%s9474_s1 + $0xfc0] sm:$0xff] }
 0x1c9   :  { %5041 = vmatpush.bf16.msra.mxu3 %v7763_v52  ;;  %v4790_v9 = vadd.f32 %v4789_v7, %v4777_v6  ;;  %v7792_v52 = vld [vmem:[%s9474_s1 + $0xfd8] sm:$0xff]  ;;  %v7773_v6 = vld [vmem:[%s9474_s1 + $0xf40] sm:$0xff] }
 0x1ca   :  { %5003 = vmatpush.bf16.msra.mxu0 %v7738_v53  ;;  %v7781_v7 = vld [vmem:[%s9474_s1 + $0xf80] sm:$0xff] }
 0x1cb   :  { %5016 = vmatpush.bf16.msra.mxu1 %v7746_v54  ;;  %v1136_v12 = vld [vmem:[#allocation1 + $0x3f] sm:$0xff] }
 0x1cc   :  { %5029 = vmatpush.bf16.msra.mxu2 %v7754_v55 }
 0x1cd   :  { %5042 = vmatpush.bf16.msra.mxu3 %v7762_v56 }
 0x1ce   :  { %5004 = vmatpush.bf16.msra.mxu0 %v7737_v59  ;;  %v4778_v19 = vpop.f32.mrf.mxu2  ;;  %v7775_v59 = vld [vmem:[%s9474_s1 + $0xf50] sm:$0xff] }
 0x1cf   :  { %5017 = vmatpush.bf16.msra.mxu1 %v7745_v60  ;;  %v4791_v20 = vpop.f32.mrf.mxu3 }
 0x1d0   :  { %5030 = vmatpush.bf16.msra.mxu2 %v7753_v62  ;;  %v7791_v62 = vld [vmem:[%s9474_s1 + $0xfd0] sm:$0xff] }
 0x1d1   :  { %5043 = vmatpush.bf16.msra.mxu3 %v7761_v63  ;;  %v7766_v63 = vld [vmem:[%s9474_s1 + $0xf08] sm:$0xff] }
 0x1d2   :  { %5005 = vmatpush.bf16.msra.mxu0 %v7736_v1  ;;  %v7782_v1 = vld [vmem:[%s9474_s1 + $0xf88] sm:$0xff] }
 0x1d3   :  { %5018 = vmatpush.bf16.msra.mxu1 %v7744_v2  ;;  %v7790_v2 = vld [vmem:[%s9474_s1 + $0xfc8] sm:$0xff] }
 0x1d4   :  { %5031 = vmatpush.bf16.msra.mxu2 %v7752_v3 }
 0x1d5   :  { %5044 = vmatpush.bf16.msra.mxu3 %v7760_v4 }
 0x1d6   :  { %5006 = vmatpush.bf16.msra.mxu0 %v7735_v10  ;;  %v1134_v10 = vld [vmem:[#allocation1 + $0x2d] sm:$0xff] }
 0x1d7   :  { %5019 = vmatpush.bf16.msra.mxu1 %v7743_v11  ;;  %v1135_v11 = vld [vmem:[#allocation1 + $0x36] sm:$0xff] }
 0x1d8   :  { %5032 = vmatpush.bf16.msra.mxu2 %v7751_v13 }
 0x1d9   :  { %5045 = vmatpush.bf16.msra.mxu3 %v7759_v14 }
 0x1da   :  { %5007 = vmatpush.bf16.msra.mxu0 %v7734_v15 }
 0x1db   :  { %5020 = vmatpush.bf16.msra.mxu1 %v7742_v16 }
 0x1dc   :  { %5033 = vmatpush.bf16.msra.mxu2 %v7750_v17 }
 0x1dd   :  { %5046 = vmatpush.bf16.msra.mxu3 %v7758_v18 }
 0x1de   :  { %5008 = vmatpush.bf16.msra.mxu0 %v7733_v21  ;;  %v4802_v41 = vpop.f32.mrf.mxu0 }
 0x1df   :  { %5021 = vmatpush.bf16.msra.mxu1 %v7741_v22  ;;  %v4803_v42 = vadd.f32 %v4802_v41, %v4790_v9  ;;  %v4815_v45 = vpop.f32.mrf.mxu1  ;;  %v1133_v9 = vld [vmem:[#allocation1 + $0x24] sm:$0xff]  ;;  %v7804_v41 = vld [vmem:[%s9476_s3 + $0x38] sm:$0xff] }
 0x1e0   :  { %5034 = vmatpush.bf16.msra.mxu2 %v7749_v23 }
 0x1e1   :  { %5047 = vmatpush.bf16.msra.mxu3 %v7757_v24  ;;  %5009 = vmatmul.bf16.vlgmr.msra.gmra.mxu0 %v1129_v29  ;;  %v4816_v48 = vadd.f32 %v4815_v45, %v4803_v42  ;;  %v7802_v45 = vld [vmem:[%s9476_s3 + $0x28] sm:$0xff] }
 0x1e2   :  { %5053 = vmatpush.bf16.msrb.mxu0 %v7772_v25  ;;  %5022 = vmatmul.bf16.vlgmr.msra.gmra.mxu1 %v1130_v31 }
 0x1e3   :  { %5066 = vmatpush.bf16.msrb.mxu1 %v7780_v26  ;;  %5035 = vmatmul.bf16.vlgmr.msra.gmra.mxu2 %v1131_v30 }
 0x1e4   :  { %5079 = vmatpush.bf16.msrb.mxu2 %v7788_v27  ;;  %5048 = vmatmul.bf16.vlgmr.msra.gmra.mxu3 %v1132_v32 }
 0x1e5   :  { %5092 = vmatpush.bf16.msrb.mxu3 %v7796_v28 }
 0x1e6   :  { %5054 = vmatpush.bf16.msrb.mxu0 %v7771_v33  ;;  %v4828_v53 = vpop.f32.mrf.mxu2  ;;  %v4804_v56 = vpop.f32.mrf.mxu0 }
 0x1e7   :  { %5067 = vmatpush.bf16.msrb.mxu1 %v7779_v34  ;;  %v4829_v54 = vadd.f32 %v4828_v53, %v4816_v48  ;;  %v4841_v55 = vpop.f32.mrf.mxu3  ;;  %v4817_v60 = vpop.f32.mrf.mxu1  ;;  %v7801_v48 = vld [vmem:[%s9476_s3 + $0x20] sm:$0xff]  ;;  %v7798_v53 = vld [vmem:[%s9476_s3 + $0x8] sm:$0xff] }
 0x1e8   :  { %5080 = vmatpush.bf16.msrb.mxu2 %v7787_v35 }
 0x1e9   :  { %5093 = vmatpush.bf16.msrb.mxu3 %v7795_v36  ;;  %v4842_v57 = vadd.f32 %v4841_v55, %v4829_v54 }
 0x1ea   :  { %5055 = vmatpush.bf16.msrb.mxu0 %v7770_v37 }
 0x1eb   :  { %5068 = vmatpush.bf16.msrb.mxu1 %v7778_v38 }
 0x1ec   :  { %5081 = vmatpush.bf16.msrb.mxu2 %v7786_v39 }
 0x1ed   :  { %5094 = vmatpush.bf16.msrb.mxu3 %v7794_v40 }
 0x1ee   :  { %5056 = vmatpush.bf16.msrb.mxu0 %v7769_v43  ;;  %v4830_v3 = vpop.f32.mrf.mxu2 }
 0x1ef   :  { %5069 = vmatpush.bf16.msrb.mxu1 %v7777_v44  ;;  %v4843_v4 = vpop.f32.mrf.mxu3  ;;  %v7803_v44 = vld [vmem:[%s9476_s3 + $0x30] sm:$0xff] }
 0x1f0   :  { %5082 = vmatpush.bf16.msrb.mxu2 %v7785_v46 }
 0x1f1   :  { %5095 = vmatpush.bf16.msrb.mxu3 %v7793_v47 }
 0x1f2   :  { %5057 = vmatpush.bf16.msrb.mxu0 %v7768_v49  ;;  %v7800_v49 = vld [vmem:[%s9476_s3 + $0x18] sm:$0xff] }
 0x1f3   :  { %5070 = vmatpush.bf16.msrb.mxu1 %v7776_v50 }
 0x1f4   :  { %5083 = vmatpush.bf16.msrb.mxu2 %v7784_v51  ;;  %v7799_v51 = vld [vmem:[%s9476_s3 + $0x10] sm:$0xff] }
 0x1f5   :  { %5096 = vmatpush.bf16.msrb.mxu3 %v7792_v52 }
 0x1f6   :  { %5058 = vmatpush.bf16.msrb.mxu0 %v7767_v58  ;;  %v7797_v58 = vld [vmem:[%s9476_s3] sm:$0xff] }
 0x1f7   :  { %5071 = vmatpush.bf16.msrb.mxu1 %v7775_v59 }
 0x1f8   :  { %5084 = vmatpush.bf16.msrb.mxu2 %v7783_v61 }
 0x1f9   :  { %5097 = vmatpush.bf16.msrb.mxu3 %v7791_v62 }
 0x1fa   :  { %5059 = vmatpush.bf16.msrb.mxu0 %v7766_v63 }
 0x1fb   :  { %5072 = vmatpush.bf16.msrb.mxu1 %v7774_v0 }
 0x1fc   :  { %5085 = vmatpush.bf16.msrb.mxu2 %v7782_v1 }
 0x1fd   :  { %5098 = vmatpush.bf16.msrb.mxu3 %v7790_v2 }
 0x1fe   :  { %5060 = vmatpush.bf16.msrb.mxu0 %v7765_v5  ;;  %v4854_v13 = vpop.f32.mrf.mxu0 }
 0x1ff   :  { %5073 = vmatpush.bf16.msrb.mxu1 %v7773_v6  ;;  %v4855_v14 = vadd.f32 %v4854_v13, %v4842_v57  ;;  %v4867_v15 = vpop.f32.mrf.mxu1 }
 0x200   :  { %5086 = vmatpush.bf16.msrb.mxu2 %v7781_v7 }
 0x201   :  { %5099 = vmatpush.bf16.msrb.mxu3 %v7789_v8  ;;  %5061 = vmatmul.bf16.vlgmr.msrb.gmra.mxu0 %v1133_v9  ;;  %v4868_v16 = vadd.f32 %v4867_v15, %v4855_v14 }
 0x202   :  { %5074 = vmatmul.bf16.vlgmr.msrb.gmra.mxu1 %v1134_v10  ;;  %5175 = vmatpush.bf16.msra.mxu0 %v7804_v41 }
 0x203   :  { %5087 = vmatmul.bf16.vlgmr.msrb.gmra.mxu2 %v1135_v11 }
 0x204   :  { %5100 = vmatmul.bf16.vlgmr.msrb.gmra.mxu3 %v1136_v12 }
 0x206   :  { %v4880_v17 = vpop.f32.mrf.mxu2  ;;  %v4856_v20 = vpop.f32.mrf.mxu0  ;;  %5176 = vmatpush.bf16.msra.mxu0 %v7803_v44 }
 0x207   :  { %v4881_v18 = vadd.f32 %v4880_v17, %v4868_v16  ;;  %v4893_v19 = vpop.f32.mrf.mxu3  ;;  %v4869_v22 = vpop.f32.mrf.mxu1 }
 0x209   :  { %v4894_v21 = vadd.f32 %v4893_v19, %v4881_v18  ;;  %v7807_v19 = vld [vmem:[%s9477_s4] ss:$0 sm:$0xff] }
 0x20a   :  { %5177 = vmatpush.bf16.msra.mxu0 %v7802_v45 }
 0x20e   :  { %v4882_v23 = vpop.f32.mrf.mxu2  ;;  %5178 = vmatpush.bf16.msra.mxu0 %v7801_v48 }
 0x20f   :  { %v4895_v24 = vpop.f32.mrf.mxu3 }
 0x212   :  { %5179 = vmatpush.bf16.msra.mxu0 %v7800_v49 }
 0x216   :  { %5180 = vmatpush.bf16.msra.mxu0 %v7799_v51 }
 0x21a   :  { %5181 = vmatpush.bf16.msra.mxu0 %v7798_v53 }
 0x21e   :  { %v4906_v25 = vpop.f32.mrf.mxu0  ;;  %5182 = vmatpush.bf16.msra.mxu0 %v7797_v58 }
 0x21f   :  { %v4907_v26 = vadd.f32 %v4906_v25, %v4894_v21  ;;  %v4919_v27 = vpop.f32.mrf.mxu1 }
 0x221   :  { %v4920_v28 = vadd.f32 %v4919_v27, %v4907_v26 }
 0x226   :  { %v4932_v29 = vpop.f32.mrf.mxu2  ;;  %v4908_v32 = vpop.f32.mrf.mxu0 }
 0x227   :  { %v4933_v30 = vadd.f32 %v4932_v29, %v4920_v28  ;;  %v4945_v31 = vpop.f32.mrf.mxu3  ;;  %v4921_v34 = vpop.f32.mrf.mxu1 }
 0x229   :  { %v4946_v33 = vadd.f32 %v4945_v31, %v4933_v30 }
 0x22e   :  { %v4934_v35 = vpop.f32.mrf.mxu2 }
 0x22f   :  { %v4947_v36 = vpop.f32.mrf.mxu3 }
 0x23e   :  { %v4958_v37 = vpop.f32.mrf.mxu0 }
 0x23f   :  { %v4971_v38 = vpop.f32.mrf.mxu1  ;;  %v4959_v55 = vadd.f32 %v4958_v37, %v4946_v33 }
 0x241   :  { %v4972_v60 = vadd.f32 %v4971_v38, %v4959_v55 }
 0x246   :  { %v4984_v39 = vpop.f32.mrf.mxu2  ;;  %v4960_v42 = vpop.f32.mrf.mxu0 }
 0x247   :  { %v4997_v40 = vpop.f32.mrf.mxu3  ;;  %v4973_v43 = vpop.f32.mrf.mxu1  ;;  %v4985_v61 = vadd.f32 %v4984_v39, %v4972_v60 }
 0x249   :  { %v4998_v0 = vadd.f32 %v4997_v40, %v4985_v61 }
 0x24e   :  { %v4986_v46 = vpop.f32.mrf.mxu2 }
 0x24f   :  { %v4999_v47 = vpop.f32.mrf.mxu3 }
 0x25e   :  { %v5010_v50 = vpop.f32.mrf.mxu0 }
 0x25f   :  { %v5023_v52 = vpop.f32.mrf.mxu1  ;;  %v5011_v1 = vadd.f32 %v5010_v50, %v4998_v0 }
 0x261   :  { %v5024_v2 = vadd.f32 %v5023_v52, %v5011_v1 }
 0x266   :  { %v5036_v54 = vpop.f32.mrf.mxu2  ;;  %v5012_v57 = vpop.f32.mrf.mxu0 }
 0x267   :  { %v5049_v56 = vpop.f32.mrf.mxu3  ;;  %v5025_v59 = vpop.f32.mrf.mxu1  ;;  %v5037_v3 = vadd.f32 %v5036_v54, %v5024_v2 }
 0x269   :  { %v5050_v4 = vadd.f32 %v5049_v56, %v5037_v3 }
 0x26e   :  { %v5038_v62 = vpop.f32.mrf.mxu2 }
 0x26f   :  { %v5051_v63 = vpop.f32.mrf.mxu3 }
 0x27e   :  { %v5062_v5 = vpop.f32.mrf.mxu0 }
 0x27f   :  { %v5075_v6 = vpop.f32.mrf.mxu1  ;;  %v5063_v7 = vadd.f32 %v5062_v5, %v5050_v4 }
 0x281   :  { %v5076_v8 = vadd.f32 %v5075_v6, %v5063_v7 }
 0x286   :  { %v5088_v9 = vpop.f32.mrf.mxu2  ;;  %v5064_v12 = vpop.f32.mrf.mxu0 }
 0x287   :  { %v5101_v10 = vpop.f32.mrf.mxu3  ;;  %v5089_v11 = vadd.f32 %v5088_v9, %v5076_v8  ;;  %v5077_v13 = vpop.f32.mrf.mxu1 }
 0x289   :  { %v5102_v14 = vadd.f32 %v5101_v10, %v5089_v11 }
 0x28b   :  { %v5105_v15 = vmax.f32 %v5102_v14, 0.0 }
 0x28d   :  { %v5106_v16 = vpack.c.bf16 %v5105_v15, %v5105_v15 }
 0x28e   :  { %v5090_v17 = vpop.f32.mrf.mxu2 }
 0x28f   :  { %v5103_v18 = vpop.f32.mrf.mxu3  ;;  %5183 = vmatmul.bf16.vlgmr.msra.gmra.mxu0 %v5106_v16 }
 0x30c   :  { %v5184_v20 = vpop.f32.mrf.mxu0 }
 0x30d   :  { %v5185_v21 = vadd.f32 %v7807_v19, %v5184_v20 }
 0x30f   :  { %5188 = vst [vmem:[#allocation2] sm:$0x3] %v5185_v21 }
 0x310   :  { %5199 = dma.vmem_to_hbm [thread:$0]  %s5195_s19, 32, %s5197_s22, [#allocation3]  }
 0x314   :  { %v5186_v22 = vpop.f32.mrf.mxu0 }
 0x315   :  { %7832 = dma.done.wait [#allocation3], 32  }
 0x316   :  { %7833 = vsyncadd [#allocation3], 4294967264 }
 0x317   :  { %5204 = vsyncpa [#allocation3], 1 }

</bundles_post_ra>
